<compile_context>
chip_gen: v7x
topology: tpu7x:2x2x1
jax: 0.10.0
libtpu: 0.0.40
codegen_flags: <defaults>
</compile_context>

<pallas_src>
import functools

import jax
import jax.numpy as jnp
from jax.experimental import pallas as pl
from jax.experimental.pallas import tpu as pltpu


_VMEM_LIMIT = 32 * 1024 * 1024          # fits v5e/v6e (128 MiB) and v7x (64 MiB)
_DN_NHWC = ("NHWC", "HWIO", "NHWC")


# ----------------------------- Pallas kernels ------------------------------ #
def _matmul_bias_act_kernel(x_ref, w_ref, b_ref, o_ref, *, relu):
    # (tm, K) @ (K, N) on the MXU (f32 accumulation), bias + optional ReLU
    # epilogue on the VPU in f32.
    acc = jnp.dot(x_ref[...], w_ref[...], preferred_element_type=jnp.float32)
    acc = acc + b_ref[...]
    if relu:
        acc = jnp.maximum(acc, 0.0)
    o_ref[...] = acc.astype(o_ref.dtype)


def _conv2_fc_head_kernel(p2_ref, w2_ref, b2_ref, wf_ref, bf_ref,
                          wo_ref, bo_ref, o_ref, *, n_pos, k_patch):
    # Fused conv2 (49 per-position patch matmuls) + ReLU + fc1 accumulation
    # + ReLU + output head.  The 32-wide conv2 activation and the 256-wide
    # hidden never leave VMEM/vregs; only the 128-lane padded head is stored.
    tb = o_ref.shape[0]
    n_hid = wf_ref.shape[2]
    w2 = w2_ref[...]
    b2 = b2_ref[...]
    h = jnp.zeros((tb, n_hid), jnp.float32)
    for s in range(n_pos):                                    # static unroll
        patch = p2_ref[:, s * k_patch:(s + 1) * k_patch]      # (tb, 256)
        t = jnp.dot(patch, w2, preferred_element_type=jnp.float32)
        t = jnp.maximum(t + b2, 0.0)                          # conv2 out @ pos s
        h = h + jnp.dot(t.astype(wf_ref.dtype), wf_ref[s],
                        preferred_element_type=jnp.float32)
    h = jnp.maximum(h + bf_ref[...], 0.0)
    y = jnp.dot(h.astype(wo_ref.dtype), wo_ref[...],
                preferred_element_type=jnp.float32)
    o_ref[...] = (y + bo_ref[...]).astype(o_ref.dtype)


# ------------------------------ call wrappers ------------------------------- #
def _pick_tile(m, candidates):
    for t in candidates:
        if m % t == 0:
            return t
    return m


def matmul_bias_act(x, w, b, *, relu, out_dtype):
    """relu?(x @ w + b).  x: (M, K), w: (K, N) (pre-transposed), b: (1, N) f32."""
    m, k = x.shape
    kw_, n = w.shape
    assert k == kw_, (k, kw_)
    tm = _pick_tile(m, (2048, 1024, 512, 256, 128))
    kern = functools.partial(_matmul_bias_act_kernel, relu=relu)
    return pl.pallas_call(
        kern,
        out_shape=jax.ShapeDtypeStruct((m, n), out_dtype),
        grid=(m // tm,),
        in_specs=[
            pl.BlockSpec((tm, k), lambda i: (i, 0)),
            pl.BlockSpec((k, n), lambda i: (0, 0)),
            pl.BlockSpec((1, n), lambda i: (0, 0)),
        ],
        out_specs=pl.BlockSpec((tm, n), lambda i: (i, 0)),
        compiler_params=pltpu.CompilerParams(
            dimension_semantics=("parallel",),
            vmem_limit_bytes=_VMEM_LIMIT),
    )(x, w, b)


def conv2_fc_head(p2, w2, b2, wf3, bf, wo, bo, *, n_pos, k_patch):
    """Fused conv2 matmul + ReLU + fc1 + ReLU + output head, batch-tiled."""
    b, kcols = p2.shape
    n_out = wo.shape[1]
    tb = _pick_tile(b, (256, 128, 64, 32, 16, 8))
    kern = functools.partial(_conv2_fc_head_kernel, n_pos=n_pos, k_patch=k_patch)
    return pl.pallas_call(
        kern,
        out_shape=jax.ShapeDtypeStruct((b, n_out), jnp.float32),
        grid=(b // tb,),
        in_specs=[
            pl.BlockSpec((tb, kcols), lambda i: (i, 0)),
            pl.BlockSpec(w2.shape, lambda i: (0, 0)),
            pl.BlockSpec(b2.shape, lambda i: (0, 0)),
            pl.BlockSpec(wf3.shape, lambda i: (0, 0, 0)),
            pl.BlockSpec(bf.shape, lambda i: (0, 0)),
            pl.BlockSpec(wo.shape, lambda i: (0, 0)),
            pl.BlockSpec(bo.shape, lambda i: (0, 0)),
        ],
        out_specs=pl.BlockSpec((tb, n_out), lambda i: (i, 0)),
        compiler_params=pltpu.CompilerParams(
            dimension_semantics=("parallel",),
            vmem_limit_bytes=_VMEM_LIMIT),
    )(p2, w2, b2, wf3, bf, wo, bo)


# --------------------- one-time parameter preparation ---------------------- #
def _patch_perm(c, kh, kw):
    """Permutation mapping conv_general_dilated_patches' feature ordering to
    PyTorch's weight.reshape(O, C*KH*KW) ordering, derived numerically."""
    torch_idx = (jnp.arange(c)[None, None, :] * (kh * kw)
                 + jnp.arange(kh)[:, None, None] * kw
                 + jnp.arange(kw)[None, :, None]).astype(jnp.float32)
    probe = torch_idx[None]                                   # (1, KH, KW, C) NHWC
    p = jax.lax.conv_general_dilated_patches(
        probe, (kh, kw), (1, 1), "VALID", dimension_numbers=_DN_NHWC)
    return jnp.round(p.reshape(-1)).astype(jnp.int32)         # (C*KH*KW,)


def prepare_params(params, dtype=jnp.bfloat16):
    """Fold every reshape / transpose / permutation / pad / cast out of the
    per-step forward (one-time preprocessing)."""
    w1, b1 = params["w1"], params["b1"]          # (16, C, 8, 8), (16,)
    w2, b2 = params["w2"], params["b2"]          # (32, 16, 4, 4), (32,)
    wf, bf = params["wfc1"], params["bfc1"]      # (256, 1568),    (256,)
    wo, bo = params["wout"], params["bout"]      # (A, 256),       (A,)
    a = wo.shape[0]

    perm1 = _patch_perm(w1.shape[1], 8, 8)
    perm2 = _patch_perm(w2.shape[1], 4, 4)
    w1m = w1.reshape(w1.shape[0], -1)[:, perm1].T.astype(dtype)   # (C*64, 16)
    w2m = w2.reshape(w2.shape[0], -1)[:, perm2].T.astype(dtype)   # (256, 32)

    # fc1 weight per conv2 spatial position: wf3[s, c, o] = wf[o, c*49 + s]
    # (PyTorch flattens conv2's NCHW output as c*49 + s).
    n_hid, fc_in = wf.shape
    c2 = w2.shape[0]
    n_pos = fc_in // c2
    wf3 = jnp.transpose(wf.reshape(n_hid, c2, n_pos), (2, 1, 0)).astype(dtype)

    # Output head padded to a multiple of 128 lanes (unmasked, lane-dense
    # stores); the wrapper slices [:, :A].
    n_out = ((a + 127) // 128) * 128
    wom = jnp.zeros((wo.shape[1], n_out), dtype).at[:, :a].set(wo.T.astype(dtype))
    bom = jnp.zeros((1, n_out), jnp.float32).at[:, :a].set(bo.astype(jnp.float32))

    return {
        "w1": w1m, "b1": b1.reshape(1, -1).astype(jnp.float32),
        "w2": w2m, "b2": b2.reshape(1, -1).astype(jnp.float32),
        "wf3": wf3, "bf": bf.reshape(1, -1).astype(jnp.float32),
        "wo": wom, "bo": bom,
    }


# ------------------------------ forward pass -------------------------------- #
@functools.partial(jax.jit, static_argnames=("action_space",))
def qnetwork_forward(x, prep, *, action_space):
    """x: (B, C, H, W) NCHW float32 (PyTorch convention)."""
    b = x.shape[0]
    dt = prep["w1"].dtype

    xh = jnp.transpose(x, (0, 2, 3, 1)).astype(dt)              # NHWC (tiny)

    # conv1 as im2col matmul (bias + ReLU fused in the kernel)
    p1 = jax.lax.conv_general_dilated_patches(
        xh, (8, 8), (4, 4), "VALID", dimension_numbers=_DN_NHWC)   # (B,16,16,C*64)
    oh1, ow1 = p1.shape[1], p1.shape[2]
    p1 = p1.reshape(b * oh1 * ow1, p1.shape[3])
    y1 = matmul_bias_act(p1, prep["w1"], prep["b1"], relu=True, out_dtype=dt)
    y1 = y1.reshape(b, oh1, ow1, y1.shape[-1])                  # NHWC

    # conv2 patch extraction (small contiguous copies); the conv2 matmul + fc1
    # + output head run fused in a single batch-tiled kernel.
    # TODO(synk): small-batch fast path — do this patch extraction (and conv1)
    # in-kernel with static window slices to remove the remaining HBM traffic.
    p2 = jax.lax.conv_general_dilated_patches(
        y1, (4, 4), (2, 2), "VALID", dimension_numbers=_DN_NHWC)   # (B,7,7,256)
    n_pos = p2.shape[1] * p2.shape[2]                           # 49
    k_patch = p2.shape[3]                                       # 256
    p2 = p2.reshape(b, n_pos * k_patch)                         # (B, 12544)
    out = conv2_fc_head(p2, prep["w2"], prep["b2"], prep["wf3"], prep["bf"],
                        prep["wo"], prep["bo"], n_pos=n_pos, k_patch=k_patch)
    return out[:, :action_space]


# ------------------------ init + pure-JAX reference ------------------------- #
def init_params(key, input_channels, action_space):
    """Deterministic PyTorch-style uniform(-1/sqrt(fan_in), 1/sqrt(fan_in))."""
    ks = jax.random.split(key, 8)

    def u(k, shape, fan_in):
        bound = 1.0 / jnp.sqrt(fan_in)
        return jax.random.uniform(k, shape, jnp.float32, -bound, bound)

    fc_in = 32 * 7 * 7
    return {
        "w1": u(ks[0], (16, input_channels, 8, 8), input_channels * 8 * 8),
        "b1": u(ks[1], (16,), input_channels * 8 * 8),
        "w2": u(ks[2], (32, 16, 4, 4), 16 * 4 * 4),
        "b2": u(ks[3], (32,), 16 * 4 * 4),
        "wfc1": u(ks[4], (256, fc_in), fc_in),
        "bfc1": u(ks[5], (256,), fc_in),
        "wout": u(ks[6], (action_space, 256), 256),
        "bout": u(ks[7], (action_space,), 256),
    }


def qnetwork_reference(x, params):
    dn = jax.lax.conv_dimension_numbers(x.shape, params["w1"].shape,
                                        ("NCHW", "OIHW", "NCHW"))
    y = jax.lax.conv_general_dilated(x, params["w1"], (4, 4), "VALID",
                                     dimension_numbers=dn)
    y = jax.nn.relu(y + params["b1"][None, :, None, None])
    dn2 = jax.lax.conv_dimension_numbers(y.shape, params["w2"].shape,
                                         ("NCHW", "OIHW", "NCHW"))
    y = jax.lax.conv_general_dilated(y, params["w2"], (2, 2), "VALID",
                                     dimension_numbers=dn2)
    y = jax.nn.relu(y + params["b2"][None, :, None, None])
    y = y.reshape(y.shape[0], -1)
    y = jax.nn.relu(y @ params["wfc1"].T + params["bfc1"])
    return y @ params["wout"].T + params["bout"]


if __name__ == "__main__":
    B, C, H, W = 2, 4, 68, 68       # 68x68 -> conv1 16x16 -> conv2 7x7 (=32*7*7)
    action_space = 6

    key = jax.random.PRNGKey(0)
    kx, kp = jax.random.split(key)
    x = jax.random.normal(kx, (B, C, H, W), jnp.float32)
    params = init_params(kp, C, action_space)

    ref = jax.block_until_ready(qnetwork_reference(x, params))

    # Structural correctness check with f32 operands (tight tolerance).
    prep_f32 = prepare_params(params, dtype=jnp.float32)
    out_f32 = jax.block_until_ready(
        qnetwork_forward(x, prep_f32, action_space=action_space))
    assert out_f32.shape == (B, action_space), out_f32.shape
    assert jnp.allclose(out_f32, ref, atol=5e-4, rtol=5e-4), \
        float(jnp.max(jnp.abs(out_f32 - ref)))

    # Performance configuration: bf16 MXU operands, f32 accumulation.
    prep = prepare_params(params)                      # one-time weight prep
    out = jax.block_until_ready(
        qnetwork_forward(x, prep, action_space=action_space))
    assert out.shape == (B, action_space), out.shape
    assert jnp.allclose(out, ref, atol=2e-2, rtol=5e-2), \
        float(jnp.max(jnp.abs(out - ref)))

    print("KERNEL_OK")
</pallas_src>

<mosaic_0001>
module attributes {stable_mosaic.version = 11 : i64} {
  func.func @_matmul_bias_act_kernel(%arg0: i32, %arg1: memref<512x256xf32, #tpu.memory_space<vmem>>, %arg2: memref<256x16xf32, #tpu.memory_space<vmem>>, %arg3: memref<1x16xf32, #tpu.memory_space<vmem>>, %arg4: memref<512x16xf32, #tpu.memory_space<vmem>>) attributes {dimension_semantics = [#tpu.dimension_semantics<parallel>], iteration_bounds = array<i64: 1>, scalar_prefetch = 0 : i64, scratch_operands = 0 : i64, tpu.core_type = #tpu.core_type<tc>, window_params = [{transform_indices = @transform_0, window_bounds = array<i64: 512, 256>}, {pipeline_mode = #tpu.pipeline_mode<synchronous>, transform_indices = @transform_1, window_bounds = array<i64: 256, 16>}, {pipeline_mode = #tpu.pipeline_mode<synchronous>, transform_indices = @transform_2, window_bounds = array<i64: 1, 16>}, {transform_indices = @transform_3, window_bounds = array<i64: 512, 16>}]} {
    %c0 = arith.constant 0 : index
    %c0_0 = arith.constant 0 : index
    %0 = vector.load %arg1[%c0, %c0_0] : memref<512x256xf32, #tpu.memory_space<vmem>>, vector<512x256xf32>
    %c0_1 = arith.constant 0 : index
    %c0_2 = arith.constant 0 : index
    %1 = vector.load %arg2[%c0_1, %c0_2] : memref<256x16xf32, #tpu.memory_space<vmem>>, vector<256x16xf32>
    %cst = arith.constant dense<0.000000e+00> : vector<512x16xf32>
    %2 = tpu.matmul %0, %1, %cst {dimension_numbers = #tpu.dot_dimension_numbers<[1], [0], [0], [1], [0, 0, 1, 1], [], []>} : vector<512x256xf32>, vector<256x16xf32>, vector<512x16xf32> -> vector<512x16xf32>
    %c0_3 = arith.constant 0 : index
    %c0_4 = arith.constant 0 : index
    %3 = vector.load %arg3[%c0_3, %c0_4] : memref<1x16xf32, #tpu.memory_space<vmem>>, vector<1x16xf32>
    %4 = vector.broadcast %3 : vector<1x16xf32> to vector<512x16xf32>
    %5 = arith.addf %2, %4 : vector<512x16xf32>
    %cst_5 = arith.constant 0.000000e+00 : f32
    %6 = vector.broadcast %cst_5 : f32 to vector<512x16xf32>
    %7 = arith.maximumf %5, %6 : vector<512x16xf32>
    %c0_6 = arith.constant 0 : index
    %c0_7 = arith.constant 0 : index
    %8 = vector.load %arg4[%c0_6, %c0_7] : memref<512x16xf32, #tpu.memory_space<vmem>>, vector<512x16xf32>
    tpu.vector_store %arg4[%c0_6, %c0_7], %7 {strides = array<i32>} : memref<512x16xf32, #tpu.memory_space<vmem>>, vector<512x16xf32>,
    return
  }
  func.func @transform_0(%arg0: i32) -> (i32, i32) {
    %c0_i32 = arith.constant 0 : i32
    %c0_i32_0 = arith.constant 0 : i32
    return %arg0, %c0_i32 : i32, i32
  }
  func.func @transform_1(%arg0: i32) -> (i32, i32) {
    %c0_i32 = arith.constant 0 : i32
    %c0_i32_0 = arith.constant 0 : i32
    %c0_i32_1 = arith.constant 0 : i32
    return %c0_i32, %c0_i32_0 : i32, i32
  }
  func.func @transform_2(%arg0: i32) -> (i32, i32) {
    %c0_i32 = arith.constant 0 : i32
    %c0_i32_0 = arith.constant 0 : i32
    %c0_i32_1 = arith.constant 0 : i32
    return %c0_i32, %c0_i32_0 : i32, i32
  }
  func.func @transform_3(%arg0: i32) -> (i32, i32) {
    %c0_i32 = arith.constant 0 : i32
    %c0_i32_0 = arith.constant 0 : i32
    return %arg0, %c0_i32 : i32, i32
  }
}

module attributes {stable_mosaic.version = 11 : i64} {
  func.func @_conv2_fc_head_kernel(%arg0: i32, %arg1: memref<2x12544xf32, #tpu.memory_space<vmem>>, %arg2: memref<256x32xf32, #tpu.memory_space<vmem>>, %arg3: memref<1x32xf32, #tpu.memory_space<vmem>>, %arg4: memref<49x32x256xf32, #tpu.memory_space<vmem>>, %arg5: memref<1x256xf32, #tpu.memory_space<vmem>>, %arg6: memref<256x128xf32, #tpu.memory_space<vmem>>, %arg7: memref<1x128xf32, #tpu.memory_space<vmem>>, %arg8: memref<2x128xf32, #tpu.memory_space<vmem>>) attributes {dimension_semantics = [#tpu.dimension_semantics<parallel>], iteration_bounds = array<i64: 1>, scalar_prefetch = 0 : i64, scratch_operands = 0 : i64, tpu.core_type = #tpu.core_type<tc>, window_params = [{transform_indices = @transform_0, window_bounds = array<i64: 2, 12544>}, {pipeline_mode = #tpu.pipeline_mode<synchronous>, transform_indices = @transform_1, window_bounds = array<i64: 256, 32>}, {pipeline_mode = #tpu.pipeline_mode<synchronous>, transform_indices = @transform_2, window_bounds = array<i64: 1, 32>}, {pipeline_mode = #tpu.pipeline_mode<synchronous>, transform_indices = @transform_3, window_bounds = array<i64: 49, 32, 256>}, {pipeline_mode = #tpu.pipeline_mode<synchronous>, transform_indices = @transform_4, window_bounds = array<i64: 1, 256>}, {pipeline_mode = #tpu.pipeline_mode<synchronous>, transform_indices = @transform_5, window_bounds = array<i64: 256, 128>}, {pipeline_mode = #tpu.pipeline_mode<synchronous>, transform_indices = @transform_6, window_bounds = array<i64: 1, 128>}, {transform_indices = @transform_7, window_bounds = array<i64: 2, 128>}]} {
    %c0 = arith.constant 0 : index
    %c0_0 = arith.constant 0 : index
    %0 = vector.load %arg2[%c0, %c0_0] : memref<256x32xf32, #tpu.memory_space<vmem>>, vector<256x32xf32>
    %c0_1 = arith.constant 0 : index
    %c0_2 = arith.constant 0 : index
    %1 = vector.load %arg3[%c0_1, %c0_2] : memref<1x32xf32, #tpu.memory_space<vmem>>, vector<1x32xf32>
    %cst = arith.constant 0.000000e+00 : f32
    %2 = vector.broadcast %cst : f32 to vector<2x256xf32>
    %c0_3 = arith.constant 0 : index
    %c0_4 = arith.constant 0 : index
    %3 = vector.load %arg1[%c0_3, %c0_4] : memref<2x12544xf32, #tpu.memory_space<vmem>>, vector<2x256xf32>
    %cst_5 = arith.constant dense<0.000000e+00> : vector<2x32xf32>
    %4 = tpu.matmul %3, %0, %cst_5 {dimension_numbers = #tpu.dot_dimension_numbers<[1], [0], [0], [1], [0, 0, 1, 1], [], []>} : vector<2x256xf32>, vector<256x32xf32>, vector<2x32xf32> -> vector<2x32xf32>
    %5 = vector.broadcast %1 : vector<1x32xf32> to vector<2x32xf32>
    %6 = arith.addf %4, %5 : vector<2x32xf32>
    %cst_6 = arith.constant 0.000000e+00 : f32
    %7 = vector.broadcast %cst_6 : f32 to vector<2x32xf32>
    %8 = arith.maximumf %6, %7 : vector<2x32xf32>
    %c0_7 = arith.constant 0 : index
    %c0_8 = arith.constant 0 : index
    %c0_9 = arith.constant 0 : index
    %9 = vector.load %arg4[%c0_7, %c0_8, %c0_9] : memref<49x32x256xf32, #tpu.memory_space<vmem>>, vector<1x32x256xf32>
    %10 = vector.shape_cast %9 : vector<1x32x256xf32> to vector<32x256xf32>
    %cst_10 = arith.constant dense<0.000000e+00> : vector<2x256xf32>
    %11 = tpu.matmul %8, %10, %cst_10 {dimension_numbers = #tpu.dot_dimension_numbers<[1], [0], [0], [1], [0, 0, 1, 1], [], []>} : vector<2x32xf32>, vector<32x256xf32>, vector<2x256xf32> -> vector<2x256xf32>
    %12 = arith.addf %2, %11 : vector<2x256xf32>
    %c0_11 = arith.constant 0 : index
    %c256 = arith.constant 256 : index
    %13 = vector.load %arg1[%c0_11, %c256] : memref<2x12544xf32, #tpu.memory_space<vmem>>, vector<2x256xf32>
    %cst_12 = arith.constant dense<0.000000e+00> : vector<2x32xf32>
    %14 = tpu.matmul %13, %0, %cst_12 {dimension_numbers = #tpu.dot_dimension_numbers<[1], [0], [0], [1], [0, 0, 1, 1], [], []>} : vector<2x256xf32>, vector<256x32xf32>, vector<2x32xf32> -> vector<2x32xf32>
    %15 = vector.broadcast %1 : vector<1x32xf32> to vector<2x32xf32>
    %16 = arith.addf %14, %15 : vector<2x32xf32>
    %cst_13 = arith.constant 0.000000e+00 : f32
    %17 = vector.broadcast %cst_13 : f32 to vector<2x32xf32>
    %18 = arith.maximumf %16, %17 : vector<2x32xf32>
    %c1 = arith.constant 1 : index
    %c0_14 = arith.constant 0 : index
    %c0_15 = arith.constant 0 : index
    %19 = vector.load %arg4[%c1, %c0_14, %c0_15] : memref<49x32x256xf32, #tpu.memory_space<vmem>>, vector<1x32x256xf32>
    %20 = vector.shape_cast %19 : vector<1x32x256xf32> to vector<32x256xf32>
    %cst_16 = arith.constant dense<0.000000e+00> : vector<2x256xf32>
    %21 = tpu.matmul %18, %20, %cst_16 {dimension_numbers = #tpu.dot_dimension_numbers<[1], [0], [0], [1], [0, 0, 1, 1], [], []>} : vector<2x32xf32>, vector<32x256xf32>, vector<2x256xf32> -> vector<2x256xf32>
    %22 = arith.addf %12, %21 : vector<2x256xf32>
    %c0_17 = arith.constant 0 : index
    %c512 = arith.constant 512 : index
    %23 = vector.load %arg1[%c0_17, %c512] : memref<2x12544xf32, #tpu.memory_space<vmem>>, vector<2x256xf32>
    %cst_18 = arith.constant dense<0.000000e+00> : vector<2x32xf32>
    %24 = tpu.matmul %23, %0, %cst_18 {dimension_numbers = #tpu.dot_dimension_numbers<[1], [0], [0], [1], [0, 0, 1, 1], [], []>} : vector<2x256xf32>, vector<256x32xf32>, vector<2x32xf32> -> vector<2x32xf32>
    %25 = vector.broadcast %1 : vector<1x32xf32> to vector<2x32xf32>
    %26 = arith.addf %24, %25 : vector<2x32xf32>
    %cst_19 = arith.constant 0.000000e+00 : f32
    %27 = vector.broadcast %cst_19 : f32 to vector<2x32xf32>
    %28 = arith.maximumf %26, %27 : vector<2x32xf32>
    %c2 = arith.constant 2 : index
    %c0_20 = arith.constant 0 : index
    %c0_21 = arith.constant 0 : index
    %29 = vector.load %arg4[%c2, %c0_20, %c0_21] : memref<49x32x256xf32, #tpu.memory_space<vmem>>, vector<1x32x256xf32>
    %30 = vector.shape_cast %29 : vector<1x32x256xf32> to vector<32x256xf32>
    %cst_22 = arith.constant dense<0.000000e+00> : vector<2x256xf32>
    %31 = tpu.matmul %28, %30, %cst_22 {dimension_numbers = #tpu.dot_dimension_numbers<[1], [0], [0], [1], [0, 0, 1, 1], [], []>} : vector<2x32xf32>, vector<32x256xf32>, vector<2x256xf32> -> vector<2x256xf32>
    %32 = arith.addf %22, %31 : vector<2x256xf32>
    %c0_23 = arith.constant 0 : index
    %c768 = arith.constant 768 : index
    %33 = vector.load %arg1[%c0_23, %c768] : memref<2x12544xf32, #tpu.memory_space<vmem>>, vector<2x256xf32>
    %cst_24 = arith.constant dense<0.000000e+00> : vector<2x32xf32>
    %34 = tpu.matmul %33, %0, %cst_24 {dimension_numbers = #tpu.dot_dimension_numbers<[1], [0], [0], [1], [0, 0, 1, 1], [], []>} : vector<2x256xf32>, vector<256x32xf32>, vector<2x32xf32> -> vector<2x32xf32>
    %35 = vector.broadcast %1 : vector<1x32xf32> to vector<2x32xf32>
    %36 = arith.addf %34, %35 : vector<2x32xf32>
    %cst_25 = arith.constant 0.000000e+00 : f32
    %37 = vector.broadcast %cst_25 : f32 to vector<2x32xf32>
    %38 = arith.maximumf %36, %37 : vector<2x32xf32>
    %c3 = arith.constant 3 : index
    %c0_26 = arith.constant 0 : index
    %c0_27 = arith.constant 0 : index
    %39 = vector.load %arg4[%c3, %c0_26, %c0_27] : memref<49x32x256xf32, #tpu.memory_space<vmem>>, vector<1x32x256xf32>
    %40 = vector.shape_cast %39 : vector<1x32x256xf32> to vector<32x256xf32>
    %cst_28 = arith.constant dense<0.000000e+00> : vector<2x256xf32>
    %41 = tpu.matmul %38, %40, %cst_28 {dimension_numbers = #tpu.dot_dimension_numbers<[1], [0], [0], [1], [0, 0, 1, 1], [], []>} : vector<2x32xf32>, vector<32x256xf32>, vector<2x256xf32> -> vector<2x256xf32>
    %42 = arith.addf %32, %41 : vector<2x256xf32>
    %c0_29 = arith.constant 0 : index
    %c1024 = arith.constant 1024 : index
    %43 = vector.load %arg1[%c0_29, %c1024] : memref<2x12544xf32, #tpu.memory_space<vmem>>, vector<2x256xf32>
    %cst_30 = arith.constant dense<0.000000e+00> : vector<2x32xf32>
    %44 = tpu.matmul %43, %0, %cst_30 {dimension_numbers = #tpu.dot_dimension_numbers<[1], [0], [0], [1], [0, 0, 1, 1], [], []>} : vector<2x256xf32>, vector<256x32xf32>, vector<2x32xf32> -> vector<2x32xf32>
    %45 = vector.broadcast %1 : vector<1x32xf32> to vector<2x32xf32>
    %46 = arith.addf %44, %45 : vector<2x32xf32>
    %cst_31 = arith.constant 0.000000e+00 : f32
    %47 = vector.broadcast %cst_31 : f32 to vector<2x32xf32>
    %48 = arith.maximumf %46, %47 : vector<2x32xf32>
    %c4 = arith.constant 4 : index
    %c0_32 = arith.constant 0 : index
    %c0_33 = arith.constant 0 : index
    %49 = vector.load %arg4[%c4, %c0_32, %c0_33] : memref<49x32x256xf32, #tpu.memory_space<vmem>>, vector<1x32x256xf32>
    %50 = vector.shape_cast %49 : vector<1x32x256xf32> to vector<32x256xf32>
    %cst_34 = arith.constant dense<0.000000e+00> : vector<2x256xf32>
    %51 = tpu.matmul %48, %50, %cst_34 {dimension_numbers = #tpu.dot_dimension_numbers<[1], [0], [0], [1], [0, 0, 1, 1], [], []>} : vector<2x32xf32>, vector<32x256xf32>, vector<2x256xf32> -> vector<2x256xf32>
    %52 = arith.addf %42, %51 : vector<2x256xf32>
    %c0_35 = arith.constant 0 : index
    %c1280 = arith.constant 1280 : index
    %53 = vector.load %arg1[%c0_35, %c1280] : memref<2x12544xf32, #tpu.memory_space<vmem>>, vector<2x256xf32>
    %cst_36 = arith.constant dense<0.000000e+00> : vector<2x32xf32>
    %54 = tpu.matmul %53, %0, %cst_36 {dimension_numbers = #tpu.dot_dimension_numbers<[1], [0], [0], [1], [0, 0, 1, 1], [], []>} : vector<2x256xf32>, vector<256x32xf32>, vector<2x32xf32> -> vector<2x32xf32>
    %55 = vector.broadcast %1 : vector<1x32xf32> to vector<2x32xf32>
    %56 = arith.addf %54, %55 : vector<2x32xf32>
    %cst_37 = arith.constant 0.000000e+00 : f32
    %57 = vector.broadcast %cst_37 : f32 to vector<2x32xf32>
    %58 = arith.maximumf %56, %57 : vector<2x32xf32>
    %c5 = arith.constant 5 : index
    %c0_38 = arith.constant 0 : index
    %c0_39 = arith.constant 0 : index
    %59 = vector.load %arg4[%c5, %c0_38, %c0_39] : memref<49x32x256xf32, #tpu.memory_space<vmem>>, vector<1x32x256xf32>
    %60 = vector.shape_cast %59 : vector<1x32x256xf32> to vector<32x256xf32>
    %cst_40 = arith.constant dense<0.000000e+00> : vector<2x256xf32>
    %61 = tpu.matmul %58, %60, %cst_40 {dimension_numbers = #tpu.dot_dimension_numbers<[1], [0], [0], [1], [0, 0, 1, 1], [], []>} : vector<2x32xf32>, vector<32x256xf32>, vector<2x256xf32> -> vector<2x256xf32>
    %62 = arith.addf %52, %61 : vector<2x256xf32>
    %c0_41 = arith.constant 0 : index
    %c1536 = arith.constant 1536 : index
    %63 = vector.load %arg1[%c0_41, %c1536] : memref<2x12544xf32, #tpu.memory_space<vmem>>, vector<2x256xf32>
    %cst_42 = arith.constant dense<0.000000e+00> : vector<2x32xf32>
    %64 = tpu.matmul %63, %0, %cst_42 {dimension_numbers = #tpu.dot_dimension_numbers<[1], [0], [0], [1], [0, 0, 1, 1], [], []>} : vector<2x256xf32>, vector<256x32xf32>, vector<2x32xf32> -> vector<2x32xf32>
    %65 = vector.broadcast %1 : vector<1x32xf32> to vector<2x32xf32>
    %66 = arith.addf %64, %65 : vector<2x32xf32>
    %cst_43 = arith.constant 0.000000e+00 : f32
    %67 = vector.broadcast %cst_43 : f32 to vector<2x32xf32>
    %68 = arith.maximumf %66, %67 : vector<2x32xf32>
    %c6 = arith.constant 6 : index
    %c0_44 = arith.constant 0 : index
    %c0_45 = arith.constant 0 : index
    %69 = vector.load %arg4[%c6, %c0_44, %c0_45] : memref<49x32x256xf32, #tpu.memory_space<vmem>>, vector<1x32x256xf32>
    %70 = vector.shape_cast %69 : vector<1x32x256xf32> to vector<32x256xf32>
    %cst_46 = arith.constant dense<0.000000e+00> : vector<2x256xf32>
    %71 = tpu.matmul %68, %70, %cst_46 {dimension_numbers = #tpu.dot_dimension_numbers<[1], [0], [0], [1], [0, 0, 1, 1], [], []>} : vector<2x32xf32>, vector<32x256xf32>, vector<2x256xf32> -> vector<2x256xf32>
    %72 = arith.addf %62, %71 : vector<2x256xf32>
    %c0_47 = arith.constant 0 : index
    %c1792 = arith.constant 1792 : index
    %73 = vector.load %arg1[%c0_47, %c1792] : memref<2x12544xf32, #tpu.memory_space<vmem>>, vector<2x256xf32>
    %cst_48 = arith.constant dense<0.000000e+00> : vector<2x32xf32>
    %74 = tpu.matmul %73, %0, %cst_48 {dimension_numbers = #tpu.dot_dimension_numbers<[1], [0], [0], [1], [0, 0, 1, 1], [], []>} : vector<2x256xf32>, vector<256x32xf32>, vector<2x32xf32> -> vector<2x32xf32>
    %75 = vector.broadcast %1 : vector<1x32xf32> to vector<2x32xf32>
    %76 = arith.addf %74, %75 : vector<2x32xf32>
    %cst_49 = arith.constant 0.000000e+00 : f32
    %77 = vector.broadcast %cst_49 : f32 to vector<2x32xf32>
    %78 = arith.maximumf %76, %77 : vector<2x32xf32>
    %c7 = arith.constant 7 : index
    %c0_50 = arith.constant 0 : index
    %c0_51 = arith.constant 0 : index
    %79 = vector.load %arg4[%c7, %c0_50, %c0_51] : memref<49x32x256xf32, #tpu.memory_space<vmem>>, vector<1x32x256xf32>
    %80 = vector.shape_cast %79 : vector<1x32x256xf32> to vector<32x256xf32>
    %cst_52 = arith.constant dense<0.000000e+00> : vector<2x256xf32>
    %81 = tpu.matmul %78, %80, %cst_52 {dimension_numbers = #tpu.dot_dimension_numbers<[1], [0], [0], [1], [0, 0, 1, 1], [], []>} : vector<2x32xf32>, vector<32x256xf32>, vector<2x256xf32> -> vector<2x256xf32>
    %82 = arith.addf %72, %81 : vector<2x256xf32>
    %c0_53 = arith.constant 0 : index
    %c2048 = arith.constant 2048 : index
    %83 = vector.load %arg1[%c0_53, %c2048] : memref<2x12544xf32, #tpu.memory_space<vmem>>, vector<2x256xf32>
    %cst_54 = arith.constant dense<0.000000e+00> : vector<2x32xf32>
    %84 = tpu.matmul %83, %0, %cst_54 {dimension_numbers = #tpu.dot_dimension_numbers<[1], [0], [0], [1], [0, 0, 1, 1], [], []>} : vector<2x256xf32>, vector<256x32xf32>, vector<2x32xf32> -> vector<2x32xf32>
    %85 = vector.broadcast %1 : vector<1x32xf32> to vector<2x32xf32>
    %86 = arith.addf %84, %85 : vector<2x32xf32>
    %cst_55 = arith.constant 0.000000e+00 : f32
    %87 = vector.broadcast %cst_55 : f32 to vector<2x32xf32>
    %88 = arith.maximumf %86, %87 : vector<2x32xf32>
    %c8 = arith.constant 8 : index
    %c0_56 = arith.constant 0 : index
    %c0_57 = arith.constant 0 : index
    %89 = vector.load %arg4[%c8, %c0_56, %c0_57] : memref<49x32x256xf32, #tpu.memory_space<vmem>>, vector<1x32x256xf32>
    %90 = vector.shape_cast %89 : vector<1x32x256xf32> to vector<32x256xf32>
    %cst_58 = arith.constant dense<0.000000e+00> : vector<2x256xf32>
    %91 = tpu.matmul %88, %90, %cst_58 {dimension_numbers = #tpu.dot_dimension_numbers<[1], [0], [0], [1], [0, 0, 1, 1], [], []>} : vector<2x32xf32>, vector<32x256xf32>, vector<2x256xf32> -> vector<2x256xf32>
    %92 = arith.addf %82, %91 : vector<2x256xf32>
    %c0_59 = arith.constant 0 : index
    %c2304 = arith.constant 2304 : index
    %93 = vector.load %arg1[%c0_59, %c2304] : memref<2x12544xf32, #tpu.memory_space<vmem>>, vector<2x256xf32>
    %cst_60 = arith.constant dense<0.000000e+00> : vector<2x32xf32>
    %94 = tpu.matmul %93, %0, %cst_60 {dimension_numbers = #tpu.dot_dimension_numbers<[1], [0], [0], [1], [0, 0, 1, 1], [], []>} : vector<2x256xf32>, vector<256x32xf32>, vector<2x32xf32> -> vector<2x32xf32>
    %95 = vector.broadcast %1 : vector<1x32xf32> to vector<2x32xf32>
    %96 = arith.addf %94, %95 : vector<2x32xf32>
    %cst_61 = arith.constant 0.000000e+00 : f32
    %97 = vector.broadcast %cst_61 : f32 to vector<2x32xf32>
    %98 = arith.maximumf %96, %97 : vector<2x32xf32>
    %c9 = arith.constant 9 : index
    %c0_62 = arith.constant 0 : index
    %c0_63 = arith.constant 0 : index
    %99 = vector.load %arg4[%c9, %c0_62, %c0_63] : memref<49x32x256xf32, #tpu.memory_space<vmem>>, vector<1x32x256xf32>
    %100 = vector.shape_cast %99 : vector<1x32x256xf32> to vector<32x256xf32>
    %cst_64 = arith.constant dense<0.000000e+00> : vector<2x256xf32>
    %101 = tpu.matmul %98, %100, %cst_64 {dimension_numbers = #tpu.dot_dimension_numbers<[1], [0], [0], [1], [0, 0, 1, 1], [], []>} : vector<2x32xf32>, vector<32x256xf32>, vector<2x256xf32> -> vector<2x256xf32>
    %102 = arith.addf %92, %101 : vector<2x256xf32>
    %c0_65 = arith.constant 0 : index
    %c2560 = arith.constant 2560 : index
    %103 = vector.load %arg1[%c0_65, %c2560] : memref<2x12544xf32, #tpu.memory_space<vmem>>, vector<2x256xf32>
    %cst_66 = arith.constant dense<0.000000e+00> : vector<2x32xf32>
    %104 = tpu.matmul %103, %0, %cst_66 {dimension_numbers = #tpu.dot_dimension_numbers<[1], [0], [0], [1], [0, 0, 1, 1], [], []>} : vector<2x256xf32>, vector<256x32xf32>, vector<2x32xf32> -> vector<2x32xf32>
    %105 = vector.broadcast %1 : vector<1x32xf32> to vector<2x32xf32>
    %106 = arith.addf %104, %105 : vector<2x32xf32>
    %cst_67 = arith.constant 0.000000e+00 : f32
    %107 = vector.broadcast %cst_67 : f32 to vector<2x32xf32>
    %108 = arith.maximumf %106, %107 : vector<2x32xf32>
    %c10 = arith.constant 10 : index
    %c0_68 = arith.constant 0 : index
    %c0_69 = arith.constant 0 : index
    %109 = vector.load %arg4[%c10, %c0_68, %c0_69] : memref<49x32x256xf32, #tpu.memory_space<vmem>>, vector<1x32x256xf32>
    %110 = vector.shape_cast %109 : vector<1x32x256xf32> to vector<32x256xf32>
    %cst_70 = arith.constant dense<0.000000e+00> : vector<2x256xf32>
    %111 = tpu.matmul %108, %110, %cst_70 {dimension_numbers = #tpu.dot_dimension_numbers<[1], [0], [0], [1], [0, 0, 1, 1], [], []>} : vector<2x32xf32>, vector<32x256xf32>, vector<2x256xf32> -> vector<2x256xf32>
    %112 = arith.addf %102, %111 : vector<2x256xf32>
    %c0_71 = arith.constant 0 : index
    %c2816 = arith.constant 2816 : index
    %113 = vector.load %arg1[%c0_71, %c2816] : memref<2x12544xf32, #tpu.memory_space<vmem>>, vector<2x256xf32>
    %cst_72 = arith.constant dense<0.000000e+00> : vector<2x32xf32>
    %114 = tpu.matmul %113, %0, %cst_72 {dimension_numbers = #tpu.dot_dimension_numbers<[1], [0], [0], [1], [0, 0, 1, 1], [], []>} : vector<2x256xf32>, vector<256x32xf32>, vector<2x32xf32> -> vector<2x32xf32>
    %115 = vector.broadcast %1 : vector<1x32xf32> to vector<2x32xf32>
    %116 = arith.addf %114, %115 : vector<2x32xf32>
    %cst_73 = arith.constant 0.000000e+00 : f32
    %117 = vector.broadcast %cst_73 : f32 to vector<2x32xf32>
    %118 = arith.maximumf %116, %117 : vector<2x32xf32>
    %c11 = arith.constant 11 : index
    %c0_74 = arith.constant 0 : index
    %c0_75 = arith.constant 0 : index
    %119 = vector.load %arg4[%c11, %c0_74, %c0_75] : memref<49x32x256xf32, #tpu.memory_space<vmem>>, vector<1x32x256xf32>
    %120 = vector.shape_cast %119 : vector<1x32x256xf32> to vector<32x256xf32>
    %cst_76 = arith.constant dense<0.000000e+00> : vector<2x256xf32>
    %121 = tpu.matmul %118, %120, %cst_76 {dimension_numbers = #tpu.dot_dimension_numbers<[1], [0], [0], [1], [0, 0, 1, 1], [], []>} : vector<2x32xf32>, vector<32x256xf32>, vector<2x256xf32> -> vector<2x256xf32>
    %122 = arith.addf %112, %121 : vector<2x256xf32>
    %c0_77 = arith.constant 0 : index
    %c3072 = arith.constant 3072 : index
    %123 = vector.load %arg1[%c0_77, %c3072] : memref<2x12544xf32, #tpu.memory_space<vmem>>, vector<2x256xf32>
    %cst_78 = arith.constant dense<0.000000e+00> : vector<2x32xf32>
    %124 = tpu.matmul %123, %0, %cst_78 {dimension_numbers = #tpu.dot_dimension_numbers<[1], [0], [0], [1], [0, 0, 1, 1], [], []>} : vector<2x256xf32>, vector<256x32xf32>, vector<2x32xf32> -> vector<2x32xf32>
    %125 = vector.broadcast %1 : vector<1x32xf32> to vector<2x32xf32>
    %126 = arith.addf %124, %125 : vector<2x32xf32>
    %cst_79 = arith.constant 0.000000e+00 : f32
    %127 = vector.broadcast %cst_79 : f32 to vector<2x32xf32>
    %128 = arith.maximumf %126, %127 : vector<2x32xf32>
    %c12 = arith.constant 12 : index
    %c0_80 = arith.constant 0 : index
    %c0_81 = arith.constant 0 : index
    %129 = vector.load %arg4[%c12, %c0_80, %c0_81] : memref<49x32x256xf32, #tpu.memory_space<vmem>>, vector<1x32x256xf32>
    %130 = vector.shape_cast %129 : vector<1x32x256xf32> to vector<32x256xf32>
    %cst_82 = arith.constant dense<0.000000e+00> : vector<2x256xf32>
    %131 = tpu.matmul %128, %130, %cst_82 {dimension_numbers = #tpu.dot_dimension_numbers<[1], [0], [0], [1], [0, 0, 1, 1], [], []>} : vector<2x32xf32>, vector<32x256xf32>, vector<2x256xf32> -> vector<2x256xf32>
    %132 = arith.addf %122, %131 : vector<2x256xf32>
    %c0_83 = arith.constant 0 : index
    %c3328 = arith.constant 3328 : index
    %133 = vector.load %arg1[%c0_83, %c3328] : memref<2x12544xf32, #tpu.memory_space<vmem>>, vector<2x256xf32>
    %cst_84 = arith.constant dense<0.000000e+00> : vector<2x32xf32>
    %134 = tpu.matmul %133, %0, %cst_84 {dimension_numbers = #tpu.dot_dimension_numbers<[1], [0], [0], [1], [0, 0, 1, 1], [], []>} : vector<2x256xf32>, vector<256x32xf32>, vector<2x32xf32> -> vector<2x32xf32>
    %135 = vector.broadcast %1 : vector<1x32xf32> to vector<2x32xf32>
    %136 = arith.addf %134, %135 : vector<2x32xf32>
    %cst_85 = arith.constant 0.000000e+00 : f32
    %137 = vector.broadcast %cst_85 : f32 to vector<2x32xf32>
    %138 = arith.maximumf %136, %137 : vector<2x32xf32>
    %c13 = arith.constant 13 : index
    %c0_86 = arith.constant 0 : index
    %c0_87 = arith.constant 0 : index
    %139 = vector.load %arg4[%c13, %c0_86, %c0_87] : memref<49x32x256xf32, #tpu.memory_space<vmem>>, vector<1x32x256xf32>
    %140 = vector.shape_cast %139 : vector<1x32x256xf32> to vector<32x256xf32>
    %cst_88 = arith.constant dense<0.000000e+00> : vector<2x256xf32>
    %141 = tpu.matmul %138, %140, %cst_88 {dimension_numbers = #tpu.dot_dimension_numbers<[1], [0], [0], [1], [0, 0, 1, 1], [], []>} : vector<2x32xf32>, vector<32x256xf32>, vector<2x256xf32> -> vector<2x256xf32>
    %142 = arith.addf %132, %141 : vector<2x256xf32>
    %c0_89 = arith.constant 0 : index
    %c3584 = arith.constant 3584 : index
    %143 = vector.load %arg1[%c0_89, %c3584] : memref<2x12544xf32, #tpu.memory_space<vmem>>, vector<2x256xf32>
    %cst_90 = arith.constant dense<0.000000e+00> : vector<2x32xf32>
    %144 = tpu.matmul %143, %0, %cst_90 {dimension_numbers = #tpu.dot_dimension_numbers<[1], [0], [0], [1], [0, 0, 1, 1], [], []>} : vector<2x256xf32>, vector<256x32xf32>, vector<2x32xf32> -> vector<2x32xf32>
    %145 = vector.broadcast %1 : vector<1x32xf32> to vector<2x32xf32>
    %146 = arith.addf %144, %145 : vector<2x32xf32>
    %cst_91 = arith.constant 0.000000e+00 : f32
    %147 = vector.broadcast %cst_91 : f32 to vector<2x32xf32>
    %148 = arith.maximumf %146, %147 : vector<2x32xf32>
    %c14 = arith.constant 14 : index
    %c0_92 = arith.constant 0 : index
    %c0_93 = arith.constant 0 : index
    %149 = vector.load %arg4[%c14, %c0_92, %c0_93] : memref<49x32x256xf32, #tpu.memory_space<vmem>>, vector<1x32x256xf32>
    %150 = vector.shape_cast %149 : vector<1x32x256xf32> to vector<32x256xf32>
    %cst_94 = arith.constant dense<0.000000e+00> : vector<2x256xf32>
    %151 = tpu.matmul %148, %150, %cst_94 {dimension_numbers = #tpu.dot_dimension_numbers<[1], [0], [0], [1], [0, 0, 1, 1], [], []>} : vector<2x32xf32>, vector<32x256xf32>, vector<2x256xf32> -> vector<2x256xf32>
    %152 = arith.addf %142, %151 : vector<2x256xf32>
    %c0_95 = arith.constant 0 : index
    %c3840 = arith.constant 3840 : index
    %153 = vector.load %arg1[%c0_95, %c3840] : memref<2x12544xf32, #tpu.memory_space<vmem>>, vector<2x256xf32>
    %cst_96 = arith.constant dense<0.000000e+00> : vector<2x32xf32>
    %154 = tpu.matmul %153, %0, %cst_96 {dimension_numbers = #tpu.dot_dimension_numbers<[1], [0], [0], [1], [0, 0, 1, 1], [], []>} : vector<2x256xf32>, vector<256x32xf32>, vector<2x32xf32> -> vector<2x32xf32>
    %155 = vector.broadcast %1 : vector<1x32xf32> to vector<2x32xf32>
    %156 = arith.addf %154, %155 : vector<2x32xf32>
    %cst_97 = arith.constant 0.000000e+00 : f32
    %157 = vector.broadcast %cst_97 : f32 to vector<2x32xf32>
    %158 = arith.maximumf %156, %157 : vector<2x32xf32>
    %c15 = arith.constant 15 : index
    %c0_98 = arith.constant 0 : index
    %c0_99 = arith.constant 0 : index
    %159 = vector.load %arg4[%c15, %c0_98, %c0_99] : memref<49x32x256xf32, #tpu.memory_space<vmem>>, vector<1x32x256xf32>
    %160 = vector.shape_cast %159 : vector<1x32x256xf32> to vector<32x256xf32>
    %cst_100 = arith.constant dense<0.000000e+00> : vector<2x256xf32>
    %161 = tpu.matmul %158, %160, %cst_100 {dimension_numbers = #tpu.dot_dimension_numbers<[1], [0], [0], [1], [0, 0, 1, 1], [], []>} : vector<2x32xf32>, vector<32x256xf32>, vector<2x256xf32> -> vector<2x256xf32>
    %162 = arith.addf %152, %161 : vector<2x256xf32>
    %c0_101 = arith.constant 0 : index
    %c4096 = arith.constant 4096 : index
    %163 = vector.load %arg1[%c0_101, %c4096] : memref<2x12544xf32, #tpu.memory_space<vmem>>, vector<2x256xf32>
    %cst_102 = arith.constant dense<0.000000e+00> : vector<2x32xf32>
    %164 = tpu.matmul %163, %0, %cst_102 {dimension_numbers = #tpu.dot_dimension_numbers<[1], [0], [0], [1], [0, 0, 1, 1], [], []>} : vector<2x256xf32>, vector<256x32xf32>, vector<2x32xf32> -> vector<2x32xf32>
    %165 = vector.broadcast %1 : vector<1x32xf32> to vector<2x32xf32>
    %166 = arith.addf %164, %165 : vector<2x32xf32>
    %cst_103 = arith.constant 0.000000e+00 : f32
    %167 = vector.broadcast %cst_103 : f32 to vector<2x32xf32>
    %168 = arith.maximumf %166, %167 : vector<2x32xf32>
    %c16 = arith.constant 16 : index
    %c0_104 = arith.constant 0 : index
    %c0_105 = arith.constant 0 : index
    %169 = vector.load %arg4[%c16, %c0_104, %c0_105] : memref<49x32x256xf32, #tpu.memory_space<vmem>>, vector<1x32x256xf32>
    %170 = vector.shape_cast %169 : vector<1x32x256xf32> to vector<32x256xf32>
    %cst_106 = arith.constant dense<0.000000e+00> : vector<2x256xf32>
    %171 = tpu.matmul %168, %170, %cst_106 {dimension_numbers = #tpu.dot_dimension_numbers<[1], [0], [0], [1], [0, 0, 1, 1], [], []>} : vector<2x32xf32>, vector<32x256xf32>, vector<2x256xf32> -> vector<2x256xf32>
    %172 = arith.addf %162, %171 : vector<2x256xf32>
    %c0_107 = arith.constant 0 : index
    %c4352 = arith.constant 4352 : index
    %173 = vector.load %arg1[%c0_107, %c4352] : memref<2x12544xf32, #tpu.memory_space<vmem>>, vector<2x256xf32>
    %cst_108 = arith.constant dense<0.000000e+00> : vector<2x32xf32>
    %174 = tpu.matmul %173, %0, %cst_108 {dimension_numbers = #tpu.dot_dimension_numbers<[1], [0], [0], [1], [0, 0, 1, 1], [], []>} : vector<2x256xf32>, vector<256x32xf32>, vector<2x32xf32> -> vector<2x32xf32>
    %175 = vector.broadcast %1 : vector<1x32xf32> to vector<2x32xf32>
    %176 = arith.addf %174, %175 : vector<2x32xf32>
    %cst_109 = arith.constant 0.000000e+00 : f32
    %177 = vector.broadcast %cst_109 : f32 to vector<2x32xf32>
    %178 = arith.maximumf %176, %177 : vector<2x32xf32>
    %c17 = arith.constant 17 : index
    %c0_110 = arith.constant 0 : index
    %c0_111 = arith.constant 0 : index
    %179 = vector.load %arg4[%c17, %c0_110, %c0_111] : memref<49x32x256xf32, #tpu.memory_space<vmem>>, vector<1x32x256xf32>
    %180 = vector.shape_cast %179 : vector<1x32x256xf32> to vector<32x256xf32>
    %cst_112 = arith.constant dense<0.000000e+00> : vector<2x256xf32>
    %181 = tpu.matmul %178, %180, %cst_112 {dimension_numbers = #tpu.dot_dimension_numbers<[1], [0], [0], [1], [0, 0, 1, 1], [], []>} : vector<2x32xf32>, vector<32x256xf32>, vector<2x256xf32> -> vector<2x256xf32>
    %182 = arith.addf %172, %181 : vector<2x256xf32>
    %c0_113 = arith.constant 0 : index
    %c4608 = arith.constant 4608 : index
    %183 = vector.load %arg1[%c0_113, %c4608] : memref<2x12544xf32, #tpu.memory_space<vmem>>, vector<2x256xf32>
    %cst_114 = arith.constant dense<0.000000e+00> : vector<2x32xf32>
    %184 = tpu.matmul %183, %0, %cst_114 {dimension_numbers = #tpu.dot_dimension_numbers<[1], [0], [0], [1], [0, 0, 1, 1], [], []>} : vector<2x256xf32>, vector<256x32xf32>, vector<2x32xf32> -> vector<2x32xf32>
    %185 = vector.broadcast %1 : vector<1x32xf32> to vector<2x32xf32>
    %186 = arith.addf %184, %185 : vector<2x32xf32>
    %cst_115 = arith.constant 0.000000e+00 : f32
    %187 = vector.broadcast %cst_115 : f32 to vector<2x32xf32>
    %188 = arith.maximumf %186, %187 : vector<2x32xf32>
    %c18 = arith.constant 18 : index
    %c0_116 = arith.constant 0 : index
    %c0_117 = arith.constant 0 : index
    %189 = vector.load %arg4[%c18, %c0_116, %c0_117] : memref<49x32x256xf32, #tpu.memory_space<vmem>>, vector<1x32x256xf32>
    %190 = vector.shape_cast %189 : vector<1x32x256xf32> to vector<32x256xf32>
    %cst_118 = arith.constant dense<0.000000e+00> : vector<2x256xf32>
    %191 = tpu.matmul %188, %190, %cst_118 {dimension_numbers = #tpu.dot_dimension_numbers<[1], [0], [0], [1], [0, 0, 1, 1], [], []>} : vector<2x32xf32>, vector<32x256xf32>, vector<2x256xf32> -> vector<2x256xf32>
    %192 = arith.addf %182, %191 : vector<2x256xf32>
    %c0_119 = arith.constant 0 : index
    %c4864 = arith.constant 4864 : index
    %193 = vector.load %arg1[%c0_119, %c4864] : memref<2x12544xf32, #tpu.memory_space<vmem>>, vector<2x256xf32>
    %cst_120 = arith.constant dense<0.000000e+00> : vector<2x32xf32>
    %194 = tpu.matmul %193, %0, %cst_120 {dimension_numbers = #tpu.dot_dimension_numbers<[1], [0], [0], [1], [0, 0, 1, 1], [], []>} : vector<2x256xf32>, vector<256x32xf32>, vector<2x32xf32> -> vector<2x32xf32>
    %195 = vector.broadcast %1 : vector<1x32xf32> to vector<2x32xf32>
    %196 = arith.addf %194, %195 : vector<2x32xf32>
    %cst_121 = arith.constant 0.000000e+00 : f32
    %197 = vector.broadcast %cst_121 : f32 to vector<2x32xf32>
    %198 = arith.maximumf %196, %197 : vector<2x32xf32>
    %c19 = arith.constant 19 : index
    %c0_122 = arith.constant 0 : index
    %c0_123 = arith.constant 0 : index
    %199 = vector.load %arg4[%c19, %c0_122, %c0_123] : memref<49x32x256xf32, #tpu.memory_space<vmem>>, vector<1x32x256xf32>
    %200 = vector.shape_cast %199 : vector<1x32x256xf32> to vector<32x256xf32>
    %cst_124 = arith.constant dense<0.000000e+00> : vector<2x256xf32>
    %201 = tpu.matmul %198, %200, %cst_124 {dimension_numbers = #tpu.dot_dimension_numbers<[1], [0], [0], [1], [0, 0, 1, 1], [], []>} : vector<2x32xf32>, vector<32x256xf32>, vector<2x256xf32> -> vector<2x256xf32>
    %202 = arith.addf %192, %201 : vector<2x256xf32>
    %c0_125 = arith.constant 0 : index
    %c5120 = arith.constant 5120 : index
    %203 = vector.load %arg1[%c0_125, %c5120] : memref<2x12544xf32, #tpu.memory_space<vmem>>, vector<2x256xf32>
    %cst_126 = arith.constant dense<0.000000e+00> : vector<2x32xf32>
    %204 = tpu.matmul %203, %0, %cst_126 {dimension_numbers = #tpu.dot_dimension_numbers<[1], [0], [0], [1], [0, 0, 1, 1], [], []>} : vector<2x256xf32>, vector<256x32xf32>, vector<2x32xf32> -> vector<2x32xf32>
    %205 = vector.broadcast %1 : vector<1x32xf32> to vector<2x32xf32>
    %206 = arith.addf %204, %205 : vector<2x32xf32>
    %cst_127 = arith.constant 0.000000e+00 : f32
    %207 = vector.broadcast %cst_127 : f32 to vector<2x32xf32>
    %208 = arith.maximumf %206, %207 : vector<2x32xf32>
    %c20 = arith.constant 20 : index
    %c0_128 = arith.constant 0 : index
    %c0_129 = arith.constant 0 : index
    %209 = vector.load %arg4[%c20, %c0_128, %c0_129] : memref<49x32x256xf32, #tpu.memory_space<vmem>>, vector<1x32x256xf32>
    %210 = vector.shape_cast %209 : vector<1x32x256xf32> to vector<32x256xf32>
    %cst_130 = arith.constant dense<0.000000e+00> : vector<2x256xf32>
    %211 = tpu.matmul %208, %210, %cst_130 {dimension_numbers = #tpu.dot_dimension_numbers<[1], [0], [0], [1], [0, 0, 1, 1], [], []>} : vector<2x32xf32>, vector<32x256xf32>, vector<2x256xf32> -> vector<2x256xf32>
    %212 = arith.addf %202, %211 : vector<2x256xf32>
    %c0_131 = arith.constant 0 : index
    %c5376 = arith.constant 5376 : index
    %213 = vector.load %arg1[%c0_131, %c5376] : memref<2x12544xf32, #tpu.memory_space<vmem>>, vector<2x256xf32>
    %cst_132 = arith.constant dense<0.000000e+00> : vector<2x32xf32>
    %214 = tpu.matmul %213, %0, %cst_132 {dimension_numbers = #tpu.dot_dimension_numbers<[1], [0], [0], [1], [0, 0, 1, 1], [], []>} : vector<2x256xf32>, vector<256x32xf32>, vector<2x32xf32> -> vector<2x32xf32>
    %215 = vector.broadcast %1 : vector<1x32xf32> to vector<2x32xf32>
    %216 = arith.addf %214, %215 : vector<2x32xf32>
    %cst_133 = arith.constant 0.000000e+00 : f32
    %217 = vector.broadcast %cst_133 : f32 to vector<2x32xf32>
    %218 = arith.maximumf %216, %217 : vector<2x32xf32>
    %c21 = arith.constant 21 : index
    %c0_134 = arith.constant 0 : index
    %c0_135 = arith.constant 0 : index
    %219 = vector.load %arg4[%c21, %c0_134, %c0_135] : memref<49x32x256xf32, #tpu.memory_space<vmem>>, vector<1x32x256xf32>
    %220 = vector.shape_cast %219 : vector<1x32x256xf32> to vector<32x256xf32>
    %cst_136 = arith.constant dense<0.000000e+00> : vector<2x256xf32>
    %221 = tpu.matmul %218, %220, %cst_136 {dimension_numbers = #tpu.dot_dimension_numbers<[1], [0], [0], [1], [0, 0, 1, 1], [], []>} : vector<2x32xf32>, vector<32x256xf32>, vector<2x256xf32> -> vector<2x256xf32>
    %222 = arith.addf %212, %221 : vector<2x256xf32>
    %c0_137 = arith.constant 0 : index
    %c5632 = arith.constant 5632 : index
    %223 = vector.load %arg1[%c0_137, %c5632] : memref<2x12544xf32, #tpu.memory_space<vmem>>, vector<2x256xf32>
    %cst_138 = arith.constant dense<0.000000e+00> : vector<2x32xf32>
    %224 = tpu.matmul %223, %0, %cst_138 {dimension_numbers = #tpu.dot_dimension_numbers<[1], [0], [0], [1], [0, 0, 1, 1], [], []>} : vector<2x256xf32>, vector<256x32xf32>, vector<2x32xf32> -> vector<2x32xf32>
    %225 = vector.broadcast %1 : vector<1x32xf32> to vector<2x32xf32>
    %226 = arith.addf %224, %225 : vector<2x32xf32>
    %cst_139 = arith.constant 0.000000e+00 : f32
    %227 = vector.broadcast %cst_139 : f32 to vector<2x32xf32>
    %228 = arith.maximumf %226, %227 : vector<2x32xf32>
    %c22 = arith.constant 22 : index
    %c0_140 = arith.constant 0 : index
    %c0_141 = arith.constant 0 : index
    %229 = vector.load %arg4[%c22, %c0_140, %c0_141] : memref<49x32x256xf32, #tpu.memory_space<vmem>>, vector<1x32x256xf32>
    %230 = vector.shape_cast %229 : vector<1x32x256xf32> to vector<32x256xf32>
    %cst_142 = arith.constant dense<0.000000e+00> : vector<2x256xf32>
    %231 = tpu.matmul %228, %230, %cst_142 {dimension_numbers = #tpu.dot_dimension_numbers<[1], [0], [0], [1], [0, 0, 1, 1], [], []>} : vector<2x32xf32>, vector<32x256xf32>, vector<2x256xf32> -> vector<2x256xf32>
    %232 = arith.addf %222, %231 : vector<2x256xf32>
    %c0_143 = arith.constant 0 : index
    %c5888 = arith.constant 5888 : index
    %233 = vector.load %arg1[%c0_143, %c5888] : memref<2x12544xf32, #tpu.memory_space<vmem>>, vector<2x256xf32>
    %cst_144 = arith.constant dense<0.000000e+00> : vector<2x32xf32>
    %234 = tpu.matmul %233, %0, %cst_144 {dimension_numbers = #tpu.dot_dimension_numbers<[1], [0], [0], [1], [0, 0, 1, 1], [], []>} : vector<2x256xf32>, vector<256x32xf32>, vector<2x32xf32> -> vector<2x32xf32>
    %235 = vector.broadcast %1 : vector<1x32xf32> to vector<2x32xf32>
    %236 = arith.addf %234, %235 : vector<2x32xf32>
    %cst_145 = arith.constant 0.000000e+00 : f32
    %237 = vector.broadcast %cst_145 : f32 to vector<2x32xf32>
    %238 = arith.maximumf %236, %237 : vector<2x32xf32>
    %c23 = arith.constant 23 : index
    %c0_146 = arith.constant 0 : index
    %c0_147 = arith.constant 0 : index
    %239 = vector.load %arg4[%c23, %c0_146, %c0_147] : memref<49x32x256xf32, #tpu.memory_space<vmem>>, vector<1x32x256xf32>
    %240 = vector.shape_cast %239 : vector<1x32x256xf32> to vector<32x256xf32>
    %cst_148 = arith.constant dense<0.000000e+00> : vector<2x256xf32>
    %241 = tpu.matmul %238, %240, %cst_148 {dimension_numbers = #tpu.dot_dimension_numbers<[1], [0], [0], [1], [0, 0, 1, 1], [], []>} : vector<2x32xf32>, vector<32x256xf32>, vector<2x256xf32> -> vector<2x256xf32>
    %242 = arith.addf %232, %241 : vector<2x256xf32>
    %c0_149 = arith.constant 0 : index
    %c6144 = arith.constant 6144 : index
    %243 = vector.load %arg1[%c0_149, %c6144] : memref<2x12544xf32, #tpu.memory_space<vmem>>, vector<2x256xf32>
    %cst_150 = arith.constant dense<0.000000e+00> : vector<2x32xf32>
    %244 = tpu.matmul %243, %0, %cst_150 {dimension_numbers = #tpu.dot_dimension_numbers<[1], [0], [0], [1], [0, 0, 1, 1], [], []>} : vector<2x256xf32>, vector<256x32xf32>, vector<2x32xf32> -> vector<2x32xf32>
    %245 = vector.broadcast %1 : vector<1x32xf32> to vector<2x32xf32>
    %246 = arith.addf %244, %245 : vector<2x32xf32>
    %cst_151 = arith.constant 0.000000e+00 : f32
    %247 = vector.broadcast %cst_151 : f32 to vector<2x32xf32>
    %248 = arith.maximumf %246, %247 : vector<2x32xf32>
    %c24 = arith.constant 24 : index
    %c0_152 = arith.constant 0 : index
    %c0_153 = arith.constant 0 : index
    %249 = vector.load %arg4[%c24, %c0_152, %c0_153] : memref<49x32x256xf32, #tpu.memory_space<vmem>>, vector<1x32x256xf32>
    %250 = vector.shape_cast %249 : vector<1x32x256xf32> to vector<32x256xf32>
    %cst_154 = arith.constant dense<0.000000e+00> : vector<2x256xf32>
    %251 = tpu.matmul %248, %250, %cst_154 {dimension_numbers = #tpu.dot_dimension_numbers<[1], [0], [0], [1], [0, 0, 1, 1], [], []>} : vector<2x32xf32>, vector<32x256xf32>, vector<2x256xf32> -> vector<2x256xf32>
    %252 = arith.addf %242, %251 : vector<2x256xf32>
    %c0_155 = arith.constant 0 : index
    %c6400 = arith.constant 6400 : index
    %253 = vector.load %arg1[%c0_155, %c6400] : memref<2x12544xf32, #tpu.memory_space<vmem>>, vector<2x256xf32>
    %cst_156 = arith.constant dense<0.000000e+00> : vector<2x32xf32>
    %254 = tpu.matmul %253, %0, %cst_156 {dimension_numbers = #tpu.dot_dimension_numbers<[1], [0], [0], [1], [0, 0, 1, 1], [], []>} : vector<2x256xf32>, vector<256x32xf32>, vector<2x32xf32> -> vector<2x32xf32>
    %255 = vector.broadcast %1 : vector<1x32xf32> to vector<2x32xf32>
    %256 = arith.addf %254, %255 : vector<2x32xf32>
    %cst_157 = arith.constant 0.000000e+00 : f32
    %257 = vector.broadcast %cst_157 : f32 to vector<2x32xf32>
    %258 = arith.maximumf %256, %257 : vector<2x32xf32>
    %c25 = arith.constant 25 : index
    %c0_158 = arith.constant 0 : index
    %c0_159 = arith.constant 0 : index
    %259 = vector.load %arg4[%c25, %c0_158, %c0_159] : memref<49x32x256xf32, #tpu.memory_space<vmem>>, vector<1x32x256xf32>
    %260 = vector.shape_cast %259 : vector<1x32x256xf32> to vector<32x256xf32>
    %cst_160 = arith.constant dense<0.000000e+00> : vector<2x256xf32>
    %261 = tpu.matmul %258, %260, %cst_160 {dimension_numbers = #tpu.dot_dimension_numbers<[1], [0], [0], [1], [0, 0, 1, 1], [], []>} : vector<2x32xf32>, vector<32x256xf32>, vector<2x256xf32> -> vector<2x256xf32>
    %262 = arith.addf %252, %261 : vector<2x256xf32>
    %c0_161 = arith.constant 0 : index
    %c6656 = arith.constant 6656 : index
    %263 = vector.load %arg1[%c0_161, %c6656] : memref<2x12544xf32, #tpu.memory_space<vmem>>, vector<2x256xf32>
    %cst_162 = arith.constant dense<0.000000e+00> : vector<2x32xf32>
    %264 = tpu.matmul %263, %0, %cst_162 {dimension_numbers = #tpu.dot_dimension_numbers<[1], [0], [0], [1], [0, 0, 1, 1], [], []>} : vector<2x256xf32>, vector<256x32xf32>, vector<2x32xf32> -> vector<2x32xf32>
    %265 = vector.broadcast %1 : vector<1x32xf32> to vector<2x32xf32>
    %266 = arith.addf %264, %265 : vector<2x32xf32>
    %cst_163 = arith.constant 0.000000e+00 : f32
    %267 = vector.broadcast %cst_163 : f32 to vector<2x32xf32>
    %268 = arith.maximumf %266, %267 : vector<2x32xf32>
    %c26 = arith.constant 26 : index
    %c0_164 = arith.constant 0 : index
    %c0_165 = arith.constant 0 : index
    %269 = vector.load %arg4[%c26, %c0_164, %c0_165] : memref<49x32x256xf32, #tpu.memory_space<vmem>>, vector<1x32x256xf32>
    %270 = vector.shape_cast %269 : vector<1x32x256xf32> to vector<32x256xf32>
    %cst_166 = arith.constant dense<0.000000e+00> : vector<2x256xf32>
    %271 = tpu.matmul %268, %270, %cst_166 {dimension_numbers = #tpu.dot_dimension_numbers<[1], [0], [0], [1], [0, 0, 1, 1], [], []>} : vector<2x32xf32>, vector<32x256xf32>, vector<2x256xf32> -> vector<2x256xf32>
    %272 = arith.addf %262, %271 : vector<2x256xf32>
    %c0_167 = arith.constant 0 : index
    %c6912 = arith.constant 6912 : index
    %273 = vector.load %arg1[%c0_167, %c6912] : memref<2x12544xf32, #tpu.memory_space<vmem>>, vector<2x256xf32>
    %cst_168 = arith.constant dense<0.000000e+00> : vector<2x32xf32>
    %274 = tpu.matmul %273, %0, %cst_168 {dimension_numbers = #tpu.dot_dimension_numbers<[1], [0], [0], [1], [0, 0, 1, 1], [], []>} : vector<2x256xf32>, vector<256x32xf32>, vector<2x32xf32> -> vector<2x32xf32>
    %275 = vector.broadcast %1 : vector<1x32xf32> to vector<2x32xf32>
    %276 = arith.addf %274, %275 : vector<2x32xf32>
    %cst_169 = arith.constant 0.000000e+00 : f32
    %277 = vector.broadcast %cst_169 : f32 to vector<2x32xf32>
    %278 = arith.maximumf %276, %277 : vector<2x32xf32>
    %c27 = arith.constant 27 : index
    %c0_170 = arith.constant 0 : index
    %c0_171 = arith.constant 0 : index
    %279 = vector.load %arg4[%c27, %c0_170, %c0_171] : memref<49x32x256xf32, #tpu.memory_space<vmem>>, vector<1x32x256xf32>
    %280 = vector.shape_cast %279 : vector<1x32x256xf32> to vector<32x256xf32>
    %cst_172 = arith.constant dense<0.000000e+00> : vector<2x256xf32>
    %281 = tpu.matmul %278, %280, %cst_172 {dimension_numbers = #tpu.dot_dimension_numbers<[1], [0], [0], [1], [0, 0, 1, 1], [], []>} : vector<2x32xf32>, vector<32x256xf32>, vector<2x256xf32> -> vector<2x256xf32>
    %282 = arith.addf %272, %281 : vector<2x256xf32>
    %c0_173 = arith.constant 0 : index
    %c7168 = arith.constant 7168 : index
    %283 = vector.load %arg1[%c0_173, %c7168] : memref<2x12544xf32, #tpu.memory_space<vmem>>, vector<2x256xf32>
    %cst_174 = arith.constant dense<0.000000e+00> : vector<2x32xf32>
    %284 = tpu.matmul %283, %0, %cst_174 {dimension_numbers = #tpu.dot_dimension_numbers<[1], [0], [0], [1], [0, 0, 1, 1], [], []>} : vector<2x256xf32>, vector<256x32xf32>, vector<2x32xf32> -> vector<2x32xf32>
    %285 = vector.broadcast %1 : vector<1x32xf32> to vector<2x32xf32>
    %286 = arith.addf %284, %285 : vector<2x32xf32>
    %cst_175 = arith.constant 0.000000e+00 : f32
    %287 = vector.broadcast %cst_175 : f32 to vector<2x32xf32>
    %288 = arith.maximumf %286, %287 : vector<2x32xf32>
    %c28 = arith.constant 28 : index
    %c0_176 = arith.constant 0 : index
    %c0_177 = arith.constant 0 : index
    %289 = vector.load %arg4[%c28, %c0_176, %c0_177] : memref<49x32x256xf32, #tpu.memory_space<vmem>>, vector<1x32x256xf32>
    %290 = vector.shape_cast %289 : vector<1x32x256xf32> to vector<32x256xf32>
    %cst_178 = arith.constant dense<0.000000e+00> : vector<2x256xf32>
    %291 = tpu.matmul %288, %290, %cst_178 {dimension_numbers = #tpu.dot_dimension_numbers<[1], [0], [0], [1], [0, 0, 1, 1], [], []>} : vector<2x32xf32>, vector<32x256xf32>, vector<2x256xf32> -> vector<2x256xf32>
    %292 = arith.addf %282, %291 : vector<2x256xf32>
    %c0_179 = arith.constant 0 : index
    %c7424 = arith.constant 7424 : index
    %293 = vector.load %arg1[%c0_179, %c7424] : memref<2x12544xf32, #tpu.memory_space<vmem>>, vector<2x256xf32>
    %cst_180 = arith.constant dense<0.000000e+00> : vector<2x32xf32>
    %294 = tpu.matmul %293, %0, %cst_180 {dimension_numbers = #tpu.dot_dimension_numbers<[1], [0], [0], [1], [0, 0, 1, 1], [], []>} : vector<2x256xf32>, vector<256x32xf32>, vector<2x32xf32> -> vector<2x32xf32>
    %295 = vector.broadcast %1 : vector<1x32xf32> to vector<2x32xf32>
    %296 = arith.addf %294, %295 : vector<2x32xf32>
    %cst_181 = arith.constant 0.000000e+00 : f32
    %297 = vector.broadcast %cst_181 : f32 to vector<2x32xf32>
    %298 = arith.maximumf %296, %297 : vector<2x32xf32>
    %c29 = arith.constant 29 : index
    %c0_182 = arith.constant 0 : index
    %c0_183 = arith.constant 0 : index
    %299 = vector.load %arg4[%c29, %c0_182, %c0_183] : memref<49x32x256xf32, #tpu.memory_space<vmem>>, vector<1x32x256xf32>
    %300 = vector.shape_cast %299 : vector<1x32x256xf32> to vector<32x256xf32>
    %cst_184 = arith.constant dense<0.000000e+00> : vector<2x256xf32>
    %301 = tpu.matmul %298, %300, %cst_184 {dimension_numbers = #tpu.dot_dimension_numbers<[1], [0], [0], [1], [0, 0, 1, 1], [], []>} : vector<2x32xf32>, vector<32x256xf32>, vector<2x256xf32> -> vector<2x256xf32>
    %302 = arith.addf %292, %301 : vector<2x256xf32>
    %c0_185 = arith.constant 0 : index
    %c7680 = arith.constant 7680 : index
    %303 = vector.load %arg1[%c0_185, %c7680] : memref<2x12544xf32, #tpu.memory_space<vmem>>, vector<2x256xf32>
    %cst_186 = arith.constant dense<0.000000e+00> : vector<2x32xf32>
    %304 = tpu.matmul %303, %0, %cst_186 {dimension_numbers = #tpu.dot_dimension_numbers<[1], [0], [0], [1], [0, 0, 1, 1], [], []>} : vector<2x256xf32>, vector<256x32xf32>, vector<2x32xf32> -> vector<2x32xf32>
    %305 = vector.broadcast %1 : vector<1x32xf32> to vector<2x32xf32>
    %306 = arith.addf %304, %305 : vector<2x32xf32>
    %cst_187 = arith.constant 0.000000e+00 : f32
    %307 = vector.broadcast %cst_187 : f32 to vector<2x32xf32>
    %308 = arith.maximumf %306, %307 : vector<2x32xf32>
    %c30 = arith.constant 30 : index
    %c0_188 = arith.constant 0 : index
    %c0_189 = arith.constant 0 : index
    %309 = vector.load %arg4[%c30, %c0_188, %c0_189] : memref<49x32x256xf32, #tpu.memory_space<vmem>>, vector<1x32x256xf32>
    %310 = vector.shape_cast %309 : vector<1x32x256xf32> to vector<32x256xf32>
    %cst_190 = arith.constant dense<0.000000e+00> : vector<2x256xf32>
    %311 = tpu.matmul %308, %310, %cst_190 {dimension_numbers = #tpu.dot_dimension_numbers<[1], [0], [0], [1], [0, 0, 1, 1], [], []>} : vector<2x32xf32>, vector<32x256xf32>, vector<2x256xf32> -> vector<2x256xf32>
    %312 = arith.addf %302, %311 : vector<2x256xf32>
    %c0_191 = arith.constant 0 : index
    %c7936 = arith.constant 7936 : index
    %313 = vector.load %arg1[%c0_191, %c7936] : memref<2x12544xf32, #tpu.memory_space<vmem>>, vector<2x256xf32>
    %cst_192 = arith.constant dense<0.000000e+00> : vector<2x32xf32>
    %314 = tpu.matmul %313, %0, %cst_192 {dimension_numbers = #tpu.dot_dimension_numbers<[1], [0], [0], [1], [0, 0, 1, 1], [], []>} : vector<2x256xf32>, vector<256x32xf32>, vector<2x32xf32> -> vector<2x32xf32>
    %315 = vector.broadcast %1 : vector<1x32xf32> to vector<2x32xf32>
    %316 = arith.addf %314, %315 : vector<2x32xf32>
    %cst_193 = arith.constant 0.000000e+00 : f32
    %317 = vector.broadcast %cst_193 : f32 to vector<2x32xf32>
    %318 = arith.maximumf %316, %317 : vector<2x32xf32>
    %c31 = arith.constant 31 : index
    %c0_194 = arith.constant 0 : index
    %c0_195 = arith.constant 0 : index
    %319 = vector.load %arg4[%c31, %c0_194, %c0_195] : memref<49x32x256xf32, #tpu.memory_space<vmem>>, vector<1x32x256xf32>
    %320 = vector.shape_cast %319 : vector<1x32x256xf32> to vector<32x256xf32>
    %cst_196 = arith.constant dense<0.000000e+00> : vector<2x256xf32>
    %321 = tpu.matmul %318, %320, %cst_196 {dimension_numbers = #tpu.dot_dimension_numbers<[1], [0], [0], [1], [0, 0, 1, 1], [], []>} : vector<2x32xf32>, vector<32x256xf32>, vector<2x256xf32> -> vector<2x256xf32>
    %322 = arith.addf %312, %321 : vector<2x256xf32>
    %c0_197 = arith.constant 0 : index
    %c8192 = arith.constant 8192 : index
    %323 = vector.load %arg1[%c0_197, %c8192] : memref<2x12544xf32, #tpu.memory_space<vmem>>, vector<2x256xf32>
    %cst_198 = arith.constant dense<0.000000e+00> : vector<2x32xf32>
    %324 = tpu.matmul %323, %0, %cst_198 {dimension_numbers = #tpu.dot_dimension_numbers<[1], [0], [0], [1], [0, 0, 1, 1], [], []>} : vector<2x256xf32>, vector<256x32xf32>, vector<2x32xf32> -> vector<2x32xf32>
    %325 = vector.broadcast %1 : vector<1x32xf32> to vector<2x32xf32>
    %326 = arith.addf %324, %325 : vector<2x32xf32>
    %cst_199 = arith.constant 0.000000e+00 : f32
    %327 = vector.broadcast %cst_199 : f32 to vector<2x32xf32>
    %328 = arith.maximumf %326, %327 : vector<2x32xf32>
    %c32 = arith.constant 32 : index
    %c0_200 = arith.constant 0 : index
    %c0_201 = arith.constant 0 : index
    %329 = vector.load %arg4[%c32, %c0_200, %c0_201] : memref<49x32x256xf32, #tpu.memory_space<vmem>>, vector<1x32x256xf32>
    %330 = vector.shape_cast %329 : vector<1x32x256xf32> to vector<32x256xf32>
    %cst_202 = arith.constant dense<0.000000e+00> : vector<2x256xf32>
    %331 = tpu.matmul %328, %330, %cst_202 {dimension_numbers = #tpu.dot_dimension_numbers<[1], [0], [0], [1], [0, 0, 1, 1], [], []>} : vector<2x32xf32>, vector<32x256xf32>, vector<2x256xf32> -> vector<2x256xf32>
    %332 = arith.addf %322, %331 : vector<2x256xf32>
    %c0_203 = arith.constant 0 : index
    %c8448 = arith.constant 8448 : index
    %333 = vector.load %arg1[%c0_203, %c8448] : memref<2x12544xf32, #tpu.memory_space<vmem>>, vector<2x256xf32>
    %cst_204 = arith.constant dense<0.000000e+00> : vector<2x32xf32>
    %334 = tpu.matmul %333, %0, %cst_204 {dimension_numbers = #tpu.dot_dimension_numbers<[1], [0], [0], [1], [0, 0, 1, 1], [], []>} : vector<2x256xf32>, vector<256x32xf32>, vector<2x32xf32> -> vector<2x32xf32>
    %335 = vector.broadcast %1 : vector<1x32xf32> to vector<2x32xf32>
    %336 = arith.addf %334, %335 : vector<2x32xf32>
    %cst_205 = arith.constant 0.000000e+00 : f32
    %337 = vector.broadcast %cst_205 : f32 to vector<2x32xf32>
    %338 = arith.maximumf %336, %337 : vector<2x32xf32>
    %c33 = arith.constant 33 : index
    %c0_206 = arith.constant 0 : index
    %c0_207 = arith.constant 0 : index
    %339 = vector.load %arg4[%c33, %c0_206, %c0_207] : memref<49x32x256xf32, #tpu.memory_space<vmem>>, vector<1x32x256xf32>
    %340 = vector.shape_cast %339 : vector<1x32x256xf32> to vector<32x256xf32>
    %cst_208 = arith.constant dense<0.000000e+00> : vector<2x256xf32>
    %341 = tpu.matmul %338, %340, %cst_208 {dimension_numbers = #tpu.dot_dimension_numbers<[1], [0], [0], [1], [0, 0, 1, 1], [], []>} : vector<2x32xf32>, vector<32x256xf32>, vector<2x256xf32> -> vector<2x256xf32>
    %342 = arith.addf %332, %341 : vector<2x256xf32>
    %c0_209 = arith.constant 0 : index
    %c8704 = arith.constant 8704 : index
    %343 = vector.load %arg1[%c0_209, %c8704] : memref<2x12544xf32, #tpu.memory_space<vmem>>, vector<2x256xf32>
    %cst_210 = arith.constant dense<0.000000e+00> : vector<2x32xf32>
    %344 = tpu.matmul %343, %0, %cst_210 {dimension_numbers = #tpu.dot_dimension_numbers<[1], [0], [0], [1], [0, 0, 1, 1], [], []>} : vector<2x256xf32>, vector<256x32xf32>, vector<2x32xf32> -> vector<2x32xf32>
    %345 = vector.broadcast %1 : vector<1x32xf32> to vector<2x32xf32>
    %346 = arith.addf %344, %345 : vector<2x32xf32>
    %cst_211 = arith.constant 0.000000e+00 : f32
    %347 = vector.broadcast %cst_211 : f32 to vector<2x32xf32>
    %348 = arith.maximumf %346, %347 : vector<2x32xf32>
    %c34 = arith.constant 34 : index
    %c0_212 = arith.constant 0 : index
    %c0_213 = arith.constant 0 : index
    %349 = vector.load %arg4[%c34, %c0_212, %c0_213] : memref<49x32x256xf32, #tpu.memory_space<vmem>>, vector<1x32x256xf32>
    %350 = vector.shape_cast %349 : vector<1x32x256xf32> to vector<32x256xf32>
    %cst_214 = arith.constant dense<0.000000e+00> : vector<2x256xf32>
    %351 = tpu.matmul %348, %350, %cst_214 {dimension_numbers = #tpu.dot_dimension_numbers<[1], [0], [0], [1], [0, 0, 1, 1], [], []>} : vector<2x32xf32>, vector<32x256xf32>, vector<2x256xf32> -> vector<2x256xf32>
    %352 = arith.addf %342, %351 : vector<2x256xf32>
    %c0_215 = arith.constant 0 : index
    %c8960 = arith.constant 8960 : index
    %353 = vector.load %arg1[%c0_215, %c8960] : memref<2x12544xf32, #tpu.memory_space<vmem>>, vector<2x256xf32>
    %cst_216 = arith.constant dense<0.000000e+00> : vector<2x32xf32>
    %354 = tpu.matmul %353, %0, %cst_216 {dimension_numbers = #tpu.dot_dimension_numbers<[1], [0], [0], [1], [0, 0, 1, 1], [], []>} : vector<2x256xf32>, vector<256x32xf32>, vector<2x32xf32> -> vector<2x32xf32>
    %355 = vector.broadcast %1 : vector<1x32xf32> to vector<2x32xf32>
    %356 = arith.addf %354, %355 : vector<2x32xf32>
    %cst_217 = arith.constant 0.000000e+00 : f32
    %357 = vector.broadcast %cst_217 : f32 to vector<2x32xf32>
    %358 = arith.maximumf %356, %357 : vector<2x32xf32>
    %c35 = arith.constant 35 : index
    %c0_218 = arith.constant 0 : index
    %c0_219 = arith.constant 0 : index
    %359 = vector.load %arg4[%c35, %c0_218, %c0_219] : memref<49x32x256xf32, #tpu.memory_space<vmem>>, vector<1x32x256xf32>
    %360 = vector.shape_cast %359 : vector<1x32x256xf32> to vector<32x256xf32>
    %cst_220 = arith.constant dense<0.000000e+00> : vector<2x256xf32>
    %361 = tpu.matmul %358, %360, %cst_220 {dimension_numbers = #tpu.dot_dimension_numbers<[1], [0], [0], [1], [0, 0, 1, 1], [], []>} : vector<2x32xf32>, vector<32x256xf32>, vector<2x256xf32> -> vector<2x256xf32>
    %362 = arith.addf %352, %361 : vector<2x256xf32>
    %c0_221 = arith.constant 0 : index
    %c9216 = arith.constant 9216 : index
    %363 = vector.load %arg1[%c0_221, %c9216] : memref<2x12544xf32, #tpu.memory_space<vmem>>, vector<2x256xf32>
    %cst_222 = arith.constant dense<0.000000e+00> : vector<2x32xf32>
    %364 = tpu.matmul %363, %0, %cst_222 {dimension_numbers = #tpu.dot_dimension_numbers<[1], [0], [0], [1], [0, 0, 1, 1], [], []>} : vector<2x256xf32>, vector<256x32xf32>, vector<2x32xf32> -> vector<2x32xf32>
    %365 = vector.broadcast %1 : vector<1x32xf32> to vector<2x32xf32>
    %366 = arith.addf %364, %365 : vector<2x32xf32>
    %cst_223 = arith.constant 0.000000e+00 : f32
    %367 = vector.broadcast %cst_223 : f32 to vector<2x32xf32>
    %368 = arith.maximumf %366, %367 : vector<2x32xf32>
    %c36 = arith.constant 36 : index
    %c0_224 = arith.constant 0 : index
    %c0_225 = arith.constant 0 : index
    %369 = vector.load %arg4[%c36, %c0_224, %c0_225] : memref<49x32x256xf32, #tpu.memory_space<vmem>>, vector<1x32x256xf32>
    %370 = vector.shape_cast %369 : vector<1x32x256xf32> to vector<32x256xf32>
    %cst_226 = arith.constant dense<0.000000e+00> : vector<2x256xf32>
    %371 = tpu.matmul %368, %370, %cst_226 {dimension_numbers = #tpu.dot_dimension_numbers<[1], [0], [0], [1], [0, 0, 1, 1], [], []>} : vector<2x32xf32>, vector<32x256xf32>, vector<2x256xf32> -> vector<2x256xf32>
    %372 = arith.addf %362, %371 : vector<2x256xf32>
    %c0_227 = arith.constant 0 : index
    %c9472 = arith.constant 9472 : index
    %373 = vector.load %arg1[%c0_227, %c9472] : memref<2x12544xf32, #tpu.memory_space<vmem>>, vector<2x256xf32>
    %cst_228 = arith.constant dense<0.000000e+00> : vector<2x32xf32>
    %374 = tpu.matmul %373, %0, %cst_228 {dimension_numbers = #tpu.dot_dimension_numbers<[1], [0], [0], [1], [0, 0, 1, 1], [], []>} : vector<2x256xf32>, vector<256x32xf32>, vector<2x32xf32> -> vector<2x32xf32>
    %375 = vector.broadcast %1 : vector<1x32xf32> to vector<2x32xf32>
    %376 = arith.addf %374, %375 : vector<2x32xf32>
    %cst_229 = arith.constant 0.000000e+00 : f32
    %377 = vector.broadcast %cst_229 : f32 to vector<2x32xf32>
    %378 = arith.maximumf %376, %377 : vector<2x32xf32>
    %c37 = arith.constant 37 : index
    %c0_230 = arith.constant 0 : index
    %c0_231 = arith.constant 0 : index
    %379 = vector.load %arg4[%c37, %c0_230, %c0_231] : memref<49x32x256xf32, #tpu.memory_space<vmem>>, vector<1x32x256xf32>
    %380 = vector.shape_cast %379 : vector<1x32x256xf32> to vector<32x256xf32>
    %cst_232 = arith.constant dense<0.000000e+00> : vector<2x256xf32>
    %381 = tpu.matmul %378, %380, %cst_232 {dimension_numbers = #tpu.dot_dimension_numbers<[1], [0], [0], [1], [0, 0, 1, 1], [], []>} : vector<2x32xf32>, vector<32x256xf32>, vector<2x256xf32> -> vector<2x256xf32>
    %382 = arith.addf %372, %381 : vector<2x256xf32>
    %c0_233 = arith.constant 0 : index
    %c9728 = arith.constant 9728 : index
    %383 = vector.load %arg1[%c0_233, %c9728] : memref<2x12544xf32, #tpu.memory_space<vmem>>, vector<2x256xf32>
    %cst_234 = arith.constant dense<0.000000e+00> : vector<2x32xf32>
    %384 = tpu.matmul %383, %0, %cst_234 {dimension_numbers = #tpu.dot_dimension_numbers<[1], [0], [0], [1], [0, 0, 1, 1], [], []>} : vector<2x256xf32>, vector<256x32xf32>, vector<2x32xf32> -> vector<2x32xf32>
    %385 = vector.broadcast %1 : vector<1x32xf32> to vector<2x32xf32>
    %386 = arith.addf %384, %385 : vector<2x32xf32>
    %cst_235 = arith.constant 0.000000e+00 : f32
    %387 = vector.broadcast %cst_235 : f32 to vector<2x32xf32>
    %388 = arith.maximumf %386, %387 : vector<2x32xf32>
    %c38 = arith.constant 38 : index
    %c0_236 = arith.constant 0 : index
    %c0_237 = arith.constant 0 : index
    %389 = vector.load %arg4[%c38, %c0_236, %c0_237] : memref<49x32x256xf32, #tpu.memory_space<vmem>>, vector<1x32x256xf32>
    %390 = vector.shape_cast %389 : vector<1x32x256xf32> to vector<32x256xf32>
    %cst_238 = arith.constant dense<0.000000e+00> : vector<2x256xf32>
    %391 = tpu.matmul %388, %390, %cst_238 {dimension_numbers = #tpu.dot_dimension_numbers<[1], [0], [0], [1], [0, 0, 1, 1], [], []>} : vector<2x32xf32>, vector<32x256xf32>, vector<2x256xf32> -> vector<2x256xf32>
    %392 = arith.addf %382, %391 : vector<2x256xf32>
    %c0_239 = arith.constant 0 : index
    %c9984 = arith.constant 9984 : index
    %393 = vector.load %arg1[%c0_239, %c9984] : memref<2x12544xf32, #tpu.memory_space<vmem>>, vector<2x256xf32>
    %cst_240 = arith.constant dense<0.000000e+00> : vector<2x32xf32>
    %394 = tpu.matmul %393, %0, %cst_240 {dimension_numbers = #tpu.dot_dimension_numbers<[1], [0], [0], [1], [0, 0, 1, 1], [], []>} : vector<2x256xf32>, vector<256x32xf32>, vector<2x32xf32> -> vector<2x32xf32>
    %395 = vector.broadcast %1 : vector<1x32xf32> to vector<2x32xf32>
    %396 = arith.addf %394, %395 : vector<2x32xf32>
    %cst_241 = arith.constant 0.000000e+00 : f32
    %397 = vector.broadcast %cst_241 : f32 to vector<2x32xf32>
    %398 = arith.maximumf %396, %397 : vector<2x32xf32>
    %c39 = arith.constant 39 : index
    %c0_242 = arith.constant 0 : index
    %c0_243 = arith.constant 0 : index
    %399 = vector.load %arg4[%c39, %c0_242, %c0_243] : memref<49x32x256xf32, #tpu.memory_space<vmem>>, vector<1x32x256xf32>
    %400 = vector.shape_cast %399 : vector<1x32x256xf32> to vector<32x256xf32>
    %cst_244 = arith.constant dense<0.000000e+00> : vector<2x256xf32>
    %401 = tpu.matmul %398, %400, %cst_244 {dimension_numbers = #tpu.dot_dimension_numbers<[1], [0], [0], [1], [0, 0, 1, 1], [], []>} : vector<2x32xf32>, vector<32x256xf32>, vector<2x256xf32> -> vector<2x256xf32>
    %402 = arith.addf %392, %401 : vector<2x256xf32>
    %c0_245 = arith.constant 0 : index
    %c10240 = arith.constant 10240 : index
    %403 = vector.load %arg1[%c0_245, %c10240] : memref<2x12544xf32, #tpu.memory_space<vmem>>, vector<2x256xf32>
    %cst_246 = arith.constant dense<0.000000e+00> : vector<2x32xf32>
    %404 = tpu.matmul %403, %0, %cst_246 {dimension_numbers = #tpu.dot_dimension_numbers<[1], [0], [0], [1], [0, 0, 1, 1], [], []>} : vector<2x256xf32>, vector<256x32xf32>, vector<2x32xf32> -> vector<2x32xf32>
    %405 = vector.broadcast %1 : vector<1x32xf32> to vector<2x32xf32>
    %406 = arith.addf %404, %405 : vector<2x32xf32>
    %cst_247 = arith.constant 0.000000e+00 : f32
    %407 = vector.broadcast %cst_247 : f32 to vector<2x32xf32>
    %408 = arith.maximumf %406, %407 : vector<2x32xf32>
    %c40 = arith.constant 40 : index
    %c0_248 = arith.constant 0 : index
    %c0_249 = arith.constant 0 : index
    %409 = vector.load %arg4[%c40, %c0_248, %c0_249] : memref<49x32x256xf32, #tpu.memory_space<vmem>>, vector<1x32x256xf32>
    %410 = vector.shape_cast %409 : vector<1x32x256xf32> to vector<32x256xf32>
    %cst_250 = arith.constant dense<0.000000e+00> : vector<2x256xf32>
    %411 = tpu.matmul %408, %410, %cst_250 {dimension_numbers = #tpu.dot_dimension_numbers<[1], [0], [0], [1], [0, 0, 1, 1], [], []>} : vector<2x32xf32>, vector<32x256xf32>, vector<2x256xf32> -> vector<2x256xf32>
    %412 = arith.addf %402, %411 : vector<2x256xf32>
    %c0_251 = arith.constant 0 : index
    %c10496 = arith.constant 10496 : index
    %413 = vector.load %arg1[%c0_251, %c10496] : memref<2x12544xf32, #tpu.memory_space<vmem>>, vector<2x256xf32>
    %cst_252 = arith.constant dense<0.000000e+00> : vector<2x32xf32>
    %414 = tpu.matmul %413, %0, %cst_252 {dimension_numbers = #tpu.dot_dimension_numbers<[1], [0], [0], [1], [0, 0, 1, 1], [], []>} : vector<2x256xf32>, vector<256x32xf32>, vector<2x32xf32> -> vector<2x32xf32>
    %415 = vector.broadcast %1 : vector<1x32xf32> to vector<2x32xf32>
    %416 = arith.addf %414, %415 : vector<2x32xf32>
    %cst_253 = arith.constant 0.000000e+00 : f32
    %417 = vector.broadcast %cst_253 : f32 to vector<2x32xf32>
    %418 = arith.maximumf %416, %417 : vector<2x32xf32>
    %c41 = arith.constant 41 : index
    %c0_254 = arith.constant 0 : index
    %c0_255 = arith.constant 0 : index
    %419 = vector.load %arg4[%c41, %c0_254, %c0_255] : memref<49x32x256xf32, #tpu.memory_space<vmem>>, vector<1x32x256xf32>
    %420 = vector.shape_cast %419 : vector<1x32x256xf32> to vector<32x256xf32>
    %cst_256 = arith.constant dense<0.000000e+00> : vector<2x256xf32>
    %421 = tpu.matmul %418, %420, %cst_256 {dimension_numbers = #tpu.dot_dimension_numbers<[1], [0], [0], [1], [0, 0, 1, 1], [], []>} : vector<2x32xf32>, vector<32x256xf32>, vector<2x256xf32> -> vector<2x256xf32>
    %422 = arith.addf %412, %421 : vector<2x256xf32>
    %c0_257 = arith.constant 0 : index
    %c10752 = arith.constant 10752 : index
    %423 = vector.load %arg1[%c0_257, %c10752] : memref<2x12544xf32, #tpu.memory_space<vmem>>, vector<2x256xf32>
    %cst_258 = arith.constant dense<0.000000e+00> : vector<2x32xf32>
    %424 = tpu.matmul %423, %0, %cst_258 {dimension_numbers = #tpu.dot_dimension_numbers<[1], [0], [0], [1], [0, 0, 1, 1], [], []>} : vector<2x256xf32>, vector<256x32xf32>, vector<2x32xf32> -> vector<2x32xf32>
    %425 = vector.broadcast %1 : vector<1x32xf32> to vector<2x32xf32>
    %426 = arith.addf %424, %425 : vector<2x32xf32>
    %cst_259 = arith.constant 0.000000e+00 : f32
    %427 = vector.broadcast %cst_259 : f32 to vector<2x32xf32>
    %428 = arith.maximumf %426, %427 : vector<2x32xf32>
    %c42 = arith.constant 42 : index
    %c0_260 = arith.constant 0 : index
    %c0_261 = arith.constant 0 : index
    %429 = vector.load %arg4[%c42, %c0_260, %c0_261] : memref<49x32x256xf32, #tpu.memory_space<vmem>>, vector<1x32x256xf32>
    %430 = vector.shape_cast %429 : vector<1x32x256xf32> to vector<32x256xf32>
    %cst_262 = arith.constant dense<0.000000e+00> : vector<2x256xf32>
    %431 = tpu.matmul %428, %430, %cst_262 {dimension_numbers = #tpu.dot_dimension_numbers<[1], [0], [0], [1], [0, 0, 1, 1], [], []>} : vector<2x32xf32>, vector<32x256xf32>, vector<2x256xf32> -> vector<2x256xf32>
    %432 = arith.addf %422, %431 : vector<2x256xf32>
    %c0_263 = arith.constant 0 : index
    %c11008 = arith.constant 11008 : index
    %433 = vector.load %arg1[%c0_263, %c11008] : memref<2x12544xf32, #tpu.memory_space<vmem>>, vector<2x256xf32>
    %cst_264 = arith.constant dense<0.000000e+00> : vector<2x32xf32>
    %434 = tpu.matmul %433, %0, %cst_264 {dimension_numbers = #tpu.dot_dimension_numbers<[1], [0], [0], [1], [0, 0, 1, 1], [], []>} : vector<2x256xf32>, vector<256x32xf32>, vector<2x32xf32> -> vector<2x32xf32>
    %435 = vector.broadcast %1 : vector<1x32xf32> to vector<2x32xf32>
    %436 = arith.addf %434, %435 : vector<2x32xf32>
    %cst_265 = arith.constant 0.000000e+00 : f32
    %437 = vector.broadcast %cst_265 : f32 to vector<2x32xf32>
    %438 = arith.maximumf %436, %437 : vector<2x32xf32>
    %c43 = arith.constant 43 : index
    %c0_266 = arith.constant 0 : index
    %c0_267 = arith.constant 0 : index
    %439 = vector.load %arg4[%c43, %c0_266, %c0_267] : memref<49x32x256xf32, #tpu.memory_space<vmem>>, vector<1x32x256xf32>
    %440 = vector.shape_cast %439 : vector<1x32x256xf32> to vector<32x256xf32>
    %cst_268 = arith.constant dense<0.000000e+00> : vector<2x256xf32>
    %441 = tpu.matmul %438, %440, %cst_268 {dimension_numbers = #tpu.dot_dimension_numbers<[1], [0], [0], [1], [0, 0, 1, 1], [], []>} : vector<2x32xf32>, vector<32x256xf32>, vector<2x256xf32> -> vector<2x256xf32>
    %442 = arith.addf %432, %441 : vector<2x256xf32>
    %c0_269 = arith.constant 0 : index
    %c11264 = arith.constant 11264 : index
    %443 = vector.load %arg1[%c0_269, %c11264] : memref<2x12544xf32, #tpu.memory_space<vmem>>, vector<2x256xf32>
    %cst_270 = arith.constant dense<0.000000e+00> : vector<2x32xf32>
    %444 = tpu.matmul %443, %0, %cst_270 {dimension_numbers = #tpu.dot_dimension_numbers<[1], [0], [0], [1], [0, 0, 1, 1], [], []>} : vector<2x256xf32>, vector<256x32xf32>, vector<2x32xf32> -> vector<2x32xf32>
    %445 = vector.broadcast %1 : vector<1x32xf32> to vector<2x32xf32>
    %446 = arith.addf %444, %445 : vector<2x32xf32>
    %cst_271 = arith.constant 0.000000e+00 : f32
    %447 = vector.broadcast %cst_271 : f32 to vector<2x32xf32>
    %448 = arith.maximumf %446, %447 : vector<2x32xf32>
    %c44 = arith.constant 44 : index
    %c0_272 = arith.constant 0 : index
    %c0_273 = arith.constant 0 : index
    %449 = vector.load %arg4[%c44, %c0_272, %c0_273] : memref<49x32x256xf32, #tpu.memory_space<vmem>>, vector<1x32x256xf32>
    %450 = vector.shape_cast %449 : vector<1x32x256xf32> to vector<32x256xf32>
    %cst_274 = arith.constant dense<0.000000e+00> : vector<2x256xf32>
    %451 = tpu.matmul %448, %450, %cst_274 {dimension_numbers = #tpu.dot_dimension_numbers<[1], [0], [0], [1], [0, 0, 1, 1], [], []>} : vector<2x32xf32>, vector<32x256xf32>, vector<2x256xf32> -> vector<2x256xf32>
    %452 = arith.addf %442, %451 : vector<2x256xf32>
    %c0_275 = arith.constant 0 : index
    %c11520 = arith.constant 11520 : index
    %453 = vector.load %arg1[%c0_275, %c11520] : memref<2x12544xf32, #tpu.memory_space<vmem>>, vector<2x256xf32>
    %cst_276 = arith.constant dense<0.000000e+00> : vector<2x32xf32>
    %454 = tpu.matmul %453, %0, %cst_276 {dimension_numbers = #tpu.dot_dimension_numbers<[1], [0], [0], [1], [0, 0, 1, 1], [], []>} : vector<2x256xf32>, vector<256x32xf32>, vector<2x32xf32> -> vector<2x32xf32>
    %455 = vector.broadcast %1 : vector<1x32xf32> to vector<2x32xf32>
    %456 = arith.addf %454, %455 : vector<2x32xf32>
    %cst_277 = arith.constant 0.000000e+00 : f32
    %457 = vector.broadcast %cst_277 : f32 to vector<2x32xf32>
    %458 = arith.maximumf %456, %457 : vector<2x32xf32>
    %c45 = arith.constant 45 : index
    %c0_278 = arith.constant 0 : index
    %c0_279 = arith.constant 0 : index
    %459 = vector.load %arg4[%c45, %c0_278, %c0_279] : memref<49x32x256xf32, #tpu.memory_space<vmem>>, vector<1x32x256xf32>
    %460 = vector.shape_cast %459 : vector<1x32x256xf32> to vector<32x256xf32>
    %cst_280 = arith.constant dense<0.000000e+00> : vector<2x256xf32>
    %461 = tpu.matmul %458, %460, %cst_280 {dimension_numbers = #tpu.dot_dimension_numbers<[1], [0], [0], [1], [0, 0, 1, 1], [], []>} : vector<2x32xf32>, vector<32x256xf32>, vector<2x256xf32> -> vector<2x256xf32>
    %462 = arith.addf %452, %461 : vector<2x256xf32>
    %c0_281 = arith.constant 0 : index
    %c11776 = arith.constant 11776 : index
    %463 = vector.load %arg1[%c0_281, %c11776] : memref<2x12544xf32, #tpu.memory_space<vmem>>, vector<2x256xf32>
    %cst_282 = arith.constant dense<0.000000e+00> : vector<2x32xf32>
    %464 = tpu.matmul %463, %0, %cst_282 {dimension_numbers = #tpu.dot_dimension_numbers<[1], [0], [0], [1], [0, 0, 1, 1], [], []>} : vector<2x256xf32>, vector<256x32xf32>, vector<2x32xf32> -> vector<2x32xf32>
    %465 = vector.broadcast %1 : vector<1x32xf32> to vector<2x32xf32>
    %466 = arith.addf %464, %465 : vector<2x32xf32>
    %cst_283 = arith.constant 0.000000e+00 : f32
    %467 = vector.broadcast %cst_283 : f32 to vector<2x32xf32>
    %468 = arith.maximumf %466, %467 : vector<2x32xf32>
    %c46 = arith.constant 46 : index
    %c0_284 = arith.constant 0 : index
    %c0_285 = arith.constant 0 : index
    %469 = vector.load %arg4[%c46, %c0_284, %c0_285] : memref<49x32x256xf32, #tpu.memory_space<vmem>>, vector<1x32x256xf32>
    %470 = vector.shape_cast %469 : vector<1x32x256xf32> to vector<32x256xf32>
    %cst_286 = arith.constant dense<0.000000e+00> : vector<2x256xf32>
    %471 = tpu.matmul %468, %470, %cst_286 {dimension_numbers = #tpu.dot_dimension_numbers<[1], [0], [0], [1], [0, 0, 1, 1], [], []>} : vector<2x32xf32>, vector<32x256xf32>, vector<2x256xf32> -> vector<2x256xf32>
    %472 = arith.addf %462, %471 : vector<2x256xf32>
    %c0_287 = arith.constant 0 : index
    %c12032 = arith.constant 12032 : index
    %473 = vector.load %arg1[%c0_287, %c12032] : memref<2x12544xf32, #tpu.memory_space<vmem>>, vector<2x256xf32>
    %cst_288 = arith.constant dense<0.000000e+00> : vector<2x32xf32>
    %474 = tpu.matmul %473, %0, %cst_288 {dimension_numbers = #tpu.dot_dimension_numbers<[1], [0], [0], [1], [0, 0, 1, 1], [], []>} : vector<2x256xf32>, vector<256x32xf32>, vector<2x32xf32> -> vector<2x32xf32>
    %475 = vector.broadcast %1 : vector<1x32xf32> to vector<2x32xf32>
    %476 = arith.addf %474, %475 : vector<2x32xf32>
    %cst_289 = arith.constant 0.000000e+00 : f32
    %477 = vector.broadcast %cst_289 : f32 to vector<2x32xf32>
    %478 = arith.maximumf %476, %477 : vector<2x32xf32>
    %c47 = arith.constant 47 : index
    %c0_290 = arith.constant 0 : index
    %c0_291 = arith.constant 0 : index
    %479 = vector.load %arg4[%c47, %c0_290, %c0_291] : memref<49x32x256xf32, #tpu.memory_space<vmem>>, vector<1x32x256xf32>
    %480 = vector.shape_cast %479 : vector<1x32x256xf32> to vector<32x256xf32>
    %cst_292 = arith.constant dense<0.000000e+00> : vector<2x256xf32>
    %481 = tpu.matmul %478, %480, %cst_292 {dimension_numbers = #tpu.dot_dimension_numbers<[1], [0], [0], [1], [0, 0, 1, 1], [], []>} : vector<2x32xf32>, vector<32x256xf32>, vector<2x256xf32> -> vector<2x256xf32>
    %482 = arith.addf %472, %481 : vector<2x256xf32>
    %c0_293 = arith.constant 0 : index
    %c12288 = arith.constant 12288 : index
    %483 = vector.load %arg1[%c0_293, %c12288] : memref<2x12544xf32, #tpu.memory_space<vmem>>, vector<2x256xf32>
    %cst_294 = arith.constant dense<0.000000e+00> : vector<2x32xf32>
    %484 = tpu.matmul %483, %0, %cst_294 {dimension_numbers = #tpu.dot_dimension_numbers<[1], [0], [0], [1], [0, 0, 1, 1], [], []>} : vector<2x256xf32>, vector<256x32xf32>, vector<2x32xf32> -> vector<2x32xf32>
    %485 = vector.broadcast %1 : vector<1x32xf32> to vector<2x32xf32>
    %486 = arith.addf %484, %485 : vector<2x32xf32>
    %cst_295 = arith.constant 0.000000e+00 : f32
    %487 = vector.broadcast %cst_295 : f32 to vector<2x32xf32>
    %488 = arith.maximumf %486, %487 : vector<2x32xf32>
    %c48 = arith.constant 48 : index
    %c0_296 = arith.constant 0 : index
    %c0_297 = arith.constant 0 : index
    %489 = vector.load %arg4[%c48, %c0_296, %c0_297] : memref<49x32x256xf32, #tpu.memory_space<vmem>>, vector<1x32x256xf32>
    %490 = vector.shape_cast %489 : vector<1x32x256xf32> to vector<32x256xf32>
    %cst_298 = arith.constant dense<0.000000e+00> : vector<2x256xf32>
    %491 = tpu.matmul %488, %490, %cst_298 {dimension_numbers = #tpu.dot_dimension_numbers<[1], [0], [0], [1], [0, 0, 1, 1], [], []>} : vector<2x32xf32>, vector<32x256xf32>, vector<2x256xf32> -> vector<2x256xf32>
    %492 = arith.addf %482, %491 : vector<2x256xf32>
    %c0_299 = arith.constant 0 : index
    %c0_300 = arith.constant 0 : index
    %493 = vector.load %arg5[%c0_299, %c0_300] : memref<1x256xf32, #tpu.memory_space<vmem>>, vector<1x256xf32>
    %494 = vector.broadcast %493 : vector<1x256xf32> to vector<2x256xf32>
    %495 = arith.addf %492, %494 : vector<2x256xf32>
    %cst_301 = arith.constant 0.000000e+00 : f32
    %496 = vector.broadcast %cst_301 : f32 to vector<2x256xf32>
    %497 = arith.maximumf %495, %496 : vector<2x256xf32>
    %c0_302 = arith.constant 0 : index
    %c0_303 = arith.constant 0 : index
    %498 = vector.load %arg6[%c0_302, %c0_303] : memref<256x128xf32, #tpu.memory_space<vmem>>, vector<256x128xf32>
    %cst_304 = arith.constant dense<0.000000e+00> : vector<2x128xf32>
    %499 = tpu.matmul %497, %498, %cst_304 {dimension_numbers = #tpu.dot_dimension_numbers<[1], [0], [0], [1], [0, 0, 1, 1], [], []>} : vector<2x256xf32>, vector<256x128xf32>, vector<2x128xf32> -> vector<2x128xf32>
    %c0_305 = arith.constant 0 : index
    %c0_306 = arith.constant 0 : index
    %500 = vector.load %arg7[%c0_305, %c0_306] : memref<1x128xf32, #tpu.memory_space<vmem>>, vector<1x128xf32>
    %501 = vector.broadcast %500 : vector<1x128xf32> to vector<2x128xf32>
    %502 = arith.addf %499, %501 : vector<2x128xf32>
    %c0_307 = arith.constant 0 : index
    %c0_308 = arith.constant 0 : index
    %503 = vector.load %arg8[%c0_307, %c0_308] : memref<2x128xf32, #tpu.memory_space<vmem>>, vector<2x128xf32>
    tpu.vector_store %arg8[%c0_307, %c0_308], %502 {strides = array<i32>} : memref<2x128xf32, #tpu.memory_space<vmem>>, vector<2x128xf32>,
    return
  }
  func.func @transform_0(%arg0: i32) -> (i32, i32) {
    %c0_i32 = arith.constant 0 : i32
    %c0_i32_0 = arith.constant 0 : i32
    return %arg0, %c0_i32 : i32, i32
  }
  func.func @transform_1(%arg0: i32) -> (i32, i32) {
    %c0_i32 = arith.constant 0 : i32
    %c0_i32_0 = arith.constant 0 : i32
    %c0_i32_1 = arith.constant 0 : i32
    return %c0_i32, %c0_i32_0 : i32, i32
  }
  func.func @transform_2(%arg0: i32) -> (i32, i32) {
    %c0_i32 = arith.constant 0 : i32
    %c0_i32_0 = arith.constant 0 : i32
    %c0_i32_1 = arith.constant 0 : i32
    return %c0_i32, %c0_i32_0 : i32, i32
  }
  func.func @transform_3(%arg0: i32) -> (i32, i32, i32) {
    %c0_i32 = arith.constant 0 : i32
    %c0_i32_0 = arith.constant 0 : i32
    %c0_i32_1 = arith.constant 0 : i32
    %c0_i32_2 = arith.constant 0 : i32
    return %c0_i32, %c0_i32_0, %c0_i32_1 : i32, i32, i32
  }
  func.func @transform_4(%arg0: i32) -> (i32, i32) {
    %c0_i32 = arith.constant 0 : i32
    %c0_i32_0 = arith.constant 0 : i32
    %c0_i32_1 = arith.constant 0 : i32
    return %c0_i32, %c0_i32_0 : i32, i32
  }
  func.func @transform_5(%arg0: i32) -> (i32, i32) {
    %c0_i32 = arith.constant 0 : i32
    %c0_i32_0 = arith.constant 0 : i32
    %c0_i32_1 = arith.constant 0 : i32
    return %c0_i32, %c0_i32_0 : i32, i32
  }
  func.func @transform_6(%arg0: i32) -> (i32, i32) {
    %c0_i32 = arith.constant 0 : i32
    %c0_i32_0 = arith.constant 0 : i32
    %c0_i32_1 = arith.constant 0 : i32
    return %c0_i32, %c0_i32_0 : i32, i32
  }
  func.func @transform_7(%arg0: i32) -> (i32, i32) {
    %c0_i32 = arith.constant 0 : i32
    %c0_i32_0 = arith.constant 0 : i32
    return %arg0, %c0_i32 : i32, i32
  }
}

</mosaic_0001>

<bundles_post_ra>
// kernel: qnetwork_forward.2
= control target key start
LH: loop header
LB: loop body
LE: loop exit
PB: predicated region body
PF: predicated region fallthrough
CT: control target
= control target key end

     0   :  { %v781_v0 = vmov 0.0|0.0   ;;  %vm630_vm0 = vcmask 130048   ;;  %s1639_s1 = inlined_call_operand.vmem [shape: f32[256,16], index: 1, kind: input, shape index: {}]   ;;  %s1640_s0 = inlined_call_operand.vmem [shape: f32[512,256], index: 0, kind: input, shape index: {}]   ;;  %s1641_s2 = inlined_call_operand.vmem [shape: f32[1,16], index: 2, kind: input, shape index: {}]   ;;  %s1642_s3 = inlined_call_operand.vmem [shape: f32[512,16], index: 3, kind: output, shape index: {}]  }
   0x1   :  { %700 = vmatprep.subr.bf16.mxu0 %v781_v0  ;;  %748 = vmatprep.subr.bf16.mxu1 %v781_v0  ;;  %v142_v1 = vld [vmem:[%s1639_s1] sm:$0xff]  ;;  %v143_v2 = vld [vmem:[%s1639_s1 + $0x8] sm:$0xff]  ;;  %v144_v3 = vld [vmem:[%s1639_s1 + $0x10] sm:$0xff] }
   0x2   :  { %v701_v4 = vpack.c.bf16 %v143_v2, %v142_v1  ;;  %v145_v5 = vld [vmem:[%s1639_s1 + $0x18] sm:$0xff]  ;;  %v146_v7 = vld [vmem:[%s1639_s1 + $0x20] sm:$0xff]  ;;  %v147_v8 = vld [vmem:[%s1639_s1 + $0x28] sm:$0xff] }
   0x3   :  { %v704_v6 = vpack.c.bf16 %v145_v5, %v144_v3  ;;  %v707_v9 = vpack.c.bf16 %v147_v8, %v146_v7  ;;  %v148_v10 = vld [vmem:[%s1639_s1 + $0x30] sm:$0xff]  ;;  %v149_v11 = vld [vmem:[%s1639_s1 + $0x38] sm:$0xff]  ;;  %v15_v12 = vld [vmem:[%s1640_s0 + $0x8] sm:$0xff] }
   0x4   :  { %702 = vmatpush1.bf16.msra.mxu0 %v701_v4  ;;  %764 = vmatpush1.bf16.msra.mxu1 %v701_v4  ;;  %v710_v13 = vpack.c.bf16 %v149_v11, %v148_v10  ;;  %v79_v14 = vld [vmem:[%s1640_s0 + $0x208] sm:$0xff]  ;;  %v150_v15 = vld [vmem:[%s1639_s1 + $0x40] sm:$0xff]  ;;  %v152_v18 = vld [vmem:[%s1639_s1 + $0x50] sm:$0xff] }
   0x5   :  { %703 = vmatprep.subr.bf16.mxu0 %v781_v0  ;;  %749 = vmatprep.subr.bf16.mxu1 %v781_v0  ;;  %v151_v16 = vld [vmem:[%s1639_s1 + $0x48] sm:$0xff]  ;;  %v153_v19 = vld [vmem:[%s1639_s1 + $0x58] sm:$0xff]  ;;  %v154_v21 = vld [vmem:[%s1639_s1 + $0x60] sm:$0xff] }
   0x6   :  { %245 = vmatprep.mubr.f32.mxu0 %v15_v12  ;;  %405 = vmatprep.mubr.f32.mxu1 %v79_v14  ;;  %v713_v17 = vpack.c.bf16 %v151_v16, %v150_v15  ;;  %v716_v20 = vpack.c.bf16 %v153_v19, %v152_v18  ;;  %v155_v22 = vld [vmem:[%s1639_s1 + $0x68] sm:$0xff]  ;;  %v156_v24 = vld [vmem:[%s1639_s1 + $0x70] sm:$0xff]  ;;  %v157_v25 = vld [vmem:[%s1639_s1 + $0x78] sm:$0xff] }
   0x7   :  { %v719_v23 = vpack.c.bf16 %v155_v22, %v154_v21  ;;  %v722_v26 = vpack.c.bf16 %v157_v25, %v156_v24  ;;  %v158_v27 = vld [vmem:[%s1639_s1 + $0x80] sm:$0xff]  ;;  %v159_v28 = vld [vmem:[%s1639_s1 + $0x88] sm:$0xff]  ;;  %v160_v30 = vld [vmem:[%s1639_s1 + $0x90] sm:$0xff] }
   0x8   :  { %705 = vmatpush1.bf16.msra.mxu0 %v704_v6  ;;  %765 = vmatpush1.bf16.msra.mxu1 %v704_v6  ;;  %v725_v29 = vpack.c.bf16 %v159_v28, %v158_v27  ;;  %v161_v31 = vld [vmem:[%s1639_s1 + $0x98] sm:$0xff]  ;;  %v162_v33 = vld [vmem:[%s1639_s1 + $0xa0] sm:$0xff]  ;;  %v163_v34 = vld [vmem:[%s1639_s1 + $0xa8] sm:$0xff] }
   0x9   :  { %706 = vmatprep.subr.bf16.mxu0 %v781_v0  ;;  %750 = vmatprep.subr.bf16.mxu1 %v781_v0  ;;  %v728_v32 = vpack.c.bf16 %v161_v31, %v160_v30  ;;  %v731_v35 = vpack.c.bf16 %v163_v34, %v162_v33  ;;  %v164_v36 = vld [vmem:[%s1639_s1 + $0xb0] sm:$0xff]  ;;  %v165_v37 = vld [vmem:[%s1639_s1 + $0xb8] sm:$0xff]  ;;  %v166_v39 = vld [vmem:[%s1639_s1 + $0xc0] sm:$0xff] }
   0xa   :  { %v734_v38 = vpack.c.bf16 %v165_v37, %v164_v36  ;;  %v167_v40 = vld [vmem:[%s1639_s1 + $0xc8] sm:$0xff]  ;;  %v168_v42 = vld [vmem:[%s1639_s1 + $0xd0] sm:$0xff]  ;;  %v169_v43 = vld [vmem:[%s1639_s1 + $0xd8] sm:$0xff] }
   0xb   :  { %v737_v41 = vpack.c.bf16 %v167_v40, %v166_v39  ;;  %v740_v44 = vpack.c.bf16 %v169_v43, %v168_v42  ;;  %v170_v45 = vld [vmem:[%s1639_s1 + $0xe0] sm:$0xff]  ;;  %v171_v46 = vld [vmem:[%s1639_s1 + $0xe8] sm:$0xff]  ;;  %v172_v48 = vld [vmem:[%s1639_s1 + $0xf0] sm:$0xff] }
   0xc   :  { %708 = vmatpush1.bf16.msra.mxu0 %v707_v9  ;;  %766 = vmatpush1.bf16.msra.mxu1 %v707_v9  ;;  %v743_v47 = vpack.c.bf16 %v171_v46, %v170_v45  ;;  %v173_v49 = vld [vmem:[%s1639_s1 + $0xf8] sm:$0xff]  ;;  %v14_v51 = vld [vmem:[%s1640_s0] sm:$0xff]  ;;  %v16_v55 = vld [vmem:[%s1640_s0 + $0x10] sm:$0xff] }
   0xd   :  { %709 = vmatprep.subr.bf16.mxu0 %v781_v0  ;;  %751 = vmatprep.subr.bf16.mxu1 %v781_v0  ;;  %v746_v50 = vpack.c.bf16 %v173_v49, %v172_v48  ;;  %v78_v52 = vld [vmem:[%s1640_s0 + $0x200] sm:$0xff]  ;;  %v17_v53 = vld [vmem:[%s1640_s0 + $0x18] sm:$0xff]  ;;  %v80_v56 = vld [vmem:[%s1640_s0 + $0x210] sm:$0xff] }
   0xe   :  { %v81_v54 = vld [vmem:[%s1640_s0 + $0x218] sm:$0xff]  ;;  %v19_v57 = vld [vmem:[%s1640_s0 + $0x28] sm:$0xff]  ;;  %v18_v59 = vld [vmem:[%s1640_s0 + $0x20] sm:$0xff] }
   0xf   :  { %v83_v58 = vld [vmem:[%s1640_s0 + $0x228] sm:$0xff]  ;;  %v82_v60 = vld [vmem:[%s1640_s0 + $0x220] sm:$0xff]  ;;  %v21_v61 = vld [vmem:[%s1640_s0 + $0x38] sm:$0xff] }
  0x10   :  { %711 = vmatpush1.bf16.msra.mxu0 %v710_v13  ;;  %767 = vmatpush1.bf16.msra.mxu1 %v710_v13  ;;  %v85_v62 = vld [vmem:[%s1640_s0 + $0x238] sm:$0xff]  ;;  %v20_v63 = vld [vmem:[%s1640_s0 + $0x30] sm:$0xff]  ;;  %v23_v1 = vld [vmem:[%s1640_s0 + $0x48] sm:$0xff] }
  0x11   :  { %712 = vmatprep.subr.bf16.mxu0 %v781_v0  ;;  %752 = vmatprep.subr.bf16.mxu1 %v781_v0  ;;  %v87_v2 = vld [vmem:[%s1640_s0 + $0x248] sm:$0xff]  ;;  %v22_v3 = vld [vmem:[%s1640_s0 + $0x40] sm:$0xff]  ;;  %v25_v5 = vld [vmem:[%s1640_s0 + $0x58] sm:$0xff] }
  0x12   :  { %v86_v4 = vld [vmem:[%s1640_s0 + $0x240] sm:$0xff]  ;;  %v89_v6 = vld [vmem:[%s1640_s0 + $0x258] sm:$0xff]  ;;  %v24_v7 = vld [vmem:[%s1640_s0 + $0x50] sm:$0xff] }
  0x13   :  { %v88_v8 = vld [vmem:[%s1640_s0 + $0x250] sm:$0xff]  ;;  %v27_v9 = vld [vmem:[%s1640_s0 + $0x68] sm:$0xff]  ;;  %v26_v11 = vld [vmem:[%s1640_s0 + $0x60] sm:$0xff] }
  0x14   :  { %714 = vmatpush1.bf16.msra.mxu0 %v713_v17  ;;  %768 = vmatpush1.bf16.msra.mxu1 %v713_v17  ;;  %v91_v10 = vld [vmem:[%s1640_s0 + $0x268] sm:$0xff]  ;;  %v90_v12 = vld [vmem:[%s1640_s0 + $0x260] sm:$0xff]  ;;  %v29_v13 = vld [vmem:[%s1640_s0 + $0x78] sm:$0xff] }
  0x15   :  { %715 = vmatprep.subr.bf16.mxu0 %v781_v0  ;;  %753 = vmatprep.subr.bf16.mxu1 %v781_v0  ;;  %v93_v14 = vld [vmem:[%s1640_s0 + $0x278] sm:$0xff]  ;;  %v28_v15 = vld [vmem:[%s1640_s0 + $0x70] sm:$0xff]  ;;  %v31_v17 = vld [vmem:[%s1640_s0 + $0x88] sm:$0xff] }
  0x16   :  { %v92_v16 = vld [vmem:[%s1640_s0 + $0x270] sm:$0xff]  ;;  %v95_v18 = vld [vmem:[%s1640_s0 + $0x288] sm:$0xff]  ;;  %v30_v19 = vld [vmem:[%s1640_s0 + $0x80] sm:$0xff] }
  0x17   :  { %v33_v21 = vld [vmem:[%s1640_s0 + $0x98] sm:$0xff]  ;;  %v96_v24 = vld [vmem:[%s1640_s0 + $0x290] sm:$0xff]  ;;  %v35_v25 = vld [vmem:[%s1640_s0 + $0xa8] sm:$0xff] }
  0x18   :  { %717 = vmatpush1.bf16.msra.mxu0 %v716_v20  ;;  %769 = vmatpush1.bf16.msra.mxu1 %v716_v20  ;;  %v94_v20 = vld [vmem:[%s1640_s0 + $0x280] sm:$0xff]  ;;  %v97_v22 = vld [vmem:[%s1640_s0 + $0x298] sm:$0xff]  ;;  %v36_v31 = vld [vmem:[%s1640_s0 + $0xb0] sm:$0xff] }
  0x19   :  { %718 = vmatprep.subr.bf16.mxu0 %v781_v0  ;;  %754 = vmatprep.subr.bf16.mxu1 %v781_v0  ;;  %v34_v27 = vld [vmem:[%s1640_s0 + $0xa0] sm:$0xff]  ;;  %v101_v30 = vld [vmem:[%s1640_s0 + $0x2b8] sm:$0xff]  ;;  %v39_v33 = vld [vmem:[%s1640_s0 + $0xc8] sm:$0xff] }
  0x1a   :  { %v98_v28 = vld [vmem:[%s1640_s0 + $0x2a0] sm:$0xff]  ;;  %v103_v34 = vld [vmem:[%s1640_s0 + $0x2c8] sm:$0xff]  ;;  %v41_v37 = vld [vmem:[%s1640_s0 + $0xd8] sm:$0xff] }
  0x1b   :  { %v102_v36 = vld [vmem:[%s1640_s0 + $0x2c0] sm:$0xff]  ;;  %v40_v39 = vld [vmem:[%s1640_s0 + $0xd0] sm:$0xff]  ;;  %v107_v42 = vld [vmem:[%s1640_s0 + $0x2e8] sm:$0xff] }
  0x1c   :  { %720 = vmatpush1.bf16.msra.mxu0 %v719_v23  ;;  %770 = vmatpush1.bf16.msra.mxu1 %v719_v23  ;;  %v32_v23 = vld [vmem:[%s1640_s0 + $0x90] sm:$0xff]  ;;  %v42_v43 = vld [vmem:[%s1640_s0 + $0xe0] sm:$0xff]  ;;  %v45_v45 = vld [vmem:[%s1640_s0 + $0xf8] sm:$0xff] }
  0x1d   :  { %721 = vmatprep.subr.bf16.mxu0 %v781_v0  ;;  %755 = vmatprep.subr.bf16.mxu1 %v781_v0  ;;  %v104_v40 = vld [vmem:[%s1640_s0 + $0x2d0] sm:$0xff]  ;;  %v109_v46 = vld [vmem:[%s1640_s0 + $0x2f8] sm:$0xff]  ;;  %v47_v49 = vld [vmem:[%s1640_s0 + $0x108] sm:$0xff] }
  0x1e   :  { %v108_v48 = vld [vmem:[%s1640_s0 + $0x2f0] sm:$0xff] }
  0x20   :  { %723 = vmatpush1.bf16.msra.mxu0 %v722_v26  ;;  %771 = vmatpush1.bf16.msra.mxu1 %v722_v26  ;;  %v99_v26 = vld [vmem:[%s1640_s0 + $0x2a8] sm:$0xff] }
  0x21   :  { %724 = vmatprep.subr.bf16.mxu0 %v781_v0  ;;  %756 = vmatprep.subr.bf16.mxu1 %v781_v0 }
  0x24   :  { %726 = vmatpush1.bf16.msra.mxu0 %v725_v29  ;;  %772 = vmatpush1.bf16.msra.mxu1 %v725_v29  ;;  %v37_v29 = vld [vmem:[%s1640_s0 + $0xb8] sm:$0xff] }
  0x25   :  { %727 = vmatprep.subr.bf16.mxu0 %v781_v0  ;;  %757 = vmatprep.subr.bf16.mxu1 %v781_v0 }
  0x28   :  { %729 = vmatpush1.bf16.msra.mxu0 %v728_v32  ;;  %773 = vmatpush1.bf16.msra.mxu1 %v728_v32  ;;  %v100_v32 = vld [vmem:[%s1640_s0 + $0x2b0] sm:$0xff] }
  0x29   :  { %730 = vmatprep.subr.bf16.mxu0 %v781_v0  ;;  %758 = vmatprep.subr.bf16.mxu1 %v781_v0 }
  0x2c   :  { %732 = vmatpush1.bf16.msra.mxu0 %v731_v35  ;;  %774 = vmatpush1.bf16.msra.mxu1 %v731_v35  ;;  %v38_v35 = vld [vmem:[%s1640_s0 + $0xc0] sm:$0xff] }
  0x2d   :  { %733 = vmatprep.subr.bf16.mxu0 %v781_v0  ;;  %759 = vmatprep.subr.bf16.mxu1 %v781_v0 }
  0x30   :  { %735 = vmatpush1.bf16.msra.mxu0 %v734_v38  ;;  %775 = vmatpush1.bf16.msra.mxu1 %v734_v38  ;;  %v105_v38 = vld [vmem:[%s1640_s0 + $0x2d8] sm:$0xff] }
  0x31   :  { %736 = vmatprep.subr.bf16.mxu0 %v781_v0  ;;  %760 = vmatprep.subr.bf16.mxu1 %v781_v0 }
  0x34   :  { %738 = vmatpush1.bf16.msra.mxu0 %v737_v41  ;;  %776 = vmatpush1.bf16.msra.mxu1 %v737_v41  ;;  %v43_v41 = vld [vmem:[%s1640_s0 + $0xe8] sm:$0xff] }
  0x35   :  { %739 = vmatprep.subr.bf16.mxu0 %v781_v0  ;;  %761 = vmatprep.subr.bf16.mxu1 %v781_v0 }
  0x38   :  { %741 = vmatpush1.bf16.msra.mxu0 %v740_v44  ;;  %777 = vmatpush1.bf16.msra.mxu1 %v740_v44  ;;  %v106_v44 = vld [vmem:[%s1640_s0 + $0x2e0] sm:$0xff] }
  0x39   :  { %742 = vmatprep.subr.bf16.mxu0 %v781_v0  ;;  %762 = vmatprep.subr.bf16.mxu1 %v781_v0 }
  0x3c   :  { %744 = vmatpush1.bf16.msra.mxu0 %v743_v47  ;;  %778 = vmatpush1.bf16.msra.mxu1 %v743_v47  ;;  %v44_v47 = vld [vmem:[%s1640_s0 + $0xf0] sm:$0xff] }
  0x3d   :  { %745 = vmatprep.subr.bf16.mxu0 %v781_v0  ;;  %763 = vmatprep.subr.bf16.mxu1 %v781_v0  ;;  %v84_v0 = vld [vmem:[%s1640_s0 + $0x230] sm:$0xff] }
  0x40   :  { %747 = vmatpush1.bf16.msra.mxu0 %v746_v50  ;;  %779 = vmatpush1.bf16.msra.mxu1 %v746_v50  ;;  %v111_v50 = vld [vmem:[%s1640_s0 + $0x308] sm:$0xff] }
  0x43   :  { %246 = vmatmul.mubr.f32.vlgmr.msra.gmra.mrb[0].mxu0 %v14_v51  ;;  %406 = vmatmul.mubr.f32.vlgmr.msra.gmra.mrb[0].mxu1 %v78_v52  ;;  %v46_v51 = vld [vmem:[%s1640_s0 + $0x100] sm:$0xff] }
  0x44   :  { %250 = vmatprep.mubr.f32.mxu0 %v17_v53  ;;  %410 = vmatprep.mubr.f32.mxu1 %v81_v54  ;;  %v110_v52 = vld [vmem:[%s1640_s0 + $0x300] sm:$0xff]  ;;  %v49_v53 = vld [vmem:[%s1640_s0 + $0x118] sm:$0xff] }
  0x45   :  { %v113_v54 = vld [vmem:[%s1640_s0 + $0x318] sm:$0xff] }
  0x47   :  { %251 = vmatmul.mubr.f32.gmra.mrb[2].mxu0 %v16_v55  ;;  %411 = vmatmul.mubr.f32.gmra.mrb[2].mxu1 %v80_v56  ;;  %v48_v55 = vld [vmem:[%s1640_s0 + $0x110] sm:$0xff] }
  0x48   :  { %255 = vmatprep.mubr.f32.mxu0 %v19_v57  ;;  %415 = vmatprep.mubr.f32.mxu1 %v83_v58  ;;  %v112_v56 = vld [vmem:[%s1640_s0 + $0x310] sm:$0xff]  ;;  %v51_v57 = vld [vmem:[%s1640_s0 + $0x128] sm:$0xff] }
  0x49   :  { %v115_v58 = vld [vmem:[%s1640_s0 + $0x328] sm:$0xff] }
  0x4b   :  { %256 = vmatmul.mubr.f32.gmra.mrb[4].mxu0 %v18_v59  ;;  %416 = vmatmul.mubr.f32.gmra.mrb[4].mxu1 %v82_v60  ;;  %v50_v59 = vld [vmem:[%s1640_s0 + $0x120] sm:$0xff] }
  0x4c   :  { %260 = vmatprep.mubr.f32.mxu0 %v21_v61  ;;  %420 = vmatprep.mubr.f32.mxu1 %v85_v62  ;;  %v114_v60 = vld [vmem:[%s1640_s0 + $0x320] sm:$0xff]  ;;  %v53_v61 = vld [vmem:[%s1640_s0 + $0x138] sm:$0xff] }
  0x4d   :  { %v117_v62 = vld [vmem:[%s1640_s0 + $0x338] sm:$0xff] }
  0x4f   :  { %261 = vmatmul.mubr.f32.gmra.mrb[6].mxu0 %v20_v63  ;;  %421 = vmatmul.mubr.f32.gmra.mrb[6].mxu1 %v84_v0  ;;  %v52_v63 = vld [vmem:[%s1640_s0 + $0x130] sm:$0xff] }
  0x50   :  { %265 = vmatprep.mubr.f32.mxu0 %v23_v1  ;;  %425 = vmatprep.mubr.f32.mxu1 %v87_v2  ;;  %v116_v0 = vld [vmem:[%s1640_s0 + $0x330] sm:$0xff]  ;;  %v55_v1 = vld [vmem:[%s1640_s0 + $0x148] sm:$0xff] }
  0x51   :  { %v119_v2 = vld [vmem:[%s1640_s0 + $0x348] sm:$0xff] }
  0x53   :  { %266 = vmatmul.mubr.f32.gmra.mrb[8].mxu0 %v22_v3  ;;  %426 = vmatmul.mubr.f32.gmra.mrb[8].mxu1 %v86_v4  ;;  %v54_v3 = vld [vmem:[%s1640_s0 + $0x140] sm:$0xff] }
  0x54   :  { %270 = vmatprep.mubr.f32.mxu0 %v25_v5  ;;  %430 = vmatprep.mubr.f32.mxu1 %v89_v6  ;;  %v118_v4 = vld [vmem:[%s1640_s0 + $0x340] sm:$0xff]  ;;  %v57_v5 = vld [vmem:[%s1640_s0 + $0x158] sm:$0xff] }
  0x55   :  { %v121_v6 = vld [vmem:[%s1640_s0 + $0x358] sm:$0xff] }
  0x57   :  { %271 = vmatmul.mubr.f32.gmra.mrb[10].mxu0 %v24_v7  ;;  %431 = vmatmul.mubr.f32.gmra.mrb[10].mxu1 %v88_v8  ;;  %v56_v7 = vld [vmem:[%s1640_s0 + $0x150] sm:$0xff] }
  0x58   :  { %275 = vmatprep.mubr.f32.mxu0 %v27_v9  ;;  %435 = vmatprep.mubr.f32.mxu1 %v91_v10  ;;  %v120_v8 = vld [vmem:[%s1640_s0 + $0x350] sm:$0xff]  ;;  %v59_v9 = vld [vmem:[%s1640_s0 + $0x168] sm:$0xff] }
  0x59   :  { %v123_v10 = vld [vmem:[%s1640_s0 + $0x368] sm:$0xff] }
  0x5b   :  { %276 = vmatmul.mubr.f32.gmra.mrb[12].mxu0 %v26_v11  ;;  %436 = vmatmul.mubr.f32.gmra.mrb[12].mxu1 %v90_v12  ;;  %v58_v11 = vld [vmem:[%s1640_s0 + $0x160] sm:$0xff] }
  0x5c   :  { %280 = vmatprep.mubr.f32.mxu0 %v29_v13  ;;  %440 = vmatprep.mubr.f32.mxu1 %v93_v14  ;;  %v122_v12 = vld [vmem:[%s1640_s0 + $0x360] sm:$0xff]  ;;  %v61_v13 = vld [vmem:[%s1640_s0 + $0x178] sm:$0xff] }
  0x5d   :  { %v125_v14 = vld [vmem:[%s1640_s0 + $0x378] sm:$0xff] }
  0x5f   :  { %281 = vmatmul.mubr.f32.gmra.mrb[14].mxu0 %v28_v15  ;;  %441 = vmatmul.mubr.f32.gmra.mrb[14].mxu1 %v92_v16  ;;  %v60_v15 = vld [vmem:[%s1640_s0 + $0x170] sm:$0xff] }
  0x60   :  { %285 = vmatprep.mubr.f32.mxu0 %v31_v17  ;;  %445 = vmatprep.mubr.f32.mxu1 %v95_v18  ;;  %v124_v16 = vld [vmem:[%s1640_s0 + $0x370] sm:$0xff]  ;;  %v63_v17 = vld [vmem:[%s1640_s0 + $0x188] sm:$0xff] }
  0x61   :  { %v127_v18 = vld [vmem:[%s1640_s0 + $0x388] sm:$0xff] }
  0x63   :  { %286 = vmatmul.mubr.f32.gmra.mrb[16].mxu0 %v30_v19  ;;  %446 = vmatmul.mubr.f32.gmra.mrb[16].mxu1 %v94_v20  ;;  %v62_v19 = vld [vmem:[%s1640_s0 + $0x180] sm:$0xff] }
  0x64   :  { %290 = vmatprep.mubr.f32.mxu0 %v33_v21  ;;  %450 = vmatprep.mubr.f32.mxu1 %v97_v22  ;;  %v126_v20 = vld [vmem:[%s1640_s0 + $0x380] sm:$0xff]  ;;  %v65_v21 = vld [vmem:[%s1640_s0 + $0x198] sm:$0xff] }
  0x65   :  { %v129_v22 = vld [vmem:[%s1640_s0 + $0x398] sm:$0xff] }
  0x67   :  { %291 = vmatmul.mubr.f32.gmra.mrb[18].mxu0 %v32_v23  ;;  %451 = vmatmul.mubr.f32.gmra.mrb[18].mxu1 %v96_v24  ;;  %v64_v23 = vld [vmem:[%s1640_s0 + $0x190] sm:$0xff] }
  0x68   :  { %295 = vmatprep.mubr.f32.mxu0 %v35_v25  ;;  %455 = vmatprep.mubr.f32.mxu1 %v99_v26  ;;  %v128_v24 = vld [vmem:[%s1640_s0 + $0x390] sm:$0xff]  ;;  %v67_v25 = vld [vmem:[%s1640_s0 + $0x1a8] sm:$0xff] }
  0x69   :  { %v131_v26 = vld [vmem:[%s1640_s0 + $0x3a8] sm:$0xff] }
  0x6b   :  { %296 = vmatmul.mubr.f32.gmra.mrb[20].mxu0 %v34_v27  ;;  %456 = vmatmul.mubr.f32.gmra.mrb[20].mxu1 %v98_v28  ;;  %v66_v27 = vld [vmem:[%s1640_s0 + $0x1a0] sm:$0xff] }
  0x6c   :  { %300 = vmatprep.mubr.f32.mxu0 %v37_v29  ;;  %460 = vmatprep.mubr.f32.mxu1 %v101_v30  ;;  %v130_v28 = vld [vmem:[%s1640_s0 + $0x3a0] sm:$0xff]  ;;  %v69_v29 = vld [vmem:[%s1640_s0 + $0x1b8] sm:$0xff] }
  0x6d   :  { %v133_v30 = vld [vmem:[%s1640_s0 + $0x3b8] sm:$0xff] }
  0x6f   :  { %301 = vmatmul.mubr.f32.gmra.mrb[22].mxu0 %v36_v31  ;;  %461 = vmatmul.mubr.f32.gmra.mrb[22].mxu1 %v100_v32  ;;  %v68_v31 = vld [vmem:[%s1640_s0 + $0x1b0] sm:$0xff] }
  0x70   :  { %305 = vmatprep.mubr.f32.mxu0 %v39_v33  ;;  %465 = vmatprep.mubr.f32.mxu1 %v103_v34  ;;  %v132_v32 = vld [vmem:[%s1640_s0 + $0x3b0] sm:$0xff]  ;;  %v71_v33 = vld [vmem:[%s1640_s0 + $0x1c8] sm:$0xff] }
  0x71   :  { %v135_v34 = vld [vmem:[%s1640_s0 + $0x3c8] sm:$0xff] }
  0x73   :  { %306 = vmatmul.mubr.f32.gmra.mrb[24].mxu0 %v38_v35  ;;  %466 = vmatmul.mubr.f32.gmra.mrb[24].mxu1 %v102_v36  ;;  %v70_v35 = vld [vmem:[%s1640_s0 + $0x1c0] sm:$0xff] }
  0x74   :  { %310 = vmatprep.mubr.f32.mxu0 %v41_v37  ;;  %470 = vmatprep.mubr.f32.mxu1 %v105_v38  ;;  %v134_v36 = vld [vmem:[%s1640_s0 + $0x3c0] sm:$0xff]  ;;  %v73_v37 = vld [vmem:[%s1640_s0 + $0x1d8] sm:$0xff] }
  0x75   :  { %v137_v38 = vld [vmem:[%s1640_s0 + $0x3d8] sm:$0xff] }
  0x77   :  { %311 = vmatmul.mubr.f32.gmra.mrb[26].mxu0 %v40_v39  ;;  %471 = vmatmul.mubr.f32.gmra.mrb[26].mxu1 %v104_v40  ;;  %v72_v39 = vld [vmem:[%s1640_s0 + $0x1d0] sm:$0xff] }
  0x78   :  { %315 = vmatprep.mubr.f32.mxu0 %v43_v41  ;;  %475 = vmatprep.mubr.f32.mxu1 %v107_v42  ;;  %v136_v40 = vld [vmem:[%s1640_s0 + $0x3d0] sm:$0xff]  ;;  %v75_v41 = vld [vmem:[%s1640_s0 + $0x1e8] sm:$0xff] }
  0x79   :  { %v139_v42 = vld [vmem:[%s1640_s0 + $0x3e8] sm:$0xff] }
  0x7b   :  { %316 = vmatmul.mubr.f32.gmra.mrb[28].mxu0 %v42_v43  ;;  %476 = vmatmul.mubr.f32.gmra.mrb[28].mxu1 %v106_v44  ;;  %v74_v43 = vld [vmem:[%s1640_s0 + $0x1e0] sm:$0xff] }
  0x7c   :  { %320 = vmatprep.mubr.f32.mxu0 %v45_v45  ;;  %480 = vmatprep.mubr.f32.mxu1 %v109_v46  ;;  %v138_v44 = vld [vmem:[%s1640_s0 + $0x3e0] sm:$0xff]  ;;  %v77_v45 = vld [vmem:[%s1640_s0 + $0x1f8] sm:$0xff] }
  0x7d   :  { %v141_v46 = vld [vmem:[%s1640_s0 + $0x3f8] sm:$0xff] }
  0x7f   :  { %321 = vmatmul.mubr.f32.gmra.mrb[30].mxu0 %v44_v47  ;;  %481 = vmatmul.mubr.f32.gmra.mrb[30].mxu1 %v108_v48  ;;  %v76_v47 = vld [vmem:[%s1640_s0 + $0x1f0] sm:$0xff] }
  0x80   :  { %325 = vmatprep.mubr.f32.mxu0 %v47_v49  ;;  %485 = vmatprep.mubr.f32.mxu1 %v111_v50  ;;  %v140_v48 = vld [vmem:[%s1640_s0 + $0x3f0] sm:$0xff]  ;;  %v1317_v49 = vld [vmem:[%s1641_s2] ss:$0 sm:$0xff] }
  0x83   :  { %326 = vmatmul.mubr.f32.gmra.mrb[32].mxu0 %v46_v51  ;;  %486 = vmatmul.mubr.f32.gmra.mrb[32].mxu1 %v110_v52 }
  0x84   :  { %330 = vmatprep.mubr.f32.mxu0 %v49_v53  ;;  %490 = vmatprep.mubr.f32.mxu1 %v113_v54 }
  0x87   :  { %331 = vmatmul.mubr.f32.gmra.mrb[34].mxu0 %v48_v55  ;;  %491 = vmatmul.mubr.f32.gmra.mrb[34].mxu1 %v112_v56 }
  0x88   :  { %335 = vmatprep.mubr.f32.mxu0 %v51_v57  ;;  %495 = vmatprep.mubr.f32.mxu1 %v115_v58 }
  0x8b   :  { %336 = vmatmul.mubr.f32.gmra.mrb[36].mxu0 %v50_v59  ;;  %496 = vmatmul.mubr.f32.gmra.mrb[36].mxu1 %v114_v60 }
  0x8c   :  { %340 = vmatprep.mubr.f32.mxu0 %v53_v61  ;;  %500 = vmatprep.mubr.f32.mxu1 %v117_v62 }
  0x8f   :  { %341 = vmatmul.mubr.f32.gmra.mrb[38].mxu0 %v52_v63  ;;  %501 = vmatmul.mubr.f32.gmra.mrb[38].mxu1 %v116_v0 }
  0x90   :  { %345 = vmatprep.mubr.f32.mxu0 %v55_v1  ;;  %505 = vmatprep.mubr.f32.mxu1 %v119_v2 }
  0x93   :  { %346 = vmatmul.mubr.f32.gmra.mrb[40].mxu0 %v54_v3  ;;  %506 = vmatmul.mubr.f32.gmra.mrb[40].mxu1 %v118_v4 }
  0x94   :  { %350 = vmatprep.mubr.f32.mxu0 %v57_v5  ;;  %510 = vmatprep.mubr.f32.mxu1 %v121_v6 }
  0x97   :  { %351 = vmatmul.mubr.f32.gmra.mrb[42].mxu0 %v56_v7  ;;  %511 = vmatmul.mubr.f32.gmra.mrb[42].mxu1 %v120_v8 }
  0x98   :  { %355 = vmatprep.mubr.f32.mxu0 %v59_v9  ;;  %515 = vmatprep.mubr.f32.mxu1 %v123_v10 }
  0x9b   :  { %356 = vmatmul.mubr.f32.gmra.mrb[44].mxu0 %v58_v11  ;;  %516 = vmatmul.mubr.f32.gmra.mrb[44].mxu1 %v122_v12 }
  0x9c   :  { %360 = vmatprep.mubr.f32.mxu0 %v61_v13  ;;  %520 = vmatprep.mubr.f32.mxu1 %v125_v14 }
  0x9f   :  { %361 = vmatmul.mubr.f32.gmra.mrb[46].mxu0 %v60_v15  ;;  %521 = vmatmul.mubr.f32.gmra.mrb[46].mxu1 %v124_v16 }
  0xa0   :  { %365 = vmatprep.mubr.f32.mxu0 %v63_v17  ;;  %525 = vmatprep.mubr.f32.mxu1 %v127_v18 }
  0xa3   :  { %366 = vmatmul.mubr.f32.gmra.mrb[48].mxu0 %v62_v19  ;;  %526 = vmatmul.mubr.f32.gmra.mrb[48].mxu1 %v126_v20 }
  0xa4   :  { %370 = vmatprep.mubr.f32.mxu0 %v65_v21  ;;  %530 = vmatprep.mubr.f32.mxu1 %v129_v22 }
  0xa7   :  { %371 = vmatmul.mubr.f32.gmra.mrb[50].mxu0 %v64_v23  ;;  %531 = vmatmul.mubr.f32.gmra.mrb[50].mxu1 %v128_v24 }
  0xa8   :  { %375 = vmatprep.mubr.f32.mxu0 %v67_v25  ;;  %535 = vmatprep.mubr.f32.mxu1 %v131_v26 }
  0xab   :  { %376 = vmatmul.mubr.f32.gmra.mrb[52].mxu0 %v66_v27  ;;  %536 = vmatmul.mubr.f32.gmra.mrb[52].mxu1 %v130_v28 }
  0xac   :  { %380 = vmatprep.mubr.f32.mxu0 %v69_v29  ;;  %540 = vmatprep.mubr.f32.mxu1 %v133_v30 }
  0xaf   :  { %381 = vmatmul.mubr.f32.gmra.mrb[54].mxu0 %v68_v31  ;;  %541 = vmatmul.mubr.f32.gmra.mrb[54].mxu1 %v132_v32 }
  0xb0   :  { %385 = vmatprep.mubr.f32.mxu0 %v71_v33  ;;  %545 = vmatprep.mubr.f32.mxu1 %v135_v34 }
  0xb3   :  { %386 = vmatmul.mubr.f32.gmra.mrb[56].mxu0 %v70_v35  ;;  %546 = vmatmul.mubr.f32.gmra.mrb[56].mxu1 %v134_v36 }
  0xb4   :  { %390 = vmatprep.mubr.f32.mxu0 %v73_v37  ;;  %550 = vmatprep.mubr.f32.mxu1 %v137_v38 }
  0xb7   :  { %391 = vmatmul.mubr.f32.gmra.mrb[58].mxu0 %v72_v39  ;;  %551 = vmatmul.mubr.f32.gmra.mrb[58].mxu1 %v136_v40 }
  0xb8   :  { %395 = vmatprep.mubr.f32.mxu0 %v75_v41  ;;  %555 = vmatprep.mubr.f32.mxu1 %v139_v42 }
  0xbb   :  { %396 = vmatmul.mubr.f32.gmra.mrb[60].mxu0 %v74_v43  ;;  %556 = vmatmul.mubr.f32.gmra.mrb[60].mxu1 %v138_v44 }
  0xbc   :  { %400 = vmatprep.mubr.f32.mxu0 %v77_v45  ;;  %560 = vmatprep.mubr.f32.mxu1 %v141_v46 }
  0xbf   :  { %401 = vmatmul.mubr.f32.gmra.mrb[62].mxu0 %v76_v47  ;;  %561 = vmatmul.mubr.f32.gmra.mrb[62].mxu1 %v140_v48 }
 0x116   :  { %v247_v50 = vpop.f32.mrb[0].mxu0  ;;  %v407_v51 = vpop.f32.mrb[0].mxu1 }
 0x117   :  { %v248_v52 = vadd.f32 %v1317_v49, %v247_v50  ;;  %v408_v53 = vadd.f32 %v1317_v49, %v407_v51  ;;  %v249_v54 = vpop.f32.mrb[1].mxu0  ;;  %v409_v55 = vpop.f32.mrb[1].mxu1 }
 0x119   :  { %v566_v56 = vmax.f32 %v248_v52, 0.0  ;;  %v598_v57 = vmax.f32 %v408_v53, 0.0 }
 0x11a   :  { %v252_v58 = vpop.f32.mrb[2].mxu0  ;;  %v412_v59 = vpop.f32.mrb[2].mxu1 }
 0x11b   :  { %631 = vst.msk [vmem:[%s1642_s3] sm:$0xff] %vm630_vm0, %v566_v56  ;;  %663 = vst.msk [vmem:[%s1642_s3 + $0x100] sm:$0xff] %vm630_vm0, %v598_v57  ;;  %v253_v60 = vadd.f32 %v1317_v49, %v252_v58  ;;  %v413_v61 = vadd.f32 %v1317_v49, %v412_v59  ;;  %v254_v62 = vpop.f32.mrb[3].mxu0  ;;  %v414_v63 = vpop.f32.mrb[3].mxu1 }
 0x11d   :  { %v567_v0 = vmax.f32 %v253_v60, 0.0  ;;  %v599_v1 = vmax.f32 %v413_v61, 0.0 }
 0x11e   :  { %v257_v2 = vpop.f32.mrb[4].mxu0  ;;  %v417_v3 = vpop.f32.mrb[4].mxu1 }
 0x11f   :  { %632 = vst.msk [vmem:[%s1642_s3 + $0x8] sm:$0xff] %vm630_vm0, %v567_v0  ;;  %664 = vst.msk [vmem:[%s1642_s3 + $0x108] sm:$0xff] %vm630_vm0, %v599_v1  ;;  %v258_v4 = vadd.f32 %v1317_v49, %v257_v2  ;;  %v418_v5 = vadd.f32 %v1317_v49, %v417_v3  ;;  %v259_v6 = vpop.f32.mrb[5].mxu0  ;;  %v419_v7 = vpop.f32.mrb[5].mxu1 }
 0x121   :  { %v568_v8 = vmax.f32 %v258_v4, 0.0  ;;  %v600_v9 = vmax.f32 %v418_v5, 0.0 }
 0x122   :  { %v262_v10 = vpop.f32.mrb[6].mxu0  ;;  %v422_v11 = vpop.f32.mrb[6].mxu1 }
 0x123   :  { %633 = vst.msk [vmem:[%s1642_s3 + $0x10] sm:$0xff] %vm630_vm0, %v568_v8  ;;  %665 = vst.msk [vmem:[%s1642_s3 + $0x110] sm:$0xff] %vm630_vm0, %v600_v9  ;;  %v263_v12 = vadd.f32 %v1317_v49, %v262_v10  ;;  %v423_v13 = vadd.f32 %v1317_v49, %v422_v11  ;;  %v264_v14 = vpop.f32.mrb[7].mxu0  ;;  %v424_v15 = vpop.f32.mrb[7].mxu1 }
 0x125   :  { %v569_v16 = vmax.f32 %v263_v12, 0.0  ;;  %v601_v17 = vmax.f32 %v423_v13, 0.0 }
 0x126   :  { %v267_v18 = vpop.f32.mrb[8].mxu0  ;;  %v427_v19 = vpop.f32.mrb[8].mxu1 }
 0x127   :  { %634 = vst.msk [vmem:[%s1642_s3 + $0x18] sm:$0xff] %vm630_vm0, %v569_v16  ;;  %666 = vst.msk [vmem:[%s1642_s3 + $0x118] sm:$0xff] %vm630_vm0, %v601_v17  ;;  %v268_v20 = vadd.f32 %v1317_v49, %v267_v18  ;;  %v428_v21 = vadd.f32 %v1317_v49, %v427_v19  ;;  %v269_v22 = vpop.f32.mrb[9].mxu0  ;;  %v429_v23 = vpop.f32.mrb[9].mxu1 }
 0x129   :  { %v570_v24 = vmax.f32 %v268_v20, 0.0  ;;  %v602_v25 = vmax.f32 %v428_v21, 0.0 }
 0x12a   :  { %v272_v26 = vpop.f32.mrb[10].mxu0  ;;  %v432_v27 = vpop.f32.mrb[10].mxu1 }
 0x12b   :  { %635 = vst.msk [vmem:[%s1642_s3 + $0x20] sm:$0xff] %vm630_vm0, %v570_v24  ;;  %667 = vst.msk [vmem:[%s1642_s3 + $0x120] sm:$0xff] %vm630_vm0, %v602_v25  ;;  %v273_v28 = vadd.f32 %v1317_v49, %v272_v26  ;;  %v433_v29 = vadd.f32 %v1317_v49, %v432_v27  ;;  %v274_v30 = vpop.f32.mrb[11].mxu0  ;;  %v434_v31 = vpop.f32.mrb[11].mxu1 }
 0x12d   :  { %v571_v32 = vmax.f32 %v273_v28, 0.0  ;;  %v603_v33 = vmax.f32 %v433_v29, 0.0 }
 0x12e   :  { %v277_v34 = vpop.f32.mrb[12].mxu0  ;;  %v437_v35 = vpop.f32.mrb[12].mxu1 }
 0x12f   :  { %636 = vst.msk [vmem:[%s1642_s3 + $0x28] sm:$0xff] %vm630_vm0, %v571_v32  ;;  %668 = vst.msk [vmem:[%s1642_s3 + $0x128] sm:$0xff] %vm630_vm0, %v603_v33  ;;  %v278_v36 = vadd.f32 %v1317_v49, %v277_v34  ;;  %v438_v37 = vadd.f32 %v1317_v49, %v437_v35  ;;  %v279_v38 = vpop.f32.mrb[13].mxu0  ;;  %v439_v39 = vpop.f32.mrb[13].mxu1 }
 0x131   :  { %v572_v40 = vmax.f32 %v278_v36, 0.0  ;;  %v604_v41 = vmax.f32 %v438_v37, 0.0 }
 0x132   :  { %v282_v42 = vpop.f32.mrb[14].mxu0  ;;  %v442_v43 = vpop.f32.mrb[14].mxu1 }
 0x133   :  { %637 = vst.msk [vmem:[%s1642_s3 + $0x30] sm:$0xff] %vm630_vm0, %v572_v40  ;;  %669 = vst.msk [vmem:[%s1642_s3 + $0x130] sm:$0xff] %vm630_vm0, %v604_v41  ;;  %v283_v44 = vadd.f32 %v1317_v49, %v282_v42  ;;  %v443_v45 = vadd.f32 %v1317_v49, %v442_v43  ;;  %v284_v46 = vpop.f32.mrb[15].mxu0  ;;  %v444_v47 = vpop.f32.mrb[15].mxu1 }
 0x135   :  { %v573_v48 = vmax.f32 %v283_v44, 0.0  ;;  %v605_v50 = vmax.f32 %v443_v45, 0.0 }
 0x136   :  { %v287_v51 = vpop.f32.mrb[16].mxu0  ;;  %v447_v52 = vpop.f32.mrb[16].mxu1 }
 0x137   :  { %638 = vst.msk [vmem:[%s1642_s3 + $0x38] sm:$0xff] %vm630_vm0, %v573_v48  ;;  %670 = vst.msk [vmem:[%s1642_s3 + $0x138] sm:$0xff] %vm630_vm0, %v605_v50  ;;  %v288_v53 = vadd.f32 %v1317_v49, %v287_v51  ;;  %v448_v54 = vadd.f32 %v1317_v49, %v447_v52  ;;  %v289_v55 = vpop.f32.mrb[17].mxu0  ;;  %v449_v56 = vpop.f32.mrb[17].mxu1 }
 0x139   :  { %v574_v57 = vmax.f32 %v288_v53, 0.0  ;;  %v606_v58 = vmax.f32 %v448_v54, 0.0 }
 0x13a   :  { %v292_v59 = vpop.f32.mrb[18].mxu0  ;;  %v452_v60 = vpop.f32.mrb[18].mxu1 }
 0x13b   :  { %639 = vst.msk [vmem:[%s1642_s3 + $0x40] sm:$0xff] %vm630_vm0, %v574_v57  ;;  %671 = vst.msk [vmem:[%s1642_s3 + $0x140] sm:$0xff] %vm630_vm0, %v606_v58  ;;  %v293_v61 = vadd.f32 %v1317_v49, %v292_v59  ;;  %v453_v62 = vadd.f32 %v1317_v49, %v452_v60  ;;  %v294_v63 = vpop.f32.mrb[19].mxu0  ;;  %v454_v0 = vpop.f32.mrb[19].mxu1 }
 0x13d   :  { %v575_v1 = vmax.f32 %v293_v61, 0.0  ;;  %v607_v2 = vmax.f32 %v453_v62, 0.0 }
 0x13e   :  { %v297_v3 = vpop.f32.mrb[20].mxu0  ;;  %v457_v4 = vpop.f32.mrb[20].mxu1 }
 0x13f   :  { %640 = vst.msk [vmem:[%s1642_s3 + $0x48] sm:$0xff] %vm630_vm0, %v575_v1  ;;  %672 = vst.msk [vmem:[%s1642_s3 + $0x148] sm:$0xff] %vm630_vm0, %v607_v2  ;;  %v298_v5 = vadd.f32 %v1317_v49, %v297_v3  ;;  %v458_v6 = vadd.f32 %v1317_v49, %v457_v4  ;;  %v299_v7 = vpop.f32.mrb[21].mxu0  ;;  %v459_v8 = vpop.f32.mrb[21].mxu1 }
 0x141   :  { %v576_v9 = vmax.f32 %v298_v5, 0.0  ;;  %v608_v10 = vmax.f32 %v458_v6, 0.0 }
 0x142   :  { %v302_v11 = vpop.f32.mrb[22].mxu0  ;;  %v462_v12 = vpop.f32.mrb[22].mxu1 }
 0x143   :  { %641 = vst.msk [vmem:[%s1642_s3 + $0x50] sm:$0xff] %vm630_vm0, %v576_v9  ;;  %673 = vst.msk [vmem:[%s1642_s3 + $0x150] sm:$0xff] %vm630_vm0, %v608_v10  ;;  %v303_v13 = vadd.f32 %v1317_v49, %v302_v11  ;;  %v463_v14 = vadd.f32 %v1317_v49, %v462_v12  ;;  %v304_v15 = vpop.f32.mrb[23].mxu0  ;;  %v464_v16 = vpop.f32.mrb[23].mxu1 }
 0x145   :  { %v577_v17 = vmax.f32 %v303_v13, 0.0  ;;  %v609_v18 = vmax.f32 %v463_v14, 0.0 }
 0x146   :  { %v307_v19 = vpop.f32.mrb[24].mxu0  ;;  %v467_v20 = vpop.f32.mrb[24].mxu1 }
 0x147   :  { %642 = vst.msk [vmem:[%s1642_s3 + $0x58] sm:$0xff] %vm630_vm0, %v577_v17  ;;  %674 = vst.msk [vmem:[%s1642_s3 + $0x158] sm:$0xff] %vm630_vm0, %v609_v18  ;;  %v308_v21 = vadd.f32 %v1317_v49, %v307_v19  ;;  %v468_v22 = vadd.f32 %v1317_v49, %v467_v20  ;;  %v309_v23 = vpop.f32.mrb[25].mxu0  ;;  %v469_v24 = vpop.f32.mrb[25].mxu1 }
 0x149   :  { %v578_v25 = vmax.f32 %v308_v21, 0.0  ;;  %v610_v26 = vmax.f32 %v468_v22, 0.0 }
 0x14a   :  { %v312_v27 = vpop.f32.mrb[26].mxu0  ;;  %v472_v28 = vpop.f32.mrb[26].mxu1 }
 0x14b   :  { %643 = vst.msk [vmem:[%s1642_s3 + $0x60] sm:$0xff] %vm630_vm0, %v578_v25  ;;  %675 = vst.msk [vmem:[%s1642_s3 + $0x160] sm:$0xff] %vm630_vm0, %v610_v26  ;;  %v313_v29 = vadd.f32 %v1317_v49, %v312_v27  ;;  %v473_v30 = vadd.f32 %v1317_v49, %v472_v28  ;;  %v314_v31 = vpop.f32.mrb[27].mxu0  ;;  %v474_v32 = vpop.f32.mrb[27].mxu1 }
 0x14d   :  { %v579_v33 = vmax.f32 %v313_v29, 0.0  ;;  %v611_v34 = vmax.f32 %v473_v30, 0.0 }
 0x14e   :  { %v317_v35 = vpop.f32.mrb[28].mxu0  ;;  %v477_v36 = vpop.f32.mrb[28].mxu1 }
 0x14f   :  { %644 = vst.msk [vmem:[%s1642_s3 + $0x68] sm:$0xff] %vm630_vm0, %v579_v33  ;;  %676 = vst.msk [vmem:[%s1642_s3 + $0x168] sm:$0xff] %vm630_vm0, %v611_v34  ;;  %v318_v37 = vadd.f32 %v1317_v49, %v317_v35  ;;  %v478_v38 = vadd.f32 %v1317_v49, %v477_v36  ;;  %v319_v39 = vpop.f32.mrb[29].mxu0  ;;  %v479_v40 = vpop.f32.mrb[29].mxu1 }
 0x151   :  { %v580_v41 = vmax.f32 %v318_v37, 0.0  ;;  %v612_v42 = vmax.f32 %v478_v38, 0.0 }
 0x152   :  { %v322_v43 = vpop.f32.mrb[30].mxu0  ;;  %v482_v44 = vpop.f32.mrb[30].mxu1 }
 0x153   :  { %645 = vst.msk [vmem:[%s1642_s3 + $0x70] sm:$0xff] %vm630_vm0, %v580_v41  ;;  %677 = vst.msk [vmem:[%s1642_s3 + $0x170] sm:$0xff] %vm630_vm0, %v612_v42  ;;  %v323_v45 = vadd.f32 %v1317_v49, %v322_v43  ;;  %v483_v46 = vadd.f32 %v1317_v49, %v482_v44  ;;  %v324_v47 = vpop.f32.mrb[31].mxu0  ;;  %v484_v48 = vpop.f32.mrb[31].mxu1 }
 0x155   :  { %v581_v50 = vmax.f32 %v323_v45, 0.0  ;;  %v613_v51 = vmax.f32 %v483_v46, 0.0 }
 0x156   :  { %v327_v52 = vpop.f32.mrb[32].mxu0  ;;  %v487_v53 = vpop.f32.mrb[32].mxu1 }
 0x157   :  { %646 = vst.msk [vmem:[%s1642_s3 + $0x78] sm:$0xff] %vm630_vm0, %v581_v50  ;;  %678 = vst.msk [vmem:[%s1642_s3 + $0x178] sm:$0xff] %vm630_vm0, %v613_v51  ;;  %v328_v54 = vadd.f32 %v1317_v49, %v327_v52  ;;  %v488_v55 = vadd.f32 %v1317_v49, %v487_v53  ;;  %v329_v56 = vpop.f32.mrb[33].mxu0  ;;  %v489_v57 = vpop.f32.mrb[33].mxu1 }
 0x159   :  { %v582_v58 = vmax.f32 %v328_v54, 0.0  ;;  %v614_v59 = vmax.f32 %v488_v55, 0.0 }
 0x15a   :  { %v332_v60 = vpop.f32.mrb[34].mxu0  ;;  %v492_v61 = vpop.f32.mrb[34].mxu1 }
 0x15b   :  { %647 = vst.msk [vmem:[%s1642_s3 + $0x80] sm:$0xff] %vm630_vm0, %v582_v58  ;;  %679 = vst.msk [vmem:[%s1642_s3 + $0x180] sm:$0xff] %vm630_vm0, %v614_v59  ;;  %v333_v62 = vadd.f32 %v1317_v49, %v332_v60  ;;  %v493_v63 = vadd.f32 %v1317_v49, %v492_v61  ;;  %v334_v0 = vpop.f32.mrb[35].mxu0  ;;  %v494_v1 = vpop.f32.mrb[35].mxu1 }
 0x15d   :  { %v583_v2 = vmax.f32 %v333_v62, 0.0  ;;  %v615_v3 = vmax.f32 %v493_v63, 0.0 }
 0x15e   :  { %v337_v4 = vpop.f32.mrb[36].mxu0  ;;  %v497_v5 = vpop.f32.mrb[36].mxu1 }
 0x15f   :  { %648 = vst.msk [vmem:[%s1642_s3 + $0x88] sm:$0xff] %vm630_vm0, %v583_v2  ;;  %680 = vst.msk [vmem:[%s1642_s3 + $0x188] sm:$0xff] %vm630_vm0, %v615_v3  ;;  %v338_v6 = vadd.f32 %v1317_v49, %v337_v4  ;;  %v498_v7 = vadd.f32 %v1317_v49, %v497_v5  ;;  %v339_v8 = vpop.f32.mrb[37].mxu0  ;;  %v499_v9 = vpop.f32.mrb[37].mxu1 }
 0x161   :  { %v584_v10 = vmax.f32 %v338_v6, 0.0  ;;  %v616_v11 = vmax.f32 %v498_v7, 0.0 }
 0x162   :  { %v342_v12 = vpop.f32.mrb[38].mxu0  ;;  %v502_v13 = vpop.f32.mrb[38].mxu1 }
 0x163   :  { %649 = vst.msk [vmem:[%s1642_s3 + $0x90] sm:$0xff] %vm630_vm0, %v584_v10  ;;  %681 = vst.msk [vmem:[%s1642_s3 + $0x190] sm:$0xff] %vm630_vm0, %v616_v11  ;;  %v343_v14 = vadd.f32 %v1317_v49, %v342_v12  ;;  %v503_v15 = vadd.f32 %v1317_v49, %v502_v13  ;;  %v344_v16 = vpop.f32.mrb[39].mxu0  ;;  %v504_v17 = vpop.f32.mrb[39].mxu1 }
 0x165   :  { %v585_v18 = vmax.f32 %v343_v14, 0.0  ;;  %v617_v19 = vmax.f32 %v503_v15, 0.0 }
 0x166   :  { %v347_v20 = vpop.f32.mrb[40].mxu0  ;;  %v507_v21 = vpop.f32.mrb[40].mxu1 }
 0x167   :  { %650 = vst.msk [vmem:[%s1642_s3 + $0x98] sm:$0xff] %vm630_vm0, %v585_v18  ;;  %682 = vst.msk [vmem:[%s1642_s3 + $0x198] sm:$0xff] %vm630_vm0, %v617_v19  ;;  %v348_v22 = vadd.f32 %v1317_v49, %v347_v20  ;;  %v508_v23 = vadd.f32 %v1317_v49, %v507_v21  ;;  %v349_v24 = vpop.f32.mrb[41].mxu0  ;;  %v509_v25 = vpop.f32.mrb[41].mxu1 }
 0x169   :  { %v586_v26 = vmax.f32 %v348_v22, 0.0  ;;  %v618_v27 = vmax.f32 %v508_v23, 0.0 }
 0x16a   :  { %v352_v28 = vpop.f32.mrb[42].mxu0  ;;  %v512_v29 = vpop.f32.mrb[42].mxu1 }
 0x16b   :  { %651 = vst.msk [vmem:[%s1642_s3 + $0xa0] sm:$0xff] %vm630_vm0, %v586_v26  ;;  %683 = vst.msk [vmem:[%s1642_s3 + $0x1a0] sm:$0xff] %vm630_vm0, %v618_v27  ;;  %v353_v30 = vadd.f32 %v1317_v49, %v352_v28  ;;  %v513_v31 = vadd.f32 %v1317_v49, %v512_v29  ;;  %v354_v32 = vpop.f32.mrb[43].mxu0  ;;  %v514_v33 = vpop.f32.mrb[43].mxu1 }
 0x16d   :  { %v587_v34 = vmax.f32 %v353_v30, 0.0  ;;  %v619_v35 = vmax.f32 %v513_v31, 0.0 }
 0x16e   :  { %v357_v36 = vpop.f32.mrb[44].mxu0  ;;  %v517_v37 = vpop.f32.mrb[44].mxu1 }
 0x16f   :  { %652 = vst.msk [vmem:[%s1642_s3 + $0xa8] sm:$0xff] %vm630_vm0, %v587_v34  ;;  %684 = vst.msk [vmem:[%s1642_s3 + $0x1a8] sm:$0xff] %vm630_vm0, %v619_v35  ;;  %v358_v38 = vadd.f32 %v1317_v49, %v357_v36  ;;  %v518_v39 = vadd.f32 %v1317_v49, %v517_v37  ;;  %v359_v40 = vpop.f32.mrb[45].mxu0  ;;  %v519_v41 = vpop.f32.mrb[45].mxu1 }
 0x171   :  { %v588_v42 = vmax.f32 %v358_v38, 0.0  ;;  %v620_v43 = vmax.f32 %v518_v39, 0.0 }
 0x172   :  { %v362_v44 = vpop.f32.mrb[46].mxu0  ;;  %v522_v45 = vpop.f32.mrb[46].mxu1 }
 0x173   :  { %653 = vst.msk [vmem:[%s1642_s3 + $0xb0] sm:$0xff] %vm630_vm0, %v588_v42  ;;  %685 = vst.msk [vmem:[%s1642_s3 + $0x1b0] sm:$0xff] %vm630_vm0, %v620_v43  ;;  %v363_v46 = vadd.f32 %v1317_v49, %v362_v44  ;;  %v523_v47 = vadd.f32 %v1317_v49, %v522_v45  ;;  %v364_v48 = vpop.f32.mrb[47].mxu0  ;;  %v524_v50 = vpop.f32.mrb[47].mxu1 }
 0x175   :  { %v589_v51 = vmax.f32 %v363_v46, 0.0  ;;  %v621_v52 = vmax.f32 %v523_v47, 0.0 }
 0x176   :  { %v367_v53 = vpop.f32.mrb[48].mxu0  ;;  %v527_v54 = vpop.f32.mrb[48].mxu1 }
 0x177   :  { %654 = vst.msk [vmem:[%s1642_s3 + $0xb8] sm:$0xff] %vm630_vm0, %v589_v51  ;;  %686 = vst.msk [vmem:[%s1642_s3 + $0x1b8] sm:$0xff] %vm630_vm0, %v621_v52  ;;  %v368_v55 = vadd.f32 %v1317_v49, %v367_v53  ;;  %v528_v56 = vadd.f32 %v1317_v49, %v527_v54  ;;  %v369_v57 = vpop.f32.mrb[49].mxu0  ;;  %v529_v58 = vpop.f32.mrb[49].mxu1 }
 0x179   :  { %v590_v59 = vmax.f32 %v368_v55, 0.0  ;;  %v622_v60 = vmax.f32 %v528_v56, 0.0 }
 0x17a   :  { %v372_v61 = vpop.f32.mrb[50].mxu0  ;;  %v532_v62 = vpop.f32.mrb[50].mxu1 }
 0x17b   :  { %655 = vst.msk [vmem:[%s1642_s3 + $0xc0] sm:$0xff] %vm630_vm0, %v590_v59  ;;  %687 = vst.msk [vmem:[%s1642_s3 + $0x1c0] sm:$0xff] %vm630_vm0, %v622_v60  ;;  %v373_v63 = vadd.f32 %v1317_v49, %v372_v61  ;;  %v533_v0 = vadd.f32 %v1317_v49, %v532_v62  ;;  %v374_v1 = vpop.f32.mrb[51].mxu0  ;;  %v534_v2 = vpop.f32.mrb[51].mxu1 }
 0x17d   :  { %v591_v3 = vmax.f32 %v373_v63, 0.0  ;;  %v623_v4 = vmax.f32 %v533_v0, 0.0 }
 0x17e   :  { %v377_v5 = vpop.f32.mrb[52].mxu0  ;;  %v537_v6 = vpop.f32.mrb[52].mxu1 }
 0x17f   :  { %656 = vst.msk [vmem:[%s1642_s3 + $0xc8] sm:$0xff] %vm630_vm0, %v591_v3  ;;  %688 = vst.msk [vmem:[%s1642_s3 + $0x1c8] sm:$0xff] %vm630_vm0, %v623_v4  ;;  %v378_v7 = vadd.f32 %v1317_v49, %v377_v5  ;;  %v538_v8 = vadd.f32 %v1317_v49, %v537_v6  ;;  %v379_v9 = vpop.f32.mrb[53].mxu0  ;;  %v539_v10 = vpop.f32.mrb[53].mxu1 }
 0x181   :  { %v592_v11 = vmax.f32 %v378_v7, 0.0  ;;  %v624_v12 = vmax.f32 %v538_v8, 0.0 }
 0x182   :  { %v382_v13 = vpop.f32.mrb[54].mxu0  ;;  %v542_v14 = vpop.f32.mrb[54].mxu1 }
 0x183   :  { %657 = vst.msk [vmem:[%s1642_s3 + $0xd0] sm:$0xff] %vm630_vm0, %v592_v11  ;;  %689 = vst.msk [vmem:[%s1642_s3 + $0x1d0] sm:$0xff] %vm630_vm0, %v624_v12  ;;  %v383_v15 = vadd.f32 %v1317_v49, %v382_v13  ;;  %v543_v16 = vadd.f32 %v1317_v49, %v542_v14  ;;  %v384_v17 = vpop.f32.mrb[55].mxu0  ;;  %v544_v18 = vpop.f32.mrb[55].mxu1 }
 0x185   :  { %v593_v19 = vmax.f32 %v383_v15, 0.0  ;;  %v625_v20 = vmax.f32 %v543_v16, 0.0 }
 0x186   :  { %v387_v21 = vpop.f32.mrb[56].mxu0  ;;  %v547_v22 = vpop.f32.mrb[56].mxu1 }
 0x187   :  { %658 = vst.msk [vmem:[%s1642_s3 + $0xd8] sm:$0xff] %vm630_vm0, %v593_v19  ;;  %690 = vst.msk [vmem:[%s1642_s3 + $0x1d8] sm:$0xff] %vm630_vm0, %v625_v20  ;;  %v388_v23 = vadd.f32 %v1317_v49, %v387_v21  ;;  %v548_v24 = vadd.f32 %v1317_v49, %v547_v22  ;;  %v389_v25 = vpop.f32.mrb[57].mxu0  ;;  %v549_v26 = vpop.f32.mrb[57].mxu1 }
 0x189   :  { %v594_v27 = vmax.f32 %v388_v23, 0.0  ;;  %v626_v28 = vmax.f32 %v548_v24, 0.0 }
 0x18a   :  { %v392_v29 = vpop.f32.mrb[58].mxu0  ;;  %v552_v30 = vpop.f32.mrb[58].mxu1 }
 0x18b   :  { %659 = vst.msk [vmem:[%s1642_s3 + $0xe0] sm:$0xff] %vm630_vm0, %v594_v27  ;;  %691 = vst.msk [vmem:[%s1642_s3 + $0x1e0] sm:$0xff] %vm630_vm0, %v626_v28  ;;  %v393_v31 = vadd.f32 %v1317_v49, %v392_v29  ;;  %v553_v32 = vadd.f32 %v1317_v49, %v552_v30  ;;  %v394_v33 = vpop.f32.mrb[59].mxu0  ;;  %v554_v34 = vpop.f32.mrb[59].mxu1 }
 0x18d   :  { %v595_v35 = vmax.f32 %v393_v31, 0.0  ;;  %v627_v36 = vmax.f32 %v553_v32, 0.0 }
 0x18e   :  { %v397_v37 = vpop.f32.mrb[60].mxu0  ;;  %v557_v38 = vpop.f32.mrb[60].mxu1 }
 0x18f   :  { %660 = vst.msk [vmem:[%s1642_s3 + $0xe8] sm:$0xff] %vm630_vm0, %v595_v35  ;;  %692 = vst.msk [vmem:[%s1642_s3 + $0x1e8] sm:$0xff] %vm630_vm0, %v627_v36  ;;  %v398_v39 = vadd.f32 %v1317_v49, %v397_v37  ;;  %v558_v40 = vadd.f32 %v1317_v49, %v557_v38  ;;  %v399_v41 = vpop.f32.mrb[61].mxu0  ;;  %v559_v42 = vpop.f32.mrb[61].mxu1 }
 0x191   :  { %v596_v43 = vmax.f32 %v398_v39, 0.0  ;;  %v628_v44 = vmax.f32 %v558_v40, 0.0 }
 0x192   :  { %v402_v45 = vpop.f32.mrb[62].mxu0  ;;  %v562_v46 = vpop.f32.mrb[62].mxu1 }
 0x193   :  { %661 = vst.msk [vmem:[%s1642_s3 + $0xf0] sm:$0xff] %vm630_vm0, %v596_v43  ;;  %693 = vst.msk [vmem:[%s1642_s3 + $0x1f0] sm:$0xff] %vm630_vm0, %v628_v44  ;;  %v403_v47 = vadd.f32 %v1317_v49, %v402_v45  ;;  %v563_v48 = vadd.f32 %v1317_v49, %v562_v46  ;;  %v404_v50 = vpop.f32.mrb[63].mxu0  ;;  %v564_v51 = vpop.f32.mrb[63].mxu1 }
 0x195   :  { %v597_v52 = vmax.f32 %v403_v47, 0.0  ;;  %v629_v53 = vmax.f32 %v563_v48, 0.0 }
 0x197   :  { %662 = vst.msk [vmem:[%s1642_s3 + $0xf8] sm:$0xff] %vm630_vm0, %v597_v52  ;;  %694 = vst.msk [vmem:[%s1642_s3 + $0x1f8] sm:$0xff] %vm630_vm0, %v629_v53 }

// kernel: qnetwork_forward.3
= control target key start
LH: loop header
LB: loop body
LE: loop exit
PB: predicated region body
PF: predicated region fallthrough
CT: control target
= control target key end

     0   :  { %s15373_s0 = inlined_call_operand.vmem [shape: f32[2,12544], index: 0, kind: input, shape index: {}]   ;;  %s15374_s1 = inlined_call_operand.vmem [shape: f32[256,32], index: 1, kind: input, shape index: {}]   ;;  %s15375_s2 = inlined_call_operand.vmem [shape: f32[1,32], index: 2, kind: input, shape index: {}]   ;;  %s15376_s3 = inlined_call_operand.vmem [shape: f32[49,32,256], index: 3, kind: input, shape index: {}]   ;;  %s15377_s4 = inlined_call_operand.vmem [shape: f32[1,256], index: 4, kind: input, shape index: {}]   ;;  %s15378_s5 = inlined_call_operand.vmem [shape: f32[256,128], index: 5, kind: input, shape index: {}]   ;;  %s15379_s6 = inlined_call_operand.vmem [shape: f32[1,128], index: 6, kind: input, shape index: {}]   ;;  %s15380_s7 = inlined_call_operand.hbm [shape: f32[2,128], index: 7, kind: output, shape index: {}]  }
   0x1   :  { %v43_v0 = vld [vmem:[%s15374_s1 + $0x80] sm:$0xff]  ;;  %v44_v1 = vld [vmem:[%s15374_s1 + $0x88] sm:$0xff]  ;;  %v45_v5 = vld [vmem:[%s15374_s1 + $0x90] sm:$0xff] }
   0x2   :  { %v27_v2 = vld [vmem:[%s15374_s1] sm:$0xff]  ;;  %v12836_v3 = vpack.c.bf16 %v44_v1, %v43_v0  ;;  %v28_v4 = vld [vmem:[%s15374_s1 + $0x8] sm:$0xff]  ;;  %v46_v6 = vld [vmem:[%s15374_s1 + $0x98] sm:$0xff] }
   0x3   :  { %v12847_v7 = vpack.c.bf16 %v28_v4, %v27_v2  ;;  %v12849_v8 = vpack.c.bf16 %v46_v6, %v45_v5  ;;  %v29_v9 = vld [vmem:[%s15374_s1 + $0x10] sm:$0xff]  ;;  %v30_v10 = vld [vmem:[%s15374_s1 + $0x18] sm:$0xff]  ;;  %v47_v11 = vld [vmem:[%s15374_s1 + $0xa0] sm:$0xff] }
   0x4   :  { %10701 = vmatprep.subr.bf16.mxu1 %v12836_v3  ;;  %v48_v12 = vld [vmem:[%s15374_s1 + $0xa8] sm:$0xff]  ;;  %10669 = vmatprep.subr.bf16.mxu0 %v12836_v3  ;;  %v12866_v13 = vpack.c.bf16 %v30_v10, %v29_v9  ;;  %v31_v15 = vld [vmem:[%s15374_s1 + $0x20] sm:$0xff]  ;;  %v49_v17 = vld [vmem:[%s15374_s1 + $0xb0] sm:$0xff] }
   0x5   :  { %10703 = vmatpush3.bf16.msra.mxu1 %v12847_v7  ;;  %10671 = vmatpush3.bf16.msra.mxu0 %v12847_v7  ;;  %v12870_v14 = vpack.c.bf16 %v48_v12, %v47_v11  ;;  %v32_v16 = vld [vmem:[%s15374_s1 + $0x28] sm:$0xff]  ;;  %v50_v18 = vld [vmem:[%s15374_s1 + $0xb8] sm:$0xff]  ;;  %v33_v21 = vld [vmem:[%s15374_s1 + $0x30] sm:$0xff] }
   0x6   :  { %10705 = vmatprep.subr.bf16.mxu1 %v12849_v8  ;;  %10673 = vmatprep.subr.bf16.mxu0 %v12849_v8  ;;  %v12886_v19 = vpack.c.bf16 %v32_v16, %v31_v15  ;;  %v12890_v20 = vpack.c.bf16 %v50_v18, %v49_v17  ;;  %v34_v22 = vld [vmem:[%s15374_s1 + $0x38] sm:$0xff]  ;;  %v51_v23 = vld [vmem:[%s15374_s1 + $0xc0] sm:$0xff]  ;;  %v52_v24 = vld [vmem:[%s15374_s1 + $0xc8] sm:$0xff] }
   0x7   :  { %v8436_v25 = vld.sshfl [vmem:[%s15373_s0 + $0x4] sm:$0x33 pattern:$0x76325410] }
   0x8   :  { %v166_v26 = vcombine.high %v8436_v25, %v8436_v25  ;;  %v8435_v27 = vld.sshfl [vmem:[%s15373_s0] sm:$0x33 pattern:$0x76325410] }
   0x9   :  { %10707 = vmatpush3.bf16.msra.mxu1 %v12866_v13  ;;  %10675 = vmatpush3.bf16.msra.mxu0 %v12866_v13 }
   0xa   :  { %10709 = vmatprep.subr.bf16.mxu1 %v12870_v14  ;;  %10677 = vmatprep.subr.bf16.mxu0 %v12870_v14 }
   0xb   :  { %12 = vsyncpa [#allocation3], 0  ;;  %v12912_v28 = vpack.c.bf16 %v34_v22, %v33_v21  ;;  %v75_v29 = vcombine.high %v8435_v27, %v8435_v27  ;;  %v12916_v30 = vpack.c.bf16 %v52_v24, %v51_v23  ;;  %v35_v31 = vld [vmem:[%s15374_s1 + $0x40] sm:$0xff]  ;;  %v36_v32 = vld [vmem:[%s15374_s1 + $0x48] sm:$0xff]  ;;  %233 = vmatprep.mubr.f32.mxu1 %v166_v26  ;;  %v12785_v2 = vmov 0.0  }
   0xc   :  { %v53_v33 = vld [vmem:[%s15374_s1 + $0xd0] sm:$0xff]  ;;  %v54_v34 = vld [vmem:[%s15374_s1 + $0xd8] sm:$0xff]  ;;  %v12932_v35 = vpack.c.bf16 %v36_v32, %v35_v31  ;;  %v55_v39 = vld [vmem:[%s15374_s1 + $0xe0] sm:$0xff]  ;;  %vm249_vm0 = vcmask 261120  }
   0xd   :  { %10711 = vmatpush3.bf16.msra.mxu1 %v12886_v19  ;;  %10679 = vmatpush3.bf16.msra.mxu0 %v12886_v19  ;;  %v12936_v36 = vpack.c.bf16 %v54_v34, %v53_v33  ;;  %v37_v37 = vld [vmem:[%s15374_s1 + $0x50] sm:$0xff]  ;;  %v38_v38 = vld [vmem:[%s15374_s1 + $0x58] sm:$0xff]  ;;  %v56_v40 = vld [vmem:[%s15374_s1 + $0xe8] sm:$0xff] }
   0xe   :  { %10713 = vmatprep.subr.bf16.mxu1 %v12890_v20  ;;  %10681 = vmatprep.subr.bf16.mxu0 %v12890_v20  ;;  %v12952_v41 = vpack.c.bf16 %v38_v38, %v37_v37  ;;  %v12956_v42 = vpack.c.bf16 %v56_v40, %v55_v39  ;;  %v39_v43 = vld [vmem:[%s15374_s1 + $0x60] sm:$0xff]  ;;  %v40_v44 = vld [vmem:[%s15374_s1 + $0x68] sm:$0xff]  ;;  %v57_v45 = vld [vmem:[%s15374_s1 + $0xf0] sm:$0xff] }
   0xf   :  { %142 = vmatprep.mubr.f32.mxu0 %v75_v29  ;;  %v58_v46 = vld [vmem:[%s15374_s1 + $0xf8] sm:$0xff]  ;;  %v12972_v47 = vpack.c.bf16 %v40_v44, %v39_v43  ;;  %v41_v49 = vld [vmem:[%s15374_s1 + $0x70] sm:$0xff]  ;;  %v8447_v52 = vld.sshfl [vmem:[%s15373_s0 + $0x8] sm:$0x33 pattern:$0x76325410] }
  0x10   :  { %v12976_v48 = vpack.c.bf16 %v58_v46, %v57_v45  ;;  %v42_v50 = vld [vmem:[%s15374_s1 + $0x78] sm:$0xff]  ;;  %v407_v53 = vcombine.high %v8447_v52, %v8447_v52  ;;  %v8438_v54 = vld [vmem:[%s15376_s3 + $0x48] sm:$0xff]  ;;  %v8437_v57 = vld [vmem:[%s15376_s3 + $0x40] sm:$0xff]  ;;  %s12786_s1 = smov [#allocation2]  }
  0x11   :  { %10715 = vmatpush3.bf16.msra.mxu1 %v12912_v28  ;;  %10683 = vmatpush3.bf16.msra.mxu0 %v12912_v28  ;;  %v12986_v51 = vpack.c.bf16 %v42_v50, %v41_v49  ;;  %v8440_v55 = vld [vmem:[%s15376_s3 + $0x58] sm:$0xff]  ;;  %v8439_v58 = vld [vmem:[%s15376_s3 + $0x50] sm:$0xff]  ;;  %v8442_v60 = vld [vmem:[%s15376_s3 + $0x68] sm:$0xff]  ;;  %s8426_s25 = sshll.u32 %s12786_s1, 4  ;;  %s8427_s25 = int_to_ptr.vmem [resolvable:$true] %s8426_s25 }
  0x12   :  { %10717 = vmatprep.subr.bf16.mxu1 %v12916_v30  ;;  %10685 = vmatprep.subr.bf16.mxu0 %v12916_v30  ;;  %v10732_v56 = vpack.c.bf16 %v8440_v55, %v8438_v54  ;;  %v10734_v59 = vpack.c.bf16 %v8439_v58, %v8437_v57  ;;  %v8444_v61 = vld [vmem:[%s15376_s3 + $0x78] sm:$0xff]  ;;  %v8441_v63 = vld [vmem:[%s15376_s3 + $0x60] sm:$0xff]  ;;  %v8443_v0 = vld [vmem:[%s15376_s3 + $0x70] sm:$0xff]  ;;  %p12766_p1 = scmp.lt.s32.totalorder %s8427_s25, %s8427_s25 }
  0x13   :  { %v10736_v62 = vpack.c.bf16 %v8444_v61, %v8442_v60  ;;  %v10738_v1 = vpack.c.bf16 %v8443_v0, %v8441_v63  ;;  %v150_v4 = vld [vmem:[%s15376_s3 + $0x8] sm:$0xff]  ;;  %v152_v5 = vld [vmem:[%s15376_s3 + $0x18] sm:$0xff]  ;;  %v8467_v9 = vld.sshfl [vmem:[%s15373_s0 + $0x10] sm:$0x33 pattern:$0x76325410] }
  0x14   :  { %v10740_v6 = vpack.c.bf16 %v152_v5, %v150_v4  ;;  %v743_v10 = vcombine.high %v8467_v9, %v8467_v9  ;;  %v8477_v11 = vld.sshfl [vmem:[%s15373_s0 + $0x14] sm:$0x33 pattern:$0x76325410]  ;;  %v13101_v17 = vld [vmem:[%s15375_s2] ss:$0 sm:$0xff] }
  0x15   :  { %10719 = vmatpush3.bf16.msra.mxu1 %v12932_v35  ;;  %10687 = vmatpush3.bf16.msra.mxu0 %v12932_v35  ;;  %v911_v12 = vcombine.high %v8477_v11, %v8477_v11  ;;  %v149_v24 = vld [vmem:[%s15376_s3] sm:$0xff]  ;;  %v154_v26 = vld [vmem:[%s15376_s3 + $0x28] sm:$0xff]  ;;  %v155_v37 = vld [vmem:[%s15376_s3 + $0x30] sm:$0xff] }
  0x16   :  { %10721 = vmatprep.subr.bf16.mxu1 %v12936_v36  ;;  %10689 = vmatprep.subr.bf16.mxu0 %v12936_v36  ;;  %v153_v34 = vld [vmem:[%s15376_s3 + $0x20] sm:$0xff]  ;;  %v8449_v38 = vld [vmem:[%s15376_s3 + $0x88] sm:$0xff]  ;;  %v8451_v39 = vld [vmem:[%s15376_s3 + $0x98] sm:$0xff] }
  0x17   :  { %v10746_v43 = vpack.c.bf16 %v155_v37, %v153_v34  ;;  %v10780_v44 = vpack.c.bf16 %v8451_v39, %v8449_v38  ;;  %v8448_v45 = vld [vmem:[%s15376_s3 + $0x80] sm:$0xff]  ;;  %v8450_v46 = vld [vmem:[%s15376_s3 + $0x90] sm:$0xff]  ;;  %v8453_v49 = vld [vmem:[%s15376_s3 + $0xa8] sm:$0xff] }
  0x18   :  { %v8455_v50 = vld [vmem:[%s15376_s3 + $0xb8] sm:$0xff]  ;;  %v8452_v55 = vld [vmem:[%s15376_s3 + $0xa0] sm:$0xff]  ;;  %v8457_v61 = vld.sshfl [vmem:[%s15373_s0 + $0xc] sm:$0x33 pattern:$0x76325410] }
  0x19   :  { %10723 = vmatpush3.bf16.msra.mxu1 %v12952_v41  ;;  %10691 = vmatpush3.bf16.msra.mxu0 %v12952_v41  ;;  %v10784_v54 = vpack.c.bf16 %v8455_v50, %v8453_v49  ;;  %v575_v63 = vcombine.high %v8457_v61, %v8457_v61  ;;  %v8461_v4 = vld [vmem:[%s15376_s3 + $0xd8] sm:$0xff] }
  0x1a   :  { %10725 = vmatprep.subr.bf16.mxu1 %v12956_v42  ;;  %10693 = vmatprep.subr.bf16.mxu0 %v12956_v42 }
  0x1d   :  { %10727 = vmatpush3.bf16.msra.mxu1 %v12972_v47  ;;  %10695 = vmatpush3.bf16.msra.mxu0 %v12972_v47 }
  0x1e   :  { %10729 = vmatprep.subr.bf16.mxu1 %v12976_v48  ;;  %10697 = vmatprep.subr.bf16.mxu0 %v12976_v48 }
  0x21   :  { %10731 = vmatpush3.bf16.msra.mxu1 %v12986_v51  ;;  %10699 = vmatpush3.bf16.msra.mxu0 %v12986_v51 }
  0x22   :  { %10749 = vmatprep.subr.bf16.mxu1 %v12836_v3  ;;  %10733 = vmatprep.subr.bf16.mxu0 %v10732_v56  ;;  %v8454_v56 = vld [vmem:[%s15376_s3 + $0xb0] sm:$0xff] }
  0x23   :  { %v10786_v57 = vpack.c.bf16 %v8454_v56, %v8452_v55  ;;  %v8479_v55 = vld [vmem:[%s15376_s3 + $0x148] sm:$0xff]  ;;  %v8481_v56 = vld [vmem:[%s15376_s3 + $0x158] sm:$0xff] }
  0x24   :  { %234 = vmatmul.mubr.f32.vlgmr.msra.gmra.mrb[0].mxu1 %v8436_v25  ;;  %143 = vmatmul.mubr.f32.vlgmr.msra.gmra.mrb[0].mxu0 %v8435_v27  ;;  %v151_v25 = vld [vmem:[%s15376_s3 + $0x10] sm:$0xff]  ;;  %v156_v27 = vld [vmem:[%s15376_s3 + $0x38] sm:$0xff] }
  0x25   :  { %10751 = vmatpush3.bf16.msra.mxu1 %v12847_v7  ;;  %474 = vmatprep.mubr.f32.mxu1 %v407_v53  ;;  %v10742_v31 = vpack.c.bf16 %v151_v25, %v149_v24  ;;  %v10744_v33 = vpack.c.bf16 %v156_v27, %v154_v26  ;;  %v10782_v53 = vpack.c.bf16 %v8450_v46, %v8448_v45  ;;  %v8469_v25 = vld [vmem:[%s15376_s3 + $0x108] sm:$0xff]  ;;  %v8471_v26 = vld [vmem:[%s15376_s3 + $0x118] sm:$0xff] }
  0x26   :  { %10753 = vmatprep.subr.bf16.mxu1 %v12849_v8  ;;  %10735 = vmatpush1.bf16.msra.mxu0 %v10734_v59  ;;  %v10860_v27 = vpack.c.bf16 %v8471_v26, %v8469_v25  ;;  %v8475_v45 = vld [vmem:[%s15376_s3 + $0x138] sm:$0xff]  ;;  %v8493_v25 = vld [vmem:[%s15376_s3 + $0x1a8] sm:$0xff] }
  0x27   :  { %10737 = vmatprep.subr.bf16.mxu0 %v10736_v62  ;;  %317 = vmatprep.mubr.f32.mxu0 %v12785_v2  ;;  %v8495_v26 = vld [vmem:[%s15376_s3 + $0x1b8] sm:$0xff] }
  0x29   :  { %10755 = vmatpush3.bf16.msra.mxu1 %v12866_v13 }
  0x2a   :  { %10757 = vmatprep.subr.bf16.mxu1 %v12870_v14  ;;  %10739 = vmatpush1.bf16.msra.mxu0 %v10738_v1  ;;  %v8459_v1 = vld [vmem:[%s15376_s3 + $0xc8] sm:$0xff] }
  0x2b   :  { %10741 = vmatprep.subr.bf16.mxu0 %v10740_v6  ;;  %v10820_v5 = vpack.c.bf16 %v8461_v4, %v8459_v1 }
  0x2d   :  { %10759 = vmatpush3.bf16.msra.mxu1 %v12886_v19 }
  0x2e   :  { %10761 = vmatprep.subr.bf16.mxu1 %v12890_v20 }
  0x31   :  { %10763 = vmatpush3.bf16.msra.mxu1 %v12912_v28 }
  0x32   :  { %10765 = vmatprep.subr.bf16.mxu1 %v12916_v30 }
  0x35   :  { %10767 = vmatpush3.bf16.msra.mxu1 %v12932_v35 }
  0x36   :  { %10769 = vmatprep.subr.bf16.mxu1 %v12936_v36 }
  0x39   :  { %10771 = vmatpush3.bf16.msra.mxu1 %v12952_v41 }
  0x3a   :  { %10773 = vmatprep.subr.bf16.mxu1 %v12956_v42 }
  0x3d   :  { %10775 = vmatpush3.bf16.msra.mxu1 %v12972_v47 }
  0x3e   :  { %10777 = vmatprep.subr.bf16.mxu1 %v12976_v48 }
  0x41   :  { %10779 = vmatpush3.bf16.msra.mxu1 %v12986_v51 }
  0x42   :  { %10829 = vmatprep.subr.bf16.mxu1 %v12836_v3 }
  0x44   :  { %475 = vmatmul.mubr.f32.vlgmr.msra.gmra.mrb[2].mxu1 %v8447_v52 }
  0x45   :  { %10831 = vmatpush3.bf16.msra.mxu1 %v12847_v7  ;;  %810 = vmatprep.mubr.f32.mxu1 %v743_v10 }
  0x46   :  { %10833 = vmatprep.subr.bf16.mxu1 %v12849_v8 }
  0x49   :  { %10835 = vmatpush3.bf16.msra.mxu1 %v12866_v13 }
  0x4a   :  { %10837 = vmatprep.subr.bf16.mxu1 %v12870_v14 }
  0x4d   :  { %10839 = vmatpush3.bf16.msra.mxu1 %v12886_v19 }
  0x4e   :  { %10841 = vmatprep.subr.bf16.mxu1 %v12890_v20 }
  0x51   :  { %10843 = vmatpush3.bf16.msra.mxu1 %v12912_v28 }
  0x52   :  { %10845 = vmatprep.subr.bf16.mxu1 %v12916_v30 }
  0x55   :  { %10847 = vmatpush3.bf16.msra.mxu1 %v12932_v35 }
  0x56   :  { %10849 = vmatprep.subr.bf16.mxu1 %v12936_v36 }
  0x59   :  { %10851 = vmatpush3.bf16.msra.mxu1 %v12952_v41 }
  0x5a   :  { %10853 = vmatprep.subr.bf16.mxu1 %v12956_v42 }
  0x5d   :  { %10855 = vmatpush3.bf16.msra.mxu1 %v12972_v47 }
  0x5e   :  { %10857 = vmatprep.subr.bf16.mxu1 %v12976_v48 }
  0x61   :  { %10859 = vmatpush3.bf16.msra.mxu1 %v12986_v51 }
  0x62   :  { %10869 = vmatprep.subr.bf16.mxu1 %v12836_v3 }
  0x64   :  { %811 = vmatmul.mubr.f32.vlgmr.msra.gmra.mrb[4].mxu1 %v8467_v9 }
  0x65   :  { %10871 = vmatpush3.bf16.msra.mxu1 %v12847_v7  ;;  %978 = vmatprep.mubr.f32.mxu1 %v911_v12  ;;  %v8460_v12 = vld [vmem:[%s15376_s3 + $0xd0] sm:$0xff] }
  0x66   :  { %10873 = vmatprep.subr.bf16.mxu1 %v12849_v8 }
  0x69   :  { %10875 = vmatpush3.bf16.msra.mxu1 %v12866_v13 }
  0x6a   :  { %10877 = vmatprep.subr.bf16.mxu1 %v12870_v14 }
  0x6d   :  { %10879 = vmatpush3.bf16.msra.mxu1 %v12886_v19 }
  0x6e   :  { %10881 = vmatprep.subr.bf16.mxu1 %v12890_v20 }
  0x71   :  { %10883 = vmatpush3.bf16.msra.mxu1 %v12912_v28 }
  0x72   :  { %10885 = vmatprep.subr.bf16.mxu1 %v12916_v30 }
  0x75   :  { %10887 = vmatpush3.bf16.msra.mxu1 %v12932_v35 }
  0x76   :  { %10889 = vmatprep.subr.bf16.mxu1 %v12936_v36 }
  0x79   :  { %10891 = vmatpush3.bf16.msra.mxu1 %v12952_v41 }
  0x7a   :  { %10893 = vmatprep.subr.bf16.mxu1 %v12956_v42 }
  0x7d   :  { %10895 = vmatpush3.bf16.msra.mxu1 %v12972_v47 }
  0x7e   :  { %10897 = vmatprep.subr.bf16.mxu1 %v12976_v48 }
  0x81   :  { %10899 = vmatpush3.bf16.msra.mxu1 %v12986_v51 }
  0x82   :  { %10949 = vmatprep.subr.bf16.mxu1 %v12836_v3 }
  0x84   :  { %979 = vmatmul.mubr.f32.vlgmr.msra.gmra.mrb[6].mxu1 %v8477_v11  ;;  %v8458_v11 = vld [vmem:[%s15376_s3 + $0xc0] sm:$0xff] }
  0x85   :  { %10951 = vmatpush3.bf16.msra.mxu1 %v12847_v7 }
  0x86   :  { %10953 = vmatprep.subr.bf16.mxu1 %v12849_v8 }
  0x89   :  { %10955 = vmatpush3.bf16.msra.mxu1 %v12866_v13 }
  0x8a   :  { %10957 = vmatprep.subr.bf16.mxu1 %v12870_v14 }
  0x8d   :  { %10959 = vmatpush3.bf16.msra.mxu1 %v12886_v19 }
  0x8e   :  { %10961 = vmatprep.subr.bf16.mxu1 %v12890_v20 }
  0x91   :  { %10963 = vmatpush3.bf16.msra.mxu1 %v12912_v28 }
  0x92   :  { %10965 = vmatprep.subr.bf16.mxu1 %v12916_v30 }
  0x95   :  { %10967 = vmatpush3.bf16.msra.mxu1 %v12932_v35 }
  0x96   :  { %10969 = vmatprep.subr.bf16.mxu1 %v12936_v36 }
  0x99   :  { %10971 = vmatpush3.bf16.msra.mxu1 %v12952_v41 }
  0x9a   :  { %10973 = vmatprep.subr.bf16.mxu1 %v12956_v42 }
  0x9d   :  { %10975 = vmatpush3.bf16.msra.mxu1 %v12972_v47 }
  0x9e   :  { %10977 = vmatprep.subr.bf16.mxu1 %v12976_v48 }
  0xa1   :  { %10979 = vmatpush3.bf16.msra.mxu1 %v12986_v51 }
  0xa2   :  { %11029 = vmatprep.subr.bf16.mxu1 %v12836_v3 }
  0xf7   :  { %v8985_v15 = vpop.f32.mrb[0].mxu1  ;;  %v8950_v16 = vpop.f32.mrb[0].mxu0 }
  0xf8   :  { %v8986_v18 = vpop.f32.mrb[1].mxu1  ;;  %v8951_v21 = vpop.f32.mrb[1].mxu0 }
  0xf9   :  { %v8987_v22 = vadd.f32 %v8986_v18, %v8985_v15  ;;  %v8952_v23 = vadd.f32 %v8951_v21, %v8950_v16  ;;  %v10822_v15 = vpack.c.bf16 %v8460_v12, %v8458_v11  ;;  %v8463_v16 = vld [vmem:[%s15376_s3 + $0xe8] sm:$0xff]  ;;  %v8465_v18 = vld [vmem:[%s15376_s3 + $0xf8] sm:$0xff] }
  0xfa   :  { %v10824_v21 = vpack.c.bf16 %v8465_v18, %v8463_v16  ;;  %v8487_v11 = vld.sshfl [vmem:[%s15373_s0 + $0x18] sm:$0x33 pattern:$0x76325410]  ;;  %v8489_v16 = vld [vmem:[%s15376_s3 + $0x188] sm:$0xff] }
  0xfb   :  { %v236_v29 = vadd.f32 %v8987_v22, %v13101_v17  ;;  %v145_v40 = vadd.f32 %v8952_v23, %v13101_v17  ;;  %v8462_v22 = vld [vmem:[%s15376_s3 + $0xe0] sm:$0xff]  ;;  %v8464_v23 = vld [vmem:[%s15376_s3 + $0xf0] sm:$0xff]  ;;  %v8491_v18 = vld [vmem:[%s15376_s3 + $0x198] sm:$0xff] }
  0xfc   :  { %v10826_v24 = vpack.c.bf16 %v8464_v23, %v8462_v22  ;;  %v8488_v22 = vld [vmem:[%s15376_s3 + $0x180] sm:$0xff]  ;;  %v8490_v23 = vld [vmem:[%s15376_s3 + $0x190] sm:$0xff] }
  0xfd   :  { %v239_v32 = vmax.f32 %v236_v29, 0.0  ;;  %v148_v52 = vmax.f32 %v145_v40, 0.0  ;;  %v8468_v40 = vld [vmem:[%s15376_s3 + $0x100] sm:$0xff] }
  0xff   :  { %8445 = vmatmul.mubr.msk.f32.vlgmr.msra.gmra.mrb[2].mxu0 %vm249_vm0, %v239_v32 }
 0x100   :  { %10743 = vmatpush1.bf16.msra.mxu0 %v10742_v31  ;;  %391 = vmatprep.mubr.f32.mxu0 %v12785_v2 }
 0x101   :  { %10745 = vmatprep.subr.bf16.mxu0 %v10744_v33  ;;  %v8497_v33 = vld.sshfl [vmem:[%s15373_s0 + $0x1c] sm:$0x33 pattern:$0x76325410] }
 0x102   :  { %v1247_v34 = vcombine.high %v8497_v33, %v8497_v33 }
 0x104   :  { %10747 = vmatpush1.bf16.msra.mxu0 %v10746_v43  ;;  %1314 = vmatprep.mubr.f32.mxu1 %v1247_v34  ;;  %v8470_v43 = vld [vmem:[%s15376_s3 + $0x110] sm:$0xff]  ;;  %v8501_v34 = vld [vmem:[%s15376_s3 + $0x1d8] sm:$0xff] }
 0x105   :  { %10781 = vmatprep.subr.bf16.mxu0 %v10780_v44  ;;  %1315 = vmatmul.mubr.f32.vlgmr.msra.gmra.mrb[8].mxu1 %v8497_v33  ;;  %v8473_v44 = vld [vmem:[%s15376_s3 + $0x128] sm:$0xff]  ;;  %v10862_v49 = vpack.c.bf16 %v8470_v43, %v8468_v40  ;;  %v8517_v43 = vld.sshfl [vmem:[%s15373_s0 + $0x24] sm:$0x33 pattern:$0x76325410] }
 0x106   :  { %11031 = vmatpush3.bf16.msra.mxu1 %v12847_v7  ;;  %v8499_v33 = vld [vmem:[%s15376_s3 + $0x1c8] sm:$0xff] }
 0x107   :  { %8446 = vmatmul.mubr.msk.f32.vlgmr.msra.gmra.mrb[2].mxu0 %vm249_vm0, %v148_v52  ;;  %11033 = vmatprep.subr.bf16.mxu1 %v12849_v8  ;;  %v10864_v52 = vpack.c.bf16 %v8475_v45, %v8473_v44  ;;  %v1583_v44 = vcombine.high %v8517_v43, %v8517_v43  ;;  %v8527_v45 = vld.sshfl [vmem:[%s15373_s0 + $0x28] sm:$0x33 pattern:$0x76325410] }
 0x108   :  { %10783 = vmatpush1.bf16.msra.mxu0 %v10782_v53  ;;  %557 = vmatprep.mubr.f32.mxu0 %v12785_v2  ;;  %v8472_v53 = vld [vmem:[%s15376_s3 + $0x120] sm:$0xff] }
 0x109   :  { %10785 = vmatprep.subr.bf16.mxu0 %v10784_v54  ;;  %v8474_v54 = vld [vmem:[%s15376_s3 + $0x130] sm:$0xff]  ;;  %1650 = vmatprep.mubr.f32.mxu1 %v1583_v44 }
 0x10a   :  { %11035 = vmatpush3.bf16.msra.mxu1 %v12866_v13 }
 0x10b   :  { %11037 = vmatprep.subr.bf16.mxu1 %v12870_v14 }
 0x10c   :  { %10787 = vmatpush1.bf16.msra.mxu0 %v10786_v57  ;;  %v10866_v57 = vpack.c.bf16 %v8474_v54, %v8472_v53  ;;  %v8498_v53 = vld [vmem:[%s15376_s3 + $0x1c0] sm:$0xff]  ;;  %v8500_v54 = vld [vmem:[%s15376_s3 + $0x1d0] sm:$0xff] }
 0x10d   :  { %10789 = vmatprep.subr.bf16.mxu0 %v12836_v3 }
 0x10e   :  { %11039 = vmatpush3.bf16.msra.mxu1 %v12886_v19 }
 0x10f   :  { %11041 = vmatprep.subr.bf16.mxu1 %v12890_v20 }
 0x112   :  { %11043 = vmatpush3.bf16.msra.mxu1 %v12912_v28 }
 0x113   :  { %11045 = vmatprep.subr.bf16.mxu1 %v12916_v30 }
 0x116   :  { %11047 = vmatpush3.bf16.msra.mxu1 %v12932_v35 }
 0x117   :  { %v9020_v58 = vpop.f32.mrb[2].mxu1  ;;  %11049 = vmatprep.subr.bf16.mxu1 %v12936_v36 }
 0x118   :  { %v9021_v59 = vpop.f32.mrb[3].mxu1 }
 0x119   :  { %v9022_v60 = vadd.f32 %v9021_v59, %v9020_v58  ;;  %v10900_v59 = vpack.c.bf16 %v8481_v56, %v8479_v55  ;;  %v8503_v55 = vld [vmem:[%s15376_s3 + $0x1e8] sm:$0xff]  ;;  %v8505_v56 = vld [vmem:[%s15376_s3 + $0x1f8] sm:$0xff] }
 0x11a   :  { %11051 = vmatpush3.bf16.msra.mxu1 %v12952_v41 }
 0x11b   :  { %v477_v62 = vadd.f32 %v9022_v60, %v13101_v17  ;;  %11053 = vmatprep.subr.bf16.mxu1 %v12956_v42  ;;  %v8478_v60 = vld [vmem:[%s15376_s3 + $0x140] sm:$0xff] }
 0x11d   :  { %v480_v0 = vmax.f32 %v477_v62, 0.0  ;;  %v8483_v62 = vld [vmem:[%s15376_s3 + $0x168] sm:$0xff] }
 0x11e   :  { %11055 = vmatpush3.bf16.msra.mxu1 %v12972_v47 }
 0x11f   :  { %8456 = vmatmul.mubr.msk.f32.vlgmr.msra.gmra.mrb[2].mxu0 %vm249_vm0, %v480_v0  ;;  %11057 = vmatprep.subr.bf16.mxu1 %v12976_v48 }
 0x120   :  { %10791 = vmatpush3.bf16.msra.mxu0 %v12847_v7  ;;  %642 = vmatprep.mubr.f32.mxu0 %v575_v63  ;;  %v8485_v63 = vld [vmem:[%s15376_s3 + $0x178] sm:$0xff] }
 0x121   :  { %10793 = vmatprep.subr.bf16.mxu0 %v12849_v8  ;;  %v10904_v4 = vpack.c.bf16 %v8485_v63, %v8483_v62  ;;  %v8504_v62 = vld [vmem:[%s15376_s3 + $0x1f0] sm:$0xff] }
 0x122   :  { %11059 = vmatpush3.bf16.msra.mxu1 %v12986_v51 }
 0x123   :  { %11069 = vmatprep.subr.bf16.mxu1 %v12836_v3 }
 0x124   :  { %10795 = vmatpush3.bf16.msra.mxu0 %v12866_v13 }
 0x125   :  { %10797 = vmatprep.subr.bf16.mxu0 %v12870_v14  ;;  %1651 = vmatmul.mubr.f32.vlgmr.msra.gmra.mrb[10].mxu1 %v8517_v43 }
 0x126   :  { %11071 = vmatpush3.bf16.msra.mxu1 %v12847_v7 }
 0x127   :  { %11073 = vmatprep.subr.bf16.mxu1 %v12849_v8 }
 0x128   :  { %10799 = vmatpush3.bf16.msra.mxu0 %v12886_v19 }
 0x129   :  { %10801 = vmatprep.subr.bf16.mxu0 %v12890_v20 }
 0x12a   :  { %11075 = vmatpush3.bf16.msra.mxu1 %v12866_v13 }
 0x12b   :  { %11077 = vmatprep.subr.bf16.mxu1 %v12870_v14 }
 0x12c   :  { %10803 = vmatpush3.bf16.msra.mxu0 %v12912_v28 }
 0x12d   :  { %10805 = vmatprep.subr.bf16.mxu0 %v12916_v30 }
 0x12e   :  { %11079 = vmatpush3.bf16.msra.mxu1 %v12886_v19 }
 0x12f   :  { %11081 = vmatprep.subr.bf16.mxu1 %v12890_v20 }
 0x130   :  { %10807 = vmatpush3.bf16.msra.mxu0 %v12932_v35 }
 0x131   :  { %10809 = vmatprep.subr.bf16.mxu0 %v12936_v36 }
 0x132   :  { %11083 = vmatpush3.bf16.msra.mxu1 %v12912_v28 }
 0x133   :  { %11085 = vmatprep.subr.bf16.mxu1 %v12916_v30 }
 0x134   :  { %10811 = vmatpush3.bf16.msra.mxu0 %v12952_v41 }
 0x135   :  { %10813 = vmatprep.subr.bf16.mxu0 %v12956_v42 }
 0x136   :  { %11087 = vmatpush3.bf16.msra.mxu1 %v12932_v35 }
 0x137   :  { %v9090_v6 = vpop.f32.mrb[4].mxu1  ;;  %11089 = vmatprep.subr.bf16.mxu1 %v12936_v36 }
 0x138   :  { %10815 = vmatpush3.bf16.msra.mxu0 %v12972_v47  ;;  %v9091_v9 = vpop.f32.mrb[5].mxu1 }
 0x139   :  { %10817 = vmatprep.subr.bf16.mxu0 %v12976_v48  ;;  %v9092_v10 = vadd.f32 %v9091_v9, %v9090_v6  ;;  %v8484_v6 = vld [vmem:[%s15376_s3 + $0x170] sm:$0xff] }
 0x13a   :  { %11091 = vmatpush3.bf16.msra.mxu1 %v12952_v41 }
 0x13b   :  { %v813_v58 = vadd.f32 %v9092_v10, %v13101_v17  ;;  %11093 = vmatprep.subr.bf16.mxu1 %v12956_v42 }
 0x13c   :  { %10819 = vmatpush3.bf16.msra.mxu0 %v12986_v51 }
 0x13d   :  { %10821 = vmatprep.subr.bf16.mxu0 %v10820_v5  ;;  %v816_v1 = vmax.f32 %v813_v58, 0.0  ;;  %v8482_v5 = vld [vmem:[%s15376_s3 + $0x160] sm:$0xff]  ;;  %v10982_v58 = vpack.c.bf16 %v8500_v54, %v8498_v53  ;;  %v8525_v53 = vld [vmem:[%s15376_s3 + $0x278] sm:$0xff] }
 0x13e   :  { %v10906_v10 = vpack.c.bf16 %v8484_v6, %v8482_v5  ;;  %11095 = vmatpush3.bf16.msra.mxu1 %v12972_v47  ;;  %v8509_v6 = vld [vmem:[%s15376_s3 + $0x208] sm:$0xff] }
 0x13f   :  { %643 = vmatmul.mubr.f32.vlgmr.msra.gmra.mrb[4].mxu0 %v8457_v61  ;;  %v8480_v61 = vld [vmem:[%s15376_s3 + $0x150] sm:$0xff]  ;;  %11097 = vmatprep.subr.bf16.mxu1 %v12976_v48 }
 0x140   :  { %725 = vmatprep.mubr.f32.mxu0 %v12785_v2  ;;  %10823 = vmatpush1.bf16.msra.mxu0 %v10822_v15  ;;  %v10902_v0 = vpack.c.bf16 %v8480_v61, %v8478_v60  ;;  %v1079_v15 = vcombine.high %v8487_v11, %v8487_v11  ;;  %v10984_v60 = vpack.c.bf16 %v8505_v56, %v8503_v55  ;;  %v8502_v61 = vld [vmem:[%s15376_s3 + $0x1e0] sm:$0xff] }
 0x141   :  { %10825 = vmatprep.subr.bf16.mxu0 %v10824_v21  ;;  %v10940_v21 = vpack.c.bf16 %v8491_v18, %v8489_v16  ;;  %v8508_v16 = vld [vmem:[%s15376_s3 + $0x200] sm:$0xff]  ;;  %v8510_v18 = vld [vmem:[%s15376_s3 + $0x210] sm:$0xff] }
 0x142   :  { %11099 = vmatpush3.bf16.msra.mxu1 %v12986_v51 }
 0x143   :  { %11149 = vmatprep.subr.bf16.mxu1 %v12836_v3 }
 0x144   :  { %10827 = vmatpush1.bf16.msra.mxu0 %v10826_v24  ;;  %v10942_v24 = vpack.c.bf16 %v8490_v23, %v8488_v22  ;;  %v8513_v22 = vld [vmem:[%s15376_s3 + $0x228] sm:$0xff]  ;;  %v8515_v23 = vld [vmem:[%s15376_s3 + $0x238] sm:$0xff] }
 0x145   :  { %10861 = vmatprep.subr.bf16.mxu0 %v10860_v27  ;;  %v10944_v27 = vpack.c.bf16 %v8495_v26, %v8493_v25  ;;  %v8512_v25 = vld [vmem:[%s15376_s3 + $0x220] sm:$0xff]  ;;  %v8514_v26 = vld [vmem:[%s15376_s3 + $0x230] sm:$0xff] }
 0x157   :  { %v9125_v29 = vpop.f32.mrb[6].mxu1 }
 0x158   :  { %v9126_v31 = vpop.f32.mrb[7].mxu1 }
 0x159   :  { %v9127_v32 = vadd.f32 %v9126_v31, %v9125_v29  ;;  %v8492_v29 = vld [vmem:[%s15376_s3 + $0x1a0] sm:$0xff]  ;;  %v8494_v31 = vld [vmem:[%s15376_s3 + $0x1b0] sm:$0xff] }
 0x15b   :  { %v981_v9 = vadd.f32 %v9127_v32, %v13101_v17  ;;  %v10946_v32 = vpack.c.bf16 %v8494_v31, %v8492_v29  ;;  %v8519_v29 = vld [vmem:[%s15376_s3 + $0x248] sm:$0xff]  ;;  %v8521_v31 = vld [vmem:[%s15376_s3 + $0x258] sm:$0xff] }
 0x15d   :  { %v984_v12 = vmax.f32 %v981_v9, 0.0  ;;  %v8511_v9 = vld [vmem:[%s15376_s3 + $0x218] sm:$0xff] }
 0x212   :  { %v9055_v37 = vpop.f32.mrb[4].mxu0 }
 0x213   :  { %v9056_v38 = vpop.f32.mrb[5].mxu0 }
 0x214   :  { %v9057_v39 = vadd.f32 %v9056_v38, %v9055_v37  ;;  %v10980_v37 = vpack.c.bf16 %v8501_v34, %v8499_v33  ;;  %v9195_v38 = vpop.f32.mrb[8].mxu1 }
 0x216   :  { %v645_v46 = vadd.f32 %v9057_v39, %v13101_v17  ;;  %v9196_v39 = vpop.f32.mrb[9].mxu1 }
 0x217   :  { %v9197_v40 = vadd.f32 %v9196_v39, %v9195_v38  ;;  %v8547_v38 = vld.sshfl [vmem:[%s15373_s0 + $0x30] sm:$0x33 pattern:$0x76325410] }
 0x218   :  { %v648_v50 = vmax.f32 %v645_v46, 0.0  ;;  %v1751_v46 = vcombine.high %v8527_v45, %v8527_v45  ;;  %v2087_v39 = vcombine.high %v8547_v38, %v8547_v38 }
 0x219   :  { %v1317_v63 = vadd.f32 %v9197_v40, %v13101_v17  ;;  %v8557_v40 = vld.sshfl [vmem:[%s15373_s0 + $0x34] sm:$0x33 pattern:$0x76325410] }
 0x21a   :  { %8466 = vmatmul.mubr.msk.f32.vlgmr.msra.gmra.mrb[2].mxu0 %vm249_vm0, %v648_v50  ;;  %1818 = vmatprep.mubr.f32.mxu1 %v1751_v46  ;;  %v2255_v43 = vcombine.high %v8557_v40, %v8557_v40 }
 0x21b   :  { %10863 = vmatpush1.bf16.msra.mxu0 %v10862_v49  ;;  %893 = vmatprep.mubr.f32.mxu0 %v12785_v2 }
 0x21c   :  { %10865 = vmatprep.subr.bf16.mxu0 %v10864_v52  ;;  %1819 = vmatmul.mubr.f32.vlgmr.msra.gmra.mrb[12].mxu1 %v8527_v45 }
 0x21d   :  { %11151 = vmatpush3.bf16.msra.mxu1 %v12847_v7  ;;  %2154 = vmatprep.mubr.f32.mxu1 %v2087_v39 }
 0x21e   :  { %11153 = vmatprep.subr.bf16.mxu1 %v12849_v8 }
 0x21f   :  { %10867 = vmatpush1.bf16.msra.mxu0 %v10866_v57 }
 0x220   :  { %10901 = vmatprep.subr.bf16.mxu0 %v10900_v59 }
 0x221   :  { %11155 = vmatpush3.bf16.msra.mxu1 %v12866_v13 }
 0x222   :  { %8476 = vmatmul.mubr.msk.f32.vlgmr.msra.gmra.mrb[2].mxu0 %vm249_vm0, %v816_v1  ;;  %11157 = vmatprep.subr.bf16.mxu1 %v12870_v14  ;;  %v8507_v1 = vld.sshfl [vmem:[%s15373_s0 + $0x20] sm:$0x33 pattern:$0x76325410] }
 0x223   :  { %10903 = vmatpush1.bf16.msra.mxu0 %v10902_v0  ;;  %1061 = vmatprep.mubr.f32.mxu0 %v12785_v2  ;;  %v10986_v0 = vpack.c.bf16 %v8504_v62, %v8502_v61  ;;  %v1415_v5 = vcombine.high %v8507_v1, %v8507_v1  ;;  %v8531_v61 = vld [vmem:[%s15376_s3 + $0x298] sm:$0xff] }
 0x224   :  { %10905 = vmatprep.subr.bf16.mxu0 %v10904_v4  ;;  %v1320_v4 = vmax.f32 %v1317_v63, 0.0 }
 0x225   :  { %11159 = vmatpush3.bf16.msra.mxu1 %v12886_v19 }
 0x226   :  { %11161 = vmatprep.subr.bf16.mxu1 %v12890_v20 }
 0x227   :  { %10907 = vmatpush1.bf16.msra.mxu0 %v10906_v10  ;;  %v11020_v10 = vpack.c.bf16 %v8511_v9, %v8509_v6  ;;  %v8535_v6 = vld [vmem:[%s15376_s3 + $0x2b8] sm:$0xff] }
 0x228   :  { %10909 = vmatprep.subr.bf16.mxu0 %v12836_v3 }
 0x229   :  { %11163 = vmatpush3.bf16.msra.mxu1 %v12912_v28 }
 0x22a   :  { %8486 = vmatmul.mubr.msk.f32.vlgmr.msra.gmra.mrb[2].mxu0 %vm249_vm0, %v984_v12  ;;  %11165 = vmatprep.subr.bf16.mxu1 %v12916_v30 }
 0x22b   :  { %10911 = vmatpush3.bf16.msra.mxu0 %v12847_v7  ;;  %1146 = vmatprep.mubr.f32.mxu0 %v1079_v15 }
 0x22c   :  { %10913 = vmatprep.subr.bf16.mxu0 %v12849_v8 }
 0x22d   :  { %11167 = vmatpush3.bf16.msra.mxu1 %v12932_v35 }
 0x22e   :  { %11169 = vmatprep.subr.bf16.mxu1 %v12936_v36 }
 0x22f   :  { %10915 = vmatpush3.bf16.msra.mxu0 %v12866_v13 }
 0x230   :  { %10917 = vmatprep.subr.bf16.mxu0 %v12870_v14 }
 0x231   :  { %11171 = vmatpush3.bf16.msra.mxu1 %v12952_v41 }
 0x232   :  { %11173 = vmatprep.subr.bf16.mxu1 %v12956_v42 }
 0x233   :  { %10919 = vmatpush3.bf16.msra.mxu0 %v12886_v19 }
 0x234   :  { %10921 = vmatprep.subr.bf16.mxu0 %v12890_v20 }
 0x235   :  { %11175 = vmatpush3.bf16.msra.mxu1 %v12972_v47 }
 0x236   :  { %11177 = vmatprep.subr.bf16.mxu1 %v12976_v48 }
 0x237   :  { %10923 = vmatpush3.bf16.msra.mxu0 %v12912_v28 }
 0x238   :  { %10925 = vmatprep.subr.bf16.mxu0 %v12916_v30 }
 0x239   :  { %11179 = vmatpush3.bf16.msra.mxu1 %v12986_v51 }
 0x23a   :  { %11189 = vmatprep.subr.bf16.mxu1 %v12836_v3 }
 0x23b   :  { %10927 = vmatpush3.bf16.msra.mxu0 %v12932_v35 }
 0x23c   :  { %10929 = vmatprep.subr.bf16.mxu0 %v12936_v36  ;;  %2155 = vmatmul.mubr.f32.vlgmr.msra.gmra.mrb[14].mxu1 %v8547_v38  ;;  %v8545_v38 = vld [vmem:[%s15376_s3 + $0x2f8] sm:$0xff] }
 0x23d   :  { %11191 = vmatpush3.bf16.msra.mxu1 %v12847_v7  ;;  %2322 = vmatprep.mubr.f32.mxu1 %v2255_v43  ;;  %v8544_v43 = vld [vmem:[%s15376_s3 + $0x2f0] sm:$0xff] }
 0x23e   :  { %11193 = vmatprep.subr.bf16.mxu1 %v12849_v8 }
 0x23f   :  { %10931 = vmatpush3.bf16.msra.mxu0 %v12952_v41 }
 0x240   :  { %10933 = vmatprep.subr.bf16.mxu0 %v12956_v42 }
 0x241   :  { %11195 = vmatpush3.bf16.msra.mxu1 %v12866_v13 }
 0x242   :  { %11197 = vmatprep.subr.bf16.mxu1 %v12870_v14 }
 0x243   :  { %10935 = vmatpush3.bf16.msra.mxu0 %v12972_v47 }
 0x244   :  { %10937 = vmatprep.subr.bf16.mxu0 %v12976_v48 }
 0x245   :  { %11199 = vmatpush3.bf16.msra.mxu1 %v12886_v19 }
 0x246   :  { %11201 = vmatprep.subr.bf16.mxu1 %v12890_v20 }
 0x247   :  { %10939 = vmatpush3.bf16.msra.mxu0 %v12986_v51 }
 0x248   :  { %10941 = vmatprep.subr.bf16.mxu0 %v10940_v21  ;;  %v11022_v21 = vpack.c.bf16 %v8510_v18, %v8508_v16 }
 0x249   :  { %11203 = vmatpush3.bf16.msra.mxu1 %v12912_v28 }
 0x24a   :  { %1147 = vmatmul.mubr.f32.vlgmr.msra.gmra.mrb[6].mxu0 %v8487_v11  ;;  %v9265_v11 = vpop.f32.mrb[10].mxu1  ;;  %11205 = vmatprep.subr.bf16.mxu1 %v12916_v30 }
 0x24b   :  { %1229 = vmatprep.mubr.f32.mxu0 %v12785_v2  ;;  %10943 = vmatpush1.bf16.msra.mxu0 %v10942_v24  ;;  %v9266_v12 = vpop.f32.mrb[11].mxu1  ;;  %v11024_v24 = vpack.c.bf16 %v8515_v23, %v8513_v22 }
 0x24c   :  { %10945 = vmatprep.subr.bf16.mxu0 %v10944_v27  ;;  %v13409_v15 = vadd.f32 %v9266_v12, %v9265_v11  ;;  %v11026_v27 = vpack.c.bf16 %v8514_v26, %v8512_v25  ;;  %v8532_v12 = vld [vmem:[%s15376_s3 + $0x2a0] sm:$0xff]  ;;  %v8541_v25 = vld [vmem:[%s15376_s3 + $0x2d8] sm:$0xff] }
 0x24d   :  { %11207 = vmatpush3.bf16.msra.mxu1 %v12932_v35 }
 0x24e   :  { %11209 = vmatprep.subr.bf16.mxu1 %v12936_v36  ;;  %v1653_v63 = vadd.f32 %v13409_v15, %v13101_v17  ;;  %v8534_v15 = vld [vmem:[%s15376_s3 + $0x2b0] sm:$0xff] }
 0x24f   :  { %10947 = vmatpush1.bf16.msra.mxu0 %v10946_v32  ;;  %v11060_v32 = vpack.c.bf16 %v8521_v31, %v8519_v29  ;;  %v11106_v18 = vpack.c.bf16 %v8534_v15, %v8532_v12 }
 0x250   :  { %10981 = vmatprep.subr.bf16.mxu0 %v10980_v37 }
 0x251   :  { %11211 = vmatpush3.bf16.msra.mxu1 %v12952_v41 }
 0x252   :  { %11213 = vmatprep.subr.bf16.mxu1 %v12956_v42 }
 0x255   :  { %11215 = vmatpush3.bf16.msra.mxu1 %v12972_v47 }
 0x256   :  { %11217 = vmatprep.subr.bf16.mxu1 %v12976_v48 }
 0x259   :  { %11219 = vmatpush3.bf16.msra.mxu1 %v12986_v51 }
 0x25a   :  { %11269 = vmatprep.subr.bf16.mxu1 %v12836_v3 }
 0x25c   :  { %2323 = vmatmul.mubr.f32.vlgmr.msra.gmra.mrb[16].mxu1 %v8557_v40  ;;  %v8542_v40 = vld [vmem:[%s15376_s3 + $0x2e0] sm:$0xff] }
 0x25d   :  { %11271 = vmatpush3.bf16.msra.mxu1 %v12847_v7 }
 0x25e   :  { %11273 = vmatprep.subr.bf16.mxu1 %v12849_v8 }
 0x261   :  { %11275 = vmatpush3.bf16.msra.mxu1 %v12866_v13 }
 0x262   :  { %11277 = vmatprep.subr.bf16.mxu1 %v12870_v14 }
 0x265   :  { %11279 = vmatpush3.bf16.msra.mxu1 %v12886_v19 }
 0x266   :  { %11281 = vmatprep.subr.bf16.mxu1 %v12890_v20 }
 0x269   :  { %11283 = vmatpush3.bf16.msra.mxu1 %v12912_v28 }
 0x26a   :  { %11285 = vmatprep.subr.bf16.mxu1 %v12916_v30 }
 0x26d   :  { %11287 = vmatpush3.bf16.msra.mxu1 %v12932_v35 }
 0x26e   :  { %11289 = vmatprep.subr.bf16.mxu1 %v12936_v36 }
 0x271   :  { %11291 = vmatpush3.bf16.msra.mxu1 %v12952_v41 }
 0x272   :  { %11293 = vmatprep.subr.bf16.mxu1 %v12956_v42 }
 0x275   :  { %11295 = vmatpush3.bf16.msra.mxu1 %v12972_v47 }
 0x276   :  { %11297 = vmatprep.subr.bf16.mxu1 %v12976_v48 }
 0x279   :  { %11299 = vmatpush3.bf16.msra.mxu1 %v12986_v51 }
 0x27a   :  { %11349 = vmatprep.subr.bf16.mxu1 %v12836_v3 }
 0x2ef   :  { %v9300_v33 = vpop.f32.mrb[12].mxu1 }
 0x2f0   :  { %v9301_v34 = vpop.f32.mrb[13].mxu1 }
 0x2f1   :  { %v13435_v37 = vadd.f32 %v9301_v34, %v9300_v33  ;;  %v8540_v33 = vld [vmem:[%s15376_s3 + $0x2d0] sm:$0xff] }
 0x2f3   :  { %v1821_v16 = vadd.f32 %v13435_v37, %v13101_v17  ;;  %v8543_v37 = vld [vmem:[%s15376_s3 + $0x2e8] sm:$0xff] }
 0x2f4   :  { %v11144_v39 = vpack.c.bf16 %v8545_v38, %v8543_v37  ;;  %v8571_v37 = vld [vmem:[%s15376_s3 + $0x398] sm:$0xff] }
 0x2f5   :  { %v1824_v22 = vmax.f32 %v1821_v16, 0.0  ;;  %v8558_v16 = vld [vmem:[%s15376_s3 + $0x340] sm:$0xff] }
 0x31d   :  { %v9160_v49 = vpop.f32.mrb[6].mxu0 }
 0x31e   :  { %v9161_v50 = vpop.f32.mrb[7].mxu0 }
 0x31f   :  { %v9162_v52 = vadd.f32 %v9161_v50, %v9160_v49  ;;  %v8518_v49 = vld [vmem:[%s15376_s3 + $0x240] sm:$0xff]  ;;  %v8520_v50 = vld [vmem:[%s15376_s3 + $0x250] sm:$0xff] }
 0x320   :  { %v11062_v55 = vpack.c.bf16 %v8520_v50, %v8518_v49 }
 0x321   :  { %v1149_v57 = vadd.f32 %v9162_v52, %v13101_v17  ;;  %v8523_v52 = vld [vmem:[%s15376_s3 + $0x268] sm:$0xff] }
 0x323   :  { %v1152_v59 = vmax.f32 %v1149_v57, 0.0  ;;  %v11064_v57 = vpack.c.bf16 %v8525_v53, %v8523_v52 }
 0x325   :  { %8496 = vmatmul.mubr.msk.f32.vlgmr.msra.gmra.mrb[2].mxu0 %vm249_vm0, %v1152_v59  ;;  %v8524_v59 = vld [vmem:[%s15376_s3 + $0x270] sm:$0xff] }
 0x326   :  { %10983 = vmatpush1.bf16.msra.mxu0 %v10982_v58  ;;  %1397 = vmatprep.mubr.f32.mxu0 %v12785_v2  ;;  %v8522_v58 = vld [vmem:[%s15376_s3 + $0x260] sm:$0xff] }
 0x327   :  { %10985 = vmatprep.subr.bf16.mxu0 %v10984_v60  ;;  %v8529_v60 = vld [vmem:[%s15376_s3 + $0x288] sm:$0xff]  ;;  %v11066_v62 = vpack.c.bf16 %v8524_v59, %v8522_v58  ;;  %v8548_v59 = vld [vmem:[%s15376_s3 + $0x300] sm:$0xff] }
 0x32a   :  { %10987 = vmatpush1.bf16.msra.mxu0 %v10986_v0  ;;  %v11100_v0 = vpack.c.bf16 %v8531_v61, %v8529_v60  ;;  %v8550_v60 = vld [vmem:[%s15376_s3 + $0x310] sm:$0xff]  ;;  %v8553_v61 = vld [vmem:[%s15376_s3 + $0x328] sm:$0xff] }
 0x32b   :  { %10989 = vmatprep.subr.bf16.mxu0 %v12836_v3 }
 0x32d   :  { %8506 = vmatmul.mubr.msk.f32.vlgmr.msra.gmra.mrb[2].mxu0 %vm249_vm0, %v1320_v4  ;;  %v8530_v4 = vld [vmem:[%s15376_s3 + $0x290] sm:$0xff] }
 0x32e   :  { %10991 = vmatpush3.bf16.msra.mxu0 %v12847_v7  ;;  %1482 = vmatprep.mubr.f32.mxu0 %v1415_v5  ;;  %v8533_v5 = vld [vmem:[%s15376_s3 + $0x2a8] sm:$0xff] }
 0x32f   :  { %10993 = vmatprep.subr.bf16.mxu0 %v12849_v8  ;;  %v11104_v11 = vpack.c.bf16 %v8535_v6, %v8533_v5  ;;  %v8552_v5 = vld [vmem:[%s15376_s3 + $0x320] sm:$0xff]  ;;  %v8554_v6 = vld [vmem:[%s15376_s3 + $0x330] sm:$0xff] }
 0x332   :  { %10995 = vmatpush3.bf16.msra.mxu0 %v12866_v13 }
 0x333   :  { %10997 = vmatprep.subr.bf16.mxu0 %v12870_v14 }
 0x336   :  { %10999 = vmatpush3.bf16.msra.mxu0 %v12886_v19 }
 0x337   :  { %11001 = vmatprep.subr.bf16.mxu0 %v12890_v20 }
 0x33a   :  { %11003 = vmatpush3.bf16.msra.mxu0 %v12912_v28 }
 0x33b   :  { %11005 = vmatprep.subr.bf16.mxu0 %v12916_v30 }
 0x33e   :  { %11007 = vmatpush3.bf16.msra.mxu0 %v12932_v35 }
 0x33f   :  { %11009 = vmatprep.subr.bf16.mxu0 %v12936_v36 }
 0x342   :  { %11011 = vmatpush3.bf16.msra.mxu0 %v12952_v41 }
 0x343   :  { %11013 = vmatprep.subr.bf16.mxu0 %v12956_v42 }
 0x346   :  { %11015 = vmatpush3.bf16.msra.mxu0 %v12972_v47 }
 0x347   :  { %11017 = vmatprep.subr.bf16.mxu0 %v12976_v48 }
 0x34a   :  { %11019 = vmatpush3.bf16.msra.mxu0 %v12986_v51 }
 0x34b   :  { %11021 = vmatprep.subr.bf16.mxu0 %v11020_v10  ;;  %v1656_v10 = vmax.f32 %v1653_v63, 0.0 }
 0x34d   :  { %1483 = vmatmul.mubr.f32.vlgmr.msra.gmra.mrb[8].mxu0 %v8507_v1  ;;  %v8528_v1 = vld [vmem:[%s15376_s3 + $0x280] sm:$0xff] }
 0x34e   :  { %1565 = vmatprep.mubr.f32.mxu0 %v12785_v2  ;;  %11023 = vmatpush1.bf16.msra.mxu0 %v11022_v21  ;;  %v11102_v9 = vpack.c.bf16 %v8530_v4, %v8528_v1  ;;  %v8537_v21 = vld.sshfl [vmem:[%s15373_s0 + $0x2c] sm:$0x33 pattern:$0x76325410] }
 0x34f   :  { %11025 = vmatprep.subr.bf16.mxu0 %v11024_v24  ;;  %v1919_v23 = vcombine.high %v8537_v21, %v8537_v21  ;;  %v8539_v24 = vld [vmem:[%s15376_s3 + $0x2c8] sm:$0xff] }
 0x350   :  { %v11140_v26 = vpack.c.bf16 %v8541_v25, %v8539_v24 }
 0x352   :  { %11027 = vmatpush1.bf16.msra.mxu0 %v11026_v27  ;;  %v9370_v27 = vpop.f32.mrb[14].mxu1 }
 0x353   :  { %11061 = vmatprep.subr.bf16.mxu0 %v11060_v32  ;;  %v9371_v29 = vpop.f32.mrb[15].mxu1  ;;  %v8538_v32 = vld [vmem:[%s15376_s3 + $0x2c0] sm:$0xff] }
 0x354   :  { %v9372_v31 = vadd.f32 %v9371_v29, %v9370_v27  ;;  %v11142_v34 = vpack.c.bf16 %v8540_v33, %v8538_v32  ;;  %v9405_v50 = vpop.f32.mrb[16].mxu1  ;;  %v8564_v27 = vld [vmem:[%s15376_s3 + $0x370] sm:$0xff]  ;;  %v8567_v32 = vld.sshfl [vmem:[%s15373_s0 + $0x38] sm:$0x33 pattern:$0x76325410] }
 0x355   :  { %v9406_v52 = vpop.f32.mrb[17].mxu1 }
 0x356   :  { %v9407_v53 = vadd.f32 %v9406_v52, %v9405_v50  ;;  %v2157_v12 = vadd.f32 %v9372_v31, %v13101_v17  ;;  %v8574_v50 = vld [vmem:[%s15376_s3 + $0x3b0] sm:$0xff] }
 0x358   :  { %v2160_v24 = vmax.f32 %v2157_v12, 0.0  ;;  %v2325_v29 = vadd.f32 %v9407_v53, %v13101_v17  ;;  %v8579_v53 = vld [vmem:[%s15376_s3 + $0x3c8] sm:$0xff] }
 0x35a   :  { %v2328_v33 = vmax.f32 %v2325_v29, 0.0  ;;  %v8591_v29 = vld [vmem:[%s15376_s3 + $0x418] sm:$0xff] }
 0x420   :  { %v9230_v44 = vpop.f32.mrb[8].mxu0 }
 0x421   :  { %v9231_v45 = vpop.f32.mrb[9].mxu0 }
 0x422   :  { %v9232_v46 = vadd.f32 %v9231_v45, %v9230_v44  ;;  %v11146_v44 = vpack.c.bf16 %v8544_v43, %v8542_v40  ;;  %v8549_v45 = vld [vmem:[%s15376_s3 + $0x308] sm:$0xff]  ;;  %v8570_v40 = vld [vmem:[%s15376_s3 + $0x390] sm:$0xff] }
 0x424   :  { %v1485_v54 = vadd.f32 %v9232_v46, %v13101_v17  ;;  %v8551_v46 = vld [vmem:[%s15376_s3 + $0x318] sm:$0xff] }
 0x425   :  { %v11180_v49 = vpack.c.bf16 %v8551_v46, %v8549_v45  ;;  %v8575_v45 = vld [vmem:[%s15376_s3 + $0x3b8] sm:$0xff] }
 0x426   :  { %v1488_v56 = vmax.f32 %v1485_v54, 0.0  ;;  %v8577_v54 = vld.sshfl [vmem:[%s15373_s0 + $0x3c] sm:$0x33 pattern:$0x76325410] }
 0x428   :  { %8516 = vmatmul.mubr.msk.f32.vlgmr.msra.gmra.mrb[2].mxu0 %vm249_vm0, %v1488_v56 }
 0x429   :  { %11063 = vmatpush1.bf16.msra.mxu0 %v11062_v55  ;;  %1733 = vmatprep.mubr.f32.mxu0 %v12785_v2  ;;  %v2591_v55 = vcombine.high %v8577_v54, %v8577_v54 }
 0x42a   :  { %11065 = vmatprep.subr.bf16.mxu0 %v11064_v57 }
 0x42b   :  { %2658 = vmatprep.mubr.f32.mxu1 %v2591_v55 }
 0x42c   :  { %2659 = vmatmul.mubr.f32.vlgmr.msra.gmra.mrb[18].mxu1 %v8577_v54  ;;  %v8581_v54 = vld [vmem:[%s15376_s3 + $0x3d8] sm:$0xff] }
 0x42d   :  { %11067 = vmatpush1.bf16.msra.mxu0 %v11066_v62  ;;  %11351 = vmatpush3.bf16.msra.mxu1 %v12847_v7  ;;  %v8555_v62 = vld [vmem:[%s15376_s3 + $0x338] sm:$0xff]  ;;  %v11300_v55 = vpack.c.bf16 %v8581_v54, %v8579_v53 }
 0x42e   :  { %11101 = vmatprep.subr.bf16.mxu0 %v11100_v0  ;;  %11353 = vmatprep.subr.bf16.mxu1 %v12849_v8  ;;  %v11182_v0 = vpack.c.bf16 %v8550_v60, %v8548_v59  ;;  %v11184_v4 = vpack.c.bf16 %v8555_v62, %v8553_v61  ;;  %v8597_v59 = vld.sshfl [vmem:[%s15373_s0 + $0x44] sm:$0x33 pattern:$0x76325410] }
 0x42f   :  { %v2927_v60 = vcombine.high %v8597_v59, %v8597_v59  ;;  %v8607_v61 = vld.sshfl [vmem:[%s15373_s0 + $0x48] sm:$0x33 pattern:$0x76325410] }
 0x430   :  { %8526 = vmatmul.mubr.msk.f32.vlgmr.msra.gmra.mrb[2].mxu0 %vm249_vm0, %v1656_v10  ;;  %v8561_v10 = vld [vmem:[%s15376_s3 + $0x358] sm:$0xff]  ;;  %v3095_v62 = vcombine.high %v8607_v61, %v8607_v61 }
 0x431   :  { %11103 = vmatpush1.bf16.msra.mxu0 %v11102_v9  ;;  %1901 = vmatprep.mubr.f32.mxu0 %v12785_v2  ;;  %v8559_v9 = vld [vmem:[%s15376_s3 + $0x348] sm:$0xff] }
 0x432   :  { %11105 = vmatprep.subr.bf16.mxu0 %v11104_v11  ;;  %11355 = vmatpush3.bf16.msra.mxu1 %v12866_v13  ;;  %v11186_v11 = vpack.c.bf16 %v8554_v6, %v8552_v5  ;;  %v11220_v15 = vpack.c.bf16 %v8561_v10, %v8559_v9  ;;  %v8580_v5 = vld [vmem:[%s15376_s3 + $0x3d0] sm:$0xff]  ;;  %v8583_v6 = vld [vmem:[%s15376_s3 + $0x3e8] sm:$0xff]  ;;  %v8585_v9 = vld [vmem:[%s15376_s3 + $0x3f8] sm:$0xff] }
 0x433   :  { %11357 = vmatprep.subr.bf16.mxu1 %v12870_v14  ;;  %2994 = vmatprep.mubr.f32.mxu1 %v2927_v60  ;;  %v13749_v10 = vld [vmem:[%s15375_s2] ss:$0 sm:$0xff] }
 0x435   :  { %11107 = vmatpush1.bf16.msra.mxu0 %v11106_v18  ;;  %v8560_v18 = vld [vmem:[%s15376_s3 + $0x350] sm:$0xff] }
 0x436   :  { %11109 = vmatprep.subr.bf16.mxu0 %v12836_v3  ;;  %11359 = vmatpush3.bf16.msra.mxu1 %v12886_v19 }
 0x437   :  { %11361 = vmatprep.subr.bf16.mxu1 %v12890_v20 }
 0x438   :  { %8536 = vmatmul.mubr.msk.f32.vlgmr.msra.gmra.mrb[2].mxu0 %vm249_vm0, %v1824_v22  ;;  %v8565_v22 = vld [vmem:[%s15376_s3 + $0x378] sm:$0xff] }
 0x439   :  { %11111 = vmatpush3.bf16.msra.mxu0 %v12847_v7  ;;  %1986 = vmatprep.mubr.f32.mxu0 %v1919_v23  ;;  %v11222_v23 = vpack.c.bf16 %v8560_v18, %v8558_v16  ;;  %v11304_v16 = vpack.c.bf16 %v8585_v9, %v8583_v6  ;;  %v8582_v18 = vld [vmem:[%s15376_s3 + $0x3e0] sm:$0xff] }
 0x43a   :  { %11113 = vmatprep.subr.bf16.mxu0 %v12849_v8  ;;  %11363 = vmatpush3.bf16.msra.mxu1 %v12912_v28 }
 0x43b   :  { %11365 = vmatprep.subr.bf16.mxu1 %v12916_v30 }
 0x43d   :  { %11115 = vmatpush3.bf16.msra.mxu0 %v12866_v13 }
 0x43e   :  { %11117 = vmatprep.subr.bf16.mxu0 %v12870_v14  ;;  %11367 = vmatpush3.bf16.msra.mxu1 %v12932_v35 }
 0x43f   :  { %11369 = vmatprep.subr.bf16.mxu1 %v12936_v36 }
 0x441   :  { %11119 = vmatpush3.bf16.msra.mxu0 %v12886_v19 }
 0x442   :  { %11121 = vmatprep.subr.bf16.mxu0 %v12890_v20  ;;  %11371 = vmatpush3.bf16.msra.mxu1 %v12952_v41 }
 0x443   :  { %11373 = vmatprep.subr.bf16.mxu1 %v12956_v42 }
 0x445   :  { %11123 = vmatpush3.bf16.msra.mxu0 %v12912_v28 }
 0x446   :  { %11125 = vmatprep.subr.bf16.mxu0 %v12916_v30  ;;  %11375 = vmatpush3.bf16.msra.mxu1 %v12972_v47 }
 0x447   :  { %11377 = vmatprep.subr.bf16.mxu1 %v12976_v48 }
 0x449   :  { %11127 = vmatpush3.bf16.msra.mxu0 %v12932_v35 }
 0x44a   :  { %11129 = vmatprep.subr.bf16.mxu0 %v12936_v36  ;;  %11379 = vmatpush3.bf16.msra.mxu1 %v12986_v51 }
 0x44b   :  { %11389 = vmatprep.subr.bf16.mxu1 %v12836_v3 }
 0x44d   :  { %11131 = vmatpush3.bf16.msra.mxu0 %v12952_v41  ;;  %2995 = vmatmul.mubr.f32.vlgmr.msra.gmra.mrb[20].mxu1 %v8597_v59 }
 0x44e   :  { %11133 = vmatprep.subr.bf16.mxu0 %v12956_v42  ;;  %11391 = vmatpush3.bf16.msra.mxu1 %v12847_v7 }
 0x44f   :  { %11393 = vmatprep.subr.bf16.mxu1 %v12849_v8  ;;  %3162 = vmatprep.mubr.f32.mxu1 %v3095_v62 }
 0x451   :  { %11135 = vmatpush3.bf16.msra.mxu0 %v12972_v47 }
 0x452   :  { %11137 = vmatprep.subr.bf16.mxu0 %v12976_v48  ;;  %11395 = vmatpush3.bf16.msra.mxu1 %v12866_v13 }
 0x453   :  { %11397 = vmatprep.subr.bf16.mxu1 %v12870_v14 }
 0x455   :  { %11139 = vmatpush3.bf16.msra.mxu0 %v12986_v51 }
 0x456   :  { %11141 = vmatprep.subr.bf16.mxu0 %v11140_v26  ;;  %v8562_v26 = vld [vmem:[%s15376_s3 + $0x360] sm:$0xff]  ;;  %11399 = vmatpush3.bf16.msra.mxu1 %v12886_v19 }
 0x457   :  { %v11226_v31 = vpack.c.bf16 %v8564_v27, %v8562_v26  ;;  %11401 = vmatprep.subr.bf16.mxu1 %v12890_v20  ;;  %v8589_v27 = vld [vmem:[%s15376_s3 + $0x408] sm:$0xff] }
 0x458   :  { %1987 = vmatmul.mubr.f32.vlgmr.msra.gmra.mrb[10].mxu0 %v8537_v21  ;;  %v8563_v21 = vld [vmem:[%s15376_s3 + $0x368] sm:$0xff] }
 0x459   :  { %2069 = vmatprep.mubr.f32.mxu0 %v12785_v2  ;;  %11143 = vmatpush1.bf16.msra.mxu0 %v11142_v34  ;;  %v11224_v25 = vpack.c.bf16 %v8565_v22, %v8563_v21  ;;  %v2423_v34 = vcombine.high %v8567_v32, %v8567_v32  ;;  %v8584_v21 = vld [vmem:[%s15376_s3 + $0x3f0] sm:$0xff] }
 0x45a   :  { %11145 = vmatprep.subr.bf16.mxu0 %v11144_v39  ;;  %v8568_v39 = vld [vmem:[%s15376_s3 + $0x380] sm:$0xff]  ;;  %11403 = vmatpush3.bf16.msra.mxu1 %v12912_v28 }
 0x45b   :  { %v11262_v43 = vpack.c.bf16 %v8570_v40, %v8568_v39  ;;  %11405 = vmatprep.subr.bf16.mxu1 %v12916_v30  ;;  %v8593_v39 = vld [vmem:[%s15376_s3 + $0x428] sm:$0xff]  ;;  %v8595_v40 = vld [vmem:[%s15376_s3 + $0x438] sm:$0xff] }
 0x45d   :  { %11147 = vmatpush1.bf16.msra.mxu0 %v11146_v44  ;;  %v8573_v44 = vld [vmem:[%s15376_s3 + $0x3a8] sm:$0xff] }
 0x45e   :  { %11181 = vmatprep.subr.bf16.mxu0 %v11180_v49  ;;  %v11264_v46 = vpack.c.bf16 %v8575_v45, %v8573_v44  ;;  %v8572_v49 = vld [vmem:[%s15376_s3 + $0x3a0] sm:$0xff]  ;;  %11407 = vmatpush3.bf16.msra.mxu1 %v12932_v35  ;;  %v8594_v45 = vld [vmem:[%s15376_s3 + $0x430] sm:$0xff] }
 0x45f   :  { %v11266_v52 = vpack.c.bf16 %v8574_v50, %v8572_v49  ;;  %11409 = vmatprep.subr.bf16.mxu1 %v12936_v36  ;;  %v8592_v44 = vld [vmem:[%s15376_s3 + $0x420] sm:$0xff]  ;;  %v8599_v49 = vld [vmem:[%s15376_s3 + $0x448] sm:$0xff]  ;;  %v8601_v50 = vld [vmem:[%s15376_s3 + $0x458] sm:$0xff] }
 0x462   :  { %11411 = vmatpush3.bf16.msra.mxu1 %v12952_v41 }
 0x463   :  { %11413 = vmatprep.subr.bf16.mxu1 %v12956_v42 }
 0x466   :  { %11415 = vmatpush3.bf16.msra.mxu1 %v12972_v47 }
 0x467   :  { %11417 = vmatprep.subr.bf16.mxu1 %v12976_v48 }
 0x46a   :  { %11419 = vmatpush3.bf16.msra.mxu1 %v12986_v51 }
 0x46b   :  { %11469 = vmatprep.subr.bf16.mxu1 %v12836_v3 }
 0x46d   :  { %3163 = vmatmul.mubr.f32.vlgmr.msra.gmra.mrb[22].mxu1 %v8607_v61 }
 0x46e   :  { %11471 = vmatpush3.bf16.msra.mxu1 %v12847_v7 }
 0x46f   :  { %11473 = vmatprep.subr.bf16.mxu1 %v12849_v8 }
 0x472   :  { %11475 = vmatpush3.bf16.msra.mxu1 %v12866_v13 }
 0x473   :  { %11477 = vmatprep.subr.bf16.mxu1 %v12870_v14 }
 0x476   :  { %11479 = vmatpush3.bf16.msra.mxu1 %v12886_v19 }
 0x477   :  { %11481 = vmatprep.subr.bf16.mxu1 %v12890_v20 }
 0x47a   :  { %11483 = vmatpush3.bf16.msra.mxu1 %v12912_v28 }
 0x47b   :  { %11485 = vmatprep.subr.bf16.mxu1 %v12916_v30 }
 0x47e   :  { %11487 = vmatpush3.bf16.msra.mxu1 %v12932_v35 }
 0x47f   :  { %11489 = vmatprep.subr.bf16.mxu1 %v12936_v36 }
 0x482   :  { %11491 = vmatpush3.bf16.msra.mxu1 %v12952_v41 }
 0x483   :  { %11493 = vmatprep.subr.bf16.mxu1 %v12956_v42 }
 0x486   :  { %11495 = vmatpush3.bf16.msra.mxu1 %v12972_v47 }
 0x487   :  { %11497 = vmatprep.subr.bf16.mxu1 %v12976_v48 }
 0x48a   :  { %11499 = vmatpush3.bf16.msra.mxu1 %v12986_v51 }
 0x48b   :  { %11509 = vmatprep.subr.bf16.mxu1 %v12836_v3 }
 0x52b   :  { %v9335_v56 = vpop.f32.mrb[10].mxu0 }
 0x52c   :  { %v9336_v57 = vpop.f32.mrb[11].mxu0 }
 0x52d   :  { %v9337_v58 = vadd.f32 %v9336_v57, %v9335_v56  ;;  %v9475_v56 = vpop.f32.mrb[18].mxu1 }
 0x52e   :  { %v9476_v57 = vpop.f32.mrb[19].mxu1 }
 0x52f   :  { %v1989_v63 = vadd.f32 %v9337_v58, %v13101_v17  ;;  %v8569_v17 = vld [vmem:[%s15376_s3 + $0x388] sm:$0xff]  ;;  %v9477_v58 = vadd.f32 %v9476_v57, %v9475_v56  ;;  %v8627_v56 = vld.sshfl [vmem:[%s15373_s0 + $0x50] sm:$0x33 pattern:$0x76325410] }
 0x530   :  { %v11260_v38 = vpack.c.bf16 %v8571_v37, %v8569_v17  ;;  %v8588_v17 = vld [vmem:[%s15376_s3 + $0x400] sm:$0xff]  ;;  %v8590_v37 = vld [vmem:[%s15376_s3 + $0x410] sm:$0xff]  ;;  %v3431_v57 = vcombine.high %v8627_v56, %v8627_v56 }
 0x531   :  { %v1992_v1 = vmax.f32 %v1989_v63, 0.0  ;;  %v2661_v22 = vadd.f32 %v13749_v10, %v9477_v58  ;;  %v8637_v58 = vld.sshfl [vmem:[%s15373_s0 + $0x54] sm:$0x33 pattern:$0x76325410] }
 0x532   :  { %3498 = vmatprep.mubr.f32.mxu1 %v3431_v57  ;;  %v3599_v59 = vcombine.high %v8637_v58, %v8637_v58 }
 0x533   :  { %8546 = vmatmul.mubr.msk.f32.vlgmr.msra.gmra.mrb[2].mxu0 %vm249_vm0, %v1992_v1  ;;  %3499 = vmatmul.mubr.f32.vlgmr.msra.gmra.mrb[24].mxu1 %v8627_v56  ;;  %v8625_v56 = vld [vmem:[%s15376_s3 + $0x4f8] sm:$0xff] }
 0x534   :  { %11183 = vmatpush1.bf16.msra.mxu0 %v11182_v0  ;;  %2237 = vmatprep.mubr.f32.mxu0 %v12785_v2 }
 0x535   :  { %11185 = vmatprep.subr.bf16.mxu0 %v11184_v4  ;;  %v8578_v4 = vld [vmem:[%s15376_s3 + $0x3c0] sm:$0xff]  ;;  %11511 = vmatpush3.bf16.msra.mxu1 %v12847_v7 }
 0x536   :  { %v11302_v12 = vpack.c.bf16 %v8580_v5, %v8578_v4  ;;  %11513 = vmatprep.subr.bf16.mxu1 %v12849_v8  ;;  %3666 = vmatprep.mubr.f32.mxu1 %v3599_v59  ;;  %v8605_v4 = vld [vmem:[%s15376_s3 + $0x478] sm:$0xff]  ;;  %v8624_v59 = vld [vmem:[%s15376_s3 + $0x4f0] sm:$0xff] }
 0x538   :  { %11187 = vmatpush1.bf16.msra.mxu0 %v11186_v11 }
 0x539   :  { %11221 = vmatprep.subr.bf16.mxu0 %v11220_v15  ;;  %11515 = vmatpush3.bf16.msra.mxu1 %v12866_v13 }
 0x53a   :  { %11517 = vmatprep.subr.bf16.mxu1 %v12870_v14 }
 0x53b   :  { %8556 = vmatmul.mubr.msk.f32.vlgmr.msra.gmra.mrb[2].mxu0 %vm249_vm0, %v2160_v24  ;;  %v8587_v24 = vld.sshfl [vmem:[%s15373_s0 + $0x40] sm:$0x33 pattern:$0x76325410] }
 0x53c   :  { %11223 = vmatpush1.bf16.msra.mxu0 %v11222_v23  ;;  %2405 = vmatprep.mubr.f32.mxu0 %v12785_v2  ;;  %v11306_v23 = vpack.c.bf16 %v8584_v21, %v8582_v18  ;;  %v2759_v26 = vcombine.high %v8587_v24, %v8587_v24  ;;  %v8611_v18 = vld [vmem:[%s15376_s3 + $0x498] sm:$0xff] }
 0x53d   :  { %11225 = vmatprep.subr.bf16.mxu0 %v11224_v25  ;;  %v2664_v25 = vmax.f32 %v2661_v22, 0.0  ;;  %11519 = vmatpush3.bf16.msra.mxu1 %v12886_v19 }
 0x53e   :  { %11521 = vmatprep.subr.bf16.mxu1 %v12890_v20 }
 0x540   :  { %11227 = vmatpush1.bf16.msra.mxu0 %v11226_v31  ;;  %v11340_v31 = vpack.c.bf16 %v8591_v29, %v8589_v27  ;;  %v8615_v27 = vld [vmem:[%s15376_s3 + $0x4b8] sm:$0xff] }
 0x541   :  { %11229 = vmatprep.subr.bf16.mxu0 %v12836_v3  ;;  %11523 = vmatpush3.bf16.msra.mxu1 %v12912_v28 }
 0x542   :  { %11525 = vmatprep.subr.bf16.mxu1 %v12916_v30 }
 0x543   :  { %8566 = vmatmul.mubr.msk.f32.vlgmr.msra.gmra.mrb[2].mxu0 %vm249_vm0, %v2328_v33 }
 0x544   :  { %11231 = vmatpush3.bf16.msra.mxu0 %v12847_v7  ;;  %2490 = vmatprep.mubr.f32.mxu0 %v2423_v34 }
 0x545   :  { %11233 = vmatprep.subr.bf16.mxu0 %v12849_v8  ;;  %11527 = vmatpush3.bf16.msra.mxu1 %v12932_v35 }
 0x546   :  { %11529 = vmatprep.subr.bf16.mxu1 %v12936_v36 }
 0x548   :  { %11235 = vmatpush3.bf16.msra.mxu0 %v12866_v13 }
 0x549   :  { %11237 = vmatprep.subr.bf16.mxu0 %v12870_v14  ;;  %11531 = vmatpush3.bf16.msra.mxu1 %v12952_v41 }
 0x54a   :  { %11533 = vmatprep.subr.bf16.mxu1 %v12956_v42 }
 0x54c   :  { %11239 = vmatpush3.bf16.msra.mxu0 %v12886_v19 }
 0x54d   :  { %11241 = vmatprep.subr.bf16.mxu0 %v12890_v20  ;;  %11535 = vmatpush3.bf16.msra.mxu1 %v12972_v47 }
 0x54e   :  { %11537 = vmatprep.subr.bf16.mxu1 %v12976_v48 }
 0x550   :  { %11243 = vmatpush3.bf16.msra.mxu0 %v12912_v28 }
 0x551   :  { %11245 = vmatprep.subr.bf16.mxu0 %v12916_v30  ;;  %11539 = vmatpush3.bf16.msra.mxu1 %v12986_v51 }
 0x552   :  { %11589 = vmatprep.subr.bf16.mxu1 %v12836_v3 }
 0x554   :  { %11247 = vmatpush3.bf16.msra.mxu0 %v12932_v35  ;;  %3667 = vmatmul.mubr.f32.vlgmr.msra.gmra.mrb[26].mxu1 %v8637_v58  ;;  %v8622_v58 = vld [vmem:[%s15376_s3 + $0x4e0] sm:$0xff] }
 0x555   :  { %11249 = vmatprep.subr.bf16.mxu0 %v12936_v36  ;;  %11591 = vmatpush3.bf16.msra.mxu1 %v12847_v7 }
 0x556   :  { %11593 = vmatprep.subr.bf16.mxu1 %v12849_v8 }
 0x558   :  { %11251 = vmatpush3.bf16.msra.mxu0 %v12952_v41 }
 0x559   :  { %11253 = vmatprep.subr.bf16.mxu0 %v12956_v42  ;;  %11595 = vmatpush3.bf16.msra.mxu1 %v12866_v13 }
 0x55a   :  { %11597 = vmatprep.subr.bf16.mxu1 %v12870_v14 }
 0x55c   :  { %11255 = vmatpush3.bf16.msra.mxu0 %v12972_v47 }
 0x55d   :  { %11257 = vmatprep.subr.bf16.mxu0 %v12976_v48  ;;  %11599 = vmatpush3.bf16.msra.mxu1 %v12886_v19 }
 0x55e   :  { %11601 = vmatprep.subr.bf16.mxu1 %v12890_v20 }
 0x560   :  { %11259 = vmatpush3.bf16.msra.mxu0 %v12986_v51 }
 0x561   :  { %11261 = vmatprep.subr.bf16.mxu0 %v11260_v38  ;;  %v11342_v38 = vpack.c.bf16 %v8590_v37, %v8588_v17  ;;  %11603 = vmatpush3.bf16.msra.mxu1 %v12912_v28 }
 0x562   :  { %11605 = vmatprep.subr.bf16.mxu1 %v12916_v30 }
 0x563   :  { %2491 = vmatmul.mubr.f32.vlgmr.msra.gmra.mrb[12].mxu0 %v8567_v32  ;;  %v9545_v32 = vpop.f32.mrb[20].mxu1 }
 0x564   :  { %2573 = vmatprep.mubr.f32.mxu0 %v12785_v2  ;;  %11263 = vmatpush1.bf16.msra.mxu0 %v11262_v43  ;;  %v9546_v33 = vpop.f32.mrb[21].mxu1  ;;  %v11344_v43 = vpack.c.bf16 %v8595_v40, %v8593_v39 }
 0x565   :  { %11265 = vmatprep.subr.bf16.mxu0 %v11264_v46  ;;  %v13788_v34 = vadd.f32 %v9546_v33, %v9545_v32  ;;  %v11346_v46 = vpack.c.bf16 %v8594_v45, %v8592_v44  ;;  %v9580_v53 = vpop.f32.mrb[22].mxu1  ;;  %11607 = vmatpush3.bf16.msra.mxu1 %v12932_v35  ;;  %v8612_v33 = vld [vmem:[%s15376_s3 + $0x4a0] sm:$0xff]  ;;  %v8621_v44 = vld [vmem:[%s15376_s3 + $0x4d8] sm:$0xff] }
 0x566   :  { %v9581_v54 = vpop.f32.mrb[23].mxu1  ;;  %11609 = vmatprep.subr.bf16.mxu1 %v12936_v36 }
 0x567   :  { %v2997_v22 = vadd.f32 %v13749_v10, %v13788_v34  ;;  %v8614_v34 = vld [vmem:[%s15376_s3 + $0x4b0] sm:$0xff] }
 0x568   :  { %11267 = vmatpush1.bf16.msra.mxu0 %v11266_v52  ;;  %v11380_v52 = vpack.c.bf16 %v8601_v50, %v8599_v49  ;;  %v11426_v37 = vpack.c.bf16 %v8614_v34, %v8612_v33 }
 0x569   :  { %11301 = vmatprep.subr.bf16.mxu0 %v11300_v55  ;;  %v13814_v55 = vadd.f32 %v9581_v54, %v9580_v53  ;;  %11611 = vmatpush3.bf16.msra.mxu1 %v12952_v41  ;;  %v8620_v53 = vld [vmem:[%s15376_s3 + $0x4d0] sm:$0xff] }
 0x56a   :  { %11613 = vmatprep.subr.bf16.mxu1 %v12956_v42 }
 0x56b   :  { %v3165_v17 = vadd.f32 %v13749_v10, %v13814_v55  ;;  %v8623_v55 = vld [vmem:[%s15376_s3 + $0x4e8] sm:$0xff] }
 0x56c   :  { %v11464_v57 = vpack.c.bf16 %v8625_v56, %v8623_v55  ;;  %v8649_v55 = vld [vmem:[%s15376_s3 + $0x588] sm:$0xff]  ;;  %v8651_v56 = vld [vmem:[%s15376_s3 + $0x598] sm:$0xff] }
 0x56d   :  { %11615 = vmatpush3.bf16.msra.mxu1 %v12972_v47  ;;  %v3168_v39 = vmax.f32 %v3165_v17, 0.0  ;;  %v8638_v17 = vld [vmem:[%s15376_s3 + $0x540] sm:$0xff] }
 0x56e   :  { %11617 = vmatprep.subr.bf16.mxu1 %v12976_v48 }
 0x571   :  { %11619 = vmatpush3.bf16.msra.mxu1 %v12986_v51 }
 0x572   :  { %11669 = vmatprep.subr.bf16.mxu1 %v12836_v3 }
 0x636   :  { %v9440_v63 = vpop.f32.mrb[12].mxu0 }
 0x637   :  { %v9441_v0 = vpop.f32.mrb[13].mxu0 }
 0x638   :  { %v9442_v1 = vadd.f32 %v9441_v0, %v9440_v63  ;;  %v8598_v63 = vld [vmem:[%s15376_s3 + $0x440] sm:$0xff]  ;;  %v8600_v0 = vld [vmem:[%s15376_s3 + $0x450] sm:$0xff] }
 0x639   :  { %v11382_v6 = vpack.c.bf16 %v8600_v0, %v8598_v63 }
 0x63a   :  { %v2493_v11 = vadd.f32 %v13749_v10, %v9442_v1  ;;  %v8603_v1 = vld [vmem:[%s15376_s3 + $0x468] sm:$0xff] }
 0x63c   :  { %v2496_v15 = vmax.f32 %v2493_v11, 0.0  ;;  %v11384_v11 = vpack.c.bf16 %v8605_v4, %v8603_v1 }
 0x63e   :  { %8576 = vmatmul.mubr.msk.f32.vlgmr.msra.gmra.mrb[2].mxu0 %vm249_vm0, %v2496_v15  ;;  %v8604_v15 = vld [vmem:[%s15376_s3 + $0x470] sm:$0xff] }
 0x63f   :  { %11303 = vmatpush1.bf16.msra.mxu0 %v11302_v12  ;;  %2741 = vmatprep.mubr.f32.mxu0 %v12785_v2  ;;  %v8602_v12 = vld [vmem:[%s15376_s3 + $0x460] sm:$0xff] }
 0x640   :  { %11305 = vmatprep.subr.bf16.mxu0 %v11304_v16  ;;  %v8609_v16 = vld [vmem:[%s15376_s3 + $0x488] sm:$0xff]  ;;  %v11386_v21 = vpack.c.bf16 %v8604_v15, %v8602_v12  ;;  %v8628_v15 = vld [vmem:[%s15376_s3 + $0x500] sm:$0xff] }
 0x643   :  { %11307 = vmatpush1.bf16.msra.mxu0 %v11306_v23  ;;  %v11420_v23 = vpack.c.bf16 %v8611_v18, %v8609_v16  ;;  %v8630_v16 = vld [vmem:[%s15376_s3 + $0x510] sm:$0xff]  ;;  %v8633_v18 = vld [vmem:[%s15376_s3 + $0x528] sm:$0xff] }
 0x644   :  { %11309 = vmatprep.subr.bf16.mxu0 %v12836_v3 }
 0x646   :  { %8586 = vmatmul.mubr.msk.f32.vlgmr.msra.gmra.mrb[2].mxu0 %vm249_vm0, %v2664_v25  ;;  %v8610_v25 = vld [vmem:[%s15376_s3 + $0x490] sm:$0xff] }
 0x647   :  { %11311 = vmatpush3.bf16.msra.mxu0 %v12847_v7  ;;  %2826 = vmatprep.mubr.f32.mxu0 %v2759_v26  ;;  %v8613_v26 = vld [vmem:[%s15376_s3 + $0x4a8] sm:$0xff] }
 0x648   :  { %11313 = vmatprep.subr.bf16.mxu0 %v12849_v8  ;;  %v11424_v32 = vpack.c.bf16 %v8615_v27, %v8613_v26  ;;  %v8632_v26 = vld [vmem:[%s15376_s3 + $0x520] sm:$0xff]  ;;  %v8634_v27 = vld [vmem:[%s15376_s3 + $0x530] sm:$0xff] }
 0x64b   :  { %11315 = vmatpush3.bf16.msra.mxu0 %v12866_v13 }
 0x64c   :  { %11317 = vmatprep.subr.bf16.mxu0 %v12870_v14 }
 0x64f   :  { %11319 = vmatpush3.bf16.msra.mxu0 %v12886_v19 }
 0x650   :  { %11321 = vmatprep.subr.bf16.mxu0 %v12890_v20 }
 0x653   :  { %11323 = vmatpush3.bf16.msra.mxu0 %v12912_v28 }
 0x654   :  { %11325 = vmatprep.subr.bf16.mxu0 %v12916_v30 }
 0x657   :  { %11327 = vmatpush3.bf16.msra.mxu0 %v12932_v35 }
 0x658   :  { %11329 = vmatprep.subr.bf16.mxu0 %v12936_v36 }
 0x65b   :  { %11331 = vmatpush3.bf16.msra.mxu0 %v12952_v41 }
 0x65c   :  { %11333 = vmatprep.subr.bf16.mxu0 %v12956_v42 }
 0x65f   :  { %11335 = vmatpush3.bf16.msra.mxu0 %v12972_v47 }
 0x660   :  { %11337 = vmatprep.subr.bf16.mxu0 %v12976_v48 }
 0x663   :  { %11339 = vmatpush3.bf16.msra.mxu0 %v12986_v51 }
 0x664   :  { %11341 = vmatprep.subr.bf16.mxu0 %v11340_v31  ;;  %v3000_v31 = vmax.f32 %v2997_v22, 0.0 }
 0x666   :  { %2827 = vmatmul.mubr.f32.vlgmr.msra.gmra.mrb[14].mxu0 %v8587_v24  ;;  %v8608_v24 = vld [vmem:[%s15376_s3 + $0x480] sm:$0xff] }
 0x667   :  { %2909 = vmatprep.mubr.f32.mxu0 %v12785_v2  ;;  %11343 = vmatpush1.bf16.msra.mxu0 %v11342_v38  ;;  %v11422_v29 = vpack.c.bf16 %v8610_v25, %v8608_v24  ;;  %v8617_v38 = vld.sshfl [vmem:[%s15373_s0 + $0x4c] sm:$0x33 pattern:$0x76325410] }
 0x668   :  { %11345 = vmatprep.subr.bf16.mxu0 %v11344_v43  ;;  %v3263_v40 = vcombine.high %v8617_v38, %v8617_v38  ;;  %v8619_v43 = vld [vmem:[%s15376_s3 + $0x4c8] sm:$0xff] }
 0x669   :  { %v11460_v45 = vpack.c.bf16 %v8621_v44, %v8619_v43 }
 0x66b   :  { %11347 = vmatpush1.bf16.msra.mxu0 %v11346_v46  ;;  %v9650_v46 = vpop.f32.mrb[24].mxu1 }
 0x66c   :  { %11381 = vmatprep.subr.bf16.mxu0 %v11380_v52  ;;  %v9651_v49 = vpop.f32.mrb[25].mxu1  ;;  %v8618_v52 = vld [vmem:[%s15376_s3 + $0x4c0] sm:$0xff] }
 0x66d   :  { %v9652_v50 = vadd.f32 %v9651_v49, %v9650_v46  ;;  %v11462_v54 = vpack.c.bf16 %v8620_v53, %v8618_v52  ;;  %v9685_v0 = vpop.f32.mrb[26].mxu1  ;;  %v8644_v46 = vld [vmem:[%s15376_s3 + $0x570] sm:$0xff]  ;;  %v8647_v52 = vld.sshfl [vmem:[%s15373_s0 + $0x58] sm:$0x33 pattern:$0x76325410] }
 0x66e   :  { %v9686_v1 = vpop.f32.mrb[27].mxu1 }
 0x66f   :  { %v9687_v4 = vadd.f32 %v9686_v1, %v9685_v0  ;;  %v3501_v33 = vadd.f32 %v13749_v10, %v9652_v50  ;;  %v8652_v0 = vld [vmem:[%s15376_s3 + $0x5a0] sm:$0xff]  ;;  %v8654_v1 = vld [vmem:[%s15376_s3 + $0x5b0] sm:$0xff] }
 0x671   :  { %v3504_v43 = vmax.f32 %v3501_v33, 0.0  ;;  %v3669_v49 = vadd.f32 %v13749_v10, %v9687_v4  ;;  %v11586_v4 = vpack.c.bf16 %v8654_v1, %v8652_v0  ;;  %v8679_v0 = vld [vmem:[%s15376_s3 + $0x648] sm:$0xff]  ;;  %v8681_v1 = vld [vmem:[%s15376_s3 + $0x658] sm:$0xff] }
 0x673   :  { %v3672_v53 = vmax.f32 %v3669_v49, 0.0  ;;  %v8671_v49 = vld [vmem:[%s15376_s3 + $0x618] sm:$0xff] }
 0x739   :  { %v9510_v60 = vpop.f32.mrb[14].mxu0 }
 0x73a   :  { %v9511_v61 = vpop.f32.mrb[15].mxu0 }
 0x73b   :  { %v9512_v62 = vadd.f32 %v9511_v61, %v9510_v60  ;;  %v11466_v60 = vpack.c.bf16 %v8624_v59, %v8622_v58  ;;  %v8629_v61 = vld [vmem:[%s15376_s3 + $0x508] sm:$0xff]  ;;  %v8648_v58 = vld [vmem:[%s15376_s3 + $0x580] sm:$0xff]  ;;  %v8650_v59 = vld [vmem:[%s15376_s3 + $0x590] sm:$0xff] }
 0x73d   :  { %v2829_v5 = vadd.f32 %v13749_v10, %v9512_v62  ;;  %v8631_v62 = vld [vmem:[%s15376_s3 + $0x518] sm:$0xff] }
 0x73e   :  { %v11500_v63 = vpack.c.bf16 %v8631_v62, %v8629_v61  ;;  %v8653_v61 = vld [vmem:[%s15376_s3 + $0x5a8] sm:$0xff]  ;;  %v8655_v62 = vld [vmem:[%s15376_s3 + $0x5b8] sm:$0xff] }
 0x73f   :  { %v2832_v9 = vmax.f32 %v2829_v5, 0.0  ;;  %v8657_v5 = vld.sshfl [vmem:[%s15373_s0 + $0x5c] sm:$0x33 pattern:$0x76325410] }
 0x741   :  { %8596 = vmatmul.mubr.msk.f32.vlgmr.msra.gmra.mrb[2].mxu0 %vm249_vm0, %v2832_v9 }
 0x742   :  { %11383 = vmatpush1.bf16.msra.mxu0 %v11382_v6  ;;  %3077 = vmatprep.mubr.f32.mxu0 %v12785_v2  ;;  %v3935_v6 = vcombine.high %v8657_v5, %v8657_v5 }
 0x743   :  { %11385 = vmatprep.subr.bf16.mxu0 %v11384_v11 }
 0x744   :  { %4002 = vmatprep.mubr.f32.mxu1 %v3935_v6  ;;  %v8661_v6 = vld [vmem:[%s15376_s3 + $0x5d8] sm:$0xff] }
 0x745   :  { %4003 = vmatmul.mubr.f32.vlgmr.msra.gmra.mrb[28].mxu1 %v8657_v5  ;;  %v8659_v5 = vld [vmem:[%s15376_s3 + $0x5c8] sm:$0xff] }
 0x746   :  { %11387 = vmatpush1.bf16.msra.mxu0 %v11386_v21  ;;  %11671 = vmatpush3.bf16.msra.mxu1 %v12847_v7  ;;  %v8635_v21 = vld [vmem:[%s15376_s3 + $0x538] sm:$0xff] }
 0x747   :  { %11421 = vmatprep.subr.bf16.mxu0 %v11420_v23  ;;  %11673 = vmatprep.subr.bf16.mxu1 %v12849_v8  ;;  %v11502_v23 = vpack.c.bf16 %v8630_v16, %v8628_v15  ;;  %v11504_v25 = vpack.c.bf16 %v8635_v21, %v8633_v18  ;;  %v8677_v16 = vld.sshfl [vmem:[%s15373_s0 + $0x64] sm:$0x33 pattern:$0x76325410] }
 0x748   :  { %v4271_v18 = vcombine.high %v8677_v16, %v8677_v16  ;;  %v8687_v21 = vld.sshfl [vmem:[%s15373_s0 + $0x68] sm:$0x33 pattern:$0x76325410] }
 0x749   :  { %8606 = vmatmul.mubr.msk.f32.vlgmr.msra.gmra.mrb[2].mxu0 %vm249_vm0, %v3000_v31  ;;  %v8641_v31 = vld [vmem:[%s15376_s3 + $0x558] sm:$0xff] }
 0x74a   :  { %11423 = vmatpush1.bf16.msra.mxu0 %v11422_v29  ;;  %3245 = vmatprep.mubr.f32.mxu0 %v12785_v2  ;;  %v8639_v29 = vld [vmem:[%s15376_s3 + $0x548] sm:$0xff] }
 0x74b   :  { %11425 = vmatprep.subr.bf16.mxu0 %v11424_v32  ;;  %11675 = vmatpush3.bf16.msra.mxu1 %v12866_v13  ;;  %v11506_v32 = vpack.c.bf16 %v8634_v27, %v8632_v26  ;;  %v11540_v34 = vpack.c.bf16 %v8641_v31, %v8639_v29  ;;  %v8658_v26 = vld [vmem:[%s15376_s3 + $0x5c0] sm:$0xff]  ;;  %v8660_v27 = vld [vmem:[%s15376_s3 + $0x5d0] sm:$0xff]  ;;  %v8663_v29 = vld [vmem:[%s15376_s3 + $0x5e8] sm:$0xff] }
 0x74c   :  { %11677 = vmatprep.subr.bf16.mxu1 %v12870_v14  ;;  %4338 = vmatprep.mubr.f32.mxu1 %v4271_v18  ;;  %v8665_v31 = vld [vmem:[%s15376_s3 + $0x5f8] sm:$0xff]  ;;  %v11622_v33 = vpack.c.bf16 %v8660_v27, %v8658_v26 }
 0x74d   :  { %v8685_v26 = vld [vmem:[%s15376_s3 + $0x678] sm:$0xff] }
 0x74e   :  { %11427 = vmatpush1.bf16.msra.mxu0 %v11426_v37  ;;  %v8640_v37 = vld [vmem:[%s15376_s3 + $0x550] sm:$0xff] }
 0x74f   :  { %11429 = vmatprep.subr.bf16.mxu0 %v12836_v3  ;;  %11679 = vmatpush3.bf16.msra.mxu1 %v12886_v19 }
 0x750   :  { %11681 = vmatprep.subr.bf16.mxu1 %v12890_v20 }
 0x751   :  { %8616 = vmatmul.mubr.msk.f32.vlgmr.msra.gmra.mrb[2].mxu0 %vm249_vm0, %v3168_v39  ;;  %v8645_v39 = vld [vmem:[%s15376_s3 + $0x578] sm:$0xff] }
 0x752   :  { %11431 = vmatpush3.bf16.msra.mxu0 %v12847_v7  ;;  %3330 = vmatprep.mubr.f32.mxu0 %v3263_v40  ;;  %v11542_v40 = vpack.c.bf16 %v8640_v37, %v8638_v17  ;;  %v11624_v17 = vpack.c.bf16 %v8665_v31, %v8663_v29  ;;  %v8662_v37 = vld [vmem:[%s15376_s3 + $0x5e0] sm:$0xff] }
 0x753   :  { %11433 = vmatprep.subr.bf16.mxu0 %v12849_v8  ;;  %11683 = vmatpush3.bf16.msra.mxu1 %v12912_v28 }
 0x754   :  { %11685 = vmatprep.subr.bf16.mxu1 %v12916_v30 }
 0x756   :  { %11435 = vmatpush3.bf16.msra.mxu0 %v12866_v13 }
 0x757   :  { %11437 = vmatprep.subr.bf16.mxu0 %v12870_v14  ;;  %11687 = vmatpush3.bf16.msra.mxu1 %v12932_v35 }
 0x758   :  { %11689 = vmatprep.subr.bf16.mxu1 %v12936_v36 }
 0x75a   :  { %11439 = vmatpush3.bf16.msra.mxu0 %v12886_v19 }
 0x75b   :  { %11441 = vmatprep.subr.bf16.mxu0 %v12890_v20  ;;  %11691 = vmatpush3.bf16.msra.mxu1 %v12952_v41 }
 0x75c   :  { %11693 = vmatprep.subr.bf16.mxu1 %v12956_v42 }
 0x75e   :  { %11443 = vmatpush3.bf16.msra.mxu0 %v12912_v28 }
 0x75f   :  { %11445 = vmatprep.subr.bf16.mxu0 %v12916_v30  ;;  %11695 = vmatpush3.bf16.msra.mxu1 %v12972_v47 }
 0x760   :  { %11697 = vmatprep.subr.bf16.mxu1 %v12976_v48 }
 0x762   :  { %11447 = vmatpush3.bf16.msra.mxu0 %v12932_v35 }
 0x763   :  { %11449 = vmatprep.subr.bf16.mxu0 %v12936_v36  ;;  %11699 = vmatpush3.bf16.msra.mxu1 %v12986_v51 }
 0x764   :  { %11709 = vmatprep.subr.bf16.mxu1 %v12836_v3 }
 0x766   :  { %11451 = vmatpush3.bf16.msra.mxu0 %v12952_v41  ;;  %4339 = vmatmul.mubr.f32.vlgmr.msra.gmra.mrb[30].mxu1 %v8677_v16 }
 0x767   :  { %11453 = vmatprep.subr.bf16.mxu0 %v12956_v42  ;;  %11711 = vmatpush3.bf16.msra.mxu1 %v12847_v7 }
 0x768   :  { %11713 = vmatprep.subr.bf16.mxu1 %v12849_v8 }
 0x76a   :  { %11455 = vmatpush3.bf16.msra.mxu0 %v12972_v47 }
 0x76b   :  { %11457 = vmatprep.subr.bf16.mxu0 %v12976_v48  ;;  %11715 = vmatpush3.bf16.msra.mxu1 %v12866_v13 }
 0x76c   :  { %11717 = vmatprep.subr.bf16.mxu1 %v12870_v14 }
 0x76e   :  { %11459 = vmatpush3.bf16.msra.mxu0 %v12986_v51 }
 0x76f   :  { %11461 = vmatprep.subr.bf16.mxu0 %v11460_v45  ;;  %v8642_v45 = vld [vmem:[%s15376_s3 + $0x560] sm:$0xff]  ;;  %11719 = vmatpush3.bf16.msra.mxu1 %v12886_v19 }
 0x770   :  { %v11546_v50 = vpack.c.bf16 %v8644_v46, %v8642_v45  ;;  %11721 = vmatprep.subr.bf16.mxu1 %v12890_v20  ;;  %v8669_v46 = vld [vmem:[%s15376_s3 + $0x608] sm:$0xff] }
 0x771   :  { %3331 = vmatmul.mubr.f32.vlgmr.msra.gmra.mrb[16].mxu0 %v8617_v38  ;;  %v8643_v38 = vld [vmem:[%s15376_s3 + $0x568] sm:$0xff] }
 0x772   :  { %3413 = vmatprep.mubr.f32.mxu0 %v12785_v2  ;;  %11463 = vmatpush1.bf16.msra.mxu0 %v11462_v54  ;;  %v11544_v44 = vpack.c.bf16 %v8645_v39, %v8643_v38  ;;  %v3767_v54 = vcombine.high %v8647_v52, %v8647_v52  ;;  %v8664_v38 = vld [vmem:[%s15376_s3 + $0x5f0] sm:$0xff] }
 0x773   :  { %11465 = vmatprep.subr.bf16.mxu0 %v11464_v57  ;;  %v11580_v57 = vpack.c.bf16 %v8651_v56, %v8649_v55  ;;  %11723 = vmatpush3.bf16.msra.mxu1 %v12912_v28  ;;  %v8668_v55 = vld [vmem:[%s15376_s3 + $0x600] sm:$0xff]  ;;  %v8670_v56 = vld [vmem:[%s15376_s3 + $0x610] sm:$0xff] }
 0x774   :  { %11725 = vmatprep.subr.bf16.mxu1 %v12916_v30 }
 0x776   :  { %11467 = vmatpush1.bf16.msra.mxu0 %v11466_v60  ;;  %v11582_v60 = vpack.c.bf16 %v8650_v59, %v8648_v58  ;;  %v8673_v58 = vld [vmem:[%s15376_s3 + $0x628] sm:$0xff]  ;;  %v8675_v59 = vld [vmem:[%s15376_s3 + $0x638] sm:$0xff] }
 0x777   :  { %11501 = vmatprep.subr.bf16.mxu0 %v11500_v63  ;;  %v11584_v63 = vpack.c.bf16 %v8655_v62, %v8653_v61  ;;  %11727 = vmatpush3.bf16.msra.mxu1 %v12932_v35  ;;  %v8672_v61 = vld [vmem:[%s15376_s3 + $0x620] sm:$0xff]  ;;  %v8674_v62 = vld [vmem:[%s15376_s3 + $0x630] sm:$0xff] }
 0x778   :  { %11729 = vmatprep.subr.bf16.mxu1 %v12936_v36 }
 0x77b   :  { %11731 = vmatpush3.bf16.msra.mxu1 %v12952_v41 }
 0x77c   :  { %11733 = vmatprep.subr.bf16.mxu1 %v12956_v42 }
 0x77f   :  { %11735 = vmatpush3.bf16.msra.mxu1 %v12972_v47 }
 0x780   :  { %11737 = vmatprep.subr.bf16.mxu1 %v12976_v48 }
 0x783   :  { %11739 = vmatpush3.bf16.msra.mxu1 %v12986_v51 }
 0x784   :  { %11789 = vmatprep.subr.bf16.mxu1 %v12836_v3 }
 0x844   :  { %v9615_v9 = vpop.f32.mrb[16].mxu0 }
 0x845   :  { %v9616_v11 = vpop.f32.mrb[17].mxu0 }
 0x846   :  { %v9617_v12 = vadd.f32 %v9616_v11, %v9615_v9  ;;  %v11620_v9 = vpack.c.bf16 %v8661_v6, %v8659_v5  ;;  %v9755_v11 = vpop.f32.mrb[28].mxu1 }
 0x848   :  { %v3333_v22 = vadd.f32 %v13749_v10, %v9617_v12  ;;  %v9756_v12 = vpop.f32.mrb[29].mxu1 }
 0x849   :  { %v9757_v15 = vadd.f32 %v9756_v12, %v9755_v11  ;;  %v8707_v11 = vld.sshfl [vmem:[%s15373_s0 + $0x70] sm:$0x33 pattern:$0x76325410] }
 0x84a   :  { %v3336_v24 = vmax.f32 %v3333_v22, 0.0  ;;  %v4439_v22 = vcombine.high %v8687_v21, %v8687_v21  ;;  %v4775_v12 = vcombine.high %v8707_v11, %v8707_v11 }
 0x84b   :  { %v4005_v39 = vadd.f32 %v13749_v10, %v9757_v15  ;;  %v8717_v15 = vld.sshfl [vmem:[%s15373_s0 + $0x74] sm:$0x33 pattern:$0x76325410] }
 0x84c   :  { %8626 = vmatmul.mubr.msk.f32.vlgmr.msra.gmra.mrb[2].mxu0 %vm249_vm0, %v3336_v24  ;;  %4506 = vmatprep.mubr.f32.mxu1 %v4439_v22  ;;  %v4943_v16 = vcombine.high %v8717_v15, %v8717_v15 }
 0x84d   :  { %11503 = vmatpush1.bf16.msra.mxu0 %v11502_v23  ;;  %3581 = vmatprep.mubr.f32.mxu0 %v12785_v2 }
 0x84e   :  { %11505 = vmatprep.subr.bf16.mxu0 %v11504_v25  ;;  %4507 = vmatmul.mubr.f32.vlgmr.msra.gmra.mrb[32].mxu1 %v8687_v21 }
 0x84f   :  { %11791 = vmatpush3.bf16.msra.mxu1 %v12847_v7  ;;  %4842 = vmatprep.mubr.f32.mxu1 %v4775_v12  ;;  %v8702_v12 = vld [vmem:[%s15376_s3 + $0x6e0] sm:$0xff] }
 0x850   :  { %11793 = vmatprep.subr.bf16.mxu1 %v12849_v8 }
 0x851   :  { %11507 = vmatpush1.bf16.msra.mxu0 %v11506_v32 }
 0x852   :  { %11541 = vmatprep.subr.bf16.mxu0 %v11540_v34 }
 0x853   :  { %11795 = vmatpush3.bf16.msra.mxu1 %v12866_v13 }
 0x854   :  { %8636 = vmatmul.mubr.msk.f32.vlgmr.msra.gmra.mrb[2].mxu0 %vm249_vm0, %v3504_v43  ;;  %11797 = vmatprep.subr.bf16.mxu1 %v12870_v14  ;;  %v8667_v43 = vld.sshfl [vmem:[%s15373_s0 + $0x60] sm:$0x33 pattern:$0x76325410] }
 0x855   :  { %11543 = vmatpush1.bf16.msra.mxu0 %v11542_v40  ;;  %3749 = vmatprep.mubr.f32.mxu0 %v12785_v2  ;;  %v11626_v40 = vpack.c.bf16 %v8664_v38, %v8662_v37  ;;  %v4103_v45 = vcombine.high %v8667_v43, %v8667_v43  ;;  %v8691_v37 = vld [vmem:[%s15376_s3 + $0x698] sm:$0xff] }
 0x856   :  { %11545 = vmatprep.subr.bf16.mxu0 %v11544_v44  ;;  %v4008_v44 = vmax.f32 %v4005_v39, 0.0 }
 0x857   :  { %11799 = vmatpush3.bf16.msra.mxu1 %v12886_v19 }
 0x858   :  { %11801 = vmatprep.subr.bf16.mxu1 %v12890_v20 }
 0x859   :  { %11547 = vmatpush1.bf16.msra.mxu0 %v11546_v50  ;;  %v11660_v50 = vpack.c.bf16 %v8671_v49, %v8669_v46  ;;  %v8695_v46 = vld [vmem:[%s15376_s3 + $0x6b8] sm:$0xff] }
 0x85a   :  { %11549 = vmatprep.subr.bf16.mxu0 %v12836_v3 }
 0x85b   :  { %11803 = vmatpush3.bf16.msra.mxu1 %v12912_v28 }
 0x85c   :  { %8646 = vmatmul.mubr.msk.f32.vlgmr.msra.gmra.mrb[2].mxu0 %vm249_vm0, %v3672_v53  ;;  %11805 = vmatprep.subr.bf16.mxu1 %v12916_v30 }
 0x85d   :  { %11551 = vmatpush3.bf16.msra.mxu0 %v12847_v7  ;;  %3834 = vmatprep.mubr.f32.mxu0 %v3767_v54 }
 0x85e   :  { %11553 = vmatprep.subr.bf16.mxu0 %v12849_v8 }
 0x85f   :  { %11807 = vmatpush3.bf16.msra.mxu1 %v12932_v35 }
 0x860   :  { %11809 = vmatprep.subr.bf16.mxu1 %v12936_v36 }
 0x861   :  { %11555 = vmatpush3.bf16.msra.mxu0 %v12866_v13 }
 0x862   :  { %11557 = vmatprep.subr.bf16.mxu0 %v12870_v14 }
 0x863   :  { %11811 = vmatpush3.bf16.msra.mxu1 %v12952_v41 }
 0x864   :  { %11813 = vmatprep.subr.bf16.mxu1 %v12956_v42 }
 0x865   :  { %11559 = vmatpush3.bf16.msra.mxu0 %v12886_v19 }
 0x866   :  { %11561 = vmatprep.subr.bf16.mxu0 %v12890_v20 }
 0x867   :  { %11815 = vmatpush3.bf16.msra.mxu1 %v12972_v47 }
 0x868   :  { %11817 = vmatprep.subr.bf16.mxu1 %v12976_v48 }
 0x869   :  { %11563 = vmatpush3.bf16.msra.mxu0 %v12912_v28 }
 0x86a   :  { %11565 = vmatprep.subr.bf16.mxu0 %v12916_v30 }
 0x86b   :  { %11819 = vmatpush3.bf16.msra.mxu1 %v12986_v51 }
 0x86c   :  { %11829 = vmatprep.subr.bf16.mxu1 %v12836_v3 }
 0x86d   :  { %11567 = vmatpush3.bf16.msra.mxu0 %v12932_v35 }
 0x86e   :  { %11569 = vmatprep.subr.bf16.mxu0 %v12936_v36  ;;  %4843 = vmatmul.mubr.f32.vlgmr.msra.gmra.mrb[34].mxu1 %v8707_v11 }
 0x86f   :  { %11831 = vmatpush3.bf16.msra.mxu1 %v12847_v7  ;;  %5010 = vmatprep.mubr.f32.mxu1 %v4943_v16 }
 0x870   :  { %11833 = vmatprep.subr.bf16.mxu1 %v12849_v8 }
 0x871   :  { %11571 = vmatpush3.bf16.msra.mxu0 %v12952_v41 }
 0x872   :  { %11573 = vmatprep.subr.bf16.mxu0 %v12956_v42 }
 0x873   :  { %11835 = vmatpush3.bf16.msra.mxu1 %v12866_v13 }
 0x874   :  { %11837 = vmatprep.subr.bf16.mxu1 %v12870_v14 }
 0x875   :  { %11575 = vmatpush3.bf16.msra.mxu0 %v12972_v47 }
 0x876   :  { %11577 = vmatprep.subr.bf16.mxu0 %v12976_v48 }
 0x877   :  { %11839 = vmatpush3.bf16.msra.mxu1 %v12886_v19 }
 0x878   :  { %11841 = vmatprep.subr.bf16.mxu1 %v12890_v20 }
 0x879   :  { %11579 = vmatpush3.bf16.msra.mxu0 %v12986_v51 }
 0x87a   :  { %11581 = vmatprep.subr.bf16.mxu0 %v11580_v57  ;;  %v11662_v57 = vpack.c.bf16 %v8670_v56, %v8668_v55 }
 0x87b   :  { %11843 = vmatpush3.bf16.msra.mxu1 %v12912_v28 }
 0x87c   :  { %3835 = vmatmul.mubr.f32.vlgmr.msra.gmra.mrb[18].mxu0 %v8647_v52  ;;  %v9825_v52 = vpop.f32.mrb[30].mxu1  ;;  %11845 = vmatprep.subr.bf16.mxu1 %v12916_v30 }
 0x87d   :  { %3917 = vmatprep.mubr.f32.mxu0 %v12785_v2  ;;  %11583 = vmatpush1.bf16.msra.mxu0 %v11582_v60  ;;  %v9826_v53 = vpop.f32.mrb[31].mxu1  ;;  %v11664_v60 = vpack.c.bf16 %v8675_v59, %v8673_v58 }
 0x87e   :  { %11585 = vmatprep.subr.bf16.mxu0 %v11584_v63  ;;  %v14162_v54 = vadd.f32 %v9826_v53, %v9825_v52  ;;  %v11666_v63 = vpack.c.bf16 %v8674_v62, %v8672_v61  ;;  %v8692_v53 = vld [vmem:[%s15376_s3 + $0x6a0] sm:$0xff] }
 0x87f   :  { %11847 = vmatpush3.bf16.msra.mxu1 %v12932_v35 }
 0x880   :  { %11849 = vmatprep.subr.bf16.mxu1 %v12936_v36  ;;  %v4341_v39 = vadd.f32 %v13749_v10, %v14162_v54  ;;  %v8694_v54 = vld [vmem:[%s15376_s3 + $0x6b0] sm:$0xff] }
 0x881   :  { %11587 = vmatpush1.bf16.msra.mxu0 %v11586_v4  ;;  %v11700_v4 = vpack.c.bf16 %v8681_v1, %v8679_v0  ;;  %v11746_v56 = vpack.c.bf16 %v8694_v54, %v8692_v53  ;;  %v8698_v1 = vld [vmem:[%s15376_s3 + $0x6c0] sm:$0xff] }
 0x882   :  { %11621 = vmatprep.subr.bf16.mxu0 %v11620_v9 }
 0x883   :  { %11851 = vmatpush3.bf16.msra.mxu1 %v12952_v41 }
 0x884   :  { %11853 = vmatprep.subr.bf16.mxu1 %v12956_v42 }
 0x887   :  { %11855 = vmatpush3.bf16.msra.mxu1 %v12972_v47 }
 0x888   :  { %11857 = vmatprep.subr.bf16.mxu1 %v12976_v48 }
 0x88b   :  { %11859 = vmatpush3.bf16.msra.mxu1 %v12986_v51 }
 0x88c   :  { %11909 = vmatprep.subr.bf16.mxu1 %v12836_v3 }
 0x88e   :  { %5011 = vmatmul.mubr.f32.vlgmr.msra.gmra.mrb[36].mxu1 %v8717_v15  ;;  %v8704_v15 = vld [vmem:[%s15376_s3 + $0x6f0] sm:$0xff] }
 0x88f   :  { %11911 = vmatpush3.bf16.msra.mxu1 %v12847_v7  ;;  %v11786_v16 = vpack.c.bf16 %v8704_v15, %v8702_v12  ;;  %v8728_v12 = vld [vmem:[%s15376_s3 + $0x780] sm:$0xff]  ;;  %v8730_v15 = vld [vmem:[%s15376_s3 + $0x790] sm:$0xff] }
 0x890   :  { %11913 = vmatprep.subr.bf16.mxu1 %v12849_v8 }
 0x893   :  { %11915 = vmatpush3.bf16.msra.mxu1 %v12866_v13 }
 0x894   :  { %11917 = vmatprep.subr.bf16.mxu1 %v12870_v14 }
 0x897   :  { %11919 = vmatpush3.bf16.msra.mxu1 %v12886_v19 }
 0x898   :  { %11921 = vmatprep.subr.bf16.mxu1 %v12890_v20 }
 0x89b   :  { %11923 = vmatpush3.bf16.msra.mxu1 %v12912_v28 }
 0x89c   :  { %11925 = vmatprep.subr.bf16.mxu1 %v12916_v30 }
 0x89f   :  { %11927 = vmatpush3.bf16.msra.mxu1 %v12932_v35 }
 0x8a0   :  { %11929 = vmatprep.subr.bf16.mxu1 %v12936_v36 }
 0x8a3   :  { %11931 = vmatpush3.bf16.msra.mxu1 %v12952_v41 }
 0x8a4   :  { %11933 = vmatprep.subr.bf16.mxu1 %v12956_v42 }
 0x8a7   :  { %11935 = vmatpush3.bf16.msra.mxu1 %v12972_v47 }
 0x8a8   :  { %11937 = vmatprep.subr.bf16.mxu1 %v12976_v48 }
 0x8ab   :  { %11939 = vmatpush3.bf16.msra.mxu1 %v12986_v51 }
 0x8ac   :  { %11989 = vmatprep.subr.bf16.mxu1 %v12836_v3 }
 0x921   :  { %v9860_v5 = vpop.f32.mrb[32].mxu1 }
 0x922   :  { %v9861_v6 = vpop.f32.mrb[33].mxu1 }
 0x923   :  { %v14188_v9 = vadd.f32 %v9861_v6, %v9860_v5  ;;  %v8703_v6 = vld [vmem:[%s15376_s3 + $0x6e8] sm:$0xff] }
 0x925   :  { %v4509_v55 = vadd.f32 %v13749_v10, %v14188_v9  ;;  %v8705_v9 = vld [vmem:[%s15376_s3 + $0x6f8] sm:$0xff] }
 0x926   :  { %v11784_v11 = vpack.c.bf16 %v8705_v9, %v8703_v6  ;;  %v8729_v6 = vld [vmem:[%s15376_s3 + $0x788] sm:$0xff]  ;;  %v8731_v9 = vld [vmem:[%s15376_s3 + $0x798] sm:$0xff] }
 0x927   :  { %v4512_v58 = vmax.f32 %v4509_v55, 0.0  ;;  %v8718_v55 = vld [vmem:[%s15376_s3 + $0x740] sm:$0xff] }
 0x941   :  { %v9930_v62 = vpop.f32.mrb[34].mxu1 }
 0x94f   :  { %v9720_v23 = vpop.f32.mrb[18].mxu0 }
 0x950   :  { %v9721_v24 = vpop.f32.mrb[19].mxu0 }
 0x951   :  { %v9722_v25 = vadd.f32 %v9721_v24, %v9720_v23  ;;  %v8678_v23 = vld [vmem:[%s15376_s3 + $0x640] sm:$0xff]  ;;  %v8680_v24 = vld [vmem:[%s15376_s3 + $0x650] sm:$0xff] }
 0x952   :  { %v11702_v29 = vpack.c.bf16 %v8680_v24, %v8678_v23 }
 0x953   :  { %v3837_v32 = vadd.f32 %v13749_v10, %v9722_v25  ;;  %v8683_v25 = vld [vmem:[%s15376_s3 + $0x668] sm:$0xff] }
 0x955   :  { %v3840_v34 = vmax.f32 %v3837_v32, 0.0  ;;  %v11704_v32 = vpack.c.bf16 %v8685_v26, %v8683_v25  ;;  %v8737_v26 = vld.sshfl [vmem:[%s15373_s0 + $0x7c] sm:$0x33 pattern:$0x76325410] }
 0x957   :  { %8656 = vmatmul.mubr.msk.f32.vlgmr.msra.gmra.mrb[2].mxu0 %vm249_vm0, %v3840_v34  ;;  %v8684_v34 = vld [vmem:[%s15376_s3 + $0x670] sm:$0xff] }
 0x958   :  { %11623 = vmatpush1.bf16.msra.mxu0 %v11622_v33  ;;  %4085 = vmatprep.mubr.f32.mxu0 %v12785_v2  ;;  %v8682_v33 = vld [vmem:[%s15376_s3 + $0x660] sm:$0xff] }
 0x959   :  { %11625 = vmatprep.subr.bf16.mxu0 %v11624_v17  ;;  %v8689_v17 = vld [vmem:[%s15376_s3 + $0x688] sm:$0xff]  ;;  %v11706_v38 = vpack.c.bf16 %v8684_v34, %v8682_v33  ;;  %v8708_v33 = vld [vmem:[%s15376_s3 + $0x700] sm:$0xff]  ;;  %v8710_v34 = vld [vmem:[%s15376_s3 + $0x710] sm:$0xff] }
 0x95c   :  { %11627 = vmatpush1.bf16.msra.mxu0 %v11626_v40  ;;  %v11740_v40 = vpack.c.bf16 %v8691_v37, %v8689_v17  ;;  %v8713_v17 = vld [vmem:[%s15376_s3 + $0x728] sm:$0xff]  ;;  %v8715_v37 = vld [vmem:[%s15376_s3 + $0x738] sm:$0xff] }
 0x95d   :  { %11629 = vmatprep.subr.bf16.mxu0 %v12836_v3 }
 0x95f   :  { %8666 = vmatmul.mubr.msk.f32.vlgmr.msra.gmra.mrb[2].mxu0 %vm249_vm0, %v4008_v44  ;;  %v8690_v44 = vld [vmem:[%s15376_s3 + $0x690] sm:$0xff] }
 0x960   :  { %11631 = vmatpush3.bf16.msra.mxu0 %v12847_v7  ;;  %4170 = vmatprep.mubr.f32.mxu0 %v4103_v45  ;;  %v8693_v45 = vld [vmem:[%s15376_s3 + $0x6a8] sm:$0xff] }
 0x961   :  { %11633 = vmatprep.subr.bf16.mxu0 %v12849_v8  ;;  %v11744_v52 = vpack.c.bf16 %v8695_v46, %v8693_v45  ;;  %v8712_v45 = vld [vmem:[%s15376_s3 + $0x720] sm:$0xff]  ;;  %v8714_v46 = vld [vmem:[%s15376_s3 + $0x730] sm:$0xff] }
 0x964   :  { %11635 = vmatpush3.bf16.msra.mxu0 %v12866_v13 }
 0x965   :  { %11637 = vmatprep.subr.bf16.mxu0 %v12870_v14 }
 0x968   :  { %11639 = vmatpush3.bf16.msra.mxu0 %v12886_v19 }
 0x969   :  { %11641 = vmatprep.subr.bf16.mxu0 %v12890_v20 }
 0x96c   :  { %11643 = vmatpush3.bf16.msra.mxu0 %v12912_v28 }
 0x96d   :  { %11645 = vmatprep.subr.bf16.mxu0 %v12916_v30 }
 0x970   :  { %11647 = vmatpush3.bf16.msra.mxu0 %v12932_v35 }
 0x971   :  { %11649 = vmatprep.subr.bf16.mxu0 %v12936_v36 }
 0x974   :  { %11651 = vmatpush3.bf16.msra.mxu0 %v12952_v41 }
 0x975   :  { %11653 = vmatprep.subr.bf16.mxu0 %v12956_v42 }
 0x978   :  { %11655 = vmatpush3.bf16.msra.mxu0 %v12972_v47 }
 0x979   :  { %11657 = vmatprep.subr.bf16.mxu0 %v12976_v48 }
 0x97c   :  { %11659 = vmatpush3.bf16.msra.mxu0 %v12986_v51 }
 0x97d   :  { %11661 = vmatprep.subr.bf16.mxu0 %v11660_v50  ;;  %v4344_v50 = vmax.f32 %v4341_v39, 0.0 }
 0x97f   :  { %4171 = vmatmul.mubr.f32.vlgmr.msra.gmra.mrb[20].mxu0 %v8667_v43  ;;  %v8688_v43 = vld [vmem:[%s15376_s3 + $0x680] sm:$0xff] }
 0x980   :  { %4253 = vmatprep.mubr.f32.mxu0 %v12785_v2  ;;  %11663 = vmatpush1.bf16.msra.mxu0 %v11662_v57  ;;  %v11742_v49 = vpack.c.bf16 %v8690_v44, %v8688_v43  ;;  %v8697_v57 = vld.sshfl [vmem:[%s15373_s0 + $0x6c] sm:$0x33 pattern:$0x76325410]  ;;  %v11824_v44 = vpack.c.bf16 %v8715_v37, %v8713_v17 }
 0x981   :  { %11665 = vmatprep.subr.bf16.mxu0 %v11664_v60  ;;  %v4607_v59 = vcombine.high %v8697_v57, %v8697_v57  ;;  %v8701_v60 = vld [vmem:[%s15376_s3 + $0x6d8] sm:$0xff]  ;;  %v8767_v37 = vld.sshfl [vmem:[%s15373_s0 + $0x88] sm:$0x33 pattern:$0x76325410] }
 0x984   :  { %11667 = vmatpush1.bf16.msra.mxu0 %v11666_v63  ;;  %v9931_v63 = vpop.f32.mrb[35].mxu1 }
 0x985   :  { %11701 = vmatprep.subr.bf16.mxu0 %v11700_v4  ;;  %v9932_v0 = vadd.f32 %v9931_v63, %v9930_v62  ;;  %v8700_v4 = vld [vmem:[%s15376_s3 + $0x6d0] sm:$0xff]  ;;  %v9965_v23 = vpop.f32.mrb[36].mxu1 }
 0x986   :  { %v11782_v5 = vpack.c.bf16 %v8700_v4, %v8698_v1  ;;  %v9966_v24 = vpop.f32.mrb[37].mxu1  ;;  %v8724_v62 = vld [vmem:[%s15376_s3 + $0x770] sm:$0xff]  ;;  %v8727_v1 = vld.sshfl [vmem:[%s15373_s0 + $0x78] sm:$0x33 pattern:$0x76325410] }
 0x987   :  { %v9967_v25 = vadd.f32 %v9966_v24, %v9965_v23  ;;  %v8732_v23 = vld [vmem:[%s15376_s3 + $0x7a0] sm:$0xff]  ;;  %v8734_v24 = vld [vmem:[%s15376_s3 + $0x7b0] sm:$0xff] }
 0xa52   :  { %v9790_v18 = vpop.f32.mrb[20].mxu0 }
 0xa53   :  { %v9791_v21 = vpop.f32.mrb[21].mxu0 }
 0xa54   :  { %v9792_v22 = vadd.f32 %v9791_v21, %v9790_v18  ;;  %v8709_v18 = vld [vmem:[%s15376_s3 + $0x708] sm:$0xff]  ;;  %v8711_v21 = vld [vmem:[%s15376_s3 + $0x718] sm:$0xff] }
 0xa56   :  { %v4173_v27 = vadd.f32 %v13749_v10, %v9792_v22  ;;  %v8699_v10 = vld [vmem:[%s15376_s3 + $0x6c8] sm:$0xff]  ;;  %v11820_v22 = vpack.c.bf16 %v8711_v21, %v8709_v18  ;;  %v8735_v21 = vld [vmem:[%s15376_s3 + $0x7b8] sm:$0xff] }
 0xa57   :  { %v11780_v61 = vpack.c.bf16 %v8701_v60, %v8699_v10  ;;  %v8733_v18 = vld [vmem:[%s15376_s3 + $0x7a8] sm:$0xff] }
 0xa58   :  { %v4176_v31 = vmax.f32 %v4173_v27, 0.0  ;;  %v5279_v27 = vcombine.high %v8737_v26, %v8737_v26 }
 0xa5a   :  { %8676 = vmatmul.mubr.msk.f32.vlgmr.msra.gmra.mrb[2].mxu0 %vm249_vm0, %v4176_v31  ;;  %5346 = vmatprep.mubr.f32.mxu1 %v5279_v27  ;;  %v8741_v27 = vld [vmem:[%s15376_s3 + $0x7d8] sm:$0xff] }
 0xa5b   :  { %11703 = vmatpush1.bf16.msra.mxu0 %v11702_v29  ;;  %4421 = vmatprep.mubr.f32.mxu0 %v12785_v2 }
 0xa5c   :  { %11705 = vmatprep.subr.bf16.mxu0 %v11704_v32  ;;  %5347 = vmatmul.mubr.f32.vlgmr.msra.gmra.mrb[38].mxu1 %v8737_v26  ;;  %v8739_v26 = vld [vmem:[%s15376_s3 + $0x7c8] sm:$0xff] }
 0xa5d   :  { %11991 = vmatpush3.bf16.msra.mxu1 %v12847_v7 }
 0xa5e   :  { %11993 = vmatprep.subr.bf16.mxu1 %v12849_v8 }
 0xa5f   :  { %11707 = vmatpush1.bf16.msra.mxu0 %v11706_v38  ;;  %v14364_v38 = vld [vmem:[%s15375_s2] ss:$0 sm:$0xff] }
 0xa60   :  { %11741 = vmatprep.subr.bf16.mxu0 %v11740_v40  ;;  %v11822_v40 = vpack.c.bf16 %v8710_v34, %v8708_v33  ;;  %v4845_v53 = vadd.f32 %v14364_v38, %v9932_v0  ;;  %v5013_v63 = vadd.f32 %v14364_v38, %v9967_v25  ;;  %v11906_v25 = vpack.c.bf16 %v8734_v24, %v8732_v23  ;;  %v8757_v34 = vld.sshfl [vmem:[%s15373_s0 + $0x84] sm:$0x33 pattern:$0x76325410]  ;;  %v8759_v23 = vld [vmem:[%s15376_s3 + $0x848] sm:$0xff]  ;;  %v8761_v24 = vld [vmem:[%s15376_s3 + $0x858] sm:$0xff] }
 0xa61   :  { %11995 = vmatpush3.bf16.msra.mxu1 %v12866_v13  ;;  %v5615_v17 = vcombine.high %v8757_v34, %v8757_v34 }
 0xa62   :  { %8686 = vmatmul.mubr.msk.f32.vlgmr.msra.gmra.mrb[2].mxu0 %vm249_vm0, %v4344_v50  ;;  %11997 = vmatprep.subr.bf16.mxu1 %v12870_v14  ;;  %v8721_v50 = vld [vmem:[%s15376_s3 + $0x758] sm:$0xff]  ;;  %v4848_v10 = vmax.f32 %v4845_v53, 0.0  ;;  %v5016_v4 = vmax.f32 %v5013_v63, 0.0 }
 0xa63   :  { %11743 = vmatpush1.bf16.msra.mxu0 %v11742_v49  ;;  %4589 = vmatprep.mubr.f32.mxu0 %v12785_v2  ;;  %v8719_v49 = vld [vmem:[%s15376_s3 + $0x748] sm:$0xff]  ;;  %v8751_v63 = vld [vmem:[%s15376_s3 + $0x818] sm:$0xff] }
 0xa64   :  { %11745 = vmatprep.subr.bf16.mxu0 %v11744_v52  ;;  %v11826_v52 = vpack.c.bf16 %v8714_v46, %v8712_v45  ;;  %v11860_v54 = vpack.c.bf16 %v8721_v50, %v8719_v49  ;;  %5682 = vmatprep.mubr.f32.mxu1 %v5615_v17  ;;  %v8738_v45 = vld [vmem:[%s15376_s3 + $0x7c0] sm:$0xff]  ;;  %v8740_v46 = vld [vmem:[%s15376_s3 + $0x7d0] sm:$0xff]  ;;  %v8743_v49 = vld [vmem:[%s15376_s3 + $0x7e8] sm:$0xff] }
 0xa65   :  { %11999 = vmatpush3.bf16.msra.mxu1 %v12886_v19  ;;  %v8745_v50 = vld [vmem:[%s15376_s3 + $0x7f8] sm:$0xff]  ;;  %v11942_v53 = vpack.c.bf16 %v8740_v46, %v8738_v45 }
 0xa66   :  { %12001 = vmatprep.subr.bf16.mxu1 %v12890_v20  ;;  %v8765_v45 = vld [vmem:[%s15376_s3 + $0x878] sm:$0xff] }
 0xa67   :  { %11747 = vmatpush1.bf16.msra.mxu0 %v11746_v56  ;;  %v8720_v56 = vld [vmem:[%s15376_s3 + $0x750] sm:$0xff] }
 0xa68   :  { %11749 = vmatprep.subr.bf16.mxu0 %v12836_v3 }
 0xa69   :  { %12003 = vmatpush3.bf16.msra.mxu1 %v12912_v28 }
 0xa6a   :  { %8696 = vmatmul.mubr.msk.f32.vlgmr.msra.gmra.mrb[2].mxu0 %vm249_vm0, %v4512_v58  ;;  %12005 = vmatprep.subr.bf16.mxu1 %v12916_v30  ;;  %v8725_v58 = vld [vmem:[%s15376_s3 + $0x778] sm:$0xff] }
 0xa6b   :  { %11751 = vmatpush3.bf16.msra.mxu0 %v12847_v7  ;;  %4674 = vmatprep.mubr.f32.mxu0 %v4607_v59  ;;  %v11862_v59 = vpack.c.bf16 %v8720_v56, %v8718_v55  ;;  %v11944_v55 = vpack.c.bf16 %v8745_v50, %v8743_v49  ;;  %v8742_v56 = vld [vmem:[%s15376_s3 + $0x7e0] sm:$0xff] }
 0xa6c   :  { %11753 = vmatprep.subr.bf16.mxu0 %v12849_v8 }
 0xa6d   :  { %12007 = vmatpush3.bf16.msra.mxu1 %v12932_v35 }
 0xa6e   :  { %12009 = vmatprep.subr.bf16.mxu1 %v12936_v36 }
 0xa6f   :  { %11755 = vmatpush3.bf16.msra.mxu0 %v12866_v13 }
 0xa70   :  { %11757 = vmatprep.subr.bf16.mxu0 %v12870_v14 }
 0xa71   :  { %12011 = vmatpush3.bf16.msra.mxu1 %v12952_v41 }
 0xa72   :  { %12013 = vmatprep.subr.bf16.mxu1 %v12956_v42 }
 0xa73   :  { %11759 = vmatpush3.bf16.msra.mxu0 %v12886_v19 }
 0xa74   :  { %11761 = vmatprep.subr.bf16.mxu0 %v12890_v20 }
 0xa75   :  { %12015 = vmatpush3.bf16.msra.mxu1 %v12972_v47 }
 0xa76   :  { %12017 = vmatprep.subr.bf16.mxu1 %v12976_v48 }
 0xa77   :  { %11763 = vmatpush3.bf16.msra.mxu0 %v12912_v28 }
 0xa78   :  { %11765 = vmatprep.subr.bf16.mxu0 %v12916_v30 }
 0xa79   :  { %12019 = vmatpush3.bf16.msra.mxu1 %v12986_v51 }
 0xa7a   :  { %12029 = vmatprep.subr.bf16.mxu1 %v12836_v3 }
 0xa7b   :  { %11767 = vmatpush3.bf16.msra.mxu0 %v12932_v35 }
 0xa7c   :  { %11769 = vmatprep.subr.bf16.mxu0 %v12936_v36  ;;  %5683 = vmatmul.mubr.f32.vlgmr.msra.gmra.mrb[40].mxu1 %v8757_v34 }
 0xa7d   :  { %12031 = vmatpush3.bf16.msra.mxu1 %v12847_v7 }
 0xa7e   :  { %12033 = vmatprep.subr.bf16.mxu1 %v12849_v8 }
 0xa7f   :  { %11771 = vmatpush3.bf16.msra.mxu0 %v12952_v41 }
 0xa80   :  { %11773 = vmatprep.subr.bf16.mxu0 %v12956_v42 }
 0xa81   :  { %12035 = vmatpush3.bf16.msra.mxu1 %v12866_v13 }
 0xa82   :  { %12037 = vmatprep.subr.bf16.mxu1 %v12870_v14 }
 0xa83   :  { %11775 = vmatpush3.bf16.msra.mxu0 %v12972_v47 }
 0xa84   :  { %11777 = vmatprep.subr.bf16.mxu0 %v12976_v48 }
 0xa85   :  { %12039 = vmatpush3.bf16.msra.mxu1 %v12886_v19 }
 0xa86   :  { %12041 = vmatprep.subr.bf16.mxu1 %v12890_v20 }
 0xa87   :  { %11779 = vmatpush3.bf16.msra.mxu0 %v12986_v51 }
 0xa88   :  { %11781 = vmatprep.subr.bf16.mxu0 %v11780_v61  ;;  %v8722_v61 = vld [vmem:[%s15376_s3 + $0x760] sm:$0xff] }
 0xa89   :  { %v11866_v0 = vpack.c.bf16 %v8724_v62, %v8722_v61  ;;  %12043 = vmatpush3.bf16.msra.mxu1 %v12912_v28  ;;  %v8749_v62 = vld [vmem:[%s15376_s3 + $0x808] sm:$0xff] }
 0xa8a   :  { %4675 = vmatmul.mubr.f32.vlgmr.msra.gmra.mrb[22].mxu0 %v8697_v57  ;;  %v8723_v57 = vld [vmem:[%s15376_s3 + $0x768] sm:$0xff]  ;;  %12045 = vmatprep.subr.bf16.mxu1 %v12916_v30 }
 0xa8b   :  { %4757 = vmatprep.mubr.f32.mxu0 %v12785_v2  ;;  %11783 = vmatpush1.bf16.msra.mxu0 %v11782_v5  ;;  %v11864_v60 = vpack.c.bf16 %v8725_v58, %v8723_v57  ;;  %v5111_v5 = vcombine.high %v8727_v1, %v8727_v1  ;;  %v8744_v57 = vld [vmem:[%s15376_s3 + $0x7f0] sm:$0xff] }
 0xa8c   :  { %11785 = vmatprep.subr.bf16.mxu0 %v11784_v11  ;;  %v11900_v11 = vpack.c.bf16 %v8731_v9, %v8729_v6  ;;  %v8748_v6 = vld [vmem:[%s15376_s3 + $0x800] sm:$0xff]  ;;  %v8750_v9 = vld [vmem:[%s15376_s3 + $0x810] sm:$0xff] }
 0xa8d   :  { %12047 = vmatpush3.bf16.msra.mxu1 %v12932_v35 }
 0xa8e   :  { %12049 = vmatprep.subr.bf16.mxu1 %v12936_v36 }
 0xa8f   :  { %11787 = vmatpush1.bf16.msra.mxu0 %v11786_v16  ;;  %v11902_v16 = vpack.c.bf16 %v8730_v15, %v8728_v12  ;;  %v8753_v12 = vld [vmem:[%s15376_s3 + $0x828] sm:$0xff]  ;;  %v8755_v15 = vld [vmem:[%s15376_s3 + $0x838] sm:$0xff] }
 0xa90   :  { %11821 = vmatprep.subr.bf16.mxu0 %v11820_v22  ;;  %v11904_v22 = vpack.c.bf16 %v8735_v21, %v8733_v18  ;;  %v8752_v18 = vld [vmem:[%s15376_s3 + $0x820] sm:$0xff]  ;;  %v8754_v21 = vld [vmem:[%s15376_s3 + $0x830] sm:$0xff] }
 0xa91   :  { %12051 = vmatpush3.bf16.msra.mxu1 %v12952_v41 }
 0xa92   :  { %12053 = vmatprep.subr.bf16.mxu1 %v12956_v42 }
 0xa95   :  { %12055 = vmatpush3.bf16.msra.mxu1 %v12972_v47 }
 0xa96   :  { %12057 = vmatprep.subr.bf16.mxu1 %v12976_v48 }
 0xa99   :  { %12059 = vmatpush3.bf16.msra.mxu1 %v12986_v51 }
 0xa9a   :  { %12109 = vmatprep.subr.bf16.mxu1 %v12836_v3 }
 0xb5d   :  { %v9895_v29 = vpop.f32.mrb[22].mxu0 }
 0xb5e   :  { %v9896_v31 = vpop.f32.mrb[23].mxu0 }
 0xb5f   :  { %v9897_v32 = vadd.f32 %v9896_v31, %v9895_v29  ;;  %v11940_v29 = vpack.c.bf16 %v8741_v27, %v8739_v26  ;;  %v10035_v31 = vpop.f32.mrb[38].mxu1 }
 0xb61   :  { %v4677_v39 = vadd.f32 %v14364_v38, %v9897_v32  ;;  %v10036_v32 = vpop.f32.mrb[39].mxu1 }
 0xb62   :  { %v10037_v33 = vadd.f32 %v10036_v32, %v10035_v31  ;;  %v8787_v31 = vld.sshfl [vmem:[%s15373_s0 + $0x90] sm:$0x33 pattern:$0x76325410] }
 0xb63   :  { %v4680_v43 = vmax.f32 %v4677_v39, 0.0  ;;  %v5783_v39 = vcombine.high %v8767_v37, %v8767_v37  ;;  %v6119_v32 = vcombine.high %v8787_v31, %v8787_v31 }
 0xb64   :  { %v5349_v58 = vadd.f32 %v14364_v38, %v10037_v33  ;;  %v8797_v33 = vld.sshfl [vmem:[%s15373_s0 + $0x94] sm:$0x33 pattern:$0x76325410] }
 0xb65   :  { %8706 = vmatmul.mubr.msk.f32.vlgmr.msra.gmra.mrb[2].mxu0 %vm249_vm0, %v4680_v43  ;;  %5850 = vmatprep.mubr.f32.mxu1 %v5783_v39  ;;  %v6287_v34 = vcombine.high %v8797_v33, %v8797_v33 }
 0xb66   :  { %11823 = vmatpush1.bf16.msra.mxu0 %v11822_v40  ;;  %4925 = vmatprep.mubr.f32.mxu0 %v12785_v2 }
 0xb67   :  { %11825 = vmatprep.subr.bf16.mxu0 %v11824_v44  ;;  %5851 = vmatmul.mubr.f32.vlgmr.msra.gmra.mrb[42].mxu1 %v8767_v37 }
 0xb68   :  { %12111 = vmatpush3.bf16.msra.mxu1 %v12847_v7  ;;  %6186 = vmatprep.mubr.f32.mxu1 %v6119_v32 }
 0xb69   :  { %12113 = vmatprep.subr.bf16.mxu1 %v12849_v8 }
 0xb6a   :  { %11827 = vmatpush1.bf16.msra.mxu0 %v11826_v52 }
 0xb6b   :  { %11861 = vmatprep.subr.bf16.mxu0 %v11860_v54 }
 0xb6c   :  { %12115 = vmatpush3.bf16.msra.mxu1 %v12866_v13 }
 0xb6d   :  { %8716 = vmatmul.mubr.msk.f32.vlgmr.msra.gmra.mrb[2].mxu0 %vm249_vm0, %v4848_v10  ;;  %12117 = vmatprep.subr.bf16.mxu1 %v12870_v14  ;;  %v8747_v10 = vld.sshfl [vmem:[%s15373_s0 + $0x80] sm:$0x33 pattern:$0x76325410] }
 0xb6e   :  { %11863 = vmatpush1.bf16.msra.mxu0 %v11862_v59  ;;  %5093 = vmatprep.mubr.f32.mxu0 %v12785_v2  ;;  %v11946_v59 = vpack.c.bf16 %v8744_v57, %v8742_v56  ;;  %v5447_v61 = vcombine.high %v8747_v10, %v8747_v10  ;;  %v8771_v56 = vld [vmem:[%s15376_s3 + $0x898] sm:$0xff] }
 0xb6f   :  { %11865 = vmatprep.subr.bf16.mxu0 %v11864_v60  ;;  %v5352_v60 = vmax.f32 %v5349_v58, 0.0 }
 0xb70   :  { %12119 = vmatpush3.bf16.msra.mxu1 %v12886_v19 }
 0xb71   :  { %12121 = vmatprep.subr.bf16.mxu1 %v12890_v20 }
 0xb72   :  { %11867 = vmatpush1.bf16.msra.mxu0 %v11866_v0  ;;  %v11980_v0 = vpack.c.bf16 %v8751_v63, %v8749_v62  ;;  %v8775_v62 = vld [vmem:[%s15376_s3 + $0x8b8] sm:$0xff] }
 0xb73   :  { %11869 = vmatprep.subr.bf16.mxu0 %v12836_v3 }
 0xb74   :  { %12123 = vmatpush3.bf16.msra.mxu1 %v12912_v28 }
 0xb75   :  { %8726 = vmatmul.mubr.msk.f32.vlgmr.msra.gmra.mrb[2].mxu0 %vm249_vm0, %v5016_v4  ;;  %12125 = vmatprep.subr.bf16.mxu1 %v12916_v30 }
 0xb76   :  { %11871 = vmatpush3.bf16.msra.mxu0 %v12847_v7  ;;  %5178 = vmatprep.mubr.f32.mxu0 %v5111_v5 }
 0xb77   :  { %11873 = vmatprep.subr.bf16.mxu0 %v12849_v8 }
 0xb78   :  { %12127 = vmatpush3.bf16.msra.mxu1 %v12932_v35 }
 0xb79   :  { %12129 = vmatprep.subr.bf16.mxu1 %v12936_v36 }
 0xb7a   :  { %11875 = vmatpush3.bf16.msra.mxu0 %v12866_v13 }
 0xb7b   :  { %11877 = vmatprep.subr.bf16.mxu0 %v12870_v14 }
 0xb7c   :  { %12131 = vmatpush3.bf16.msra.mxu1 %v12952_v41 }
 0xb7d   :  { %12133 = vmatprep.subr.bf16.mxu1 %v12956_v42 }
 0xb7e   :  { %11879 = vmatpush3.bf16.msra.mxu0 %v12886_v19 }
 0xb7f   :  { %11881 = vmatprep.subr.bf16.mxu0 %v12890_v20 }
 0xb80   :  { %12135 = vmatpush3.bf16.msra.mxu1 %v12972_v47 }
 0xb81   :  { %12137 = vmatprep.subr.bf16.mxu1 %v12976_v48 }
 0xb82   :  { %11883 = vmatpush3.bf16.msra.mxu0 %v12912_v28 }
 0xb83   :  { %11885 = vmatprep.subr.bf16.mxu0 %v12916_v30 }
 0xb84   :  { %12139 = vmatpush3.bf16.msra.mxu1 %v12986_v51 }
 0xb85   :  { %12149 = vmatprep.subr.bf16.mxu1 %v12836_v3 }
 0xb86   :  { %11887 = vmatpush3.bf16.msra.mxu0 %v12932_v35 }
 0xb87   :  { %11889 = vmatprep.subr.bf16.mxu0 %v12936_v36  ;;  %6187 = vmatmul.mubr.f32.vlgmr.msra.gmra.mrb[44].mxu1 %v8787_v31  ;;  %v8785_v31 = vld [vmem:[%s15376_s3 + $0x8f8] sm:$0xff] }
 0xb88   :  { %12151 = vmatpush3.bf16.msra.mxu1 %v12847_v7  ;;  %6354 = vmatprep.mubr.f32.mxu1 %v6287_v34  ;;  %v8784_v34 = vld [vmem:[%s15376_s3 + $0x8f0] sm:$0xff] }
 0xb89   :  { %12153 = vmatprep.subr.bf16.mxu1 %v12849_v8 }
 0xb8a   :  { %11891 = vmatpush3.bf16.msra.mxu0 %v12952_v41 }
 0xb8b   :  { %11893 = vmatprep.subr.bf16.mxu0 %v12956_v42 }
 0xb8c   :  { %12155 = vmatpush3.bf16.msra.mxu1 %v12866_v13 }
 0xb8d   :  { %12157 = vmatprep.subr.bf16.mxu1 %v12870_v14 }
 0xb8e   :  { %11895 = vmatpush3.bf16.msra.mxu0 %v12972_v47 }
 0xb8f   :  { %11897 = vmatprep.subr.bf16.mxu0 %v12976_v48 }
 0xb90   :  { %12159 = vmatpush3.bf16.msra.mxu1 %v12886_v19 }
 0xb91   :  { %12161 = vmatprep.subr.bf16.mxu1 %v12890_v20 }
 0xb92   :  { %11899 = vmatpush3.bf16.msra.mxu0 %v12986_v51 }
 0xb93   :  { %11901 = vmatprep.subr.bf16.mxu0 %v11900_v11  ;;  %v11982_v11 = vpack.c.bf16 %v8750_v9, %v8748_v6 }
 0xb94   :  { %12163 = vmatpush3.bf16.msra.mxu1 %v12912_v28 }
 0xb95   :  { %5179 = vmatmul.mubr.f32.vlgmr.msra.gmra.mrb[24].mxu0 %v8727_v1  ;;  %v10105_v1 = vpop.f32.mrb[40].mxu1  ;;  %12165 = vmatprep.subr.bf16.mxu1 %v12916_v30 }
 0xb96   :  { %5261 = vmatprep.mubr.f32.mxu0 %v12785_v2  ;;  %11903 = vmatpush1.bf16.msra.mxu0 %v11902_v16  ;;  %v10106_v4 = vpop.f32.mrb[41].mxu1  ;;  %v11984_v16 = vpack.c.bf16 %v8755_v15, %v8753_v12 }
 0xb97   :  { %11905 = vmatprep.subr.bf16.mxu0 %v11904_v22  ;;  %v14541_v5 = vadd.f32 %v10106_v4, %v10105_v1  ;;  %v11986_v22 = vpack.c.bf16 %v8754_v21, %v8752_v18  ;;  %v8772_v4 = vld [vmem:[%s15376_s3 + $0x8a0] sm:$0xff]  ;;  %v8781_v18 = vld [vmem:[%s15376_s3 + $0x8d8] sm:$0xff] }
 0xb98   :  { %12167 = vmatpush3.bf16.msra.mxu1 %v12932_v35 }
 0xb99   :  { %12169 = vmatprep.subr.bf16.mxu1 %v12936_v36  ;;  %v5685_v58 = vadd.f32 %v14364_v38, %v14541_v5  ;;  %v8774_v5 = vld [vmem:[%s15376_s3 + $0x8b0] sm:$0xff] }
 0xb9a   :  { %11907 = vmatpush1.bf16.msra.mxu0 %v11906_v25  ;;  %v12020_v25 = vpack.c.bf16 %v8761_v24, %v8759_v23  ;;  %v12066_v9 = vpack.c.bf16 %v8774_v5, %v8772_v4 }
 0xb9b   :  { %11941 = vmatprep.subr.bf16.mxu0 %v11940_v29 }
 0xb9c   :  { %12171 = vmatpush3.bf16.msra.mxu1 %v12952_v41 }
 0xb9d   :  { %12173 = vmatprep.subr.bf16.mxu1 %v12956_v42 }
 0xba0   :  { %12175 = vmatpush3.bf16.msra.mxu1 %v12972_v47 }
 0xba1   :  { %12177 = vmatprep.subr.bf16.mxu1 %v12976_v48 }
 0xba4   :  { %12179 = vmatpush3.bf16.msra.mxu1 %v12986_v51 }
 0xba5   :  { %12229 = vmatprep.subr.bf16.mxu1 %v12836_v3 }
 0xba7   :  { %6355 = vmatmul.mubr.f32.vlgmr.msra.gmra.mrb[46].mxu1 %v8797_v33  ;;  %v8782_v33 = vld [vmem:[%s15376_s3 + $0x8e0] sm:$0xff] }
 0xba8   :  { %12231 = vmatpush3.bf16.msra.mxu1 %v12847_v7 }
 0xba9   :  { %12233 = vmatprep.subr.bf16.mxu1 %v12849_v8 }
 0xbac   :  { %12235 = vmatpush3.bf16.msra.mxu1 %v12866_v13 }
 0xbad   :  { %12237 = vmatprep.subr.bf16.mxu1 %v12870_v14 }
 0xbb0   :  { %12239 = vmatpush3.bf16.msra.mxu1 %v12886_v19 }
 0xbb1   :  { %12241 = vmatprep.subr.bf16.mxu1 %v12890_v20 }
 0xbb4   :  { %12243 = vmatpush3.bf16.msra.mxu1 %v12912_v28 }
 0xbb5   :  { %12245 = vmatprep.subr.bf16.mxu1 %v12916_v30 }
 0xbb8   :  { %12247 = vmatpush3.bf16.msra.mxu1 %v12932_v35 }
 0xbb9   :  { %12249 = vmatprep.subr.bf16.mxu1 %v12936_v36 }
 0xbbc   :  { %12251 = vmatpush3.bf16.msra.mxu1 %v12952_v41 }
 0xbbd   :  { %12253 = vmatprep.subr.bf16.mxu1 %v12956_v42 }
 0xbc0   :  { %12255 = vmatpush3.bf16.msra.mxu1 %v12972_v47 }
 0xbc1   :  { %12257 = vmatprep.subr.bf16.mxu1 %v12976_v48 }
 0xbc4   :  { %12259 = vmatpush3.bf16.msra.mxu1 %v12986_v51 }
 0xbc5   :  { %12309 = vmatprep.subr.bf16.mxu1 %v12836_v3 }
 0xc3a   :  { %v10140_v26 = vpop.f32.mrb[42].mxu1 }
 0xc3b   :  { %v10141_v27 = vpop.f32.mrb[43].mxu1 }
 0xc3c   :  { %v14567_v29 = vadd.f32 %v10141_v27, %v10140_v26  ;;  %v8780_v26 = vld [vmem:[%s15376_s3 + $0x8d0] sm:$0xff] }
 0xc3e   :  { %v5853_v6 = vadd.f32 %v14364_v38, %v14567_v29  ;;  %v8783_v29 = vld [vmem:[%s15376_s3 + $0x8e8] sm:$0xff] }
 0xc3f   :  { %v12104_v32 = vpack.c.bf16 %v8785_v31, %v8783_v29  ;;  %v8809_v29 = vld [vmem:[%s15376_s3 + $0x988] sm:$0xff]  ;;  %v8811_v31 = vld [vmem:[%s15376_s3 + $0x998] sm:$0xff] }
 0xc40   :  { %v5856_v12 = vmax.f32 %v5853_v6, 0.0  ;;  %v8798_v6 = vld [vmem:[%s15376_s3 + $0x940] sm:$0xff] }
 0xc68   :  { %v10000_v40 = vpop.f32.mrb[24].mxu0 }
 0xc69   :  { %v10001_v43 = vpop.f32.mrb[25].mxu0 }
 0xc6a   :  { %v10002_v44 = vadd.f32 %v10001_v43, %v10000_v40  ;;  %v8758_v40 = vld [vmem:[%s15376_s3 + $0x840] sm:$0xff]  ;;  %v8760_v43 = vld [vmem:[%s15376_s3 + $0x850] sm:$0xff] }
 0xc6b   :  { %v12022_v49 = vpack.c.bf16 %v8760_v43, %v8758_v40 }
 0xc6c   :  { %v5181_v52 = vadd.f32 %v14364_v38, %v10002_v44  ;;  %v8763_v44 = vld [vmem:[%s15376_s3 + $0x868] sm:$0xff] }
 0xc6e   :  { %v5184_v54 = vmax.f32 %v5181_v52, 0.0  ;;  %v12024_v52 = vpack.c.bf16 %v8765_v45, %v8763_v44 }
 0xc70   :  { %8736 = vmatmul.mubr.msk.f32.vlgmr.msra.gmra.mrb[2].mxu0 %vm249_vm0, %v5184_v54  ;;  %v8764_v54 = vld [vmem:[%s15376_s3 + $0x870] sm:$0xff] }
 0xc71   :  { %11943 = vmatpush1.bf16.msra.mxu0 %v11942_v53  ;;  %5429 = vmatprep.mubr.f32.mxu0 %v12785_v2  ;;  %v8762_v53 = vld [vmem:[%s15376_s3 + $0x860] sm:$0xff] }
 0xc72   :  { %11945 = vmatprep.subr.bf16.mxu0 %v11944_v55  ;;  %v8769_v55 = vld [vmem:[%s15376_s3 + $0x888] sm:$0xff]  ;;  %v12026_v57 = vpack.c.bf16 %v8764_v54, %v8762_v53  ;;  %v8788_v54 = vld [vmem:[%s15376_s3 + $0x900] sm:$0xff] }
 0xc75   :  { %11947 = vmatpush1.bf16.msra.mxu0 %v11946_v59  ;;  %v12060_v59 = vpack.c.bf16 %v8771_v56, %v8769_v55  ;;  %v8790_v55 = vld [vmem:[%s15376_s3 + $0x910] sm:$0xff]  ;;  %v8793_v56 = vld [vmem:[%s15376_s3 + $0x928] sm:$0xff] }
 0xc76   :  { %11949 = vmatprep.subr.bf16.mxu0 %v12836_v3 }
 0xc78   :  { %8746 = vmatmul.mubr.msk.f32.vlgmr.msra.gmra.mrb[2].mxu0 %vm249_vm0, %v5352_v60  ;;  %v8770_v60 = vld [vmem:[%s15376_s3 + $0x890] sm:$0xff] }
 0xc79   :  { %11951 = vmatpush3.bf16.msra.mxu0 %v12847_v7  ;;  %5514 = vmatprep.mubr.f32.mxu0 %v5447_v61  ;;  %v8773_v61 = vld [vmem:[%s15376_s3 + $0x8a8] sm:$0xff] }
 0xc7a   :  { %11953 = vmatprep.subr.bf16.mxu0 %v12849_v8  ;;  %v12064_v1 = vpack.c.bf16 %v8775_v62, %v8773_v61  ;;  %v8792_v61 = vld [vmem:[%s15376_s3 + $0x920] sm:$0xff]  ;;  %v8794_v62 = vld [vmem:[%s15376_s3 + $0x930] sm:$0xff] }
 0xc7d   :  { %11955 = vmatpush3.bf16.msra.mxu0 %v12866_v13 }
 0xc7e   :  { %11957 = vmatprep.subr.bf16.mxu0 %v12870_v14 }
 0xc81   :  { %11959 = vmatpush3.bf16.msra.mxu0 %v12886_v19 }
 0xc82   :  { %11961 = vmatprep.subr.bf16.mxu0 %v12890_v20 }
 0xc85   :  { %11963 = vmatpush3.bf16.msra.mxu0 %v12912_v28 }
 0xc86   :  { %11965 = vmatprep.subr.bf16.mxu0 %v12916_v30 }
 0xc89   :  { %11967 = vmatpush3.bf16.msra.mxu0 %v12932_v35 }
 0xc8a   :  { %11969 = vmatprep.subr.bf16.mxu0 %v12936_v36 }
 0xc8d   :  { %11971 = vmatpush3.bf16.msra.mxu0 %v12952_v41 }
 0xc8e   :  { %11973 = vmatprep.subr.bf16.mxu0 %v12956_v42 }
 0xc91   :  { %11975 = vmatpush3.bf16.msra.mxu0 %v12972_v47 }
 0xc92   :  { %11977 = vmatprep.subr.bf16.mxu0 %v12976_v48 }
 0xc95   :  { %11979 = vmatpush3.bf16.msra.mxu0 %v12986_v51 }
 0xc96   :  { %11981 = vmatprep.subr.bf16.mxu0 %v11980_v0  ;;  %v5688_v0 = vmax.f32 %v5685_v58, 0.0 }
 0xc98   :  { %5515 = vmatmul.mubr.f32.vlgmr.msra.gmra.mrb[26].mxu0 %v8747_v10  ;;  %v8768_v10 = vld [vmem:[%s15376_s3 + $0x880] sm:$0xff] }
 0xc99   :  { %5597 = vmatprep.mubr.f32.mxu0 %v12785_v2  ;;  %11983 = vmatpush1.bf16.msra.mxu0 %v11982_v11  ;;  %v12062_v63 = vpack.c.bf16 %v8770_v60, %v8768_v10  ;;  %v8777_v11 = vld.sshfl [vmem:[%s15373_s0 + $0x8c] sm:$0x33 pattern:$0x76325410] }
 0xc9a   :  { %11985 = vmatprep.subr.bf16.mxu0 %v11984_v16  ;;  %v5951_v15 = vcombine.high %v8777_v11, %v8777_v11  ;;  %v8779_v16 = vld [vmem:[%s15376_s3 + $0x8c8] sm:$0xff] }
 0xc9b   :  { %v12100_v21 = vpack.c.bf16 %v8781_v18, %v8779_v16 }
 0xc9d   :  { %11987 = vmatpush1.bf16.msra.mxu0 %v11986_v22  ;;  %v10210_v22 = vpop.f32.mrb[44].mxu1 }
 0xc9e   :  { %12021 = vmatprep.subr.bf16.mxu0 %v12020_v25  ;;  %v10211_v23 = vpop.f32.mrb[45].mxu1  ;;  %v8778_v25 = vld [vmem:[%s15376_s3 + $0x8c0] sm:$0xff] }
 0xc9f   :  { %v10212_v24 = vadd.f32 %v10211_v23, %v10210_v22  ;;  %v12102_v27 = vpack.c.bf16 %v8780_v26, %v8778_v25  ;;  %v10245_v43 = vpop.f32.mrb[46].mxu1  ;;  %v8804_v22 = vld [vmem:[%s15376_s3 + $0x970] sm:$0xff]  ;;  %v8807_v25 = vld.sshfl [vmem:[%s15373_s0 + $0x98] sm:$0x33 pattern:$0x76325410] }
 0xca0   :  { %v10246_v44 = vpop.f32.mrb[47].mxu1 }
 0xca1   :  { %v10247_v45 = vadd.f32 %v10246_v44, %v10245_v43  ;;  %v6189_v4 = vadd.f32 %v14364_v38, %v10212_v24  ;;  %v8812_v43 = vld [vmem:[%s15376_s3 + $0x9a0] sm:$0xff]  ;;  %v8814_v44 = vld [vmem:[%s15376_s3 + $0x9b0] sm:$0xff] }
 0xca3   :  { %v6192_v16 = vmax.f32 %v6189_v4, 0.0  ;;  %v6357_v23 = vadd.f32 %v14364_v38, %v10247_v45  ;;  %v12226_v45 = vpack.c.bf16 %v8814_v44, %v8812_v43  ;;  %v8841_v43 = vld [vmem:[%s15376_s3 + $0xa58] sm:$0xff] }
 0xca5   :  { %v6360_v26 = vmax.f32 %v6357_v23, 0.0 }
 0xd6b   :  { %v10070_v17 = vpop.f32.mrb[26].mxu0 }
 0xd6c   :  { %v10071_v37 = vpop.f32.mrb[27].mxu0 }
 0xd6d   :  { %v10072_v39 = vadd.f32 %v10071_v37, %v10070_v17  ;;  %v12106_v17 = vpack.c.bf16 %v8784_v34, %v8782_v33  ;;  %v8789_v37 = vld [vmem:[%s15376_s3 + $0x908] sm:$0xff]  ;;  %v8808_v33 = vld [vmem:[%s15376_s3 + $0x980] sm:$0xff]  ;;  %v8810_v34 = vld [vmem:[%s15376_s3 + $0x990] sm:$0xff] }
 0xd6f   :  { %v5517_v46 = vadd.f32 %v14364_v38, %v10072_v39  ;;  %v8791_v39 = vld [vmem:[%s15376_s3 + $0x918] sm:$0xff] }
 0xd70   :  { %v12140_v40 = vpack.c.bf16 %v8791_v39, %v8789_v37  ;;  %v8813_v37 = vld [vmem:[%s15376_s3 + $0x9a8] sm:$0xff]  ;;  %v8815_v39 = vld [vmem:[%s15376_s3 + $0x9b8] sm:$0xff] }
 0xd71   :  { %v5520_v50 = vmax.f32 %v5517_v46, 0.0  ;;  %v8817_v46 = vld.sshfl [vmem:[%s15373_s0 + $0x9c] sm:$0x33 pattern:$0x76325410] }
 0xd73   :  { %8756 = vmatmul.mubr.msk.f32.vlgmr.msra.gmra.mrb[2].mxu0 %vm249_vm0, %v5520_v50 }
 0xd74   :  { %12023 = vmatpush1.bf16.msra.mxu0 %v12022_v49  ;;  %5765 = vmatprep.mubr.f32.mxu0 %v12785_v2  ;;  %v6623_v49 = vcombine.high %v8817_v46, %v8817_v46 }
 0xd75   :  { %12025 = vmatprep.subr.bf16.mxu0 %v12024_v52 }
 0xd76   :  { %6690 = vmatprep.mubr.f32.mxu1 %v6623_v49  ;;  %v8821_v49 = vld [vmem:[%s15376_s3 + $0x9d8] sm:$0xff] }
 0xd77   :  { %6691 = vmatmul.mubr.f32.vlgmr.msra.gmra.mrb[48].mxu1 %v8817_v46  ;;  %v8819_v46 = vld [vmem:[%s15376_s3 + $0x9c8] sm:$0xff] }
 0xd78   :  { %12027 = vmatpush1.bf16.msra.mxu0 %v12026_v57  ;;  %12311 = vmatpush3.bf16.msra.mxu1 %v12847_v7  ;;  %v8795_v57 = vld [vmem:[%s15376_s3 + $0x938] sm:$0xff] }
 0xd79   :  { %12061 = vmatprep.subr.bf16.mxu0 %v12060_v59  ;;  %12313 = vmatprep.subr.bf16.mxu1 %v12849_v8  ;;  %v12142_v59 = vpack.c.bf16 %v8790_v55, %v8788_v54  ;;  %v12144_v60 = vpack.c.bf16 %v8795_v57, %v8793_v56  ;;  %v8837_v55 = vld.sshfl [vmem:[%s15373_s0 + $0xa4] sm:$0x33 pattern:$0x76325410] }
 0xd7a   :  { %v6959_v56 = vcombine.high %v8837_v55, %v8837_v55  ;;  %v8847_v57 = vld.sshfl [vmem:[%s15373_s0 + $0xa8] sm:$0x33 pattern:$0x76325410] }
 0xd7b   :  { %8766 = vmatmul.mubr.msk.f32.vlgmr.msra.gmra.mrb[2].mxu0 %vm249_vm0, %v5688_v0  ;;  %v8801_v0 = vld [vmem:[%s15376_s3 + $0x958] sm:$0xff] }
 0xd7c   :  { %12063 = vmatpush1.bf16.msra.mxu0 %v12062_v63  ;;  %5933 = vmatprep.mubr.f32.mxu0 %v12785_v2  ;;  %v8799_v63 = vld [vmem:[%s15376_s3 + $0x948] sm:$0xff] }
 0xd7d   :  { %12065 = vmatprep.subr.bf16.mxu0 %v12064_v1  ;;  %12315 = vmatpush3.bf16.msra.mxu1 %v12866_v13  ;;  %v12146_v1 = vpack.c.bf16 %v8794_v62, %v8792_v61  ;;  %v12180_v5 = vpack.c.bf16 %v8801_v0, %v8799_v63  ;;  %v8818_v61 = vld [vmem:[%s15376_s3 + $0x9c0] sm:$0xff]  ;;  %v8820_v62 = vld [vmem:[%s15376_s3 + $0x9d0] sm:$0xff]  ;;  %v8823_v63 = vld [vmem:[%s15376_s3 + $0x9e8] sm:$0xff] }
 0xd7e   :  { %12317 = vmatprep.subr.bf16.mxu1 %v12870_v14  ;;  %7026 = vmatprep.mubr.f32.mxu1 %v6959_v56  ;;  %v8825_v0 = vld [vmem:[%s15376_s3 + $0x9f8] sm:$0xff]  ;;  %v12262_v4 = vpack.c.bf16 %v8820_v62, %v8818_v61  ;;  %v14995_v61 = vld [vmem:[%s15375_s2] ss:$0 sm:$0xff] }
 0xd80   :  { %12067 = vmatpush1.bf16.msra.mxu0 %v12066_v9  ;;  %v8800_v9 = vld [vmem:[%s15376_s3 + $0x950] sm:$0xff] }
 0xd81   :  { %12069 = vmatprep.subr.bf16.mxu0 %v12836_v3  ;;  %12319 = vmatpush3.bf16.msra.mxu1 %v12886_v19 }
 0xd82   :  { %12321 = vmatprep.subr.bf16.mxu1 %v12890_v20 }
 0xd83   :  { %8776 = vmatmul.mubr.msk.f32.vlgmr.msra.gmra.mrb[2].mxu0 %vm249_vm0, %v5856_v12  ;;  %v8805_v12 = vld [vmem:[%s15376_s3 + $0x978] sm:$0xff] }
 0xd84   :  { %12071 = vmatpush3.bf16.msra.mxu0 %v12847_v7  ;;  %6018 = vmatprep.mubr.f32.mxu0 %v5951_v15  ;;  %v12182_v15 = vpack.c.bf16 %v8800_v9, %v8798_v6  ;;  %v12264_v6 = vpack.c.bf16 %v8825_v0, %v8823_v63  ;;  %v8822_v9 = vld [vmem:[%s15376_s3 + $0x9e0] sm:$0xff] }
 0xd85   :  { %12073 = vmatprep.subr.bf16.mxu0 %v12849_v8  ;;  %12323 = vmatpush3.bf16.msra.mxu1 %v12912_v28 }
 0xd86   :  { %12325 = vmatprep.subr.bf16.mxu1 %v12916_v30 }
 0xd88   :  { %12075 = vmatpush3.bf16.msra.mxu0 %v12866_v13 }
 0xd89   :  { %12077 = vmatprep.subr.bf16.mxu0 %v12870_v14  ;;  %12327 = vmatpush3.bf16.msra.mxu1 %v12932_v35 }
 0xd8a   :  { %12329 = vmatprep.subr.bf16.mxu1 %v12936_v36 }
 0xd8c   :  { %12079 = vmatpush3.bf16.msra.mxu0 %v12886_v19 }
 0xd8d   :  { %12081 = vmatprep.subr.bf16.mxu0 %v12890_v20  ;;  %12331 = vmatpush3.bf16.msra.mxu1 %v12952_v41 }
 0xd8e   :  { %12333 = vmatprep.subr.bf16.mxu1 %v12956_v42 }
 0xd90   :  { %12083 = vmatpush3.bf16.msra.mxu0 %v12912_v28 }
 0xd91   :  { %12085 = vmatprep.subr.bf16.mxu0 %v12916_v30  ;;  %12335 = vmatpush3.bf16.msra.mxu1 %v12972_v47 }
 0xd92   :  { %12337 = vmatprep.subr.bf16.mxu1 %v12976_v48 }
 0xd94   :  { %12087 = vmatpush3.bf16.msra.mxu0 %v12932_v35 }
 0xd95   :  { %12089 = vmatprep.subr.bf16.mxu0 %v12936_v36  ;;  %12339 = vmatpush3.bf16.msra.mxu1 %v12986_v51 }
 0xd96   :  { %12349 = vmatprep.subr.bf16.mxu1 %v12836_v3 }
 0xd98   :  { %12091 = vmatpush3.bf16.msra.mxu0 %v12952_v41  ;;  %7027 = vmatmul.mubr.f32.vlgmr.msra.gmra.mrb[50].mxu1 %v8837_v55 }
 0xd99   :  { %12093 = vmatprep.subr.bf16.mxu0 %v12956_v42  ;;  %12351 = vmatpush3.bf16.msra.mxu1 %v12847_v7 }
 0xd9a   :  { %12353 = vmatprep.subr.bf16.mxu1 %v12849_v8 }
 0xd9c   :  { %12095 = vmatpush3.bf16.msra.mxu0 %v12972_v47 }
 0xd9d   :  { %12097 = vmatprep.subr.bf16.mxu0 %v12976_v48  ;;  %12355 = vmatpush3.bf16.msra.mxu1 %v12866_v13 }
 0xd9e   :  { %12357 = vmatprep.subr.bf16.mxu1 %v12870_v14 }
 0xda0   :  { %12099 = vmatpush3.bf16.msra.mxu0 %v12986_v51 }
 0xda1   :  { %12101 = vmatprep.subr.bf16.mxu0 %v12100_v21  ;;  %v8802_v21 = vld [vmem:[%s15376_s3 + $0x960] sm:$0xff]  ;;  %12359 = vmatpush3.bf16.msra.mxu1 %v12886_v19 }
 0xda2   :  { %v12186_v24 = vpack.c.bf16 %v8804_v22, %v8802_v21  ;;  %12361 = vmatprep.subr.bf16.mxu1 %v12890_v20  ;;  %v8831_v22 = vld [vmem:[%s15376_s3 + $0xa18] sm:$0xff] }
 0xda3   :  { %6019 = vmatmul.mubr.f32.vlgmr.msra.gmra.mrb[28].mxu0 %v8777_v11  ;;  %v8803_v11 = vld [vmem:[%s15376_s3 + $0x968] sm:$0xff] }
 0xda4   :  { %6101 = vmatprep.mubr.f32.mxu0 %v12785_v2  ;;  %12103 = vmatpush1.bf16.msra.mxu0 %v12102_v27  ;;  %v12184_v18 = vpack.c.bf16 %v8805_v12, %v8803_v11  ;;  %v6455_v27 = vcombine.high %v8807_v25, %v8807_v25  ;;  %v8824_v11 = vld [vmem:[%s15376_s3 + $0x9f0] sm:$0xff] }
 0xda5   :  { %12105 = vmatprep.subr.bf16.mxu0 %v12104_v32  ;;  %v12220_v32 = vpack.c.bf16 %v8811_v31, %v8809_v29  ;;  %12363 = vmatpush3.bf16.msra.mxu1 %v12912_v28  ;;  %v8830_v29 = vld [vmem:[%s15376_s3 + $0xa10] sm:$0xff] }
 0xda6   :  { %12365 = vmatprep.subr.bf16.mxu1 %v12916_v30 }
 0xda8   :  { %12107 = vmatpush1.bf16.msra.mxu0 %v12106_v17  ;;  %v12222_v17 = vpack.c.bf16 %v8810_v34, %v8808_v33  ;;  %v8835_v33 = vld [vmem:[%s15376_s3 + $0xa38] sm:$0xff] }
 0xda9   :  { %12141 = vmatprep.subr.bf16.mxu0 %v12140_v40  ;;  %v12224_v40 = vpack.c.bf16 %v8815_v39, %v8813_v37  ;;  %12367 = vmatpush3.bf16.msra.mxu1 %v12932_v35  ;;  %v8834_v37 = vld [vmem:[%s15376_s3 + $0xa30] sm:$0xff] }
 0xdaa   :  { %12369 = vmatprep.subr.bf16.mxu1 %v12936_v36 }
 0xdad   :  { %12371 = vmatpush3.bf16.msra.mxu1 %v12952_v41 }
 0xdae   :  { %12373 = vmatprep.subr.bf16.mxu1 %v12956_v42 }
 0xdb1   :  { %12375 = vmatpush3.bf16.msra.mxu1 %v12972_v47 }
 0xdb2   :  { %12377 = vmatprep.subr.bf16.mxu1 %v12976_v48 }
 0xdb5   :  { %12379 = vmatpush3.bf16.msra.mxu1 %v12986_v51 }
 0xdb6   :  { %12429 = vmatprep.subr.bf16.mxu1 %v12836_v3 }
 0xe76   :  { %v10175_v50 = vpop.f32.mrb[28].mxu0 }
 0xe77   :  { %v10176_v52 = vpop.f32.mrb[29].mxu0 }
 0xe78   :  { %v10177_v53 = vadd.f32 %v10176_v52, %v10175_v50  ;;  %v12260_v50 = vpack.c.bf16 %v8821_v49, %v8819_v46  ;;  %v10315_v52 = vpop.f32.mrb[48].mxu1 }
 0xe7a   :  { %v6021_v58 = vadd.f32 %v14364_v38, %v10177_v53  ;;  %v10316_v53 = vpop.f32.mrb[49].mxu1 }
 0xe7b   :  { %v10317_v54 = vadd.f32 %v10316_v53, %v10315_v52  ;;  %v8877_v53 = vld.sshfl [vmem:[%s15373_s0 + $0xb4] sm:$0x33 pattern:$0x76325410] }
 0xe7c   :  { %v6024_v10 = vmax.f32 %v6021_v58, 0.0  ;;  %v7127_v58 = vcombine.high %v8847_v57, %v8847_v57 }
 0xe7d   :  { %v6693_v12 = vadd.f32 %v14364_v38, %v10317_v54  ;;  %v7631_v54 = vcombine.high %v8877_v53, %v8877_v53 }
 0xe7e   :  { %8786 = vmatmul.mubr.msk.f32.vlgmr.msra.gmra.mrb[2].mxu0 %vm249_vm0, %v6024_v10  ;;  %7194 = vmatprep.mubr.f32.mxu1 %v7127_v58  ;;  %v8838_v58 = vld [vmem:[%s15376_s3 + $0xa40] sm:$0xff] }
 0xe7f   :  { %12143 = vmatpush1.bf16.msra.mxu0 %v12142_v59  ;;  %6269 = vmatprep.mubr.f32.mxu0 %v12785_v2 }
 0xe80   :  { %12145 = vmatprep.subr.bf16.mxu0 %v12144_v60  ;;  %7195 = vmatmul.mubr.f32.vlgmr.msra.gmra.mrb[52].mxu1 %v8847_v57 }
 0xe81   :  { %12431 = vmatpush3.bf16.msra.mxu1 %v12847_v7 }
 0xe82   :  { %12433 = vmatprep.subr.bf16.mxu1 %v12849_v8 }
 0xe83   :  { %12147 = vmatpush1.bf16.msra.mxu0 %v12146_v1 }
 0xe84   :  { %12181 = vmatprep.subr.bf16.mxu0 %v12180_v5 }
 0xe85   :  { %12435 = vmatpush3.bf16.msra.mxu1 %v12866_v13 }
 0xe86   :  { %8796 = vmatmul.mubr.msk.f32.vlgmr.msra.gmra.mrb[2].mxu0 %vm249_vm0, %v6192_v16  ;;  %12437 = vmatprep.subr.bf16.mxu1 %v12870_v14  ;;  %v8827_v16 = vld.sshfl [vmem:[%s15373_s0 + $0xa0] sm:$0x33 pattern:$0x76325410] }
 0xe87   :  { %12183 = vmatpush1.bf16.msra.mxu0 %v12182_v15  ;;  %6437 = vmatprep.mubr.f32.mxu0 %v12785_v2  ;;  %v12266_v15 = vpack.c.bf16 %v8824_v11, %v8822_v9  ;;  %v6791_v21 = vcombine.high %v8827_v16, %v8827_v16  ;;  %v8851_v9 = vld [vmem:[%s15376_s3 + $0xa98] sm:$0xff] }
 0xe88   :  { %12185 = vmatprep.subr.bf16.mxu0 %v12184_v18  ;;  %v6696_v18 = vmax.f32 %v6693_v12, 0.0 }
 0xe89   :  { %12439 = vmatpush3.bf16.msra.mxu1 %v12886_v19 }
 0xe8a   :  { %12441 = vmatprep.subr.bf16.mxu1 %v12890_v20 }
 0xe8b   :  { %12187 = vmatpush1.bf16.msra.mxu0 %v12186_v24  ;;  %v10385_v24 = vpop.f32.mrb[50].mxu1 }
 0xe8c   :  { %12189 = vmatprep.subr.bf16.mxu0 %v12836_v3 }
 0xe8d   :  { %12443 = vmatpush3.bf16.msra.mxu1 %v12912_v28 }
 0xe8e   :  { %8806 = vmatmul.mubr.msk.f32.vlgmr.msra.gmra.mrb[2].mxu0 %vm249_vm0, %v6360_v26  ;;  %12445 = vmatprep.subr.bf16.mxu1 %v12916_v30 }
 0xe8f   :  { %12191 = vmatpush3.bf16.msra.mxu0 %v12847_v7  ;;  %6522 = vmatprep.mubr.f32.mxu0 %v6455_v27  ;;  %v8828_v27 = vld [vmem:[%s15376_s3 + $0xa00] sm:$0xff] }
 0xe90   :  { %12193 = vmatprep.subr.bf16.mxu0 %v12849_v8  ;;  %v12302_v31 = vpack.c.bf16 %v8830_v29, %v8828_v27 }
 0xe91   :  { %12447 = vmatpush3.bf16.msra.mxu1 %v12932_v35 }
 0xe92   :  { %12449 = vmatprep.subr.bf16.mxu1 %v12936_v36 }
 0xe93   :  { %12195 = vmatpush3.bf16.msra.mxu0 %v12866_v13 }
 0xe94   :  { %12197 = vmatprep.subr.bf16.mxu0 %v12870_v14 }
 0xe95   :  { %12451 = vmatpush3.bf16.msra.mxu1 %v12952_v41 }
 0xe96   :  { %12453 = vmatprep.subr.bf16.mxu1 %v12956_v42 }
 0xe97   :  { %12199 = vmatpush3.bf16.msra.mxu0 %v12886_v19 }
 0xe98   :  { %12201 = vmatprep.subr.bf16.mxu0 %v12890_v20 }
 0xe99   :  { %12455 = vmatpush3.bf16.msra.mxu1 %v12972_v47 }
 0xe9a   :  { %12457 = vmatprep.subr.bf16.mxu1 %v12976_v48 }
 0xe9b   :  { %12203 = vmatpush3.bf16.msra.mxu0 %v12912_v28 }
 0xe9c   :  { %12205 = vmatprep.subr.bf16.mxu0 %v12916_v30 }
 0xe9d   :  { %12459 = vmatpush3.bf16.msra.mxu1 %v12986_v51 }
 0xe9e   :  { %12469 = vmatprep.subr.bf16.mxu1 %v12836_v3 }
 0xe9f   :  { %12207 = vmatpush3.bf16.msra.mxu0 %v12932_v35 }
 0xea0   :  { %12209 = vmatprep.subr.bf16.mxu0 %v12936_v36 }
 0xea3   :  { %12211 = vmatpush3.bf16.msra.mxu0 %v12952_v41 }
 0xea4   :  { %12213 = vmatprep.subr.bf16.mxu0 %v12956_v42 }
 0xea7   :  { %12215 = vmatpush3.bf16.msra.mxu0 %v12972_v47 }
 0xea8   :  { %12217 = vmatprep.subr.bf16.mxu0 %v12976_v48 }
 0xeab   :  { %12219 = vmatpush3.bf16.msra.mxu0 %v12986_v51 }
 0xeac   :  { %12221 = vmatprep.subr.bf16.mxu0 %v12220_v32  ;;  %v8833_v32 = vld [vmem:[%s15376_s3 + $0xa28] sm:$0xff] }
 0xead   :  { %v12304_v34 = vpack.c.bf16 %v8835_v33, %v8833_v32 }
 0xeae   :  { %6523 = vmatmul.mubr.f32.vlgmr.msra.gmra.mrb[30].mxu0 %v8807_v25  ;;  %v10386_v25 = vpop.f32.mrb[51].mxu1 }
 0xeaf   :  { %6605 = vmatprep.mubr.f32.mxu0 %v12785_v2  ;;  %12223 = vmatpush1.bf16.msra.mxu0 %v12222_v17  ;;  %v14915_v26 = vadd.f32 %v10386_v25, %v10385_v24  ;;  %v8832_v17 = vld [vmem:[%s15376_s3 + $0xa20] sm:$0xff] }
 0xeb0   :  { %12225 = vmatprep.subr.bf16.mxu0 %v12224_v40  ;;  %v12306_v39 = vpack.c.bf16 %v8834_v37, %v8832_v17  ;;  %v8839_v40 = vld [vmem:[%s15376_s3 + $0xa48] sm:$0xff]  ;;  %v8852_v25 = vld [vmem:[%s15376_s3 + $0xaa0] sm:$0xff]  ;;  %v8861_v17 = vld [vmem:[%s15376_s3 + $0xad8] sm:$0xff] }
 0xeb1   :  { %v12340_v44 = vpack.c.bf16 %v8841_v43, %v8839_v40  ;;  %v7029_v12 = vadd.f32 %v14995_v61, %v14915_v26  ;;  %v8854_v26 = vld [vmem:[%s15376_s3 + $0xab0] sm:$0xff] }
 0xeb2   :  { %v12386_v29 = vpack.c.bf16 %v8854_v26, %v8852_v25 }
 0xeb3   :  { %12227 = vmatpush1.bf16.msra.mxu0 %v12226_v45 }
 0xeb4   :  { %12261 = vmatprep.subr.bf16.mxu0 %v12260_v50  ;;  %v8867_v50 = vld.sshfl [vmem:[%s15373_s0 + $0xb0] sm:$0x33 pattern:$0x76325410] }
 0xeb5   :  { %v7463_v52 = vcombine.high %v8867_v50, %v8867_v50 }
 0xeb7   :  { %7530 = vmatprep.mubr.f32.mxu1 %v7463_v52 }
 0xeb8   :  { %7531 = vmatmul.mubr.f32.vlgmr.msra.gmra.mrb[54].mxu1 %v8867_v50  ;;  %v8865_v50 = vld [vmem:[%s15376_s3 + $0xaf8] sm:$0xff] }
 0xeb9   :  { %12471 = vmatpush3.bf16.msra.mxu1 %v12847_v7  ;;  %7698 = vmatprep.mubr.f32.mxu1 %v7631_v54  ;;  %v8864_v54 = vld [vmem:[%s15376_s3 + $0xaf0] sm:$0xff] }
 0xeba   :  { %12473 = vmatprep.subr.bf16.mxu1 %v12849_v8 }
 0xebd   :  { %12475 = vmatpush3.bf16.msra.mxu1 %v12866_v13 }
 0xebe   :  { %12477 = vmatprep.subr.bf16.mxu1 %v12870_v14 }
 0xec1   :  { %12479 = vmatpush3.bf16.msra.mxu1 %v12886_v19 }
 0xec2   :  { %12481 = vmatprep.subr.bf16.mxu1 %v12890_v20 }
 0xec5   :  { %12483 = vmatpush3.bf16.msra.mxu1 %v12912_v28 }
 0xec6   :  { %12485 = vmatprep.subr.bf16.mxu1 %v12916_v30 }
 0xec9   :  { %12487 = vmatpush3.bf16.msra.mxu1 %v12932_v35 }
 0xeca   :  { %12489 = vmatprep.subr.bf16.mxu1 %v12936_v36 }
 0xecd   :  { %12491 = vmatpush3.bf16.msra.mxu1 %v12952_v41 }
 0xece   :  { %12493 = vmatprep.subr.bf16.mxu1 %v12956_v42 }
 0xed1   :  { %12495 = vmatpush3.bf16.msra.mxu1 %v12972_v47 }
 0xed2   :  { %12497 = vmatprep.subr.bf16.mxu1 %v12976_v48 }
 0xed5   :  { %12499 = vmatpush3.bf16.msra.mxu1 %v12986_v51 }
 0xed6   :  { %12549 = vmatprep.subr.bf16.mxu1 %v12836_v3 }
 0xed8   :  { %7699 = vmatmul.mubr.f32.vlgmr.msra.gmra.mrb[56].mxu1 %v8877_v53  ;;  %v8862_v53 = vld [vmem:[%s15376_s3 + $0xae0] sm:$0xff] }
 0xed9   :  { %12551 = vmatpush3.bf16.msra.mxu1 %v12847_v7 }
 0xeda   :  { %12553 = vmatprep.subr.bf16.mxu1 %v12849_v8 }
 0xedd   :  { %12555 = vmatpush3.bf16.msra.mxu1 %v12866_v13 }
 0xede   :  { %12557 = vmatprep.subr.bf16.mxu1 %v12870_v14 }
 0xee1   :  { %12559 = vmatpush3.bf16.msra.mxu1 %v12886_v19 }
 0xee2   :  { %12561 = vmatprep.subr.bf16.mxu1 %v12890_v20 }
 0xee5   :  { %12563 = vmatpush3.bf16.msra.mxu1 %v12912_v28 }
 0xee6   :  { %12565 = vmatprep.subr.bf16.mxu1 %v12916_v30 }
 0xee9   :  { %12567 = vmatpush3.bf16.msra.mxu1 %v12932_v35 }
 0xeea   :  { %12569 = vmatprep.subr.bf16.mxu1 %v12936_v36 }
 0xeed   :  { %12571 = vmatpush3.bf16.msra.mxu1 %v12952_v41 }
 0xeee   :  { %12573 = vmatprep.subr.bf16.mxu1 %v12956_v42 }
 0xef1   :  { %12575 = vmatpush3.bf16.msra.mxu1 %v12972_v47 }
 0xef2   :  { %12577 = vmatprep.subr.bf16.mxu1 %v12976_v48 }
 0xef5   :  { %12579 = vmatpush3.bf16.msra.mxu1 %v12986_v51 }
 0xf53   :  { %v10420_v45 = vpop.f32.mrb[52].mxu1 }
 0xf54   :  { %v10421_v46 = vpop.f32.mrb[53].mxu1 }
 0xf55   :  { %v14941_v49 = vadd.f32 %v10421_v46, %v10420_v45  ;;  %v8860_v45 = vld [vmem:[%s15376_s3 + $0xad0] sm:$0xff] }
 0xf57   :  { %v7197_v27 = vadd.f32 %v14995_v61, %v14941_v49  ;;  %v8863_v49 = vld [vmem:[%s15376_s3 + $0xae8] sm:$0xff] }
 0xf58   :  { %v12424_v52 = vpack.c.bf16 %v8865_v50, %v8863_v49  ;;  %v8889_v49 = vld [vmem:[%s15376_s3 + $0xb88] sm:$0xff]  ;;  %v8891_v50 = vld [vmem:[%s15376_s3 + $0xb98] sm:$0xff] }
 0xf59   :  { %v7200_v32 = vmax.f32 %v7197_v27, 0.0  ;;  %v8878_v27 = vld [vmem:[%s15376_s3 + $0xb40] sm:$0xff] }
 0xf81   :  { %v10280_v59 = vpop.f32.mrb[30].mxu0 }
 0xf82   :  { %v10281_v10 = vpop.f32.mrb[31].mxu0 }
 0xf83   :  { %v10282_v60 = vadd.f32 %v10281_v10, %v10280_v59  ;;  %v8840_v59 = vld [vmem:[%s15376_s3 + $0xa50] sm:$0xff]  ;;  %v8843_v10 = vld [vmem:[%s15376_s3 + $0xa68] sm:$0xff] }
 0xf84   :  { %v12342_v63 = vpack.c.bf16 %v8840_v59, %v8838_v58 }
 0xf85   :  { %v6525_v1 = vadd.f32 %v14364_v38, %v10282_v60  ;;  %v8829_v38 = vld [vmem:[%s15376_s3 + $0xa08] sm:$0xff]  ;;  %v8845_v60 = vld [vmem:[%s15376_s3 + $0xa78] sm:$0xff] }
 0xf86   :  { %v12300_v23 = vpack.c.bf16 %v8831_v22, %v8829_v38  ;;  %v8855_v38 = vld [vmem:[%s15376_s3 + $0xab8] sm:$0xff] }
 0xf87   :  { %v6528_v5 = vmax.f32 %v6525_v1, 0.0  ;;  %v12344_v1 = vpack.c.bf16 %v8845_v60, %v8843_v10 }
 0xf89   :  { %8816 = vmatmul.mubr.msk.f32.vlgmr.msra.gmra.mrb[2].mxu0 %vm249_vm0, %v6528_v5  ;;  %v8844_v5 = vld [vmem:[%s15376_s3 + $0xa70] sm:$0xff] }
 0xf8a   :  { %12263 = vmatpush1.bf16.msra.mxu0 %v12262_v4  ;;  %6773 = vmatprep.mubr.f32.mxu0 %v12785_v2  ;;  %v8842_v4 = vld [vmem:[%s15376_s3 + $0xa60] sm:$0xff] }
 0xf8b   :  { %12265 = vmatprep.subr.bf16.mxu0 %v12264_v6  ;;  %v8849_v6 = vld [vmem:[%s15376_s3 + $0xa88] sm:$0xff]  ;;  %v12346_v11 = vpack.c.bf16 %v8844_v5, %v8842_v4  ;;  %v8868_v5 = vld [vmem:[%s15376_s3 + $0xb00] sm:$0xff] }
 0xf8e   :  { %12267 = vmatpush1.bf16.msra.mxu0 %v12266_v15  ;;  %v12380_v15 = vpack.c.bf16 %v8851_v9, %v8849_v6  ;;  %v8870_v6 = vld [vmem:[%s15376_s3 + $0xb10] sm:$0xff]  ;;  %v8873_v9 = vld [vmem:[%s15376_s3 + $0xb28] sm:$0xff] }
 0xf8f   :  { %12269 = vmatprep.subr.bf16.mxu0 %v12836_v3 }
 0xf91   :  { %8826 = vmatmul.mubr.msk.f32.vlgmr.msra.gmra.mrb[2].mxu0 %vm249_vm0, %v6696_v18  ;;  %v8850_v18 = vld [vmem:[%s15376_s3 + $0xa90] sm:$0xff] }
 0xf92   :  { %12271 = vmatpush3.bf16.msra.mxu0 %v12847_v7  ;;  %6858 = vmatprep.mubr.f32.mxu0 %v6791_v21  ;;  %v8853_v21 = vld [vmem:[%s15376_s3 + $0xaa8] sm:$0xff] }
 0xf93   :  { %12273 = vmatprep.subr.bf16.mxu0 %v12849_v8  ;;  %v12384_v24 = vpack.c.bf16 %v8855_v38, %v8853_v21  ;;  %v8872_v21 = vld [vmem:[%s15376_s3 + $0xb20] sm:$0xff]  ;;  %v8874_v38 = vld [vmem:[%s15376_s3 + $0xb30] sm:$0xff] }
 0xf96   :  { %12275 = vmatpush3.bf16.msra.mxu0 %v12866_v13 }
 0xf97   :  { %12277 = vmatprep.subr.bf16.mxu0 %v12870_v14 }
 0xf9a   :  { %12279 = vmatpush3.bf16.msra.mxu0 %v12886_v19 }
 0xf9b   :  { %12281 = vmatprep.subr.bf16.mxu0 %v12890_v20 }
 0xf9e   :  { %12283 = vmatpush3.bf16.msra.mxu0 %v12912_v28 }
 0xf9f   :  { %12285 = vmatprep.subr.bf16.mxu0 %v12916_v30 }
 0xfa2   :  { %12287 = vmatpush3.bf16.msra.mxu0 %v12932_v35 }
 0xfa3   :  { %12289 = vmatprep.subr.bf16.mxu0 %v12936_v36 }
 0xfa6   :  { %12291 = vmatpush3.bf16.msra.mxu0 %v12952_v41 }
 0xfa7   :  { %12293 = vmatprep.subr.bf16.mxu0 %v12956_v42 }
 0xfaa   :  { %12295 = vmatpush3.bf16.msra.mxu0 %v12972_v47 }
 0xfab   :  { %12297 = vmatprep.subr.bf16.mxu0 %v12976_v48 }
 0xfae   :  { %12299 = vmatpush3.bf16.msra.mxu0 %v12986_v51 }
 0xfaf   :  { %12301 = vmatprep.subr.bf16.mxu0 %v12300_v23  ;;  %v7032_v23 = vmax.f32 %v7029_v12, 0.0 }
 0xfb1   :  { %6859 = vmatmul.mubr.f32.vlgmr.msra.gmra.mrb[32].mxu0 %v8827_v16  ;;  %v8848_v16 = vld [vmem:[%s15376_s3 + $0xa80] sm:$0xff] }
 0xfb2   :  { %6941 = vmatprep.mubr.f32.mxu0 %v12785_v2  ;;  %12303 = vmatpush1.bf16.msra.mxu0 %v12302_v31  ;;  %v12382_v22 = vpack.c.bf16 %v8850_v18, %v8848_v16  ;;  %v8857_v31 = vld.sshfl [vmem:[%s15373_s0 + $0xac] sm:$0x33 pattern:$0x76325410] }
 0xfb3   :  { %12305 = vmatprep.subr.bf16.mxu0 %v12304_v34  ;;  %v7295_v33 = vcombine.high %v8857_v31, %v8857_v31  ;;  %v8859_v34 = vld [vmem:[%s15376_s3 + $0xac8] sm:$0xff] }
 0xfb4   :  { %v12420_v37 = vpack.c.bf16 %v8861_v17, %v8859_v34 }
 0xfb6   :  { %12307 = vmatpush1.bf16.msra.mxu0 %v12306_v39  ;;  %v10490_v39 = vpop.f32.mrb[54].mxu1 }
 0xfb7   :  { %12341 = vmatprep.subr.bf16.mxu0 %v12340_v44  ;;  %v10491_v40 = vpop.f32.mrb[55].mxu1  ;;  %v8858_v44 = vld [vmem:[%s15376_s3 + $0xac0] sm:$0xff] }
 0xfb8   :  { %v10492_v43 = vadd.f32 %v10491_v40, %v10490_v39  ;;  %v12422_v46 = vpack.c.bf16 %v8860_v45, %v8858_v44  ;;  %v10525_v59 = vpop.f32.mrb[56].mxu1  ;;  %v8884_v39 = vld [vmem:[%s15376_s3 + $0xb70] sm:$0xff]  ;;  %v8887_v44 = vld.sshfl [vmem:[%s15373_s0 + $0xb8] sm:$0x33 pattern:$0x76325410] }
 0xfb9   :  { %v10526_v10 = vpop.f32.mrb[57].mxu1 }
 0xfba   :  { %v10527_v60 = vadd.f32 %v10526_v10, %v10525_v59  ;;  %v7533_v25 = vadd.f32 %v14995_v61, %v10492_v43  ;;  %v8892_v59 = vld [vmem:[%s15376_s3 + $0xba0] sm:$0xff]  ;;  %v8894_v10 = vld [vmem:[%s15376_s3 + $0xbb0] sm:$0xff] }
 0xfbc   :  { %v7536_v34 = vmax.f32 %v7533_v25, 0.0  ;;  %v7701_v40 = vadd.f32 %v14995_v61, %v10527_v60  ;;  %v12546_v60 = vpack.c.bf16 %v8894_v10, %v8892_v59  ;;  %v8904_v25 = vld [vmem:[%s15376_s3 + $0xbf0] sm:$0xff]  ;;  %v8335_v59 = vld [vmem:[%s15378_s5 + $0xc8] sm:$0xff] }
 0xfbe   :  { %v7704_v45 = vmax.f32 %v7701_v40, 0.0  ;;  %v8313_v40 = vld [vmem:[%s15378_s5 + $0x18] sm:$0xff] }
0x1084   :  { %v10350_v55 = vpop.f32.mrb[32].mxu0 }
0x1085   :  { %v10351_v56 = vpop.f32.mrb[33].mxu0 }
0x1086   :  { %v10352_v57 = vadd.f32 %v10351_v56, %v10350_v55  ;;  %v12426_v55 = vpack.c.bf16 %v8864_v54, %v8862_v53  ;;  %v8869_v56 = vld [vmem:[%s15376_s3 + $0xb08] sm:$0xff]  ;;  %v8888_v53 = vld [vmem:[%s15376_s3 + $0xb80] sm:$0xff]  ;;  %v8890_v54 = vld [vmem:[%s15376_s3 + $0xb90] sm:$0xff] }
0x1088   :  { %v6861_v62 = vadd.f32 %v14995_v61, %v10352_v57  ;;  %v8871_v57 = vld [vmem:[%s15376_s3 + $0xb18] sm:$0xff] }
0x1089   :  { %v12460_v58 = vpack.c.bf16 %v8871_v57, %v8869_v56  ;;  %v8893_v56 = vld [vmem:[%s15376_s3 + $0xba8] sm:$0xff]  ;;  %v8895_v57 = vld [vmem:[%s15376_s3 + $0xbb8] sm:$0xff] }
0x108a   :  { %v6864_v0 = vmax.f32 %v6861_v62, 0.0  ;;  %v8897_v62 = vld.sshfl [vmem:[%s15373_s0 + $0xbc] sm:$0x33 pattern:$0x76325410] }
0x108c   :  { %8836 = vmatmul.mubr.msk.f32.vlgmr.msra.gmra.mrb[2].mxu0 %vm249_vm0, %v6864_v0 }
0x108d   :  { %12343 = vmatpush1.bf16.msra.mxu0 %v12342_v63  ;;  %7109 = vmatprep.mubr.f32.mxu0 %v12785_v2  ;;  %v7967_v63 = vcombine.high %v8897_v62, %v8897_v62 }
0x108e   :  { %12345 = vmatprep.subr.bf16.mxu0 %v12344_v1 }
0x108f   :  { %8034 = vmatprep.mubr.f32.mxu1 %v7967_v63  ;;  %v8901_v63 = vld [vmem:[%s15376_s3 + $0xbd8] sm:$0xff] }
0x1090   :  { %8035 = vmatmul.mubr.f32.vlgmr.msra.gmra.mrb[58].mxu1 %v8897_v62  ;;  %v8899_v62 = vld [vmem:[%s15376_s3 + $0xbc8] sm:$0xff] }
0x1091   :  { %12347 = vmatpush1.bf16.msra.mxu0 %v12346_v11  ;;  %v8875_v11 = vld [vmem:[%s15376_s3 + $0xb38] sm:$0xff] }
0x1092   :  { %12381 = vmatprep.subr.bf16.mxu0 %v12380_v15  ;;  %v12462_v15 = vpack.c.bf16 %v8870_v6, %v8868_v5  ;;  %v12464_v18 = vpack.c.bf16 %v8875_v11, %v8873_v9 }
0x1094   :  { %8846 = vmatmul.mubr.msk.f32.vlgmr.msra.gmra.mrb[2].mxu0 %vm249_vm0, %v7032_v23  ;;  %v8881_v23 = vld [vmem:[%s15376_s3 + $0xb58] sm:$0xff] }
0x1095   :  { %12383 = vmatpush1.bf16.msra.mxu0 %v12382_v22  ;;  %7277 = vmatprep.mubr.f32.mxu0 %v12785_v2  ;;  %v8879_v22 = vld [vmem:[%s15376_s3 + $0xb48] sm:$0xff] }
0x1096   :  { %12385 = vmatprep.subr.bf16.mxu0 %v12384_v24  ;;  %v12466_v24 = vpack.c.bf16 %v8874_v38, %v8872_v21  ;;  %v12500_v26 = vpack.c.bf16 %v8881_v23, %v8879_v22 }
0x1099   :  { %12387 = vmatpush1.bf16.msra.mxu0 %v12386_v29  ;;  %v8880_v29 = vld [vmem:[%s15376_s3 + $0xb50] sm:$0xff] }
0x109a   :  { %12389 = vmatprep.subr.bf16.mxu0 %v12836_v3 }
0x109c   :  { %8856 = vmatmul.mubr.msk.f32.vlgmr.msra.gmra.mrb[2].mxu0 %vm249_vm0, %v7200_v32  ;;  %v8885_v32 = vld [vmem:[%s15376_s3 + $0xb78] sm:$0xff] }
0x109d   :  { %12391 = vmatpush3.bf16.msra.mxu0 %v12847_v7  ;;  %7362 = vmatprep.mubr.f32.mxu0 %v7295_v33  ;;  %v12502_v33 = vpack.c.bf16 %v8880_v29, %v8878_v27  ;;  %v8907_v29 = vld.sshfl [vmem:[%s15373_s0 + $0xc0] sm:$0x33 pattern:$0x76325410] }
0x109e   :  { %12393 = vmatprep.subr.bf16.mxu0 %v12849_v8 }
0x10a1   :  { %12395 = vmatpush3.bf16.msra.mxu0 %v12866_v13 }
0x10a2   :  { %12397 = vmatprep.subr.bf16.mxu0 %v12870_v14 }
0x10a5   :  { %12399 = vmatpush3.bf16.msra.mxu0 %v12886_v19 }
0x10a6   :  { %12401 = vmatprep.subr.bf16.mxu0 %v12890_v20 }
0x10a9   :  { %12403 = vmatpush3.bf16.msra.mxu0 %v12912_v28 }
0x10aa   :  { %12405 = vmatprep.subr.bf16.mxu0 %v12916_v30 }
0x10ad   :  { %12407 = vmatpush3.bf16.msra.mxu0 %v12932_v35 }
0x10ae   :  { %12409 = vmatprep.subr.bf16.mxu0 %v12936_v36 }
0x10b1   :  { %12411 = vmatpush3.bf16.msra.mxu0 %v12952_v41 }
0x10b2   :  { %12413 = vmatprep.subr.bf16.mxu0 %v12956_v42 }
0x10b5   :  { %12415 = vmatpush3.bf16.msra.mxu0 %v12972_v47 }
0x10b6   :  { %12417 = vmatprep.subr.bf16.mxu0 %v12976_v48 }
0x10b9   :  { %12419 = vmatpush3.bf16.msra.mxu0 %v12986_v51 }
0x10ba   :  { %12421 = vmatprep.subr.bf16.mxu0 %v12420_v37  ;;  %v8882_v37 = vld [vmem:[%s15376_s3 + $0xb60] sm:$0xff] }
0x10bb   :  { %v12506_v43 = vpack.c.bf16 %v8884_v39, %v8882_v37  ;;  %v8312_v39 = vld [vmem:[%s15378_s5 + $0x10] sm:$0xff] }
0x10bc   :  { %7363 = vmatmul.mubr.f32.vlgmr.msra.gmra.mrb[34].mxu0 %v8857_v31  ;;  %v8883_v31 = vld [vmem:[%s15376_s3 + $0xb68] sm:$0xff] }
0x10bd   :  { %7445 = vmatprep.mubr.f32.mxu0 %v12785_v2  ;;  %12423 = vmatpush1.bf16.msra.mxu0 %v12422_v46  ;;  %v12504_v17 = vpack.c.bf16 %v8885_v32, %v8883_v31  ;;  %v7799_v46 = vcombine.high %v8887_v44, %v8887_v44  ;;  %v8135_v32 = vcombine.high %v8907_v29, %v8907_v29 }
0x10be   :  { %12425 = vmatprep.subr.bf16.mxu0 %v12424_v52  ;;  %v12540_v52 = vpack.c.bf16 %v8891_v50, %v8889_v49  ;;  %v8314_v49 = vld [vmem:[%s15378_s5 + $0x20] sm:$0xff]  ;;  %v8315_v50 = vld [vmem:[%s15378_s5 + $0x28] sm:$0xff] }
0x10c1   :  { %12427 = vmatpush1.bf16.msra.mxu0 %v12426_v55  ;;  %v12542_v55 = vpack.c.bf16 %v8890_v54, %v8888_v53  ;;  %v8333_v53 = vld [vmem:[%s15378_s5 + $0xb8] sm:$0xff]  ;;  %v12638_v54 = vpack.c.bf16 %v8315_v50, %v8314_v49 }
0x10c2   :  { %12461 = vmatprep.subr.bf16.mxu0 %v12460_v58  ;;  %v12544_v58 = vpack.c.bf16 %v8895_v57, %v8893_v56  ;;  %v8316_v56 = vld [vmem:[%s15378_s5 + $0x30] sm:$0xff]  ;;  %v8317_v57 = vld [vmem:[%s15378_s5 + $0x38] sm:$0xff] }
0x10c3   :  { %v12642_v10 = vpack.c.bf16 %v8317_v57, %v8316_v56 }
0x118f   :  { %v10455_v0 = vpop.f32.mrb[34].mxu0 }
0x1190   :  { %v10456_v1 = vpop.f32.mrb[35].mxu0 }
0x1191   :  { %v10457_v4 = vadd.f32 %v10456_v1, %v10455_v0  ;;  %v12580_v0 = vpack.c.bf16 %v8901_v63, %v8899_v62  ;;  %v10595_v1 = vpop.f32.mrb[58].mxu1  ;;  %v8318_v62 = vld [vmem:[%s15378_s5 + $0x40] sm:$0xff]  ;;  %v8319_v63 = vld [vmem:[%s15378_s5 + $0x48] sm:$0xff] }
0x1193   :  { %v7365_v12 = vadd.f32 %v14995_v61, %v10457_v4  ;;  %v10596_v4 = vpop.f32.mrb[59].mxu1 }
0x1194   :  { %v10597_v5 = vadd.f32 %v10596_v4, %v10595_v1  ;;  %v8337_v1 = vld [vmem:[%s15378_s5 + $0xd8] sm:$0xff]  ;;  %v12646_v4 = vpack.c.bf16 %v8319_v63, %v8318_v62 }
0x1195   :  { %v7368_v16 = vmax.f32 %v7365_v12, 0.0  ;;  %v8898_v12 = vld [vmem:[%s15376_s3 + $0xbc0] sm:$0xff] }
0x1197   :  { %8866 = vmatmul.mubr.msk.f32.vlgmr.msra.gmra.mrb[2].mxu0 %vm249_vm0, %v7368_v16  ;;  %v8903_v16 = vld [vmem:[%s15376_s3 + $0xbe8] sm:$0xff] }
0x1198   :  { %12463 = vmatpush1.bf16.msra.mxu0 %v12462_v15  ;;  %7613 = vmatprep.mubr.f32.mxu0 %v12785_v2  ;;  %v8900_v15 = vld [vmem:[%s15376_s3 + $0xbd0] sm:$0xff] }
0x1199   :  { %12465 = vmatprep.subr.bf16.mxu0 %v12464_v18  ;;  %v8905_v18 = vld [vmem:[%s15376_s3 + $0xbf8] sm:$0xff]  ;;  %v12582_v38 = vpack.c.bf16 %v8900_v15, %v8898_v12  ;;  %v8339_v12 = vld [vmem:[%s15378_s5 + $0xe8] sm:$0xff] }
0x119a   :  { %v12584_v23 = vpack.c.bf16 %v8905_v18, %v8903_v16 }
0x119c   :  { %12467 = vmatpush1.bf16.msra.mxu0 %v12466_v24  ;;  %v8902_v24 = vld [vmem:[%s15376_s3 + $0xbe0] sm:$0xff] }
0x119d   :  { %12501 = vmatprep.subr.bf16.mxu0 %v12500_v26  ;;  %v8037_v26 = vadd.f32 %v14995_v61, %v10597_v5  ;;  %v12586_v27 = vpack.c.bf16 %v8904_v25, %v8902_v24  ;;  %v8322_v24 = vld [vmem:[%s15378_s5 + $0x60] sm:$0xff]  ;;  %v8323_v25 = vld [vmem:[%s15378_s5 + $0x68] sm:$0xff] }
0x119f   :  { %8876 = vmatmul.mubr.msk.f32.vlgmr.msra.gmra.mrb[2].mxu0 %vm249_vm0, %v7536_v34  ;;  %v8040_v31 = vmax.f32 %v8037_v26, 0.0  ;;  %v8329_v34 = vld [vmem:[%s15378_s5 + $0x98] sm:$0xff]  ;;  %v12654_v26 = vpack.c.bf16 %v8323_v25, %v8322_v24 }
0x11a0   :  { %12503 = vmatpush1.bf16.msra.mxu0 %v12502_v33  ;;  %7781 = vmatprep.mubr.f32.mxu0 %v12785_v2  ;;  %v8328_v33 = vld [vmem:[%s15378_s5 + $0x90] sm:$0xff] }
0x11a1   :  { %12505 = vmatprep.subr.bf16.mxu0 %v12504_v17  ;;  %v12632_v37 = vpack.c.bf16 %v8329_v34, %v8328_v33 }
0x11a4   :  { %12507 = vmatpush1.bf16.msra.mxu0 %v12506_v43  ;;  %v8330_v43 = vld [vmem:[%s15378_s5 + $0xa0] sm:$0xff] }
0x11a5   :  { %12509 = vmatprep.subr.bf16.mxu0 %v12836_v3 }
0x11a7   :  { %8886 = vmatmul.mubr.msk.f32.vlgmr.msra.gmra.mrb[2].mxu0 %vm249_vm0, %v7704_v45  ;;  %v12634_v45 = vpack.c.bf16 %v8313_v40, %v8312_v39 }
0x11a8   :  { %12511 = vmatpush3.bf16.msra.mxu0 %v12847_v7  ;;  %7866 = vmatprep.mubr.f32.mxu0 %v7799_v46 }
0x11a9   :  { %12513 = vmatprep.subr.bf16.mxu0 %v12849_v8 }
0x11ac   :  { %12515 = vmatpush3.bf16.msra.mxu0 %v12866_v13 }
0x11ad   :  { %12517 = vmatprep.subr.bf16.mxu0 %v12870_v14 }
0x11b0   :  { %12519 = vmatpush3.bf16.msra.mxu0 %v12886_v19 }
0x11b1   :  { %12521 = vmatprep.subr.bf16.mxu0 %v12890_v20 }
0x11b4   :  { %12523 = vmatpush3.bf16.msra.mxu0 %v12912_v28 }
0x11b5   :  { %12525 = vmatprep.subr.bf16.mxu0 %v12916_v30 }
0x11b8   :  { %12527 = vmatpush3.bf16.msra.mxu0 %v12932_v35 }
0x11b9   :  { %12529 = vmatprep.subr.bf16.mxu0 %v12936_v36 }
0x11bc   :  { %12531 = vmatpush3.bf16.msra.mxu0 %v12952_v41 }
0x11bd   :  { %12533 = vmatprep.subr.bf16.mxu0 %v12956_v42 }
0x11c0   :  { %12535 = vmatpush3.bf16.msra.mxu0 %v12972_v47 }
0x11c1   :  { %12537 = vmatprep.subr.bf16.mxu0 %v12976_v48 }
0x11c4   :  { %12539 = vmatpush3.bf16.msra.mxu0 %v12986_v51 }
0x11c5   :  { %12541 = vmatprep.subr.bf16.mxu0 %v12540_v52  ;;  %v8332_v52 = vld [vmem:[%s15378_s5 + $0xb0] sm:$0xff] }
0x11c7   :  { %7867 = vmatmul.mubr.f32.vlgmr.msra.gmra.mrb[36].mxu0 %v8887_v44  ;;  %v8331_v44 = vld [vmem:[%s15378_s5 + $0xa8] sm:$0xff] }
0x11c8   :  { %7949 = vmatprep.mubr.f32.mxu0 %v12785_v2  ;;  %12543 = vmatpush1.bf16.msra.mxu0 %v12542_v55  ;;  %v12636_v46 = vpack.c.bf16 %v8331_v44, %v8330_v43  ;;  %v12640_v55 = vpack.c.bf16 %v8333_v53, %v8332_v52 }
0x11c9   :  { %12545 = vmatprep.subr.bf16.mxu0 %v12544_v58  ;;  %v8334_v58 = vld [vmem:[%s15378_s5 + $0xc0] sm:$0xff] }
0x11cc   :  { %12547 = vmatpush1.bf16.msra.mxu0 %v12546_v60  ;;  %v12644_v60 = vpack.c.bf16 %v8335_v59, %v8334_v58 }
0x11cd   :  { %12581 = vmatprep.subr.bf16.mxu0 %v12580_v0  ;;  %v8336_v0 = vld [vmem:[%s15378_s5 + $0xd0] sm:$0xff] }
0x11ce   :  { %v12648_v5 = vpack.c.bf16 %v8337_v1, %v8336_v0 }
0x129a   :  { %v10560_v6 = vpop.f32.mrb[36].mxu0 }
0x129b   :  { %v10561_v9 = vpop.f32.mrb[37].mxu0 }
0x129c   :  { %v10562_v11 = vadd.f32 %v10561_v9, %v10560_v6  ;;  %v8320_v6 = vld [vmem:[%s15378_s5 + $0x50] sm:$0xff]  ;;  %v8321_v9 = vld [vmem:[%s15378_s5 + $0x58] sm:$0xff] }
0x129d   :  { %v12650_v15 = vpack.c.bf16 %v8321_v9, %v8320_v6 }
0x129e   :  { %v7869_v21 = vadd.f32 %v14995_v61, %v10562_v11  ;;  %v8338_v11 = vld [vmem:[%s15378_s5 + $0xe0] sm:$0xff] }
0x129f   :  { %v12652_v16 = vpack.c.bf16 %v8339_v12, %v8338_v11 }
0x12a0   :  { %v7872_v22 = vmax.f32 %v7869_v21, 0.0 }
0x12a2   :  { %8896 = vmatmul.mubr.msk.f32.vlgmr.msra.gmra.mrb[2].mxu0 %vm249_vm0, %v7872_v22 }
0x12a3   :  { %12583 = vmatpush1.bf16.msra.mxu0 %v12582_v38  ;;  %8117 = vmatprep.mubr.f32.mxu0 %v12785_v2 }
0x12a4   :  { %12585 = vmatprep.subr.bf16.mxu0 %v12584_v23 }
0x12a7   :  { %12587 = vmatpush1.bf16.msra.mxu0 %v12586_v27  ;;  %v8340_v27 = vld [vmem:[%s15378_s5 + $0xf0] sm:$0xff] }
0x12a8   :  { %12589 = vmatprep.subr.bf16.mxu0 %v12836_v3  ;;  %v8909_v3 = vld [vmem:[%s15376_s3 + $0xc08] sm:$0xff] }
0x12aa   :  { %8906 = vmatmul.mubr.msk.f32.vlgmr.msra.gmra.mrb[2].mxu0 %vm249_vm0, %v8040_v31  ;;  %v8324_v31 = vld [vmem:[%s15378_s5 + $0x70] sm:$0xff] }
0x12ab   :  { %12591 = vmatpush3.bf16.msra.mxu0 %v12847_v7  ;;  %8202 = vmatprep.mubr.f32.mxu0 %v8135_v32  ;;  %v8911_v7 = vld [vmem:[%s15376_s3 + $0xc18] sm:$0xff] }
0x12ac   :  { %12593 = vmatprep.subr.bf16.mxu0 %v12849_v8  ;;  %v12620_v8 = vpack.c.bf16 %v8911_v7, %v8909_v3  ;;  %v8325_v32 = vld [vmem:[%s15378_s5 + $0x78] sm:$0xff]  ;;  %v8296_v7 = vlaneseq }
0x12ad   :  { %v12658_v3 = vpack.c.bf16 %v8325_v32, %v8324_v31 }
0x12af   :  { %12595 = vmatpush3.bf16.msra.mxu0 %v12866_v13  ;;  %v8908_v13 = vld [vmem:[%s15376_s3 + $0xc00] sm:$0xff] }
0x12b0   :  { %12597 = vmatprep.subr.bf16.mxu0 %v12870_v14  ;;  %v8910_v14 = vld [vmem:[%s15376_s3 + $0xc10] sm:$0xff] }
0x12b3   :  { %12599 = vmatpush3.bf16.msra.mxu0 %v12886_v19  ;;  %v12622_v19 = vpack.c.bf16 %v8910_v14, %v8908_v13  ;;  %v8294_v14 = vld [vmem:[%s15377_s4] sm:$0x3]  ;;  %s12761_s4 = scalar_lea.vmem %s8427_s25, 32 }
0x12b4   :  { %12601 = vmatprep.subr.bf16.mxu0 %v12890_v20  ;;  %v8913_v20 = vld [vmem:[%s15376_s3 + $0xc28] sm:$0xff]  ;;  %p12762_p0 = scmp.ne.s32.totalorder %s8427_s25, %s12761_s4  ;;  %p12767_p2 = scmp.lt.s32.totalorder %s12761_s4, %s12761_s4 }
0x12b6   :  { %p12768_p3 = por %p12767_p2, %p12766_p1 }
0x12b7   :  { %12603 = vmatpush3.bf16.msra.mxu0 %v12912_v28  ;;  %v8915_v28 = vld [vmem:[%s15376_s3 + $0xc38] sm:$0xff] }
0x12b8   :  { %12605 = vmatprep.subr.bf16.mxu0 %v12916_v30  ;;  %v12624_v30 = vpack.c.bf16 %v8915_v28, %v8913_v20  ;;  %p12769_p4 = pnand %p12768_p3, %p12762_p0 }
0x12bb   :  { %12607 = vmatpush3.bf16.msra.mxu0 %v12932_v35  ;;  %v8912_v35 = vld [vmem:[%s15376_s3 + $0xc20] sm:$0xff] }
0x12bc   :  { %12609 = vmatprep.subr.bf16.mxu0 %v12936_v36  ;;  %v8914_v36 = vld [vmem:[%s15376_s3 + $0xc30] sm:$0xff] }
0x12bf   :  { %12611 = vmatpush3.bf16.msra.mxu0 %v12952_v41  ;;  %v12626_v41 = vpack.c.bf16 %v8914_v36, %v8912_v35 }
0x12c0   :  { %12613 = vmatprep.subr.bf16.mxu0 %v12956_v42  ;;  %v8326_v42 = vld [vmem:[%s15378_s5 + $0x80] sm:$0xff] }
0x12c3   :  { %12615 = vmatpush3.bf16.msra.mxu0 %v12972_v47  ;;  %v8327_v47 = vld [vmem:[%s15378_s5 + $0x88] sm:$0xff] }
0x12c4   :  { %12617 = vmatprep.subr.bf16.mxu0 %v12976_v48  ;;  %v8310_v48 = vld [vmem:[%s15378_s5] sm:$0xff] }
0x12c7   :  { %12619 = vmatpush3.bf16.msra.mxu0 %v12986_v51  ;;  %v12628_v51 = vpack.c.bf16 %v8327_v47, %v8326_v42 }
0x12c8   :  { %12621 = vmatprep.subr.bf16.mxu0 %v12620_v8  ;;  %v8297_v8 = vshrl.u32 %v8296_v7, 7 }
0x12c9   :  { %12629 = vmatprep.subr.bf16.mxu1 %v12628_v51 }
0x12ca   :  { %8203 = vmatmul.mubr.f32.vlgmr.msra.gmra.mrb[38].mxu0 %v8907_v29  ;;  %v8298_v13 = vsub.s32 0, %v8297_v8 }
0x12cb   :  { %8285 = vmatprep.mubr.f32.mxu0 %v12785_v2  ;;  %12623 = vmatpush1.bf16.msra.mxu0 %v12622_v19  ;;  %v8311_v2 = vld [vmem:[%s15378_s5 + $0x8] sm:$0xff]  ;;  %v8302_v19 = vsub.s32 1, %v8297_v8 }
0x12cc   :  { %12625 = vmatprep.subr.bf16.mxu0 %v12624_v30  ;;  %v12630_v17 = vpack.c.bf16 %v8311_v2, %v8310_v48  ;;  %v8299_v20 = vrot.slane %v8294_v14, %v8298_v13  ;;  %v8917_v2 = vld [vmem:[%s15379_s6] ss:$0 sm:$0xff] }
0x12cd   :  { %v8303_v28 = vrot.slane %v8294_v14, %v8302_v19 }
0x12ce   :  { %12631 = vmatpush3.bf16.msra.mxu1 %v12630_v17 }
0x12cf   :  { %12627 = vmatpush1.bf16.msra.mxu0 %v12626_v41  ;;  %12633 = vmatprep.subr.bf16.mxu1 %v12632_v37 }
0x12d2   :  { %12635 = vmatpush3.bf16.msra.mxu1 %v12634_v45 }
0x12d3   :  { %12637 = vmatprep.subr.bf16.mxu1 %v12636_v46 }
0x12d6   :  { %12639 = vmatpush3.bf16.msra.mxu1 %v12638_v54 }
0x12d7   :  { %12641 = vmatprep.subr.bf16.mxu1 %v12640_v55 }
0x12da   :  { %12643 = vmatpush3.bf16.msra.mxu1 %v12642_v10 }
0x12db   :  { %12645 = vmatprep.subr.bf16.mxu1 %v12644_v60 }
0x12de   :  { %12647 = vmatpush3.bf16.msra.mxu1 %v12646_v4 }
0x12df   :  { %12649 = vmatprep.subr.bf16.mxu1 %v12648_v5 }
0x12e2   :  { %12651 = vmatpush3.bf16.msra.mxu1 %v12650_v15 }
0x12e3   :  { %12653 = vmatprep.subr.bf16.mxu1 %v12652_v16 }
0x12e6   :  { %12655 = vmatpush3.bf16.msra.mxu1 %v12654_v26 }
0x139d   :  { %v10630_v18 = vpop.f32.mrb[38].mxu0 }
0x139e   :  { %v10631_v21 = vpop.f32.mrb[39].mxu0 }
0x139f   :  { %v10632_v38 = vadd.f32 %v10631_v21, %v10630_v18 }
0x13a1   :  { %v8205_v22 = vadd.f32 %v14995_v61, %v10632_v38  ;;  %v8341_v61 = vld [vmem:[%s15378_s5 + $0xf8] sm:$0xff] }
0x13a2   :  { %v12656_v29 = vpack.c.bf16 %v8341_v61, %v8340_v27 }
0x13a3   :  { %v8208_v23 = vmax.f32 %v8205_v22, 0.0 }
0x13a4   :  { %12657 = vmatprep.subr.bf16.mxu1 %v12656_v29 }
0x13a5   :  { %8916 = vmatmul.mubr.msk.f32.vlgmr.msra.gmra.mrb[2].mxu0 %vm249_vm0, %v8208_v23  ;;  %12659 = vmatpush3.bf16.msra.mxu1 %v12658_v3 }
0x1478   :  { %v8287_v30 = vpop.f32.mrb[2].mxu0 }
0x1479   :  { %v8306_v35 = vadd.f32 %v8299_v20, %v8287_v30  ;;  %v8289_v36 = vpop.f32.mrb[3].mxu0 }
0x147a   :  { %v8307_v41 = vadd.f32 %v8303_v28, %v8289_v36 }
0x147b   :  { %v8308_v47 = vmax.f32 %v8306_v35, 0.0 }
0x147c   :  { %v8309_v42 = vmax.f32 %v8307_v41, 0.0 }
0x147e   :  { %8413 = vmatprep.mubr.f32.mxu1 %v8309_v42 }
0x147f   :  { %8414 = vmatmul.mubr.f32.vlgmr.msra.gmra.mrb[60].mxu1 %v8308_v47 }
0x1552   :  { %v10665_v48 = vpop.f32.mrb[60].mxu1 }
0x1553   :  { %v10666_v51 = vpop.f32.mrb[61].mxu1 }
0x1554   :  { %v10667_v33 = vadd.f32 %v10666_v51, %v10665_v48 }
0x1556   :  { %v8416_v34 = vadd.f32 %v10667_v33, %v8917_v2 }
0x1558   :  { %8419 = vst [vmem:[#allocation2] sm:$0x3] %v8416_v34 }
0x1559   :  { %12772 = shalt.err (!%p12769_p4)
}
0x155a   :  { %s12773_s28 = scalar_lea.hbm %s15380_s7, 32 }
0x155b   :  { %p12774_p5 = scmp.ne.s32.totalorder %s15380_s7, %s12773_s28  ;;  %p12777_p6 = scmp.lt.u32.totalorder %s12773_s28, %s15380_s7 }
0x155d   :  { %p12779_p7 = pnand %p12777_p6, %p12774_p5 }
0x155f   :  { %12782 = shalt.err (!%p12779_p7)
}
0x1560   :  { %8429 = dma.vmem_to_hbm [thread:$0]  %s8427_s25, 32, %s15380_s7, [#allocation3]  }
0x1561   :  { %12783 = dma.done.wait [#allocation3], 32  }
0x1562   :  { %12784 = vsyncadd [#allocation3], 4294967264 }
0x1563   :  { %8433 = vsyncpa [#allocation3], 1 }

</bundles_post_ra>
